<compile_context>
chip_gen: v7x
topology: tpu7x:2x2x1
jax: 0.10.0
libtpu: 0.0.40
codegen_flags: <defaults>
</compile_context>

<pallas_src>
import functools

import jax
import jax.numpy as jnp
from jax import lax
from jax.experimental import pallas as pl
from jax.experimental.pallas import tpu as pltpu

# ----------------------------- config (lane-dense) ---------------------------
HIDDEN = 512
NUM_HEADS = 4
NUM_KV_HEADS = 2
HEAD_DIM = HIDDEN // NUM_HEADS            # 128
HALF = HEAD_DIM // 2                      # 64
Q_SIZE = NUM_HEADS * HEAD_DIM             # 512
KV_SIZE = NUM_KV_HEADS * HEAD_DIM         # 256
GROUPS = NUM_HEADS // NUM_KV_HEADS        # 2
QKV_WIDTH = NUM_KV_HEADS * (GROUPS + 2) * HEAD_DIM   # 1024
INTERMEDIATE = 512
SEQ = 128
RMS_EPS = 1e-6
ROPE_THETA = 10000.0
SCALE = HEAD_DIM ** -0.5
NEG_INF = -1e30                           # f32 additive mask constant


# ------------------------------ fused kernel ---------------------------------
def _decoder_layer_kernel(has_residual, *refs):
    if has_residual:
        (x_ref, res_ref, cossin_ref, norms_ref,
         wqkv_ref, wo_ref, wgu_ref, w2_ref,
         out_ref, res_out_ref, attn_scratch) = refs
    else:
        (x_ref, cossin_ref, norms_ref,
         wqkv_ref, wo_ref, wgu_ref, w2_ref,
         out_ref, res_out_ref, attn_scratch) = refs
        res_ref = None

    x = x_ref[...].astype(jnp.float32)                 # (S, H)
    S = x.shape[0]

    # ---- attention_norm: (optional residual add) + RMSNorm ----
    if res_ref is not None:
        s0 = x + res_ref[...].astype(jnp.float32)
    else:
        s0 = x
    attn_w = norms_ref[0:1, :]
    ffn_w = norms_ref[1:2, :]
    var = jnp.mean(s0 * s0, axis=-1, keepdims=True)
    h = (s0 * lax.rsqrt(var + RMS_EPS) * attn_w).astype(jnp.bfloat16)

    # ---- qkv projection (single MXU matmul, bf16 operands, f32 acc) ----
    qkv = jnp.dot(h, wqkv_ref[...], preferred_element_type=jnp.float32)  # (S, QKVW) f32

    # ---- neox RoPE: t*[cos,cos] + roll(t, D/2)*[-sin,sin]  (XLU roll) ----
    cos_full = cossin_ref[:, :HEAD_DIM]                # (S, D)
    sin_signed = cossin_ref[:, HEAD_DIM:]              # (S, D)

    def rope(t):                                       # t: (S, HEAD_DIM) f32
        return t * cos_full + pltpu.roll(t, HALF, 1) * sin_signed

    # ---- causal additive bias, tiled over the stacked query groups ----
    row = lax.broadcasted_iota(jnp.int32, (S, S), 0)
    col = lax.broadcasted_iota(jnp.int32, (S, S), 1)
    bias = jnp.where(col <= row, 0.0, NEG_INF).astype(jnp.float32)
    bias_g = jnp.concatenate([bias] * GROUPS, axis=0)  # (GROUPS*S, S)

    # ---- attention: one QK^T and one P*V dot per kv head (GQA sharing) ----
    stride = (GROUPS + 2) * HEAD_DIM                   # per-kv-head column stride
    for kv in range(NUM_KV_HEADS):
        base = kv * stride
        k_h = rope(qkv[:, base + GROUPS * HEAD_DIM:
                          base + (GROUPS + 1) * HEAD_DIM]).astype(jnp.bfloat16)
        v_h = qkv[:, base + (GROUPS + 1) * HEAD_DIM:
                     base + (GROUPS + 2) * HEAD_DIM].astype(jnp.bfloat16)
        q_stk = jnp.concatenate(
            [rope(qkv[:, base + g * HEAD_DIM: base + (g + 1) * HEAD_DIM])
             for g in range(GROUPS)], axis=0).astype(jnp.bfloat16)   # (G*S, D)

        s = lax.dot_general(q_stk, k_h, (((1,), (1,)), ((), ())),
                            preferred_element_type=jnp.float32) * SCALE   # (G*S, S)
        s = s + bias_g
        m = jnp.max(s, axis=-1, keepdims=True)
        e = jnp.exp(s - m)
        denom = jnp.sum(e, axis=-1, keepdims=True)
        p = (e * pl.reciprocal(denom, approx=True)).astype(jnp.bfloat16)  # EUP slot
        pv = jnp.dot(p, v_h, preferred_element_type=jnp.float32)          # (G*S, D)

        for g in range(GROUPS):
            head = kv * GROUPS + g
            attn_scratch[:, head * HEAD_DIM:(head + 1) * HEAD_DIM] = \
                pv[g * S:(g + 1) * S, :]

    attn = attn_scratch[...].astype(jnp.bfloat16)                          # (S, Q_SIZE)
    o = jnp.dot(attn, wo_ref[...], preferred_element_type=jnp.float32)     # (S, H)

    # ---- ffn_norm: fused residual add + RMSNorm ----
    s1 = o + s0
    res_out_ref[...] = s1.astype(res_out_ref.dtype)
    var2 = jnp.mean(s1 * s1, axis=-1, keepdims=True)
    h2 = (s1 * lax.rsqrt(var2 + RMS_EPS) * ffn_w).astype(jnp.bfloat16)

    # ---- SwiGLU MLP: fused gate/up matmul, split, silu*up, down ----
    gu = jnp.dot(h2, wgu_ref[...], preferred_element_type=jnp.float32)     # (S, 2I)
    gate = gu[:, :INTERMEDIATE]
    up = gu[:, INTERMEDIATE:]
    act = (gate * jax.nn.sigmoid(gate) * up).astype(jnp.bfloat16)
    out_ref[...] = jnp.dot(
        act, w2_ref[...], preferred_element_type=jnp.float32
    ).astype(out_ref.dtype)


# ------------------------------ wrappers --------------------------------------
def _rope_tables(positions):
    """Packed full-width tables: [:, :D] = [cos,cos], [:, D:] = [-sin,sin]."""
    inv_freq = 1.0 / (
        ROPE_THETA ** (jnp.arange(0, HEAD_DIM, 2, dtype=jnp.float32) / HEAD_DIM)
    )
    freqs = positions.astype(jnp.float32)[:, None] * inv_freq[None, :]   # (S, HALF)
    cos, sin = jnp.cos(freqs), jnp.sin(freqs)
    cos_full = jnp.concatenate([cos, cos], axis=-1)                      # (S, D)
    sin_signed = jnp.concatenate([-sin, sin], axis=-1)                   # (S, D)
    return jnp.concatenate([cos_full, sin_signed], axis=-1)              # (S, 2D)


def decoder_layer_forward(positions, hidden_states, params, residual=None):
    S, H = hidden_states.shape
    cossin = _rope_tables(positions)
    has_residual = residual is not None

    args = [hidden_states]
    if has_residual:
        args.append(residual)
    args += [cossin, params["norms"],
             params["wqkv_t"], params["wo_t"], params["wgu_t"], params["w2_t"]]

    flops = (2 * S * H * QKV_WIDTH
             + 2 * NUM_HEADS * S * S * HEAD_DIM * 2
             + 2 * S * Q_SIZE * H
             + 2 * S * H * 2 * INTERMEDIATE
             + 2 * S * INTERMEDIATE * H)
    transcendentals = NUM_HEADS * S * S + S * INTERMEDIATE + 2 * S
    bytes_accessed = int(sum(a.size * a.dtype.itemsize for a in args)
                         + 2 * S * H * hidden_states.dtype.itemsize)

    out, res_out = pl.pallas_call(
        functools.partial(_decoder_layer_kernel, has_residual),
        out_shape=(
            jax.ShapeDtypeStruct((S, H), hidden_states.dtype),
            jax.ShapeDtypeStruct((S, H), hidden_states.dtype),
        ),
        scratch_shapes=[pltpu.VMEM((S, Q_SIZE), jnp.float32)],
        compiler_params=pltpu.CompilerParams(vmem_limit_bytes=32 * 1024 * 1024),
        cost_estimate=pl.CostEstimate(flops=flops,
                                      transcendentals=transcendentals,
                                      bytes_accessed=bytes_accessed),
    )(*args)
    return out, res_out


# ----------------------- pure-JAX reference (for checking) -------------------
def ref_forward(positions, hidden_states, params, residual=None):
    attn_w, ffn_w = params["norms"][0], params["norms"][1]

    def rms(x, w):
        var = jnp.mean(x * x, axis=-1, keepdims=True)
        return x * lax.rsqrt(var + RMS_EPS) * w

    x = hidden_states.astype(jnp.float32)
    if residual is None:
        residual = x
        h = rms(x, attn_w)
    else:
        s = x + residual.astype(jnp.float32)
        residual = s
        h = rms(s, attn_w)

    S = h.shape[0]
    qkv = jnp.dot(h.astype(jnp.bfloat16), params["wqkv_t"],
                  preferred_element_type=jnp.float32)
    qkv = qkv.reshape(S, NUM_KV_HEADS, GROUPS + 2, HEAD_DIM)
    q = qkv[:, :, :GROUPS, :].reshape(S, NUM_HEADS, HEAD_DIM).transpose(1, 0, 2)
    k = qkv[:, :, GROUPS, :].transpose(1, 0, 2)
    v = qkv[:, :, GROUPS + 1, :].transpose(1, 0, 2)

    inv_freq = 1.0 / (
        ROPE_THETA ** (jnp.arange(0, HEAD_DIM, 2, dtype=jnp.float32) / HEAD_DIM))
    freqs = positions.astype(jnp.float32)[:, None] * inv_freq[None, :]
    cos, sin = jnp.cos(freqs), jnp.sin(freqs)

    def rope(t):                                     # (heads, S, D)
        t1, t2 = t[..., :HALF], t[..., HALF:]
        c, s_ = cos[None], sin[None]
        return jnp.concatenate([t1 * c - t2 * s_, t2 * c + t1 * s_], axis=-1)

    q, k = rope(q), rope(k)
    k_rep = jnp.repeat(k, GROUPS, axis=0)
    v_rep = jnp.repeat(v, GROUPS, axis=0)
    scores = jnp.einsum("hqd,hkd->hqk", q.astype(jnp.bfloat16),
                        k_rep.astype(jnp.bfloat16),
                        preferred_element_type=jnp.float32) * SCALE
    mask = jnp.tril(jnp.ones((S, S), bool))
    scores = jnp.where(mask[None], scores, NEG_INF)
    m = jnp.max(scores, axis=-1, keepdims=True)
    e = jnp.exp(scores - m)
    p = e / jnp.sum(e, axis=-1, keepdims=True)
    o = jnp.einsum("hqk,hkd->hqd", p.astype(jnp.bfloat16),
                   v_rep.astype(jnp.bfloat16),
                   preferred_element_type=jnp.float32)
    attn_out = o.transpose(1, 0, 2).reshape(S, Q_SIZE)
    ho = jnp.dot(attn_out.astype(jnp.bfloat16), params["wo_t"],
                 preferred_element_type=jnp.float32)

    s = ho + residual
    residual = s
    h = rms(s, ffn_w)

    gu = jnp.dot(h.astype(jnp.bfloat16), params["wgu_t"],
                 preferred_element_type=jnp.float32)
    gate, up = gu[:, :INTERMEDIATE], gu[:, INTERMEDIATE:]
    act = gate * jax.nn.sigmoid(gate) * up
    out = jnp.dot(act.astype(jnp.bfloat16), params["w2_t"],
                  preferred_element_type=jnp.float32)
    return out.astype(hidden_states.dtype), residual.astype(hidden_states.dtype)


# --------------------------------- main ---------------------------------------
def make_params(key):
    ks = jax.random.split(key, 4)
    wqkv = jax.random.normal(ks[0], (HIDDEN, QKV_WIDTH), jnp.float32) * 0.02
    wo = jax.random.normal(ks[1], (Q_SIZE, HIDDEN), jnp.float32) * 0.02
    wgu = jax.random.normal(ks[2], (HIDDEN, 2 * INTERMEDIATE), jnp.float32) * 0.02
    w2 = jax.random.normal(ks[3], (INTERMEDIATE, HIDDEN), jnp.float32) * 0.02
    norms = jnp.stack([jnp.ones((HIDDEN,), jnp.float32),
                       jnp.ones((HIDDEN,), jnp.float32)], axis=0)
    return {
        "norms": norms,                         # (2, H): [attention_norm; ffn_norm]
        "wqkv_t": wqkv.astype(jnp.bfloat16),    # (H, (G+2)*kv*D)
        "wo_t": wo.astype(jnp.bfloat16),        # (Q_SIZE, H)
        "wgu_t": wgu.astype(jnp.bfloat16),      # (H, 2I)  [gate | up]
        "w2_t": w2.astype(jnp.bfloat16),        # (I, H)
    }


if __name__ == "__main__":
    key = jax.random.PRNGKey(0)
    kx, kp = jax.random.split(key)
    positions = jnp.arange(SEQ, dtype=jnp.int32)
    hidden_states = jax.random.normal(kx, (SEQ, HIDDEN), jnp.float32)
    params = make_params(kp)

    fwd = jax.jit(decoder_layer_forward)

    # first layer (residual=None path)
    out, res = fwd(positions, hidden_states, params, None)
    jax.block_until_ready((out, res))
    ref_out, ref_res = ref_forward(positions, hidden_states, params, None)
    assert jnp.allclose(out, ref_out, rtol=2e-2, atol=2e-3), "output mismatch (layer 0)"
    assert jnp.allclose(res, ref_res, rtol=2e-2, atol=2e-3), "residual mismatch (layer 0)"

    # second layer (fused add + RMSNorm residual path)
    out2, res2 = fwd(positions, out, params, res)
    jax.block_until_ready((out2, res2))
    ref_out2, ref_res2 = ref_forward(positions, ref_out, params, ref_res)
    assert jnp.allclose(out2, ref_out2, rtol=2e-2, atol=3e-3), "output mismatch (layer 1)"
    assert jnp.allclose(res2, ref_res2, rtol=2e-2, atol=3e-3), "residual mismatch (layer 1)"

    print("KERNEL_OK")
</pallas_src>

<mosaic_0001>
module attributes {stable_mosaic.version = 11 : i64} {
  func.func @_decoder_layer_kernel(%arg0: memref<128x512xf32, #tpu.memory_space<vmem>>, %arg1: memref<128x256xf32, #tpu.memory_space<vmem>>, %arg2: memref<2x512xf32, #tpu.memory_space<vmem>>, %arg3: memref<512x1024xbf16, #tpu.memory_space<vmem>>, %arg4: memref<512x512xbf16, #tpu.memory_space<vmem>>, %arg5: memref<512x1024xbf16, #tpu.memory_space<vmem>>, %arg6: memref<512x512xbf16, #tpu.memory_space<vmem>>, %arg7: memref<128x512xf32, #tpu.memory_space<vmem>>, %arg8: memref<128x512xf32, #tpu.memory_space<vmem>>, %arg9: memref<128x512xf32, #tpu.memory_space<vmem>>) attributes {dimension_semantics = [], scalar_prefetch = 0 : i64, scratch_operands = 1 : i64, tpu.core_type = #tpu.core_type<tc>} {
    %c0 = arith.constant 0 : index
    %c0_0 = arith.constant 0 : index
    %0 = vector.load %arg0[%c0, %c0_0] : memref<128x512xf32, #tpu.memory_space<vmem>>, vector<128x512xf32>
    %c0_1 = arith.constant 0 : index
    %c0_2 = arith.constant 0 : index
    %1 = vector.load %arg2[%c0_1, %c0_2] : memref<2x512xf32, #tpu.memory_space<vmem>>, vector<1x512xf32>
    %c1 = arith.constant 1 : index
    %c0_3 = arith.constant 0 : index
    %2 = vector.load %arg2[%c1, %c0_3] : memref<2x512xf32, #tpu.memory_space<vmem>>, vector<1x512xf32>
    %3 = arith.mulf %0, %0 : vector<128x512xf32>
    %cst = arith.constant dense<0.000000e+00> : vector<128xf32>
    %4 = vector.multi_reduction <add>, %3, %cst [1] : vector<128x512xf32> to vector<128xf32>
    %5 = vector.shape_cast %4 : vector<128xf32> to vector<128x1xf32>
    %cst_4 = arith.constant 5.120000e+02 : f32
    %6 = vector.broadcast %cst_4 : f32 to vector<128x1xf32>
    %7 = arith.divf %5, %6 : vector<128x1xf32>
    %cst_5 = arith.constant 9.99999997E-7 : f32
    %8 = vector.broadcast %cst_5 : f32 to vector<128x1xf32>
    %9 = arith.addf %7, %8 : vector<128x1xf32>
    %10 = math.rsqrt %9 : vector<128x1xf32>
    %11 = vector.broadcast %10 : vector<128x1xf32> to vector<128x512xf32>
    %12 = arith.mulf %0, %11 : vector<128x512xf32>
    %13 = vector.broadcast %1 : vector<1x512xf32> to vector<128x512xf32>
    %14 = arith.mulf %12, %13 : vector<128x512xf32>
    %15 = arith.truncf %14 : vector<128x512xf32> to vector<128x512xbf16>
    %c0_6 = arith.constant 0 : index
    %c0_7 = arith.constant 0 : index
    %16 = vector.load %arg3[%c0_6, %c0_7] : memref<512x1024xbf16, #tpu.memory_space<vmem>>, vector<512x1024xbf16>
    %cst_8 = arith.constant dense<0.000000e+00> : vector<128x1024xf32>
    %17 = tpu.matmul %15, %16, %cst_8 {dimension_numbers = #tpu.dot_dimension_numbers<[1], [0], [0], [1], [0, 0, 1, 1], [], []>} : vector<128x512xbf16>, vector<512x1024xbf16>, vector<128x1024xf32> -> vector<128x1024xf32>
    %c0_9 = arith.constant 0 : index
    %c0_10 = arith.constant 0 : index
    %18 = vector.load %arg1[%c0_9, %c0_10] : memref<128x256xf32, #tpu.memory_space<vmem>>, vector<128x128xf32>
    %c0_11 = arith.constant 0 : index
    %c128 = arith.constant 128 : index
    %19 = vector.load %arg1[%c0_11, %c128] : memref<128x256xf32, #tpu.memory_space<vmem>>, vector<128x128xf32>
    %20 = tpu.iota {dimensions = array<i32: 0>} : vector<128x128xi32>
    %21 = tpu.iota {dimensions = array<i32: 1>} : vector<128x128xi32>
    %22 = arith.cmpi sle, %21, %20 : vector<128x128xi32>
    %cst_12 = arith.constant 0.000000e+00 : f32
    %cst_13 = arith.constant -1.000000e+30 : f32
    %23 = vector.broadcast %cst_12 : f32 to vector<128x128xf32>
    %24 = vector.broadcast %cst_13 : f32 to vector<128x128xf32>
    %25 = arith.select %22, %23, %24 : vector<128x128xi1>, vector<128x128xf32>
    %26 = tpu.concatenate %25, %25 in 0 : vector<128x128xf32>, vector<128x128xf32> -> vector<256x128xf32>
    %27 = vector.extract_strided_slice %17 {offsets = [0, 256], sizes = [128, 128], strides = [1, 1]} : vector<128x1024xf32> to vector<128x128xf32>
    %28 = arith.mulf %27, %18 : vector<128x128xf32>
    %c64_i32 = arith.constant 64 : i32
    %29 = tpu.dynamic_rotate %27 by %c64_i32 dim 1 : vector<128x128xf32>, i32 -> vector<128x128xf32>
    %30 = arith.mulf %29, %19 : vector<128x128xf32>
    %31 = arith.addf %28, %30 : vector<128x128xf32>
    %32 = arith.truncf %31 : vector<128x128xf32> to vector<128x128xbf16>
    %33 = vector.extract_strided_slice %17 {offsets = [0, 384], sizes = [128, 128], strides = [1, 1]} : vector<128x1024xf32> to vector<128x128xf32>
    %34 = arith.truncf %33 : vector<128x128xf32> to vector<128x128xbf16>
    %35 = vector.extract_strided_slice %17 {offsets = [0, 0], sizes = [128, 128], strides = [1, 1]} : vector<128x1024xf32> to vector<128x128xf32>
    %36 = arith.mulf %35, %18 : vector<128x128xf32>
    %c64_i32_14 = arith.constant 64 : i32
    %37 = tpu.dynamic_rotate %35 by %c64_i32_14 dim 1 : vector<128x128xf32>, i32 -> vector<128x128xf32>
    %38 = arith.mulf %37, %19 : vector<128x128xf32>
    %39 = arith.addf %36, %38 : vector<128x128xf32>
    %40 = vector.extract_strided_slice %17 {offsets = [0, 128], sizes = [128, 128], strides = [1, 1]} : vector<128x1024xf32> to vector<128x128xf32>
    %41 = arith.mulf %40, %18 : vector<128x128xf32>
    %c64_i32_15 = arith.constant 64 : i32
    %42 = tpu.dynamic_rotate %40 by %c64_i32_15 dim 1 : vector<128x128xf32>, i32 -> vector<128x128xf32>
    %43 = arith.mulf %42, %19 : vector<128x128xf32>
    %44 = arith.addf %41, %43 : vector<128x128xf32>
    %45 = tpu.concatenate %39, %44 in 0 : vector<128x128xf32>, vector<128x128xf32> -> vector<256x128xf32>
    %46 = arith.truncf %45 : vector<256x128xf32> to vector<256x128xbf16>
    %cst_16 = arith.constant dense<0.000000e+00> : vector<256x128xf32>
    %47 = tpu.matmul %46, %32, %cst_16 {dimension_numbers = #tpu.dot_dimension_numbers<[1], [1], [0], [0], [0, 0, 1, 0], [], []>} : vector<256x128xbf16>, vector<128x128xbf16>, vector<256x128xf32> -> vector<256x128xf32>
    %cst_17 = arith.constant 0.0883883461 : f32
    %48 = vector.broadcast %cst_17 : f32 to vector<256x128xf32>
    %49 = arith.mulf %47, %48 : vector<256x128xf32>
    %50 = arith.addf %49, %26 : vector<256x128xf32>
    %cst_18 = arith.constant dense<0xFF800000> : vector<256xf32>
    %51 = vector.multi_reduction <maximumf>, %50, %cst_18 [1] : vector<256x128xf32> to vector<256xf32>
    %52 = vector.shape_cast %51 : vector<256xf32> to vector<256x1xf32>
    %53 = vector.broadcast %52 : vector<256x1xf32> to vector<256x128xf32>
    %54 = arith.subf %50, %53 : vector<256x128xf32>
    %55 = math.exp %54 : vector<256x128xf32>
    %cst_19 = arith.constant dense<0.000000e+00> : vector<256xf32>
    %56 = vector.multi_reduction <add>, %55, %cst_19 [1] : vector<256x128xf32> to vector<256xf32>
    %57 = vector.shape_cast %56 : vector<256xf32> to vector<256x1xf32>
    %58 = tpu.reciprocal %57 {approx = true} : vector<256x1xf32> -> vector<256x1xf32>
    %59 = vector.broadcast %58 : vector<256x1xf32> to vector<256x128xf32>
    %60 = arith.mulf %55, %59 : vector<256x128xf32>
    %61 = arith.truncf %60 : vector<256x128xf32> to vector<256x128xbf16>
    %cst_20 = arith.constant dense<0.000000e+00> : vector<256x128xf32>
    %62 = tpu.matmul %61, %34, %cst_20 {dimension_numbers = #tpu.dot_dimension_numbers<[1], [0], [0], [1], [0, 0, 1, 1], [], []>} : vector<256x128xbf16>, vector<128x128xbf16>, vector<256x128xf32> -> vector<256x128xf32>
    %63 = vector.extract_strided_slice %62 {offsets = [0, 0], sizes = [128, 128], strides = [1, 1]} : vector<256x128xf32> to vector<128x128xf32>
    %c0_21 = arith.constant 0 : index
    %c0_22 = arith.constant 0 : index
    %64 = vector.load %arg9[%c0_21, %c0_22] : memref<128x512xf32, #tpu.memory_space<vmem>>, vector<128x128xf32>
    tpu.vector_store %arg9[%c0_21, %c0_22], %63 {strides = array<i32>} : memref<128x512xf32, #tpu.memory_space<vmem>>, vector<128x128xf32>,
    %65 = vector.extract_strided_slice %62 {offsets = [128, 0], sizes = [128, 128], strides = [1, 1]} : vector<256x128xf32> to vector<128x128xf32>
    %c0_23 = arith.constant 0 : index
    %c128_24 = arith.constant 128 : index
    %66 = vector.load %arg9[%c0_23, %c128_24] : memref<128x512xf32, #tpu.memory_space<vmem>>, vector<128x128xf32>
    tpu.vector_store %arg9[%c0_23, %c128_24], %65 {strides = array<i32>} : memref<128x512xf32, #tpu.memory_space<vmem>>, vector<128x128xf32>,
    %67 = vector.extract_strided_slice %17 {offsets = [0, 768], sizes = [128, 128], strides = [1, 1]} : vector<128x1024xf32> to vector<128x128xf32>
    %68 = arith.mulf %67, %18 : vector<128x128xf32>
    %c64_i32_25 = arith.constant 64 : i32
    %69 = tpu.dynamic_rotate %67 by %c64_i32_25 dim 1 : vector<128x128xf32>, i32 -> vector<128x128xf32>
    %70 = arith.mulf %69, %19 : vector<128x128xf32>
    %71 = arith.addf %68, %70 : vector<128x128xf32>
    %72 = arith.truncf %71 : vector<128x128xf32> to vector<128x128xbf16>
    %73 = vector.extract_strided_slice %17 {offsets = [0, 896], sizes = [128, 128], strides = [1, 1]} : vector<128x1024xf32> to vector<128x128xf32>
    %74 = arith.truncf %73 : vector<128x128xf32> to vector<128x128xbf16>
    %75 = vector.extract_strided_slice %17 {offsets = [0, 512], sizes = [128, 128], strides = [1, 1]} : vector<128x1024xf32> to vector<128x128xf32>
    %76 = arith.mulf %75, %18 : vector<128x128xf32>
    %c64_i32_26 = arith.constant 64 : i32
    %77 = tpu.dynamic_rotate %75 by %c64_i32_26 dim 1 : vector<128x128xf32>, i32 -> vector<128x128xf32>
    %78 = arith.mulf %77, %19 : vector<128x128xf32>
    %79 = arith.addf %76, %78 : vector<128x128xf32>
    %80 = vector.extract_strided_slice %17 {offsets = [0, 640], sizes = [128, 128], strides = [1, 1]} : vector<128x1024xf32> to vector<128x128xf32>
    %81 = arith.mulf %80, %18 : vector<128x128xf32>
    %c64_i32_27 = arith.constant 64 : i32
    %82 = tpu.dynamic_rotate %80 by %c64_i32_27 dim 1 : vector<128x128xf32>, i32 -> vector<128x128xf32>
    %83 = arith.mulf %82, %19 : vector<128x128xf32>
    %84 = arith.addf %81, %83 : vector<128x128xf32>
    %85 = tpu.concatenate %79, %84 in 0 : vector<128x128xf32>, vector<128x128xf32> -> vector<256x128xf32>
    %86 = arith.truncf %85 : vector<256x128xf32> to vector<256x128xbf16>
    %cst_28 = arith.constant dense<0.000000e+00> : vector<256x128xf32>
    %87 = tpu.matmul %86, %72, %cst_28 {dimension_numbers = #tpu.dot_dimension_numbers<[1], [1], [0], [0], [0, 0, 1, 0], [], []>} : vector<256x128xbf16>, vector<128x128xbf16>, vector<256x128xf32> -> vector<256x128xf32>
    %cst_29 = arith.constant 0.0883883461 : f32
    %88 = vector.broadcast %cst_29 : f32 to vector<256x128xf32>
    %89 = arith.mulf %87, %88 : vector<256x128xf32>
    %90 = arith.addf %89, %26 : vector<256x128xf32>
    %cst_30 = arith.constant dense<0xFF800000> : vector<256xf32>
    %91 = vector.multi_reduction <maximumf>, %90, %cst_30 [1] : vector<256x128xf32> to vector<256xf32>
    %92 = vector.shape_cast %91 : vector<256xf32> to vector<256x1xf32>
    %93 = vector.broadcast %92 : vector<256x1xf32> to vector<256x128xf32>
    %94 = arith.subf %90, %93 : vector<256x128xf32>
    %95 = math.exp %94 : vector<256x128xf32>
    %cst_31 = arith.constant dense<0.000000e+00> : vector<256xf32>
    %96 = vector.multi_reduction <add>, %95, %cst_31 [1] : vector<256x128xf32> to vector<256xf32>
    %97 = vector.shape_cast %96 : vector<256xf32> to vector<256x1xf32>
    %98 = tpu.reciprocal %97 {approx = true} : vector<256x1xf32> -> vector<256x1xf32>
    %99 = vector.broadcast %98 : vector<256x1xf32> to vector<256x128xf32>
    %100 = arith.mulf %95, %99 : vector<256x128xf32>
    %101 = arith.truncf %100 : vector<256x128xf32> to vector<256x128xbf16>
    %cst_32 = arith.constant dense<0.000000e+00> : vector<256x128xf32>
    %102 = tpu.matmul %101, %74, %cst_32 {dimension_numbers = #tpu.dot_dimension_numbers<[1], [0], [0], [1], [0, 0, 1, 1], [], []>} : vector<256x128xbf16>, vector<128x128xbf16>, vector<256x128xf32> -> vector<256x128xf32>
    %103 = vector.extract_strided_slice %102 {offsets = [0, 0], sizes = [128, 128], strides = [1, 1]} : vector<256x128xf32> to vector<128x128xf32>
    %c0_33 = arith.constant 0 : index
    %c256 = arith.constant 256 : index
    %104 = vector.load %arg9[%c0_33, %c256] : memref<128x512xf32, #tpu.memory_space<vmem>>, vector<128x128xf32>
    tpu.vector_store %arg9[%c0_33, %c256], %103 {strides = array<i32>} : memref<128x512xf32, #tpu.memory_space<vmem>>, vector<128x128xf32>,
    %105 = vector.extract_strided_slice %102 {offsets = [128, 0], sizes = [128, 128], strides = [1, 1]} : vector<256x128xf32> to vector<128x128xf32>
    %c0_34 = arith.constant 0 : index
    %c384 = arith.constant 384 : index
    %106 = vector.load %arg9[%c0_34, %c384] : memref<128x512xf32, #tpu.memory_space<vmem>>, vector<128x128xf32>
    tpu.vector_store %arg9[%c0_34, %c384], %105 {strides = array<i32>} : memref<128x512xf32, #tpu.memory_space<vmem>>, vector<128x128xf32>,
    %c0_35 = arith.constant 0 : index
    %c0_36 = arith.constant 0 : index
    %107 = vector.load %arg9[%c0_35, %c0_36] : memref<128x512xf32, #tpu.memory_space<vmem>>, vector<128x512xf32>
    %108 = arith.truncf %107 : vector<128x512xf32> to vector<128x512xbf16>
    %c0_37 = arith.constant 0 : index
    %c0_38 = arith.constant 0 : index
    %109 = vector.load %arg4[%c0_37, %c0_38] : memref<512x512xbf16, #tpu.memory_space<vmem>>, vector<512x512xbf16>
    %cst_39 = arith.constant dense<0.000000e+00> : vector<128x512xf32>
    %110 = tpu.matmul %108, %109, %cst_39 {dimension_numbers = #tpu.dot_dimension_numbers<[1], [0], [0], [1], [0, 0, 1, 1], [], []>} : vector<128x512xbf16>, vector<512x512xbf16>, vector<128x512xf32> -> vector<128x512xf32>
    %111 = arith.addf %110, %0 : vector<128x512xf32>
    %c0_40 = arith.constant 0 : index
    %c0_41 = arith.constant 0 : index
    %112 = vector.load %arg8[%c0_40, %c0_41] : memref<128x512xf32, #tpu.memory_space<vmem>>, vector<128x512xf32>
    tpu.vector_store %arg8[%c0_40, %c0_41], %111 {strides = array<i32>} : memref<128x512xf32, #tpu.memory_space<vmem>>, vector<128x512xf32>,
    %113 = arith.mulf %111, %111 : vector<128x512xf32>
    %cst_42 = arith.constant dense<0.000000e+00> : vector<128xf32>
    %114 = vector.multi_reduction <add>, %113, %cst_42 [1] : vector<128x512xf32> to vector<128xf32>
    %115 = vector.shape_cast %114 : vector<128xf32> to vector<128x1xf32>
    %cst_43 = arith.constant 5.120000e+02 : f32
    %116 = vector.broadcast %cst_43 : f32 to vector<128x1xf32>
    %117 = arith.divf %115, %116 : vector<128x1xf32>
    %cst_44 = arith.constant 9.99999997E-7 : f32
    %118 = vector.broadcast %cst_44 : f32 to vector<128x1xf32>
    %119 = arith.addf %117, %118 : vector<128x1xf32>
    %120 = math.rsqrt %119 : vector<128x1xf32>
    %121 = vector.broadcast %120 : vector<128x1xf32> to vector<128x512xf32>
    %122 = arith.mulf %111, %121 : vector<128x512xf32>
    %123 = vector.broadcast %2 : vector<1x512xf32> to vector<128x512xf32>
    %124 = arith.mulf %122, %123 : vector<128x512xf32>
    %125 = arith.truncf %124 : vector<128x512xf32> to vector<128x512xbf16>
    %c0_45 = arith.constant 0 : index
    %c0_46 = arith.constant 0 : index
    %126 = vector.load %arg5[%c0_45, %c0_46] : memref<512x1024xbf16, #tpu.memory_space<vmem>>, vector<512x1024xbf16>
    %cst_47 = arith.constant dense<0.000000e+00> : vector<128x1024xf32>
    %127 = tpu.matmul %125, %126, %cst_47 {dimension_numbers = #tpu.dot_dimension_numbers<[1], [0], [0], [1], [0, 0, 1, 1], [], []>} : vector<128x512xbf16>, vector<512x1024xbf16>, vector<128x1024xf32> -> vector<128x1024xf32>
    %128 = vector.extract_strided_slice %127 {offsets = [0, 0], sizes = [128, 512], strides = [1, 1]} : vector<128x1024xf32> to vector<128x512xf32>
    %129 = vector.extract_strided_slice %127 {offsets = [0, 512], sizes = [128, 512], strides = [1, 1]} : vector<128x1024xf32> to vector<128x512xf32>
    %130 = arith.negf %128 : vector<128x512xf32>
    %131 = math.exp %130 : vector<128x512xf32>
    %cst_48 = arith.constant 1.000000e+00 : f32
    %132 = vector.broadcast %cst_48 : f32 to vector<128x512xf32>
    %133 = arith.addf %132, %131 : vector<128x512xf32>
    %134 = arith.divf %132, %133 : vector<128x512xf32>
    %135 = arith.mulf %128, %134 : vector<128x512xf32>
    %136 = arith.mulf %135, %129 : vector<128x512xf32>
    %137 = arith.truncf %136 : vector<128x512xf32> to vector<128x512xbf16>
    %c0_49 = arith.constant 0 : index
    %c0_50 = arith.constant 0 : index
    %138 = vector.load %arg6[%c0_49, %c0_50] : memref<512x512xbf16, #tpu.memory_space<vmem>>, vector<512x512xbf16>
    %cst_51 = arith.constant dense<0.000000e+00> : vector<128x512xf32>
    %139 = tpu.matmul %137, %138, %cst_51 {dimension_numbers = #tpu.dot_dimension_numbers<[1], [0], [0], [1], [0, 0, 1, 1], [], []>} : vector<128x512xbf16>, vector<512x512xbf16>, vector<128x512xf32> -> vector<128x512xf32>
    %c0_52 = arith.constant 0 : index
    %c0_53 = arith.constant 0 : index
    %140 = vector.load %arg7[%c0_52, %c0_53] : memref<128x512xf32, #tpu.memory_space<vmem>>, vector<128x512xf32>
    tpu.vector_store %arg7[%c0_52, %c0_53], %139 {strides = array<i32>} : memref<128x512xf32, #tpu.memory_space<vmem>>, vector<128x512xf32>,
    return
  }
}

</mosaic_0001>

<bundles_post_ra>
// kernel: decoder_layer_forward.1
= control target key start
LH: loop header
LB: loop body
LE: loop exit
PB: predicated region body
PF: predicated region fallthrough
CT: control target
= control target key end

     0   :  { %14 = vsyncpa [#allocation4], 0  ;;  %s18448_s0 = inlined_call_operand.hbm [shape: f32[128,512], index: 0, kind: input, shape index: {}]   ;;  %s18449_s1 = inlined_call_operand.vmem [shape: f32[128,256], index: 1, kind: input, shape index: {}]   ;;  %s18450_s2 = inlined_call_operand.vmem [shape: f32[2,512], index: 2, kind: input, shape index: {}]   ;;  %s18451_s3 = inlined_call_operand.hbm [shape: bf16[512,1024], index: 3, kind: input, shape index: {}]   ;;  %s18452_s4 = inlined_call_operand.vmem [shape: bf16[512,512], index: 4, kind: input, shape index: {}]   ;;  %s18453_s5 = inlined_call_operand.hbm [shape: bf16[512,1024], index: 5, kind: input, shape index: {}]   ;;  %s18454_s6 = inlined_call_operand.hbm [shape: bf16[512,512], index: 6, kind: input, shape index: {}]   ;;  %s18455_s7 = inlined_call_operand.hbm [shape: f32[128,512], index: 7, kind: output, shape index: {0}]   ;;  %s18456_s8 = inlined_call_operand.hbm [shape: f32[128,512], index: 8, kind: output, shape index: {1}]  }
   0x1   :  { %15 = vsyncpa [#allocation7], 0 }
   0x2   :  { %16 = vsyncpa [#allocation10], 0 }
   0x3   :  { %17 = vsyncpa [#allocation5], 0 }
   0x4   :  { %18 = vsyncpa [#allocation13], 0  ;;  %s13917_s27 = smov [#allocation6]   ;;  %s13918_s29 = smov [#allocation3]  }
   0x5   :  { %s40_s28 = sshll.u32 %s13917_s27, 4  ;;  %s24_s30 = sshll.u32 %s13918_s29, 4  ;;  %s41_s28 = int_to_ptr.vmem [resolvable:$true] %s40_s28  ;;  %s13974_s30 = int_to_ptr.vmem [resolvable:$true] %s24_s30 }
   0x6   :  { %s13775_s11 = scalar_lea.hbm %s18451_s3, 32768 }
   0x7   :  { %p13776_p0 = scmp.ne.s32.totalorder %s18451_s3, %s13775_s11  ;;  %p13779_p1 = scmp.lt.u32.totalorder %s13775_s11, %s18451_s3 }
   0x9   :  { %p13781_p2 = pnand %p13779_p1, %p13776_p0 }
   0xb   :  { %13784 = shalt.err (!%p13781_p2)
}
   0xc   :  { %s13785_s16 = scalar_lea.vmem %s41_s28, 32768  ;;  %p13790_p4 = scmp.lt.s32.totalorder %s41_s28, %s41_s28 }
   0xd   :  { %p13786_p3 = scmp.ne.s32.totalorder %s41_s28, %s13785_s16  ;;  %p13791_p5 = scmp.lt.s32.totalorder %s13785_s16, %s13785_s16 }
   0xf   :  { %p13792_p6 = por %p13791_p5, %p13790_p4 }
  0x11   :  { %p13793_p7 = pnand %p13792_p6, %p13786_p3 }
  0x13   :  { %13796 = shalt.err (!%p13793_p7)
}
  0x14   :  { %s13919_s17 = smov 512   ;;  %s13920_s18 = smov 32  }
  0x15   :  { %46 = dma.hbm_to_vmem [thread:$0]  %s18451_s3, 32768, %s41_s28, [#allocation7], %s13919_s17, %s13919_s17, %s13920_s18  }
  0x16   :  { %s13797_s23 = scalar_lea.hbm %s18448_s0, 8192 }
  0x17   :  { %p13798_p8 = scmp.ne.s32.totalorder %s18448_s0, %s13797_s23  ;;  %p13801_p9 = scmp.lt.u32.totalorder %s13797_s23, %s18448_s0 }
  0x19   :  { %p13803_p10 = pnand %p13801_p9, %p13798_p8 }
  0x1b   :  { %13806 = shalt.err (!%p13803_p10)
}
  0x1c   :  { %s13807_s29 = scalar_lea.vmem %s13974_s30, 8192  ;;  %p13812_p12 = scmp.lt.s32.totalorder %s13974_s30, %s13974_s30 }
  0x1d   :  { %p13808_p11 = scmp.ne.s32.totalorder %s13974_s30, %s13807_s29  ;;  %p13813_p13 = scmp.lt.s32.totalorder %s13807_s29, %s13807_s29 }
  0x1f   :  { %p13814_p0 = por %p13813_p13, %p13812_p12 }
  0x21   :  { %p13815_p1 = pnand %p13814_p0, %p13808_p11 }
  0x23   :  { %13818 = shalt.err (!%p13815_p1)
}
  0x24   :  { %30 = dma.hbm_to_vmem [thread:$0]  %s18448_s0, 8192, %s13974_s30, [#allocation4], %s13919_s17, %s13919_s17, %s13920_s18  }
  0x25   :  { %s13921_s9 = smov [#allocation8]   ;;  %s13922_s11 = smov [#allocation9]  }
  0x26   :  { %s54_s10 = sshll.u32 %s13921_s9, 4  ;;  %s66_s12 = sshll.u32 %s13922_s11, 4  ;;  %s55_s10 = int_to_ptr.vmem [resolvable:$true] %s54_s10  ;;  %s14011_s12 = int_to_ptr.vmem [resolvable:$true] %s66_s12 }
  0x27   :  { %s13819_s15 = scalar_lea.hbm %s18453_s5, 32768 }
  0x28   :  { %p13820_p2 = scmp.ne.s32.totalorder %s18453_s5, %s13819_s15  ;;  %p13823_p3 = scmp.lt.u32.totalorder %s13819_s15, %s18453_s5 }
  0x2a   :  { %p13825_p4 = pnand %p13823_p3, %p13820_p2 }
  0x2c   :  { %13828 = shalt.err (!%p13825_p4)
}
  0x2d   :  { %s13829_s0 = scalar_lea.vmem %s55_s10, 32768  ;;  %p13834_p6 = scmp.lt.s32.totalorder %s55_s10, %s55_s10 }
  0x2e   :  { %p13830_p5 = scmp.ne.s32.totalorder %s55_s10, %s13829_s0  ;;  %p13835_p7 = scmp.lt.s32.totalorder %s13829_s0, %s13829_s0 }
  0x30   :  { %p13836_p8 = por %p13835_p7, %p13834_p6 }
  0x32   :  { %p13837_p9 = pnand %p13836_p8, %p13830_p5 }
  0x34   :  { %13840 = shalt.err (!%p13837_p9)
}
  0x35   :  { %60 = dma.hbm_to_vmem [thread:$0]  %s18453_s5, 32768, %s55_s10, [#allocation7], %s13919_s17, %s13919_s17, %s13920_s18  }
  0x36   :  { %s13841_s25 = scalar_lea.hbm %s18454_s6, 16384 }
  0x37   :  { %p13842_p10 = scmp.ne.s32.totalorder %s18454_s6, %s13841_s25  ;;  %p13845_p11 = scmp.lt.u32.totalorder %s13841_s25, %s18454_s6 }
  0x39   :  { %p13847_p12 = pnand %p13845_p11, %p13842_p10 }
  0x3b   :  { %13850 = shalt.err (!%p13847_p12)
}
  0x3c   :  { %s13851_s28 = scalar_lea.vmem %s14011_s12, 16384  ;;  %p13856_p0 = scmp.lt.s32.totalorder %s14011_s12, %s14011_s12 }
  0x3d   :  { %p13852_p13 = scmp.ne.s32.totalorder %s14011_s12, %s13851_s28  ;;  %p13857_p1 = scmp.lt.s32.totalorder %s13851_s28, %s13851_s28 }
  0x3f   :  { %p13858_p2 = por %p13857_p1, %p13856_p0 }
  0x41   :  { %p13859_p3 = pnand %p13858_p2, %p13852_p13 }
  0x43   :  { %13862 = shalt.err (!%p13859_p3)
}
  0x44   :  { %s13923_s5 = smov 256   ;;  %s13924_s9 = smov 16  }
  0x45   :  { %72 = dma.hbm_to_vmem [thread:$0]  %s18454_s6, 16384, %s14011_s12, [#allocation10], %s13923_s5, %s13923_s5, %s13924_s9  }
  0x46   :  { %13907 = dma.done.wait [#allocation4], 8192  }
  0x47   :  { %13908 = vsyncadd [#allocation4], 4294959104 }
  0x48   :  { %13909 = dma.done.wait [#allocation7], 65536  }
  0x49   :  { %13910 = vsyncadd [#allocation7], 4294901760 }
  0x4a   :  { %13911 = dma.done.wait [#allocation10], 16384  }
  0x4b   :  { %13912 = vsyncadd [#allocation10], 4294950912  ;;  %v86_v0 = vld [vmem:[#allocation3] sm:$0xff]  ;;  %v87_v1 = vld [vmem:[#allocation3 + $0x8] sm:$0xff]  ;;  %s13925_s13 = smov 64  }
  0x4c   :  { %v88_v2 = vld [vmem:[#allocation3 + $0x10] sm:$0xff]  ;;  %v89_v3 = vld [vmem:[#allocation3 + $0x18] sm:$0xff]  ;;  %v153_v4 = vmul.f32 %v86_v0, %v86_v0  ;;  %v154_v5 = vmul.f32 %v87_v1, %v87_v1  ;;  %v94_v7 = vld [vmem:[#allocation3 + $0x40] sm:$0xff] }
  0x4d   :  { %v155_v6 = vmul.f32 %v88_v2, %v88_v2  ;;  %v95_v8 = vld [vmem:[#allocation3 + $0x48] sm:$0xff]  ;;  %v156_v9 = vmul.f32 %v89_v3, %v89_v3  ;;  %v96_v10 = vld [vmem:[#allocation3 + $0x50] sm:$0xff]  ;;  %v97_v11 = vld [vmem:[#allocation3 + $0x58] sm:$0xff]  ;;  %v161_v12 = vmul.f32 %v94_v7, %v94_v7 }
  0x4e   :  { %v162_v13 = vmul.f32 %v95_v8, %v95_v8  ;;  %v90_v14 = vld [vmem:[#allocation3 + $0x20] sm:$0xff]  ;;  %v217_v15 = vadd.f32 %v154_v5, %v153_v4  ;;  %v163_v16 = vmul.f32 %v96_v10, %v96_v10  ;;  %v164_v17 = vmul.f32 %v97_v11, %v97_v11  ;;  %v91_v18 = vld [vmem:[#allocation3 + $0x28] sm:$0xff]  ;;  %v92_v19 = vld [vmem:[#allocation3 + $0x30] sm:$0xff] }
  0x4f   :  { %v93_v20 = vld [vmem:[#allocation3 + $0x38] sm:$0xff]  ;;  %v157_v21 = vmul.f32 %v90_v14, %v90_v14  ;;  %v158_v23 = vmul.f32 %v91_v18, %v91_v18  ;;  %v159_v24 = vmul.f32 %v92_v19, %v92_v19  ;;  %v98_v26 = vld [vmem:[#allocation3 + $0x60] sm:$0xff]  ;;  %v99_v27 = vld [vmem:[#allocation3 + $0x68] sm:$0xff] }
  0x50   :  { %v227_v22 = vadd.f32 %v162_v13, %v161_v12  ;;  %v160_v25 = vmul.f32 %v93_v20, %v93_v20  ;;  %v100_v28 = vld [vmem:[#allocation3 + $0x70] sm:$0xff]  ;;  %v218_v29 = vadd.f32 %v217_v15, %v155_v6  ;;  %v101_v30 = vld [vmem:[#allocation3 + $0x78] sm:$0xff]  ;;  %v165_v31 = vmul.f32 %v98_v26, %v98_v26  ;;  %v106_v34 = vld [vmem:[#allocation3 + $0xa0] sm:$0xff] }
  0x51   :  { %v166_v32 = vmul.f32 %v99_v27, %v99_v27  ;;  %v167_v33 = vmul.f32 %v100_v28, %v100_v28  ;;  %v107_v35 = vld [vmem:[#allocation3 + $0xa8] sm:$0xff]  ;;  %v222_v37 = vadd.f32 %v158_v23, %v157_v21  ;;  %v168_v38 = vmul.f32 %v101_v30, %v101_v30  ;;  %v108_v39 = vld [vmem:[#allocation3 + $0xb0] sm:$0xff]  ;;  %v109_v40 = vld [vmem:[#allocation3 + $0xb8] sm:$0xff] }
  0x52   :  { %v228_v36 = vadd.f32 %v227_v22, %v163_v16  ;;  %v173_v41 = vmul.f32 %v106_v34, %v106_v34  ;;  %v102_v42 = vld [vmem:[#allocation3 + $0x80] sm:$0xff]  ;;  %v219_v43 = vadd.f32 %v218_v29, %v156_v9  ;;  %v174_v45 = vmul.f32 %v107_v35, %v107_v35  ;;  %v103_v47 = vld [vmem:[#allocation3 + $0x88] sm:$0xff]  ;;  %v104_v48 = vld [vmem:[#allocation3 + $0x90] sm:$0xff] }
  0x53   :  { %v232_v44 = vadd.f32 %v166_v32, %v165_v31  ;;  %v175_v46 = vmul.f32 %v108_v39, %v108_v39  ;;  %v105_v49 = vld [vmem:[#allocation3 + $0x98] sm:$0xff]  ;;  %v223_v51 = vadd.f32 %v222_v37, %v159_v24  ;;  %v176_v52 = vmul.f32 %v109_v40, %v109_v40  ;;  %v114_v54 = vld [vmem:[#allocation3 + $0xe0] sm:$0xff]  ;;  %v115_v55 = vld [vmem:[#allocation3 + $0xe8] sm:$0xff] }
  0x54   :  { %v229_v50 = vadd.f32 %v228_v36, %v164_v17  ;;  %v169_v53 = vmul.f32 %v102_v42, %v102_v42  ;;  %v116_v56 = vld [vmem:[#allocation3 + $0xf0] sm:$0xff]  ;;  %220 = vadd.xlane.f32.xlu0 %v219_v43  ;;  %v242_v58 = vadd.f32 %v174_v45, %v173_v41  ;;  %v170_v59 = vmul.f32 %v103_v47, %v103_v47  ;;  %v117_v61 = vld [vmem:[#allocation3 + $0xf8] sm:$0xff]  ;;  %v110_v62 = vld [vmem:[#allocation3 + $0xc0] sm:$0xff] }
  0x55   :  { %v233_v57 = vadd.f32 %v232_v44, %v167_v33  ;;  %v171_v60 = vmul.f32 %v104_v48, %v104_v48  ;;  %v111_v63 = vld [vmem:[#allocation3 + $0xc8] sm:$0xff]  ;;  %v224_v0 = vadd.f32 %v223_v51, %v160_v25  ;;  %v172_v1 = vmul.f32 %v105_v49, %v105_v49  ;;  %v112_v4 = vld [vmem:[#allocation3 + $0xd0] sm:$0xff]  ;;  %v113_v5 = vld [vmem:[#allocation3 + $0xd8] sm:$0xff] }
  0x56   :  { %230 = vadd.xlane.f32.xlu1 %v229_v50  ;;  %v181_v2 = vmul.f32 %v114_v54, %v114_v54  ;;  %v182_v3 = vmul.f32 %v115_v55, %v115_v55  ;;  %v243_v7 = vadd.f32 %v242_v58, %v175_v46  ;;  %v237_v8 = vadd.f32 %v170_v59, %v169_v53  ;;  %v122_v10 = vld [vmem:[#allocation3 + $0x120] sm:$0xff]  ;;  %v123_v11 = vld [vmem:[#allocation3 + $0x128] sm:$0xff]  ;;  %v124_v16 = vld [vmem:[#allocation3 + $0x130] sm:$0xff] }
  0x57   :  { %v234_v6 = vadd.f32 %v233_v57, %v168_v38  ;;  %v183_v9 = vmul.f32 %v116_v56, %v116_v56  ;;  %v184_v12 = vmul.f32 %v117_v61, %v117_v61  ;;  %v177_v14 = vmul.f32 %v110_v62, %v110_v62  ;;  %v125_v17 = vld [vmem:[#allocation3 + $0x138] sm:$0xff]  ;;  %v118_v18 = vld [vmem:[#allocation3 + $0x100] sm:$0xff]  ;;  %v119_v23 = vld [vmem:[#allocation3 + $0x108] sm:$0xff] }
  0x58   :  { %v252_v13 = vadd.f32 %v182_v3, %v181_v2  ;;  %v178_v15 = vmul.f32 %v111_v63, %v111_v63  ;;  %225 = vadd.xlane.f32.xlu0 %v224_v0  ;;  %v244_v19 = vadd.f32 %v243_v7, %v176_v52  ;;  %v238_v20 = vadd.f32 %v237_v8, %v171_v60  ;;  %v120_v24 = vld [vmem:[#allocation3 + $0x110] sm:$0xff]  ;;  %v121_v29 = vld [vmem:[#allocation3 + $0x118] sm:$0xff]  ;;  %v130_v30 = vld [vmem:[#allocation3 + $0x160] sm:$0xff] }
  0x59   :  { %v179_v21 = vmul.f32 %v112_v4, %v112_v4  ;;  %v180_v22 = vmul.f32 %v113_v5, %v113_v5  ;;  %v189_v27 = vmul.f32 %v122_v10, %v122_v10  ;;  %v190_v28 = vmul.f32 %v123_v11, %v123_v11  ;;  %v131_v31 = vld [vmem:[#allocation3 + $0x168] sm:$0xff]  ;;  %v132_v36 = vld [vmem:[#allocation3 + $0x170] sm:$0xff]  ;;  %v126_v41 = vld [vmem:[#allocation3 + $0x140] sm:$0xff] }
  0x5a   :  { %235 = vadd.xlane.f32.xlu1 %v234_v6  ;;  %v253_v25 = vadd.f32 %v252_v13, %v183_v9  ;;  %v247_v26 = vadd.f32 %v178_v15, %v177_v14  ;;  %v239_v32 = vadd.f32 %v238_v20, %v172_v1  ;;  %v191_v33 = vmul.f32 %v124_v16, %v124_v16  ;;  %v127_v42 = vld [vmem:[#allocation3 + $0x148] sm:$0xff]  ;;  %v133_v45 = vld [vmem:[#allocation3 + $0x178] sm:$0xff]  ;;  %v128_v48 = vld [vmem:[#allocation3 + $0x150] sm:$0xff] }
  0x5b   :  { %v192_v34 = vmul.f32 %v125_v17, %v125_v17  ;;  %v185_v35 = vmul.f32 %v118_v18, %v118_v18  ;;  %v262_v39 = vadd.f32 %v190_v28, %v189_v27  ;;  %v186_v40 = vmul.f32 %v119_v23, %v119_v23  ;;  %v129_v49 = vld [vmem:[#allocation3 + $0x158] sm:$0xff]  ;;  %v138_v54 = vld [vmem:[#allocation3 + $0x1a0] sm:$0xff]  ;;  %v139_v55 = vld [vmem:[#allocation3 + $0x1a8] sm:$0xff] }
  0x5c   :  { %v254_v37 = vadd.f32 %v253_v25, %v184_v12  ;;  %v248_v38 = vadd.f32 %v247_v26, %v179_v21  ;;  %240 = vadd.xlane.f32.xlu0 %v239_v32  ;;  %v187_v43 = vmul.f32 %v120_v24, %v120_v24  ;;  %v188_v44 = vmul.f32 %v121_v29, %v121_v29  ;;  %v140_v59 = vld [vmem:[#allocation3 + $0x1b0] sm:$0xff]  ;;  %v134_v60 = vld [vmem:[#allocation3 + $0x180] sm:$0xff]  ;;  %v141_v1 = vld [vmem:[#allocation3 + $0x1b8] sm:$0xff] }
  0x5d   :  { %v197_v46 = vmul.f32 %v130_v30, %v130_v30  ;;  %v198_v47 = vmul.f32 %v131_v31, %v131_v31  ;;  %v263_v51 = vadd.f32 %v262_v39, %v191_v33  ;;  %v257_v52 = vadd.f32 %v186_v40, %v185_v35  ;;  %v135_v2 = vld [vmem:[#allocation3 + $0x188] sm:$0xff]  ;;  %v136_v7 = vld [vmem:[#allocation3 + $0x190] sm:$0xff]  ;;  %v146_v8 = vld [vmem:[#allocation3 + $0x1e0] sm:$0xff] }
  0x5e   :  { %245 = vadd.xlane.f32.xlu1 %v244_v19  ;;  %v249_v50 = vadd.f32 %v248_v38, %v180_v22  ;;  %v199_v53 = vmul.f32 %v132_v36, %v132_v36  ;;  %v193_v57 = vmul.f32 %v126_v41, %v126_v41  ;;  %v194_v58 = vmul.f32 %v127_v42, %v127_v42  ;;  %v147_v9 = vld [vmem:[#allocation3 + $0x1e8] sm:$0xff]  ;;  %v137_v13 = vld [vmem:[#allocation3 + $0x198] sm:$0xff]  ;;  %v148_v15 = vld [vmem:[#allocation3 + $0x1f0] sm:$0xff] }
  0x5f   :  { %v272_v56 = vadd.f32 %v198_v47, %v197_v46  ;;  %v258_v61 = vadd.f32 %v257_v52, %v187_v43  ;;  %v200_v62 = vmul.f32 %v133_v45, %v133_v45  ;;  %v195_v63 = vmul.f32 %v128_v48, %v128_v48  ;;  %v149_v20 = vld [vmem:[#allocation3 + $0x1f8] sm:$0xff]  ;;  %v142_v21 = vld [vmem:[#allocation3 + $0x1c0] sm:$0xff]  ;;  %v143_v22 = vld [vmem:[#allocation3 + $0x1c8] sm:$0xff] }
  0x60   :  { %v196_v0 = vmul.f32 %v129_v49, %v129_v49  ;;  %250 = vadd.xlane.f32.xlu0 %v249_v50  ;;  %v267_v4 = vadd.f32 %v194_v58, %v193_v57  ;;  %v205_v5 = vmul.f32 %v138_v54, %v138_v54  ;;  %v206_v6 = vmul.f32 %v139_v55, %v139_v55  ;;  %v144_v27 = vld [vmem:[#allocation3 + $0x1d0] sm:$0xff]  ;;  %v145_v28 = vld [vmem:[#allocation3 + $0x1d8] sm:$0xff]  ;;  %v528_v29 = vld [vmem:[#allocation6 + $0x8] sm:$0xff] }
  0x61   :  { %v273_v3 = vadd.f32 %v272_v56, %v199_v53  ;;  %v264_v10 = vadd.f32 %v263_v51, %v192_v34  ;;  %v259_v11 = vadd.f32 %v258_v61, %v188_v44  ;;  %v207_v12 = vmul.f32 %v140_v59, %v140_v59  ;;  %v532_v34 = vld [vmem:[#allocation6 + $0x28] sm:$0xff]  ;;  %v527_v35 = vld [vmem:[#allocation6] sm:$0xff] }
  0x62   :  { %255 = vadd.xlane.f32.xlu1 %v254_v37  ;;  %v201_v14 = vmul.f32 %v134_v60, %v134_v60  ;;  %v268_v16 = vadd.f32 %v267_v4, %v195_v63  ;;  %v208_v17 = vmul.f32 %v141_v1, %v141_v1  ;;  %v282_v18 = vadd.f32 %v206_v6, %v205_v5  ;;  %v531_v36 = vld [vmem:[#allocation6 + $0x20] sm:$0xff]  ;;  %v536_v41 = vld [vmem:[#allocation6 + $0x48] sm:$0xff] }
  0x63   :  { %v202_v19 = vmul.f32 %v135_v2, %v135_v2  ;;  %v274_v23 = vadd.f32 %v273_v3, %v200_v62  ;;  %v203_v24 = vmul.f32 %v136_v7, %v136_v7  ;;  %v213_v25 = vmul.f32 %v146_v8, %v146_v8  ;;  %v540_v42 = vld [vmem:[#allocation6 + $0x68] sm:$0xff]  ;;  %v535_v47 = vld [vmem:[#allocation6 + $0x40] sm:$0xff] }
  0x64   :  { %v214_v26 = vmul.f32 %v147_v9, %v147_v9  ;;  %260 = vadd.xlane.f32.xlu0 %v259_v11  ;;  %v269_v30 = vadd.f32 %v268_v16, %v196_v0  ;;  %v283_v31 = vadd.f32 %v282_v18, %v207_v12  ;;  %v204_v32 = vmul.f32 %v137_v13, %v137_v13  ;;  %v539_v48 = vld [vmem:[#allocation6 + $0x60] sm:$0xff]  ;;  %v544_v57 = vld [vmem:[#allocation6 + $0x88] sm:$0xff] }
  0x65   :  { %v277_v33 = vadd.f32 %v202_v19, %v201_v14  ;;  %v215_v37 = vmul.f32 %v148_v15, %v148_v15  ;;  %v209_v39 = vmul.f32 %v142_v21, %v142_v21  ;;  %v210_v40 = vmul.f32 %v143_v22, %v143_v22  ;;  %v548_v58 = vld [vmem:[#allocation6 + $0xa8] sm:$0xff]  ;;  %v543_v62 = vld [vmem:[#allocation6 + $0x80] sm:$0xff] }
  0x66   :  { %265 = vadd.xlane.f32.xlu1 %v264_v10  ;;  %v292_v38 = vadd.f32 %v214_v26, %v213_v25  ;;  %v284_v43 = vadd.f32 %v283_v31, %v208_v17  ;;  %v216_v45 = vmul.f32 %v149_v20, %v149_v20  ;;  %v211_v46 = vmul.f32 %v144_v27, %v144_v27  ;;  %v547_v63 = vld [vmem:[#allocation6 + $0xa0] sm:$0xff]  ;;  %v552_v5 = vld [vmem:[#allocation6 + $0xc8] sm:$0xff] }
  0x67   :  { %v278_v44 = vadd.f32 %v277_v33, %v203_v24  ;;  %v212_v49 = vmul.f32 %v145_v28, %v145_v28  ;;  %v287_v50 = vadd.f32 %v210_v40, %v209_v39  ;;  %v11098_v51 = vcombine.high %v528_v29, %v532_v34  ;;  %v556_v6 = vld [vmem:[#allocation6 + $0xe8] sm:$0xff]  ;;  %v551_v8 = vld [vmem:[#allocation6 + $0xc0] sm:$0xff] }
  0x68   :  { %v11096_v52 = vcombine.high %v527_v35, %v531_v36  ;;  %270 = vadd.xlane.f32.xlu0 %v269_v30  ;;  %v11097_v54 = vcombine.low %v528_v29, %v532_v34  ;;  %v11095_v55 = vcombine.low %v527_v35, %v531_v36  ;;  %v11106_v56 = vcombine.high %v536_v41, %v540_v42  ;;  %v555_v9 = vld [vmem:[#allocation6 + $0xe0] sm:$0xff]  ;;  %v560_v14 = vld [vmem:[#allocation6 + $0x108] sm:$0xff] }
  0x69   :  { %v279_v53 = vadd.f32 %v278_v44, %v204_v32  ;;  %v293_v59 = vadd.f32 %v292_v38, %v215_v37  ;;  %v288_v60 = vadd.f32 %v287_v50, %v211_v46  ;;  %2289 = vmatprep.subr.bf16.mxu1 %v11098_v51  ;;  %v11104_v61 = vcombine.high %v535_v47, %v539_v48  ;;  %v564_v15 = vld [vmem:[#allocation6 + $0x128] sm:$0xff]  ;;  %v559_v16 = vld [vmem:[#allocation6 + $0x100] sm:$0xff] }
  0x6a   :  { %275 = vadd.xlane.f32.xlu1 %v274_v23  ;;  %2063 = vmatprep.subr.bf16.mxu0 %v11096_v52  ;;  %v11105_v0 = vcombine.low %v536_v41, %v540_v42  ;;  %v11103_v1 = vcombine.low %v535_v47, %v539_v48  ;;  %v11114_v2 = vcombine.high %v544_v57, %v548_v58  ;;  %v563_v17 = vld [vmem:[#allocation6 + $0x120] sm:$0xff]  ;;  %v568_v22 = vld [vmem:[#allocation6 + $0x148] sm:$0xff] }
  0x6b   :  { %2290 = vmatpush1.bf16.msra.mxu1 %v11097_v54  ;;  %2064 = vmatpush1.bf16.msra.mxu0 %v11095_v55  ;;  %v289_v3 = vadd.f32 %v288_v60, %v212_v49  ;;  %v11112_v4 = vcombine.high %v543_v62, %v547_v63  ;;  %v294_v7 = vadd.f32 %v293_v59, %v216_v45  ;;  %v572_v23 = vld [vmem:[#allocation6 + $0x168] sm:$0xff]  ;;  %v567_v24 = vld [vmem:[#allocation6 + $0x140] sm:$0xff] }
  0x6c   :  { %2291 = vmatprep.subr.bf16.mxu1 %v11106_v56  ;;  %280 = vadd.xlane.f32.xlu0 %v279_v53  ;;  %v11113_v10 = vcombine.low %v544_v57, %v548_v58  ;;  %v11111_v11 = vcombine.low %v543_v62, %v547_v63  ;;  %v11122_v12 = vcombine.high %v552_v5, %v556_v6  ;;  %v571_v25 = vld [vmem:[#allocation6 + $0x160] sm:$0xff]  ;;  %v576_v27 = vld [vmem:[#allocation6 + $0x188] sm:$0xff] }
  0x6d   :  { %2065 = vmatprep.subr.bf16.mxu0 %v11104_v61  ;;  %v11120_v13 = vcombine.high %v551_v8, %v555_v9  ;;  %v11121_v18 = vcombine.low %v552_v5, %v556_v6  ;;  %v11119_v19 = vcombine.low %v551_v8, %v555_v9  ;;  %v11130_v20 = vcombine.high %v560_v14, %v564_v15  ;;  %v580_v28 = vld [vmem:[#allocation6 + $0x1a8] sm:$0xff]  ;;  %v575_v31 = vld [vmem:[#allocation6 + $0x180] sm:$0xff] }
  0x6e   :  { %285 = vadd.xlane.f32.xlu1 %v284_v43  ;;  %v11128_v21 = vcombine.high %v559_v16, %v563_v17  ;;  %v11129_v26 = vcombine.low %v560_v14, %v564_v15  ;;  %v11127_v29 = vcombine.low %v559_v16, %v563_v17  ;;  %v11138_v30 = vcombine.high %v568_v22, %v572_v23  ;;  %v579_v32 = vld [vmem:[#allocation6 + $0x1a0] sm:$0xff]  ;;  %v14045_v34 = vld [vmem:[#allocation6 + $0x408] sm:$0xff]  ;;  %v13639_v43 = vld [vmem:[#allocation3 + $0x18] sm:$0xff] }
  0x6f   :  { %2292 = vmatpush1.bf16.msra.mxu1 %v11105_v0  ;;  %2066 = vmatpush1.bf16.msra.mxu0 %v11103_v1  ;;  %v11136_v33 = vcombine.high %v567_v24, %v571_v25  ;;  %v14047_v35 = vld [vmem:[#allocation6 + $0x428] sm:$0xff]  ;;  %v14049_v36 = vld [vmem:[#allocation6 + $0x400] sm:$0xff]  ;;  %v11137_v37 = vcombine.low %v568_v22, %v572_v23  ;;  %v11135_v38 = vcombine.low %v567_v24, %v571_v25 }
  0x70   :  { %2293 = vmatprep.subr.bf16.mxu1 %v11114_v2  ;;  %290 = vadd.xlane.f32.xlu0 %v289_v3  ;;  %v584_v39 = vld [vmem:[#allocation6 + $0x1c8] sm:$0xff]  ;;  %v14051_v40 = vld [vmem:[#allocation6 + $0x420] sm:$0xff]  ;;  %v11146_v41 = vcombine.high %v576_v27, %v580_v28  ;;  %v11144_v45 = vcombine.high %v575_v31, %v579_v32  ;;  %v11145_v48 = vcombine.low %v576_v27, %v580_v28 }
  0x71   :  { %2067 = vmatprep.subr.bf16.mxu0 %v11112_v4  ;;  %v588_v42 = vld [vmem:[#allocation6 + $0x1e8] sm:$0xff]  ;;  %v583_v46 = vld [vmem:[#allocation6 + $0x1c0] sm:$0xff]  ;;  %v11143_v51 = vcombine.low %v575_v31, %v579_v32 }
  0x72   :  { %295 = vadd.xlane.f32.xlu1 %v294_v7  ;;  %v587_v47 = vld [vmem:[#allocation6 + $0x1e0] sm:$0xff]  ;;  %v592_v49 = vld [vmem:[#allocation6 + $0x208] sm:$0xff]  ;;  %v11154_v52 = vcombine.high %v584_v39, %v588_v42  ;;  %v11153_v56 = vcombine.low %v584_v39, %v588_v42 }
  0x73   :  { %2294 = vmatpush1.bf16.msra.mxu1 %v11113_v10  ;;  %2068 = vmatpush1.bf16.msra.mxu0 %v11111_v11  ;;  %v596_v50 = vld [vmem:[#allocation6 + $0x228] sm:$0xff]  ;;  %v11152_v53 = vcombine.high %v583_v46, %v587_v47  ;;  %v591_v54 = vld [vmem:[#allocation6 + $0x200] sm:$0xff]  ;;  %v11151_v59 = vcombine.low %v583_v46, %v587_v47 }
  0x74   :  { %2295 = vmatprep.subr.bf16.mxu1 %v11122_v12  ;;  %2069 = vmatprep.subr.bf16.mxu0 %v11120_v13  ;;  %v595_v55 = vld [vmem:[#allocation6 + $0x220] sm:$0xff]  ;;  %v600_v57 = vld [vmem:[#allocation6 + $0x248] sm:$0xff]  ;;  %v11162_v60 = vcombine.high %v592_v49, %v596_v50  ;;  %v11161_v0 = vcombine.low %v592_v49, %v596_v50 }
  0x75   :  { %v604_v58 = vld [vmem:[#allocation6 + $0x268] sm:$0xff]  ;;  %v11160_v61 = vcombine.high %v591_v54, %v595_v55  ;;  %v599_v62 = vld [vmem:[#allocation6 + $0x240] sm:$0xff]  ;;  %v11159_v3 = vcombine.low %v591_v54, %v595_v55 }
  0x76   :  { %v603_v63 = vld [vmem:[#allocation6 + $0x260] sm:$0xff]  ;;  %v608_v1 = vld [vmem:[#allocation6 + $0x288] sm:$0xff]  ;;  %v11170_v4 = vcombine.high %v600_v57, %v604_v58  ;;  %v11169_v8 = vcombine.low %v600_v57, %v604_v58 }
  0x77   :  { %2296 = vmatpush1.bf16.msra.mxu1 %v11121_v18  ;;  %2070 = vmatpush1.bf16.msra.mxu0 %v11119_v19  ;;  %v612_v2 = vld [vmem:[#allocation6 + $0x2a8] sm:$0xff]  ;;  %v11168_v5 = vcombine.high %v599_v62, %v603_v63  ;;  %v607_v6 = vld [vmem:[#allocation6 + $0x280] sm:$0xff]  ;;  %v11167_v11 = vcombine.low %v599_v62, %v603_v63  ;;  %v18461_v62 = vlaneseq }
  0x78   :  { %2297 = vmatprep.subr.bf16.mxu1 %v11130_v20  ;;  %2071 = vmatprep.subr.bf16.mxu0 %v11128_v21  ;;  %v611_v7 = vld [vmem:[#allocation6 + $0x2a0] sm:$0xff]  ;;  %v616_v9 = vld [vmem:[#allocation6 + $0x2c8] sm:$0xff]  ;;  %v11178_v12 = vcombine.high %v608_v1, %v612_v2  ;;  %v11177_v16 = vcombine.low %v608_v1, %v612_v2 }
  0x79   :  { %v620_v10 = vld [vmem:[#allocation6 + $0x2e8] sm:$0xff]  ;;  %v11176_v13 = vcombine.high %v607_v6, %v611_v7  ;;  %v615_v14 = vld [vmem:[#allocation6 + $0x2c0] sm:$0xff]  ;;  %v11175_v19 = vcombine.low %v607_v6, %v611_v7  ;;  %v14062_v63 = vshrl.u32 %v18461_v62, 7 }
  0x7a   :  { %v619_v15 = vld [vmem:[#allocation6 + $0x2e0] sm:$0xff]  ;;  %v624_v17 = vld [vmem:[#allocation6 + $0x308] sm:$0xff]  ;;  %v11186_v20 = vcombine.high %v616_v9, %v620_v10  ;;  %v11185_v24 = vcombine.low %v616_v9, %v620_v10 }
  0x7b   :  { %2298 = vmatpush1.bf16.msra.mxu1 %v11129_v26  ;;  %2072 = vmatpush1.bf16.msra.mxu0 %v11127_v29  ;;  %v628_v18 = vld [vmem:[#allocation6 + $0x328] sm:$0xff]  ;;  %v11184_v21 = vcombine.high %v615_v14, %v619_v15  ;;  %v623_v22 = vld [vmem:[#allocation6 + $0x300] sm:$0xff]  ;;  %v11183_v27 = vcombine.low %v615_v14, %v619_v15  ;;  %18732 = vst [vmem:[#allocation19_spill] sm:$0xff] %v14062_v63  ;;  %v18459_v1 = vsub.s32 1, %v14062_v63  ;;  %v18460_v2 = vsub.s32 0, %v14062_v63 }
  0x7c   :  { %2299 = vmatprep.subr.bf16.mxu1 %v11138_v30  ;;  %2073 = vmatprep.subr.bf16.mxu0 %v11136_v33  ;;  %v627_v23 = vld [vmem:[#allocation6 + $0x320] sm:$0xff]  ;;  %v632_v25 = vld [vmem:[#allocation6 + $0x348] sm:$0xff]  ;;  %v11194_v28 = vcombine.high %v624_v17, %v628_v18  ;;  %v11193_v32 = vcombine.low %v624_v17, %v628_v18  ;;  %v18458_v9 = vsub.s32 3, %v14062_v63 }
  0x7d   :  { %v636_v26 = vld [vmem:[#allocation6 + $0x368] sm:$0xff]  ;;  %v11192_v29 = vcombine.high %v623_v22, %v627_v23  ;;  %v631_v30 = vld [vmem:[#allocation6 + $0x340] sm:$0xff] }
  0x7e   :  { %v635_v31 = vld [vmem:[#allocation6 + $0x360] sm:$0xff]  ;;  %v640_v33 = vld [vmem:[#allocation6 + $0x388] sm:$0xff]  ;;  %v11202_v39 = vcombine.high %v632_v25, %v636_v26  ;;  %v11201_v46 = vcombine.low %v632_v25, %v636_v26 }
  0x7f   :  { %2300 = vmatpush1.bf16.msra.mxu1 %v11137_v37  ;;  %2074 = vmatpush1.bf16.msra.mxu0 %v11135_v38  ;;  %v644_v37 = vld [vmem:[#allocation6 + $0x3a8] sm:$0xff]  ;;  %v11191_v38 = vcombine.low %v623_v22, %v627_v23  ;;  %v639_v42 = vld [vmem:[#allocation6 + $0x380] sm:$0xff]  ;;  %v11199_v49 = vcombine.low %v631_v30, %v635_v31  ;;  %v18457_v22 = vsub.s32 2, %v14062_v63 }
  0x80   :  { %2301 = vmatprep.subr.bf16.mxu1 %v11146_v41  ;;  %2075 = vmatprep.subr.bf16.mxu0 %v11144_v45  ;;  %v11200_v41 = vcombine.high %v631_v30, %v635_v31  ;;  %v643_v45 = vld [vmem:[#allocation6 + $0x3a0] sm:$0xff]  ;;  %v648_v47 = vld [vmem:[#allocation6 + $0x3c8] sm:$0xff]  ;;  %v11210_v50 = vcombine.high %v640_v33, %v644_v37  ;;  %v11209_v54 = vcombine.low %v640_v33, %v644_v37 }
  0x81   :  { %v11207_v55 = vcombine.low %v639_v42, %v643_v45  ;;  %v14075_v6 = vld [vmem:[#allocation6 + $0x460] sm:$0xff]  ;;  %v14077_v7 = vld [vmem:[#allocation6 + $0x488] sm:$0xff] }
  0x82   :  { %v14084_v14 = vld [vmem:[#allocation6 + $0x4a0] sm:$0xff]  ;;  %v14094_v18 = vld [vmem:[#allocation6 + $0x4c8] sm:$0xff] }
  0x83   :  { %2302 = vmatpush1.bf16.msra.mxu1 %v11145_v48  ;;  %2076 = vmatpush1.bf16.msra.mxu0 %v11143_v51  ;;  %v652_v48 = vld [vmem:[#allocation6 + $0x3e8] sm:$0xff]  ;;  %v11208_v51 = vcombine.high %v639_v42, %v643_v45  ;;  %v14121_v37 = vld [vmem:[#allocation6 + $0x500] sm:$0xff] }
  0x84   :  { %2303 = vmatprep.subr.bf16.mxu1 %v11154_v52  ;;  %2077 = vmatprep.subr.bf16.mxu0 %v11152_v53  ;;  %v647_v52 = vld [vmem:[#allocation6 + $0x3c0] sm:$0xff]  ;;  %v11217_v58 = vcombine.low %v648_v47, %v652_v48  ;;  %v14107_v26 = vld [vmem:[#allocation6 + $0x508] sm:$0xff] }
  0x85   :  { %v651_v53 = vld [vmem:[#allocation6 + $0x3e0] sm:$0xff]  ;;  %v13635_v45 = vld [vmem:[#allocation3 + $0x8] sm:$0xff] }
  0x86   :  { %v11216_v57 = vcombine.high %v647_v52, %v651_v53  ;;  %v13638_v44 = vld [vmem:[#allocation3 + $0x40] sm:$0xff] }
  0x87   :  { %2304 = vmatpush1.bf16.msra.mxu1 %v11153_v56  ;;  %2078 = vmatpush1.bf16.msra.mxu0 %v11151_v59  ;;  %v11218_v56 = vcombine.high %v648_v47, %v652_v48  ;;  %v11215_v59 = vcombine.low %v647_v52, %v651_v53  ;;  %v14131_v47 = vld [vmem:[#allocation6 + $0x568] sm:$0xff] }
  0x88   :  { %2305 = vmatprep.subr.bf16.mxu1 %v11162_v60  ;;  %2079 = vmatprep.subr.bf16.mxu0 %v11160_v61  ;;  %v11226_v60 = vcombine.high %v14045_v34, %v14047_v35  ;;  %v11224_v61 = vcombine.high %v14049_v36, %v14051_v40  ;;  %v14139_v52 = vld [vmem:[#allocation6 + $0x588] sm:$0xff] }
  0x89   :  { %v14141_v53 = vld [vmem:[#allocation6 + $0x5a8] sm:$0xff] }
  0x8b   :  { %2306 = vmatpush1.bf16.msra.mxu1 %v11161_v0  ;;  %2080 = vmatpush1.bf16.msra.mxu0 %v11159_v3  ;;  %v150_v0 = vld [vmem:[%s18450_s2] ss:$2 sm:$0xf]  ;;  %v14069_v3 = vld [vmem:[#allocation6 + $0x448] sm:$0xff] }
  0x8c   :  { %2307 = vmatprep.subr.bf16.mxu1 %v11170_v4  ;;  %2081 = vmatprep.subr.bf16.mxu0 %v11168_v5  ;;  %v14071_v4 = vld [vmem:[#allocation6 + $0x468] sm:$0xff]  ;;  %v14073_v5 = vld [vmem:[#allocation6 + $0x440] sm:$0xff]  ;;  %v14092_v17 = vrot.slane %v150_v0, %v18460_v2 }
  0x8d   :  { %v14179_v2 = vld [vmem:[#allocation6 + $0x608] sm:$0xff] }
  0x8e   :  { %18737 = vst [vmem:[#allocation24_spill] sm:$0xff] %v14179_v2 }
  0x8f   :  { %2308 = vmatpush1.bf16.msra.mxu1 %v11169_v8  ;;  %2082 = vmatpush1.bf16.msra.mxu0 %v11167_v11  ;;  %v14079_v8 = vld [vmem:[#allocation6 + $0x4a8] sm:$0xff] }
  0x90   :  { %2309 = vmatprep.subr.bf16.mxu1 %v11178_v12  ;;  %2083 = vmatprep.subr.bf16.mxu0 %v11176_v13  ;;  %v14082_v13 = vld [vmem:[#allocation6 + $0x480] sm:$0xff] }
  0x93   :  { %2310 = vmatpush1.bf16.msra.mxu1 %v11177_v16  ;;  %2084 = vmatpush1.bf16.msra.mxu0 %v11175_v19  ;;  %v14088_v16 = vrot.slane %v150_v0, %v18459_v1  ;;  %v14096_v19 = vld [vmem:[#allocation6 + $0x4e8] sm:$0xff]  ;;  %v14191_v1 = vld [vmem:[#allocation6 + $0x620] sm:$0xff] }
  0x94   :  { %2311 = vmatprep.subr.bf16.mxu1 %v11186_v20  ;;  %2085 = vmatprep.subr.bf16.mxu0 %v11184_v21  ;;  %v14098_v20 = vld [vmem:[#allocation6 + $0x4c0] sm:$0xff]  ;;  %18740 = vst [vmem:[#allocation27_spill] sm:$0xff] %v14191_v1 }
  0x95   :  { %v14100_v21 = vld [vmem:[#allocation6 + $0x4e0] sm:$0xff] }
  0x97   :  { %2312 = vmatpush1.bf16.msra.mxu1 %v11185_v24  ;;  %2086 = vmatpush1.bf16.msra.mxu0 %v11183_v27  ;;  %v14109_v27 = vld [vmem:[#allocation6 + $0x528] sm:$0xff] }
  0x98   :  { %2313 = vmatprep.subr.bf16.mxu1 %v11194_v28  ;;  %2087 = vmatprep.subr.bf16.mxu0 %v11192_v29  ;;  %v14113_v28 = vrot.slane %v150_v0, %v18458_v9 }
  0x9b   :  { %2314 = vmatpush1.bf16.msra.mxu1 %v11193_v32  ;;  %2088 = vmatpush1.bf16.msra.mxu0 %v11191_v38  ;;  %v14123_v38 = vld [vmem:[#allocation6 + $0x520] sm:$0xff] }
  0x9c   :  { %2315 = vmatprep.subr.bf16.mxu1 %v11202_v39  ;;  %2089 = vmatprep.subr.bf16.mxu0 %v11200_v41 }
  0x9f   :  { %2316 = vmatpush1.bf16.msra.mxu1 %v11201_v46  ;;  %2090 = vmatpush1.bf16.msra.mxu0 %v11199_v49  ;;  %v14129_v46 = vld [vmem:[#allocation6 + $0x548] sm:$0xff] }
  0xa0   :  { %2317 = vmatprep.subr.bf16.mxu1 %v11210_v50  ;;  %2091 = vmatprep.subr.bf16.mxu0 %v11208_v51  ;;  %v14135_v50 = vld [vmem:[#allocation6 + $0x540] sm:$0xff] }
  0xa1   :  { %v14137_v51 = vld [vmem:[#allocation6 + $0x560] sm:$0xff] }
  0xa3   :  { %2318 = vmatpush1.bf16.msra.mxu1 %v11209_v54  ;;  %2092 = vmatpush1.bf16.msra.mxu0 %v11207_v55  ;;  %v14145_v54 = vrot.slane %v150_v0, %v18457_v22  ;;  %v14173_v22 = vld [vmem:[#allocation6 + $0x5e0] sm:$0xff]  ;;  %v14205_v0 = vld [vmem:[#allocation6 + $0x668] sm:$0xff] }
  0xa4   :  { %2319 = vmatprep.subr.bf16.mxu1 %v11218_v56  ;;  %2093 = vmatprep.subr.bf16.mxu0 %v11216_v57  ;;  %18736 = vst [vmem:[#allocation23_spill] sm:$0xff] %v14173_v22  ;;  %18742 = vst [vmem:[#allocation29_spill] sm:$0xff] %v14205_v0  ;;  %v13636_v56 = vld [vmem:[#allocation3] sm:$0xff] }
  0xa7   :  { %2320 = vmatpush1.bf16.msra.mxu1 %v11217_v58  ;;  %2094 = vmatpush1.bf16.msra.mxu0 %v11215_v59  ;;  %v14153_v59 = vld [vmem:[#allocation6 + $0x580] sm:$0xff] }
  0xa8   :  { %2402 = vmatprep.subr.bf16.mxu1 %v11226_v60  ;;  %2176 = vmatprep.subr.bf16.mxu0 %v11224_v61  ;;  %v14155_v60 = vld [vmem:[#allocation6 + $0x5a0] sm:$0xff] }
  0xe1   :  { %v221_v10 = vpop.xlane.xlu0 %220 }
  0xe2   :  { %v298_v11 = vmul.f32 0.001953125, %v221_v10 }
  0xe3   :  { %v231_v12 = vpop.xlane.xlu1 %230 }
  0xe4   :  { %v300_v15 = vmul.f32 0.001953125, %v231_v12  ;;  %v314_v23 = vadd.f32 1e-06, %v298_v11 }
  0xe5   :  { %v226_v30 = vpop.xlane.xlu0 %225 }
  0xe6   :  { %v316_v29 = vadd.f32 1e-06, %v300_v15  ;;  %13059 = vrsqrt.f32 %v314_v23  ;;  %v299_v39 = vmul.f32 0.001953125, %v226_v30  ;;  %v14163_v15 = vld [vmem:[#allocation6 + $0x5c8] sm:$0xff] }
  0xe7   :  { %v236_v41 = vpop.xlane.xlu1 %235  ;;  %18733 = vst [vmem:[#allocation20_spill] sm:$0xff] %v14163_v15  ;;  %v14165_v23 = vld [vmem:[#allocation6 + $0x5e8] sm:$0xff] }
  0xe8   :  { %13061 = vrsqrt.f32 %v316_v29  ;;  %v301_v48 = vmul.f32 0.001953125, %v236_v41  ;;  %v315_v55 = vadd.f32 1e-06, %v299_v39  ;;  %18734 = vst [vmem:[#allocation21_spill] sm:$0xff] %v14165_v23  ;;  %v14211_v39 = vld [vmem:[#allocation6 + $0x640] sm:$0xff]  ;;  %v14264_v23 = vld [vmem:[#allocation6 + $0x6a8] sm:$0xff] }
  0xe9   :  { %v241_v10 = vpop.xlane.xlu0 %240  ;;  %18743 = vst [vmem:[#allocation30_spill] sm:$0xff] %v14211_v39 }
  0xea   :  { %v317_v61 = vadd.f32 1e-06, %v301_v48  ;;  %13063 = vrsqrt.f32 %v315_v55  ;;  %v302_v30 = vmul.f32 0.001953125, %v241_v10  ;;  %v14171_v48 = vld [vmem:[#allocation6 + $0x5c0] sm:$0xff]  ;;  %v14181_v10 = vld [vmem:[#allocation6 + $0x628] sm:$0xff] }
  0xeb   :  { %v246_v29 = vpop.xlane.xlu1 %245  ;;  %18735 = vst [vmem:[#allocation22_spill] sm:$0xff] %v14171_v48  ;;  %18738 = vst [vmem:[#allocation25_spill] sm:$0xff] %v14181_v10 }
  0xec   :  { %13065 = vrsqrt.f32 %v317_v61  ;;  %v303_v9 = vmul.f32 0.001953125, %v246_v29  ;;  %v318_v62 = vadd.f32 1e-06, %v302_v30  ;;  %v14189_v29 = vld [vmem:[#allocation6 + $0x600] sm:$0xff] }
  0xed   :  { %18739 = vst [vmem:[#allocation26_spill] sm:$0xff] %v14189_v29  ;;  %v251_v55 = vpop.xlane.xlu0 %250 }
  0xee   :  { %v319_v41 = vadd.f32 1e-06, %v303_v9  ;;  %13067 = vrsqrt.f32 %v318_v62  ;;  %v304_v58 = vmul.f32 0.001953125, %v251_v55  ;;  %v14203_v9 = vld [vmem:[#allocation6 + $0x648] sm:$0xff]  ;;  %v14213_v55 = vld [vmem:[#allocation6 + $0x660] sm:$0xff] }
  0xef   :  { %v256_v11 = vpop.xlane.xlu1 %255  ;;  %18741 = vst [vmem:[#allocation28_spill] sm:$0xff] %v14203_v9  ;;  %18744 = vst [vmem:[#allocation31_spill] sm:$0xff] %v14213_v55  ;;  %v13642_v9 = vld [vmem:[#allocation3 + $0x38] sm:$0xff] }
  0xf0   :  { %13069 = vrsqrt.f32 %v319_v41  ;;  %v305_v12 = vmul.f32 0.001953125, %v256_v11  ;;  %v14215_v61 = vpop.eup %13059  ;;  %v320_v57 = vadd.f32 1e-06, %v304_v58  ;;  %v13637_v41 = vld [vmem:[#allocation3 + $0x48] sm:$0xff] }
  0xf1   :  { %v347_v62 = vmul.f32 %v13635_v45, %v14215_v61  ;;  %v261_v49 = vpop.xlane.xlu0 %260  ;;  %v346_v31 = vmul.f32 %v13636_v56, %v14215_v61  ;;  %v13641_v45 = vld [vmem:[#allocation3 + $0x20] sm:$0xff] }
  0xf2   :  { %v14223_v30 = vpop.eup %13061  ;;  %v321_v33 = vadd.f32 1e-06, %v305_v12  ;;  %13071 = vrsqrt.f32 %v320_v57  ;;  %v306_v32 = vmul.f32 0.001953125, %v261_v49 }
  0xf3   :  { %v355_v11 = vmul.f32 %v13637_v41, %v14223_v30  ;;  %v266_v24 = vpop.xlane.xlu1 %265  ;;  %v432_v58 = vmul.f32 %v14088_v16, %v347_v62  ;;  %v354_v56 = vmul.f32 %v13638_v44, %v14223_v30  ;;  %v349_v41 = vmul.f32 %v13639_v43, %v14215_v61  ;;  %v13643_v44 = vld [vmem:[#allocation3 + $0x68] sm:$0xff] }
  0xf4   :  { %13073 = vrsqrt.f32 %v321_v33  ;;  %v307_v25 = vmul.f32 0.001953125, %v266_v24  ;;  %v14236_v42 = vpop.eup %13063  ;;  %v322_v57 = vadd.f32 1e-06, %v306_v32  ;;  %v13640_v24 = vld [vmem:[#allocation3 + $0x28] sm:$0xff]  ;;  %v431_v1 = vmul.f32 %v14092_v17, %v346_v31 }
  0xf5   :  { %v351_v33 = vmul.f32 %v13640_v24, %v14236_v42  ;;  %v350_v63 = vmul.f32 %v13641_v45, %v14236_v42  ;;  %v271_v0 = vpop.xlane.xlu0 %270  ;;  %v353_v62 = vmul.f32 %v13642_v9, %v14236_v42  ;;  %v440_v43 = vmul.f32 %v14088_v16, %v355_v11  ;;  %v13644_v9 = vld [vmem:[#allocation3 + $0x60] sm:$0xff] }
  0xf6   :  { %v14241_v49 = vpop.eup %13065  ;;  %v323_v12 = vadd.f32 1e-06, %v307_v25  ;;  %v308_v10 = vmul.f32 0.001953125, %v271_v0  ;;  %13075 = vrsqrt.f32 %v322_v57 }
  0xf7   :  { %v359_v32 = vmul.f32 %v13643_v44, %v14241_v49  ;;  %v276_v29 = vpop.xlane.xlu1 %275  ;;  %v436_v2 = vmul.f32 %v14088_v16, %v351_v33  ;;  %v435_v24 = vmul.f32 %v14092_v17, %v350_v63  ;;  %v358_v31 = vmul.f32 %v13644_v9, %v14241_v49  ;;  %v13645_v33 = vld [vmem:[#allocation3 + $0x88] sm:$0xff] }
  0xf8   :  { %v309_v45 = vmul.f32 0.001953125, %v276_v29  ;;  %v14251_v25 = vpop.eup %13067  ;;  %13077 = vrsqrt.f32 %v323_v12  ;;  %v324_v48 = vadd.f32 1e-06, %v308_v10  ;;  %v14262_v29 = vld [vmem:[#allocation6 + $0x688] sm:$0xff]  ;;  %v13646_v12 = vld [vmem:[#allocation3 + $0x80] sm:$0xff] }
  0xf9   :  { %v444_v22 = vmul.f32 %v14088_v16, %v359_v32  ;;  %v14257_v11 = vpack.c.bf16 %v436_v2, %v432_v58  ;;  %v14259_v0 = vpack.c.bf16 %v435_v24, %v431_v1  ;;  %v363_v63 = vmul.f32 %v13645_v33, %v14251_v25  ;;  %v281_v57 = vpop.xlane.xlu0 %280  ;;  %v13647_v58 = vld [vmem:[#allocation3 + $0xa8] sm:$0xff]  ;;  %v13648_v33 = vld [vmem:[#allocation3 + $0xa0] sm:$0xff] }
  0xfa   :  { %v14255_v44 = vpop.eup %13069  ;;  %v438_v32 = vmul.f32 %v14113_v28, %v353_v62  ;;  %v362_v10 = vmul.f32 %v13646_v12, %v14251_v25  ;;  %v434_v2 = vmul.f32 %v14113_v28, %v349_v41  ;;  %v325_v62 = vadd.f32 1e-06, %v309_v45 }
  0xfb   :  { %18745 = vst [vmem:[#allocation32_spill] sm:$0xff] %v14257_v11  ;;  %18746 = vst [vmem:[#allocation33_spill] sm:$0xff] %v14259_v0  ;;  %v14267_v15 = vpack.c.bf16 %v444_v22, %v440_v43  ;;  %v286_v9 = vpop.xlane.xlu1 %285  ;;  %2095 = vmatprep.mubr.bf16.mxu0 %v14257_v11  ;;  %2321 = vmatprep.mubr.bf16.mxu1 %v14257_v11  ;;  %v367_v24 = vmul.f32 %v13647_v58, %v14255_v44  ;;  %13079 = vrsqrt.f32 %v324_v48 }
  0xfc   :  { %v366_v22 = vmul.f32 %v13648_v33, %v14255_v44  ;;  %v14277_v43 = vpop.eup %13071  ;;  %2096 = vmatmul.mubr.bf16.vlgmr.msra.gmra.mrb[0].mxu0 %v14259_v0  ;;  %2322 = vmatmul.mubr.bf16.vlgmr.msra.gmra.mrb[0].mxu1 %v14259_v0  ;;  %v439_v41 = vmul.f32 %v14092_v17, %v354_v56  ;;  %v311_v12 = vmul.f32 0.001953125, %v286_v9  ;;  %v310_v1 = vmul.f32 0.001953125, %v281_v57  ;;  %v14294_v56 = vld [vmem:[#allocation6 + $0x680] sm:$0xff] }
  0xfd   :  { %18747 = vst [vmem:[#allocation34_spill] sm:$0xff] %v14267_v15  ;;  %v18748_v58 = vcombine.low %v14045_v34, %v14047_v35  ;;  %v18749_v48 = vcombine.low %v14049_v36, %v14051_v40  ;;  %v443_v45 = vmul.f32 %v14092_v17, %v358_v31  ;;  %v448_v33 = vmul.f32 %v14088_v16, %v363_v63  ;;  %v13649_v35 = vld [vmem:[#allocation3 + $0xc8] sm:$0xff]  ;;  %v14303_v63 = vld [vmem:[#allocation6 + $0x6a0] sm:$0xff] }
  0xfe   :  { %v14284_v55 = vpop.eup %13073  ;;  %13081 = vrsqrt.f32 %v325_v62  ;;  %v14296_v57 = vpack.c.bf16 %v438_v32, %v434_v2  ;;  %2105 = vmatprep.mubr.bf16.mxu0 %v14267_v15  ;;  %2331 = vmatprep.mubr.bf16.mxu1 %v14267_v15  ;;  %v447_v34 = vmul.f32 %v14092_v17, %v362_v10  ;;  %v371_v9 = vmul.f32 %v13649_v35, %v14277_v43  ;;  %v13650_v36 = vld [vmem:[#allocation3 + $0xe8] sm:$0xff]  ;;  %v13652_v15 = vld [vmem:[#allocation3 + $0xe0] sm:$0xff] }
  0xff   :  { %2403 = vmatpush1.bf16.msra.mxu1 %v18748_v58  ;;  %2177 = vmatpush1.bf16.msra.mxu0 %v18749_v48  ;;  %v375_v40 = vmul.f32 %v13650_v36, %v14284_v55  ;;  %v327_v31 = vadd.f32 1e-06, %v311_v12  ;;  %v296_v58 = vpop.xlane.xlu1 %295  ;;  %v14305_v62 = vld [vmem:[#allocation6 + $0x6c8] sm:$0xff]  ;;  %v18751_v2 = vcombine.high %v14069_v3, %v14071_v4  ;;  %v18752_v10 = vcombine.high %v14073_v5, %v14075_v6  ;;  %v13651_v12 = vld [vmem:[#allocation3 + $0xc0] sm:$0xff] }
 0x100   :  { %18750 = vst [vmem:[#allocation35_spill] sm:$0xff] %v14296_v57  ;;  %v14307_v32 = vld [vmem:[#allocation6 + $0x6e8] sm:$0xff]  ;;  %v452_v48 = vmul.f32 %v14088_v16, %v367_v24  ;;  %v451_v35 = vmul.f32 %v14092_v17, %v366_v22  ;;  %v370_v36 = vmul.f32 %v13651_v12, %v14277_v43  ;;  %v326_v11 = vadd.f32 1e-06, %v310_v1  ;;  %v14321_v39 = vpop.eup %13075 }
 0x101   :  { %2404 = vmatprep.subr.bf16.mxu1 %v18751_v2  ;;  %2178 = vmatprep.subr.bf16.mxu0 %v18752_v10  ;;  %v374_v0 = vmul.f32 %v13652_v15, %v14284_v55  ;;  %13083 = vrsqrt.f32 %v327_v31  ;;  %v313_v57 = vmul.f32 0.001953125, %v296_v58  ;;  %v11306_v2 = vcombine.high %v14262_v29, %v14264_v23 }
 0x102   :  { %v18753_v10 = vcombine.low %v14069_v3, %v14071_v4  ;;  %v18754_v24 = vcombine.low %v14073_v5, %v14075_v6  ;;  %13085 = vrsqrt.f32 %v326_v11  ;;  %v14335_v31 = vpop.eup %13077  ;;  %v18755_v3 = vcombine.high %v14077_v7, %v14079_v8 }
 0x103   :  { %v14340_v4 = vpack.c.bf16 %v443_v45, %v439_v41  ;;  %v18756_v5 = vcombine.high %v14082_v13, %v14084_v14  ;;  %v456_v6 = vmul.f32 %v14088_v16, %v371_v9  ;;  %v460_v11 = vmul.f32 %v14088_v16, %v375_v40  ;;  %v13653_v45 = vld [vmem:[#allocation3 + $0x108] sm:$0xff] }
 0x104   :  { %2405 = vmatpush1.bf16.msra.mxu1 %v18753_v10  ;;  %2179 = vmatpush1.bf16.msra.mxu0 %v18754_v24  ;;  %v14347_v58 = vpack.c.bf16 %v452_v48, %v448_v33  ;;  %v14349_v12 = vpack.c.bf16 %v451_v35, %v447_v34  ;;  %v14352_v10 = vmul.f32 %v14092_v17, %v370_v36  ;;  %v329_v24 = vadd.f32 1e-06, %v313_v57  ;;  %v13655_v48 = vld [vmem:[#allocation3 + $0x30] sm:$0xff]  ;;  %v13656_v35 = vld [vmem:[#allocation3 + $0x58] sm:$0xff] }
 0x105   :  { %2406 = vmatprep.subr.bf16.mxu1 %v18755_v3  ;;  %2180 = vmatprep.subr.bf16.mxu0 %v18756_v5  ;;  %v14357_v41 = vmul.f32 %v14092_v17, %v374_v0  ;;  %v379_v9 = vmul.f32 %v13653_v45, %v14321_v39  ;;  %v13654_v3 = vld [vmem:[#allocation3 + $0x10] sm:$0xff]  ;;  %v14361_v40 = vpop.eup %13079  ;;  %v18757_v34 = vcombine.low %v14077_v7, %v14079_v8  ;;  %v13657_v5 = vld [vmem:[#allocation3 + $0x78] sm:$0xff] }
 0x106   :  { %2106 = vmatmul.mubr.bf16.gmra.mrb[4].mxu0 %v14340_v4  ;;  %2332 = vmatmul.mubr.bf16.gmra.mrb[4].mxu1 %v14340_v4  ;;  %v348_v33 = vmul.f32 %v13654_v3, %v14215_v61  ;;  %v18758_v57 = vcombine.low %v14082_v13, %v14084_v14  ;;  %v352_v0 = vmul.f32 %v13655_v48, %v14236_v42  ;;  %v13658_v13 = vld [vmem:[#allocation3 + $0x128] sm:$0xff]  ;;  %v13659_v42 = vld [vmem:[#allocation3 + $0x100] sm:$0xff]  ;;  %13087 = vrsqrt.f32 %v329_v24 }
 0x107   :  { %v357_v36 = vmul.f32 %v13656_v35, %v14223_v30  ;;  %v361_v45 = vmul.f32 %v13657_v5, %v14241_v49  ;;  %v18759_v61 = vcombine.high %v14094_v18, %v14096_v19  ;;  %v18760_v7 = vcombine.high %v14098_v20, %v14100_v21  ;;  %2115 = vmatprep.mubr.bf16.mxu0 %v14347_v58  ;;  %v291_v35 = vpop.xlane.xlu0 %290  ;;  %v13661_v5 = vld [vmem:[#allocation3 + $0x148] sm:$0xff] }
 0x108   :  { %2407 = vmatpush1.bf16.msra.mxu1 %v18757_v34  ;;  %2181 = vmatpush1.bf16.msra.mxu0 %v18758_v57  ;;  %v14378_v8 = vpack.c.bf16 %v460_v11, %v456_v6  ;;  %v383_v14 = vmul.f32 %v13658_v13, %v14335_v31  ;;  %v378_v3 = vmul.f32 %v13659_v42, %v14321_v39  ;;  %v14382_v34 = vpop.eup %13081  ;;  %v13660_v57 = vld [vmem:[#allocation3 + $0x120] sm:$0xff] }
 0x109   :  { %2408 = vmatprep.subr.bf16.mxu1 %v18759_v61  ;;  %2182 = vmatprep.subr.bf16.mxu0 %v18760_v7  ;;  %v382_v48 = vmul.f32 %v13660_v57, %v14335_v31  ;;  %v433_v6 = vmul.f32 %v14145_v54, %v348_v33  ;;  %v437_v11 = vmul.f32 %v14145_v54, %v352_v0  ;;  %v13662_v7 = vld [vmem:[#allocation3 + $0x168] sm:$0xff]  ;;  %v13663_v42 = vld [vmem:[#allocation3 + $0x140] sm:$0xff] }
 0x10a   :  { %2341 = vmatprep.mubr.bf16.mxu1 %v14347_v58  ;;  %v387_v61 = vmul.f32 %v13661_v5, %v14361_v40  ;;  %v391_v13 = vmul.f32 %v13662_v7, %v14382_v34  ;;  %v386_v22 = vmul.f32 %v13663_v42, %v14361_v40  ;;  %v442_v1 = vmul.f32 %v14113_v28, %v357_v36  ;;  %v13664_v33 = vld [vmem:[#allocation3 + $0x160] sm:$0xff]  ;;  %v13665_v42 = vld [vmem:[#allocation3 + $0x50] sm:$0xff] }
 0x10b   :  { %v18761_v57 = vcombine.low %v14094_v18, %v14096_v19  ;;  %v18762_v24 = vcombine.low %v14098_v20, %v14100_v21  ;;  %v390_v0 = vmul.f32 %v13664_v33, %v14382_v34  ;;  %v14400_v5 = vpack.c.bf16 %v437_v11, %v433_v6  ;;  %v14403_v15 = vpop.eup %13083  ;;  %v13666_v33 = vld [vmem:[#allocation3 + $0x70] sm:$0xff] }
 0x10c   :  { %v446_v7 = vmul.f32 %v14113_v28, %v361_v45  ;;  %v18763_v36 = vcombine.high %v14107_v26, %v14109_v27  ;;  %v18764_v18 = vcombine.high %v14121_v37, %v14123_v38  ;;  %v464_v19 = vmul.f32 %v14088_v16, %v379_v9  ;;  %v14414_v11 = vpop.eup %13085 }
 0x10d   :  { %2409 = vmatpush1.bf16.msra.mxu1 %v18761_v57  ;;  %2183 = vmatpush1.bf16.msra.mxu0 %v18762_v24  ;;  %v463_v20 = vmul.f32 %v14092_v17, %v378_v3  ;;  %v312_v21 = vmul.f32 0.001953125, %v291_v35  ;;  %v356_v6 = vmul.f32 %v13665_v42, %v14223_v30  ;;  %v468_v45 = vmul.f32 %v14088_v16, %v383_v14  ;;  %v14426_v35 = vld [vmem:[#allocation6 + $0x6c0] sm:$0xff]  ;;  %v13669_v42 = vld [vmem:[#allocation3 + $0x188] sm:$0xff] }
 0x10e   :  { %2410 = vmatprep.subr.bf16.mxu1 %v18763_v36  ;;  %2184 = vmatprep.subr.bf16.mxu0 %v18764_v18  ;;  %v467_v57 = vmul.f32 %v14092_v17, %v382_v48  ;;  %v14418_v24 = vpack.c.bf16 %v446_v7, %v442_v1  ;;  %v360_v36 = vmul.f32 %v13666_v33, %v14241_v49  ;;  %v14428_v14 = vld [vmem:[#allocation6 + $0x6e0] sm:$0xff]  ;;  %v13667_v7 = vld [vmem:[#allocation3 + $0x1a8] sm:$0xff] }
 0x10f   :  { %2116 = vmatmul.mubr.bf16.gmra.mrb[8].mxu0 %v14349_v12  ;;  %2342 = vmatmul.mubr.bf16.gmra.mrb[8].mxu1 %v14349_v12  ;;  %v472_v9 = vmul.f32 %v14088_v16, %v387_v61  ;;  %v476_v3 = vmul.f32 %v14088_v16, %v391_v13  ;;  %v471_v30 = vmul.f32 %v14092_v17, %v386_v22  ;;  %v13668_v13 = vld [vmem:[#allocation3 + $0x1a0] sm:$0xff] }
 0x110   :  { %v18765_v1 = vcombine.low %v14107_v26, %v14109_v27  ;;  %v18766_v49 = vcombine.low %v14121_v37, %v14123_v38  ;;  %v475_v48 = vmul.f32 %v14092_v17, %v390_v0  ;;  %v399_v61 = vmul.f32 %v13667_v7, %v14403_v15  ;;  %2125 = vmatprep.mubr.bf16.mxu0 %v14378_v8 }
 0x111   :  { %v398_v22 = vmul.f32 %v13668_v13, %v14403_v15  ;;  %v18767_v18 = vcombine.high %v14129_v46, %v14131_v47  ;;  %v18768_v26 = vcombine.high %v14135_v50, %v14137_v51  ;;  %v328_v27 = vadd.f32 1e-06, %v312_v21  ;;  %2351 = vmatprep.mubr.bf16.mxu1 %v14378_v8 }
 0x112   :  { %2411 = vmatpush1.bf16.msra.mxu1 %v18765_v1  ;;  %2185 = vmatpush1.bf16.msra.mxu0 %v18766_v49  ;;  %v395_v37 = vmul.f32 %v13669_v42, %v14414_v11  ;;  %v441_v38 = vmul.f32 %v14145_v54, %v356_v6  ;;  %v445_v0 = vmul.f32 %v14145_v54, %v360_v36  ;;  %v13670_v6 = vld [vmem:[#allocation3 + $0x180] sm:$0xff] }
 0x113   :  { %2412 = vmatprep.subr.bf16.mxu1 %v18767_v18  ;;  %2186 = vmatprep.subr.bf16.mxu0 %v18768_v26  ;;  %v14452_v33 = vpack.c.bf16 %v14357_v41, %v14352_v10  ;;  %v11314_v1 = vcombine.high %v14305_v62, %v14307_v32  ;;  %v11312_v21 = vcombine.high %v14426_v35, %v14428_v14  ;;  %v14465_v18 = vpop.eup %13087  ;;  %13089 = vrsqrt.f32 %v328_v27 }
 0x114   :  { %v14458_v49 = vpack.c.bf16 %v468_v45, %v464_v19  ;;  %v14460_v7 = vpack.c.bf16 %v467_v57, %v463_v20  ;;  %v394_v36 = vmul.f32 %v13670_v6, %v14414_v11  ;;  %v14463_v13 = vpack.c.bf16 %v445_v0, %v441_v38  ;;  %v13675_v38 = vld [vmem:[#allocation3 + $0xd8] sm:$0xff] }
 0x115   :  { %v18769_v10 = vcombine.low %v14129_v46, %v14131_v47  ;;  %v18770_v41 = vcombine.low %v14135_v50, %v14137_v51  ;;  %v14473_v26 = vpack.c.bf16 %v476_v3, %v472_v9  ;;  %v14475_v19 = vpack.c.bf16 %v475_v48, %v471_v30  ;;  %v13671_v50 = vld [vmem:[#allocation3 + $0x98] sm:$0xff]  ;;  %v13673_v30 = vld [vmem:[#allocation3 + $0x90] sm:$0xff] }
 0x116   :  { %v14478_v20 = vmul.f32 %v14088_v16, %v399_v61  ;;  %v18771_v45 = vcombine.high %v14139_v52, %v14141_v53  ;;  %v18772_v57 = vcombine.high %v14153_v59, %v14155_v60  ;;  %v14487_v46 = vmul.f32 %v14088_v16, %v395_v37  ;;  %v13672_v9 = vld [vmem:[#allocation3 + $0xb8] sm:$0xff]  ;;  %v13674_v61 = vld [vmem:[#allocation3 + $0xb0] sm:$0xff]  ;;  %v13676_v37 = vld [vmem:[#allocation3 + $0x1e8] sm:$0xff] }
 0x117   :  { %2413 = vmatpush1.bf16.msra.mxu1 %v18769_v10  ;;  %2187 = vmatpush1.bf16.msra.mxu0 %v18770_v41  ;;  %v14490_v47 = vmul.f32 %v14092_v17, %v398_v22  ;;  %v365_v51 = vmul.f32 %v13671_v50, %v14251_v25  ;;  %v369_v3 = vmul.f32 %v13672_v9, %v14255_v44  ;;  %v18778_v9 = vld [vmem:[#allocation22_spill] sm:$0xff] }
 0x118   :  { %2414 = vmatprep.subr.bf16.mxu1 %v18771_v45  ;;  %2188 = vmatprep.subr.bf16.mxu0 %v18772_v57  ;;  %v364_v48 = vmul.f32 %v13673_v30, %v14251_v25  ;;  %v368_v42 = vmul.f32 %v13674_v61, %v14255_v44  ;;  %v373_v27 = vmul.f32 %v13675_v38, %v14277_v43  ;;  %v18775_v45 = vld [vmem:[#allocation20_spill] sm:$0xff]  ;;  %v18776_v57 = vld [vmem:[#allocation21_spill] sm:$0xff] }
 0x119   :  { %2126 = vmatmul.mubr.bf16.gmra.mrb[12].mxu0 %v14452_v33  ;;  %2352 = vmatmul.mubr.bf16.gmra.mrb[12].mxu1 %v14452_v33  ;;  %v14500_v22 = vmul.f32 %v14092_v17, %v394_v36  ;;  %v14503_v0 = vmul.f32 %v13676_v37, %v14465_v18  ;;  %v450_v6 = vmul.f32 %v14113_v28, %v365_v51  ;;  %v18779_v51 = vld [vmem:[#allocation23_spill] sm:$0xff] }
 0x11a   :  { %v18773_v25 = vcombine.low %v14139_v52, %v14141_v53  ;;  %v18774_v44 = vcombine.low %v14153_v59, %v14155_v60  ;;  %v454_v10 = vmul.f32 %v14113_v28, %v369_v3  ;;  %v449_v41 = vmul.f32 %v14145_v54, %v364_v48  ;;  %v13677_v52 = vld [vmem:[#allocation3 + $0xf8] sm:$0xff]  ;;  %v13678_v60 = vld [vmem:[#allocation3 + $0xd0] sm:$0xff]  ;;  %2135 = vmatprep.mubr.bf16.mxu0 %v14458_v49 }
 0x11b   :  { %v453_v36 = vmul.f32 %v14145_v54, %v368_v42  ;;  %v18777_v50 = vcombine.high %v18775_v45, %v18776_v57  ;;  %v18780_v30 = vcombine.high %v18778_v9, %v18779_v51  ;;  %v377_v53 = vmul.f32 %v13677_v52, %v14284_v55  ;;  %2361 = vmatprep.mubr.bf16.mxu1 %v14458_v49  ;;  %v13679_v42 = vld [vmem:[#allocation3 + $0xf0] sm:$0xff] }
 0x11c   :  { %2415 = vmatpush1.bf16.msra.mxu1 %v18773_v25  ;;  %2189 = vmatpush1.bf16.msra.mxu0 %v18774_v44  ;;  %v458_v59 = vmul.f32 %v14113_v28, %v373_v27  ;;  %v372_v3 = vmul.f32 %v13678_v60, %v14277_v43  ;;  %v14526_v48 = vpack.c.bf16 %v454_v10, %v450_v6  ;;  %v13680_v44 = vld [vmem:[#allocation3 + $0x118] sm:$0xff]  ;;  %v13682_v10 = vld [vmem:[#allocation3 + $0x110] sm:$0xff] }
 0x11d   :  { %2416 = vmatprep.subr.bf16.mxu1 %v18777_v50  ;;  %2190 = vmatprep.subr.bf16.mxu0 %v18780_v30  ;;  %v14528_v61 = vpack.c.bf16 %v453_v36, %v449_v41  ;;  %v376_v38 = vmul.f32 %v13679_v42, %v14284_v55  ;;  %v462_v37 = vmul.f32 %v14113_v28, %v377_v53  ;;  %v13681_v50 = vld [vmem:[#allocation3 + $0x138] sm:$0xff]  ;;  %v13683_v36 = vld [vmem:[#allocation3 + $0x130] sm:$0xff]  ;;  %v18783_v53 = vld [vmem:[#allocation24_spill] sm:$0xff] }
 0x11e   :  { %v457_v25 = vmul.f32 %v14145_v54, %v372_v3  ;;  %v381_v27 = vmul.f32 %v13680_v44, %v14321_v39  ;;  %v385_v43 = vmul.f32 %v13681_v50, %v14335_v31  ;;  %v18781_v30 = vcombine.low %v18775_v45, %v18776_v57  ;;  %v18784_v60 = vld [vmem:[#allocation25_spill] sm:$0xff]  ;;  %v18786_v42 = vld [vmem:[#allocation26_spill] sm:$0xff]  ;;  %v18787_v44 = vld [vmem:[#allocation27_spill] sm:$0xff] }
 0x11f   :  { %v18782_v6 = vcombine.low %v18778_v9, %v18779_v51  ;;  %v461_v55 = vmul.f32 %v14145_v54, %v376_v38  ;;  %v380_v41 = vmul.f32 %v13682_v10, %v14321_v39  ;;  %v384_v52 = vmul.f32 %v13683_v36, %v14335_v31  ;;  %v13684_v50 = vld [vmem:[#allocation3 + $0x158] sm:$0xff] }
 0x120   :  { %2417 = vmatpush1.bf16.msra.mxu1 %v18781_v30  ;;  %v18785_v3 = vcombine.high %v18783_v53, %v18784_v60  ;;  %v18788_v45 = vcombine.high %v18786_v42, %v18787_v44  ;;  %v14550_v57 = vpack.c.bf16 %v462_v37, %v458_v59  ;;  %v466_v9 = vmul.f32 %v14113_v28, %v381_v27  ;;  %v13685_v37 = vld [vmem:[#allocation3 + $0x178] sm:$0xff] }
 0x121   :  { %2191 = vmatpush1.bf16.msra.mxu0 %v18782_v6  ;;  %v470_v51 = vmul.f32 %v14113_v28, %v385_v43  ;;  %v14554_v38 = vpack.c.bf16 %v461_v55, %v457_v25  ;;  %v465_v39 = vmul.f32 %v14145_v54, %v380_v41  ;;  %v469_v31 = vmul.f32 %v14145_v54, %v384_v52  ;;  %v14559_v6 = vpop.eup %13089  ;;  %v13686_v25 = vld [vmem:[#allocation3 + $0x150] sm:$0xff] }
 0x122   :  { %2418 = vmatprep.subr.bf16.mxu1 %v18785_v3  ;;  %2192 = vmatprep.subr.bf16.mxu0 %v18788_v45  ;;  %v389_v30 = vmul.f32 %v13684_v50, %v14361_v40  ;;  %v393_v27 = vmul.f32 %v13685_v37, %v14382_v34  ;;  %v388_v43 = vmul.f32 %v13686_v25, %v14361_v40  ;;  %v13687_v52 = vld [vmem:[#allocation3 + $0x170] sm:$0xff]  ;;  %v18791_v45 = vld [vmem:[#allocation28_spill] sm:$0xff]  ;;  %v18794_v40 = vld [vmem:[#allocation30_spill] sm:$0xff] }
 0x123   :  { %2136 = vmatmul.mubr.bf16.gmra.mrb[16].mxu0 %v14460_v7  ;;  %2362 = vmatmul.mubr.bf16.gmra.mrb[16].mxu1 %v14460_v7  ;;  %v14563_v59 = vpack.c.bf16 %v470_v51, %v466_v9  ;;  %v18789_v55 = vcombine.low %v18783_v53, %v18784_v60  ;;  %v18790_v10 = vcombine.low %v18786_v42, %v18787_v44  ;;  %v18792_v9 = vld [vmem:[#allocation29_spill] sm:$0xff]  ;;  %v18795_v50 = vld [vmem:[#allocation31_spill] sm:$0xff]  ;;  %v13688_v42 = vld [vmem:[#allocation3 + $0x198] sm:$0xff] }
 0x124   :  { %v14573_v41 = vpack.c.bf16 %v469_v31, %v465_v39  ;;  %v474_v36 = vmul.f32 %v14113_v28, %v389_v30  ;;  %v392_v3 = vmul.f32 %v13687_v52, %v14382_v34  ;;  %v18793_v51 = vcombine.high %v18791_v45, %v18792_v9  ;;  %2145 = vmatprep.mubr.bf16.mxu0 %v14473_v26  ;;  %v13689_v39 = vld [vmem:[#allocation3 + $0x1b8] sm:$0xff]  ;;  %v13690_v30 = vld [vmem:[#allocation3 + $0x190] sm:$0xff] }
 0x125   :  { %2419 = vmatpush1.bf16.msra.mxu1 %v18789_v55  ;;  %2193 = vmatpush1.bf16.msra.mxu0 %v18790_v10  ;;  %v18796_v37 = vcombine.high %v18794_v40, %v18795_v50  ;;  %v478_v53 = vmul.f32 %v14113_v28, %v393_v27  ;;  %v473_v60 = vmul.f32 %v14145_v54, %v388_v43  ;;  %v13691_v43 = vld [vmem:[#allocation3 + $0x1b0] sm:$0xff]  ;;  %v13692_v52 = vld [vmem:[#allocation3 + $0x1d8] sm:$0xff] }
 0x126   :  { %2420 = vmatprep.subr.bf16.mxu1 %v18793_v51  ;;  %v397_v44 = vmul.f32 %v13688_v42, %v14414_v11  ;;  %2371 = vmatprep.mubr.bf16.mxu1 %v14473_v26  ;;  %v477_v34 = vmul.f32 %v14145_v54, %v392_v3  ;;  %v401_v31 = vmul.f32 %v13689_v39, %v14403_v15  ;;  %v755_v39 = vld [vmem:[#allocation6 + $0x720] sm:$0xff] }
 0x127   :  { %2194 = vmatprep.subr.bf16.mxu0 %v18796_v37  ;;  %v396_v25 = vmul.f32 %v13690_v30, %v14414_v11  ;;  %v14591_v55 = vpack.c.bf16 %v478_v53, %v474_v36  ;;  %v400_v10 = vmul.f32 %v13691_v43, %v14403_v15  ;;  %v405_v51 = vmul.f32 %v13692_v52, %v14559_v6 }
 0x128   :  { %v482_v27 = vmul.f32 %v14113_v28, %v397_v44  ;;  %v18797_v37 = vcombine.low %v18791_v45, %v18792_v9  ;;  %v18798_v3 = vcombine.low %v18794_v40, %v18795_v50  ;;  %v14602_v42 = vpack.c.bf16 %v477_v34, %v473_v60  ;;  %v752_v45 = vld [vmem:[#allocation6 + $0x708] sm:$0xff]  ;;  %v13693_v40 = vld [vmem:[#allocation3 + $0x1f8] sm:$0xff]  ;;  %v751_v34 = vld [vmem:[#allocation6 + $0x700] sm:$0xff] }
 0x129   :  { %v486_v11 = vmul.f32 %v14113_v28, %v401_v31  ;;  %v481_v36 = vmul.f32 %v14145_v54, %v396_v25  ;;  %v18799_v15 = vcombine.high %v14294_v56, %v14303_v63  ;;  %v756_v9 = vld [vmem:[#allocation6 + $0x728] sm:$0xff]  ;;  %v485_v53 = vmul.f32 %v14145_v54, %v400_v10  ;;  %v13695_v25 = vld [vmem:[#allocation3 + $0x1d0] sm:$0xff] }
 0x12a   :  { %2421 = vmatpush1.bf16.msra.mxu1 %v18797_v37  ;;  %2195 = vmatpush1.bf16.msra.mxu0 %v18798_v3  ;;  %v409_v50 = vmul.f32 %v13693_v40, %v14465_v18  ;;  %v490_v60 = vmul.f32 %v14113_v28, %v405_v51  ;;  %v14617_v44 = vpack.c.bf16 %v14478_v20, %v14487_v46  ;;  %v13696_v20 = vld [vmem:[#allocation3 + $0x1f0] sm:$0xff] }
 0x12b   :  { %2422 = vmatprep.subr.bf16.mxu1 %v11306_v2  ;;  %2196 = vmatprep.subr.bf16.mxu0 %v18799_v15  ;;  %v13694_v2 = vld [vmem:[#allocation3 + $0x1c8] sm:$0xff]  ;;  %v14620_v30 = vpack.c.bf16 %v486_v11, %v482_v27  ;;  %v404_v43 = vmul.f32 %v13695_v25, %v14559_v6  ;;  %v14625_v10 = vpack.c.bf16 %v485_v53, %v481_v36  ;;  %v759_v36 = vld [vmem:[#allocation6 + $0x740] sm:$0xff] }
 0x12c   :  { %v403_v31 = vmul.f32 %v13694_v2, %v14559_v6  ;;  %2146 = vmatmul.mubr.bf16.gmra.mrb[20].mxu0 %v14475_v19  ;;  %2372 = vmatmul.mubr.bf16.gmra.mrb[20].mxu1 %v14475_v19  ;;  %v494_v52 = vmul.f32 %v14113_v28, %v409_v50  ;;  %v408_v46 = vmul.f32 %v13696_v20, %v14465_v18  ;;  %v763_v15 = vld [vmem:[#allocation6 + $0x760] sm:$0xff]  ;;  %v780_v20 = vld [vmem:[#allocation6 + $0x7e8] sm:$0xff] }
 0x12d   :  { %v18800_v51 = vcombine.low %v14262_v29, %v14264_v23  ;;  %v18801_v27 = vcombine.low %v14294_v56, %v14303_v63  ;;  %v11311_v37 = vcombine.low %v14426_v35, %v14428_v14  ;;  %v11322_v3 = vcombine.high %v752_v45, %v756_v9  ;;  %v760_v23 = vld [vmem:[#allocation6 + $0x748] sm:$0xff]  ;;  %2155 = vmatprep.mubr.bf16.mxu0 %v14617_v44  ;;  %v13697_v14 = vld [vmem:[#allocation3 + $0x1c0] sm:$0xff] }
 0x12e   :  { %v489_v11 = vmul.f32 %v14145_v54, %v404_v43  ;;  %v11320_v28 = vcombine.high %v751_v34, %v755_v39  ;;  %v14644_v29 = vpack.c.bf16 %v494_v52, %v490_v60  ;;  %v493_v56 = vmul.f32 %v14145_v54, %v408_v46  ;;  %2381 = vmatprep.mubr.bf16.mxu1 %v14617_v44  ;;  %v764_v63 = vld [vmem:[#allocation6 + $0x768] sm:$0xff]  ;;  %v13698_v54 = vld [vmem:[#allocation3 + $0x1e0] sm:$0xff] }
 0x12f   :  { %2423 = vmatpush1.bf16.msra.mxu1 %v18800_v51  ;;  %2197 = vmatpush1.bf16.msra.mxu0 %v18801_v27  ;;  %v488_v53 = vmul.f32 %v14088_v16, %v403_v31  ;;  %v14654_v35 = vpack.c.bf16 %v14490_v47, %v14500_v22  ;;  %v406_v40 = vmul.f32 %v13698_v54, %v14465_v18  ;;  %v768_v22 = vld [vmem:[#allocation6 + $0x788] sm:$0xff]  ;;  %v767_v25 = vld [vmem:[#allocation6 + $0x780] sm:$0xff]  ;;  %v537_v54 = vld [vmem:[#allocation6 + $0x50] sm:$0xff] }
 0x130   :  { %2424 = vmatprep.subr.bf16.mxu1 %v11314_v1  ;;  %2198 = vmatprep.subr.bf16.mxu0 %v11312_v21  ;;  %v492_v1 = vmul.f32 %v14088_v16, %v14503_v0  ;;  %v402_v21 = vmul.f32 %v13697_v14, %v14559_v6  ;;  %v14658_v50 = vpack.c.bf16 %v493_v56, %v489_v11  ;;  %v772_v6 = vld [vmem:[#allocation6 + $0x7a8] sm:$0xff]  ;;  %v771_v43 = vld [vmem:[#allocation6 + $0x7a0] sm:$0xff]  ;;  %v533_v56 = vld [vmem:[#allocation6 + $0x30] sm:$0xff] }
 0x131   :  { %v18802_v60 = vcombine.low %v14305_v62, %v14307_v32  ;;  %v11321_v2 = vcombine.low %v752_v45, %v756_v9  ;;  %v11319_v31 = vcombine.low %v751_v34, %v755_v39  ;;  %v11330_v16 = vcombine.high %v760_v23, %v764_v63  ;;  %v776_v39 = vld [vmem:[#allocation6 + $0x7c8] sm:$0xff]  ;;  %v775_v46 = vld [vmem:[#allocation6 + $0x7c0] sm:$0xff]  ;;  %v538_v14 = vld [vmem:[#allocation6 + $0x58] sm:$0xff] }
 0x132   :  { %v11328_v47 = vcombine.high %v759_v36, %v763_v15  ;;  %v14663_v0 = vpack.c.bf16 %v492_v1, %v488_v53  ;;  %v487_v62 = vmul.f32 %v14092_v17, %v402_v21  ;;  %v491_v32 = vmul.f32 %v14092_v17, %v406_v40  ;;  %v779_v51 = vld [vmem:[#allocation6 + $0x7e0] sm:$0xff]  ;;  %v542_v21 = vld [vmem:[#allocation6 + $0x78] sm:$0xff]  ;;  %v541_v40 = vld [vmem:[#allocation6 + $0x70] sm:$0xff] }
 0x133   :  { %2425 = vmatpush1.bf16.msra.mxu1 %v18802_v60  ;;  %2199 = vmatpush1.bf16.msra.mxu0 %v11311_v37  ;;  %v11329_v18 = vcombine.low %v760_v23, %v764_v63  ;;  %v11327_v45 = vcombine.low %v759_v36, %v763_v15  ;;  %v11338_v9 = vcombine.high %v768_v22, %v772_v6  ;;  %v530_v37 = vld [vmem:[#allocation6 + $0x18] sm:$0xff]  ;;  %v529_v23 = vld [vmem:[#allocation6 + $0x10] sm:$0xff]  ;;  %v18803_v15 = vld [vmem:[#allocation35_spill] sm:$0xff] }
 0x134   :  { %2426 = vmatprep.subr.bf16.mxu1 %v11322_v3  ;;  %2200 = vmatprep.subr.bf16.mxu0 %v11320_v28  ;;  %v11336_v34 = vcombine.high %v767_v25, %v771_v43  ;;  %v14671_v52 = vpack.c.bf16 %v491_v32, %v487_v62  ;;  %v11337_v17 = vcombine.low %v768_v22, %v772_v6  ;;  %v534_v28 = vld [vmem:[#allocation6 + $0x38] sm:$0xff]  ;;  %v545_v6 = vld [vmem:[#allocation6 + $0x90] sm:$0xff] }
 0x135   :  { %2156 = vmatmul.mubr.bf16.gmra.mrb[24].mxu0 %v14654_v35  ;;  %2382 = vmatmul.mubr.bf16.gmra.mrb[24].mxu1 %v14654_v35  ;;  %v11335_v27 = vcombine.low %v767_v25, %v771_v43  ;;  %v11346_v3 = vcombine.high %v776_v39, %v780_v20  ;;  %v11344_v11 = vcombine.high %v775_v46, %v779_v51  ;;  %v550_v22 = vld [vmem:[#allocation6 + $0xb8] sm:$0xff]  ;;  %v549_v25 = vld [vmem:[#allocation6 + $0xb0] sm:$0xff] }
 0x136   :  { %2165 = vmatprep.mubr.bf16.mxu0 %v14663_v0  ;;  %2391 = vmatprep.mubr.bf16.mxu1 %v14663_v0  ;;  %v11345_v63 = vcombine.low %v776_v39, %v780_v20  ;;  %v11343_v36 = vcombine.low %v775_v46, %v779_v51  ;;  %v11102_v53 = vcombine.high %v530_v37, %v534_v28  ;;  %v557_v39 = vld [vmem:[#allocation6 + $0xf0] sm:$0xff] }
 0x137   :  { %2427 = vmatpush1.bf16.msra.mxu1 %v11321_v2  ;;  %2201 = vmatpush1.bf16.msra.mxu0 %v11319_v31  ;;  %v11100_v1 = vcombine.high %v529_v23, %v533_v56  ;;  %v11101_v60 = vcombine.low %v530_v37, %v534_v28  ;;  %v11099_v2 = vcombine.low %v529_v23, %v533_v56  ;;  %v566_v37 = vld [vmem:[#allocation6 + $0x138] sm:$0xff] }
 0x138   :  { %2428 = vmatprep.subr.bf16.mxu1 %v11330_v16  ;;  %2202 = vmatprep.subr.bf16.mxu0 %v11328_v47  ;;  %v11110_v31 = vcombine.high %v538_v14, %v542_v21  ;;  %v11108_v16 = vcombine.high %v537_v54, %v541_v40  ;;  %v546_v47 = vld [vmem:[#allocation6 + $0x98] sm:$0xff]  ;;  %v11109_v43 = vcombine.low %v538_v14, %v542_v21  ;;  %v573_v14 = vld [vmem:[#allocation6 + $0x170] sm:$0xff] }
 0x139   :  { %v11107_v62 = vcombine.low %v537_v54, %v541_v40  ;;  %v11118_v32 = vcombine.high %v546_v47, %v550_v22  ;;  %v11117_v20 = vcombine.low %v546_v47, %v550_v22  ;;  %v11115_v46 = vcombine.low %v545_v6, %v549_v25  ;;  %v581_v47 = vld [vmem:[#allocation6 + $0x1b0] sm:$0xff] }
 0x13b   :  { %2429 = vmatpush1.bf16.msra.mxu1 %v11329_v18  ;;  %2203 = vmatpush1.bf16.msra.mxu0 %v11327_v45  ;;  %v11116_v18 = vcombine.high %v545_v6, %v549_v25  ;;  %v554_v45 = vld [vmem:[#allocation6 + $0xd8] sm:$0xff] }
 0x13c   :  { %2430 = vmatprep.subr.bf16.mxu1 %v11338_v9  ;;  %2204 = vmatprep.subr.bf16.mxu0 %v11336_v34  ;;  %v558_v9 = vld [vmem:[#allocation6 + $0xf8] sm:$0xff]  ;;  %v553_v34 = vld [vmem:[#allocation6 + $0xd0] sm:$0xff] }
 0x13d   :  { %2166 = vmatmul.mubr.bf16.gmra.mrb[28].mxu0 %v14671_v52  ;;  %2392 = vmatmul.mubr.bf16.gmra.mrb[28].mxu1 %v14671_v52  ;;  %v11126_v51 = vcombine.high %v554_v45, %v558_v9  ;;  %v11125_v28 = vcombine.low %v554_v45, %v558_v9  ;;  %v11123_v23 = vcombine.low %v553_v34, %v557_v39  ;;  %v589_v45 = vld [vmem:[#allocation6 + $0x1f0] sm:$0xff] }
 0x13e   :  { %2208 = vmatprep.mubr.bf16.mxu0 %v18803_v15  ;;  %2434 = vmatprep.mubr.bf16.mxu1 %v18803_v15 }
 0x13f   :  { %2431 = vmatpush1.bf16.msra.mxu1 %v11337_v17  ;;  %2205 = vmatpush1.bf16.msra.mxu0 %v11335_v27  ;;  %v11124_v17 = vcombine.high %v553_v34, %v557_v39  ;;  %v562_v27 = vld [vmem:[#allocation6 + $0x118] sm:$0xff] }
 0x140   :  { %2432 = vmatprep.subr.bf16.mxu1 %v11346_v3  ;;  %2206 = vmatprep.subr.bf16.mxu0 %v11344_v11  ;;  %v561_v3 = vld [vmem:[#allocation6 + $0x110] sm:$0xff]  ;;  %v11134_v56 = vcombine.high %v562_v27, %v566_v37  ;;  %v11133_v21 = vcombine.low %v562_v27, %v566_v37 }
 0x141   :  { %v565_v11 = vld [vmem:[#allocation6 + $0x130] sm:$0xff] }
 0x142   :  { %v11131_v54 = vcombine.low %v561_v3, %v565_v11  ;;  %v597_v27 = vld [vmem:[#allocation6 + $0x230] sm:$0xff] }
 0x143   :  { %2433 = vmatpush1.bf16.msra.mxu1 %v11345_v63  ;;  %2207 = vmatpush1.bf16.msra.mxu0 %v11343_v36  ;;  %v11132_v63 = vcombine.high %v561_v3, %v565_v11  ;;  %v570_v36 = vld [vmem:[#allocation6 + $0x158] sm:$0xff] }
 0x144   :  { %2741 = vmatprep.subr.bf16.mxu1 %v11102_v53  ;;  %2515 = vmatprep.subr.bf16.mxu0 %v11100_v1  ;;  %v574_v53 = vld [vmem:[#allocation6 + $0x178] sm:$0xff]  ;;  %v569_v1 = vld [vmem:[#allocation6 + $0x150] sm:$0xff] }
 0x145   :  { %v11142_v40 = vcombine.high %v570_v36, %v574_v53  ;;  %v11141_v22 = vcombine.low %v570_v36, %v574_v53  ;;  %v11139_v6 = vcombine.low %v569_v1, %v573_v14  ;;  %v605_v36 = vld [vmem:[#allocation6 + $0x270] sm:$0xff] }
 0x146   :  { %2209 = vmatmul.mubr.bf16.vlgmr.msra.gmra.mrb[0].mxu0 %v14400_v5  ;;  %2435 = vmatmul.mubr.bf16.vlgmr.msra.gmra.mrb[0].mxu1 %v14400_v5 }
 0x147   :  { %2742 = vmatpush1.bf16.msra.mxu1 %v11101_v60  ;;  %2218 = vmatprep.mubr.bf16.mxu0 %v14418_v24  ;;  %v11140_v60 = vcombine.high %v569_v1, %v573_v14 }
 0x148   :  { %2444 = vmatprep.mubr.bf16.mxu1 %v14418_v24  ;;  %2516 = vmatpush1.bf16.msra.mxu0 %v11099_v2  ;;  %v578_v2 = vld [vmem:[#allocation6 + $0x198] sm:$0xff] }
 0x149   :  { %2743 = vmatprep.subr.bf16.mxu1 %v11110_v31  ;;  %2517 = vmatprep.subr.bf16.mxu0 %v11108_v16  ;;  %v582_v31 = vld [vmem:[#allocation6 + $0x1b8] sm:$0xff]  ;;  %v577_v16 = vld [vmem:[#allocation6 + $0x190] sm:$0xff] }
 0x14a   :  { %v11150_v25 = vcombine.high %v578_v2, %v582_v31  ;;  %v11149_v9 = vcombine.low %v578_v2, %v582_v31  ;;  %v11147_v34 = vcombine.low %v577_v16, %v581_v47  ;;  %v613_v2 = vld [vmem:[#allocation6 + $0x2b0] sm:$0xff] }
 0x14b   :  { %2744 = vmatpush1.bf16.msra.mxu1 %v11109_v43  ;;  %v11148_v43 = vcombine.high %v577_v16, %v581_v47 }
 0x14c   :  { %2518 = vmatpush1.bf16.msra.mxu0 %v11107_v62  ;;  %2745 = vmatprep.subr.bf16.mxu1 %v11118_v32  ;;  %v586_v62 = vld [vmem:[#allocation6 + $0x1d8] sm:$0xff] }
 0x14d   :  { %2519 = vmatprep.subr.bf16.mxu0 %v11116_v18  ;;  %v590_v32 = vld [vmem:[#allocation6 + $0x1f8] sm:$0xff]  ;;  %v585_v18 = vld [vmem:[#allocation6 + $0x1d0] sm:$0xff] }
 0x14e   :  { %2219 = vmatmul.mubr.bf16.gmra.mrb[4].mxu0 %v14463_v13  ;;  %2445 = vmatmul.mubr.bf16.gmra.mrb[4].mxu1 %v14463_v13  ;;  %v11158_v39 = vcombine.high %v586_v62, %v590_v32  ;;  %v11157_v37 = vcombine.low %v586_v62, %v590_v32  ;;  %v11155_v3 = vcombine.low %v585_v18, %v589_v45  ;;  %v621_v62 = vld [vmem:[#allocation6 + $0x2f0] sm:$0xff] }
 0x14f   :  { %2746 = vmatpush1.bf16.msra.mxu1 %v11117_v20  ;;  %2228 = vmatprep.mubr.bf16.mxu0 %v14526_v48  ;;  %v11156_v20 = vcombine.high %v585_v18, %v589_v45 }
 0x150   :  { %2454 = vmatprep.mubr.bf16.mxu1 %v14526_v48  ;;  %2520 = vmatpush1.bf16.msra.mxu0 %v11115_v46  ;;  %v594_v46 = vld [vmem:[#allocation6 + $0x218] sm:$0xff] }
 0x151   :  { %2747 = vmatprep.subr.bf16.mxu1 %v11126_v51  ;;  %2521 = vmatprep.subr.bf16.mxu0 %v11124_v17  ;;  %v598_v51 = vld [vmem:[#allocation6 + $0x238] sm:$0xff]  ;;  %v593_v17 = vld [vmem:[#allocation6 + $0x210] sm:$0xff] }
 0x152   :  { %v11166_v11 = vcombine.high %v594_v46, %v598_v51  ;;  %v11165_v53 = vcombine.low %v594_v46, %v598_v51  ;;  %v11163_v1 = vcombine.low %v593_v17, %v597_v27  ;;  %v629_v46 = vld [vmem:[#allocation6 + $0x330] sm:$0xff] }
 0x153   :  { %2748 = vmatpush1.bf16.msra.mxu1 %v11125_v28  ;;  %v11164_v28 = vcombine.high %v593_v17, %v597_v27 }
 0x154   :  { %2522 = vmatpush1.bf16.msra.mxu0 %v11123_v23  ;;  %2749 = vmatprep.subr.bf16.mxu1 %v11134_v56  ;;  %v602_v23 = vld [vmem:[#allocation6 + $0x258] sm:$0xff] }
 0x155   :  { %2523 = vmatprep.subr.bf16.mxu0 %v11132_v63  ;;  %v606_v56 = vld [vmem:[#allocation6 + $0x278] sm:$0xff]  ;;  %v601_v63 = vld [vmem:[#allocation6 + $0x250] sm:$0xff] }
 0x156   :  { %2229 = vmatmul.mubr.bf16.gmra.mrb[8].mxu0 %v14528_v61  ;;  %2455 = vmatmul.mubr.bf16.gmra.mrb[8].mxu1 %v14528_v61  ;;  %v11174_v14 = vcombine.high %v602_v23, %v606_v56  ;;  %v11173_v31 = vcombine.low %v602_v23, %v606_v56  ;;  %v11171_v16 = vcombine.low %v601_v63, %v605_v36  ;;  %v637_v23 = vld [vmem:[#allocation6 + $0x370] sm:$0xff] }
 0x157   :  { %2750 = vmatpush1.bf16.msra.mxu1 %v11133_v21  ;;  %2238 = vmatprep.mubr.bf16.mxu0 %v14550_v57  ;;  %v11172_v21 = vcombine.high %v601_v63, %v605_v36 }
 0x158   :  { %2464 = vmatprep.mubr.bf16.mxu1 %v14550_v57  ;;  %2524 = vmatpush1.bf16.msra.mxu0 %v11131_v54  ;;  %v610_v54 = vld [vmem:[#allocation6 + $0x298] sm:$0xff] }
 0x159   :  { %2751 = vmatprep.subr.bf16.mxu1 %v11142_v40  ;;  %2525 = vmatprep.subr.bf16.mxu0 %v11140_v60  ;;  %v614_v40 = vld [vmem:[#allocation6 + $0x2b8] sm:$0xff]  ;;  %v609_v60 = vld [vmem:[#allocation6 + $0x290] sm:$0xff] }
 0x15a   :  { %v11182_v47 = vcombine.high %v610_v54, %v614_v40  ;;  %v11181_v32 = vcombine.low %v610_v54, %v614_v40  ;;  %v11179_v18 = vcombine.low %v609_v60, %v613_v2  ;;  %v645_v54 = vld [vmem:[#allocation6 + $0x3b0] sm:$0xff] }
 0x15b   :  { %2752 = vmatpush1.bf16.msra.mxu1 %v11141_v22  ;;  %v11180_v22 = vcombine.high %v609_v60, %v613_v2 }
 0x15c   :  { %2526 = vmatpush1.bf16.msra.mxu0 %v11139_v6  ;;  %2753 = vmatprep.subr.bf16.mxu1 %v11150_v25  ;;  %v618_v6 = vld [vmem:[#allocation6 + $0x2d8] sm:$0xff] }
 0x15d   :  { %2527 = vmatprep.subr.bf16.mxu0 %v11148_v43  ;;  %v622_v25 = vld [vmem:[#allocation6 + $0x2f8] sm:$0xff]  ;;  %v617_v43 = vld [vmem:[#allocation6 + $0x2d0] sm:$0xff] }
 0x15e   :  { %2239 = vmatmul.mubr.bf16.gmra.mrb[12].mxu0 %v14554_v38  ;;  %2465 = vmatmul.mubr.bf16.gmra.mrb[12].mxu1 %v14554_v38  ;;  %v11190_v45 = vcombine.high %v618_v6, %v622_v25  ;;  %v11189_v51 = vcombine.low %v618_v6, %v622_v25  ;;  %v11187_v17 = vcombine.low %v617_v43, %v621_v62  ;;  %v653_v6 = vld [vmem:[#allocation6 + $0x3f0] sm:$0xff] }
 0x15f   :  { %2754 = vmatpush1.bf16.msra.mxu1 %v11149_v9  ;;  %2248 = vmatprep.mubr.bf16.mxu0 %v14563_v59  ;;  %v11188_v9 = vcombine.high %v617_v43, %v621_v62 }
 0x160   :  { %2474 = vmatprep.mubr.bf16.mxu1 %v14563_v59  ;;  %2528 = vmatpush1.bf16.msra.mxu0 %v11147_v34  ;;  %v626_v34 = vld [vmem:[#allocation6 + $0x318] sm:$0xff] }
 0x161   :  { %2755 = vmatprep.subr.bf16.mxu1 %v11158_v39  ;;  %2529 = vmatprep.subr.bf16.mxu0 %v11156_v20  ;;  %v630_v39 = vld [vmem:[#allocation6 + $0x338] sm:$0xff]  ;;  %v625_v20 = vld [vmem:[#allocation6 + $0x310] sm:$0xff] }
 0x162   :  { %v11198_v27 = vcombine.high %v626_v34, %v630_v39  ;;  %v11197_v56 = vcombine.low %v626_v34, %v630_v39  ;;  %v11195_v63 = vcombine.low %v625_v20, %v629_v46  ;;  %v661_v34 = vld [vmem:[#allocation6 + $0x430] sm:$0xff]  ;;  %v18804_v39 = vld [vmem:[#allocation32_spill] sm:$0xff] }
 0x163   :  { %2756 = vmatpush1.bf16.msra.mxu1 %v11157_v37  ;;  %v11196_v37 = vcombine.high %v625_v20, %v629_v46 }
 0x164   :  { %2530 = vmatpush1.bf16.msra.mxu0 %v11155_v3  ;;  %2757 = vmatprep.subr.bf16.mxu1 %v11166_v11  ;;  %v634_v3 = vld [vmem:[#allocation6 + $0x358] sm:$0xff] }
 0x165   :  { %2531 = vmatprep.subr.bf16.mxu0 %v11164_v28  ;;  %v638_v11 = vld [vmem:[#allocation6 + $0x378] sm:$0xff]  ;;  %v633_v28 = vld [vmem:[#allocation6 + $0x350] sm:$0xff] }
 0x166   :  { %2249 = vmatmul.mubr.bf16.gmra.mrb[16].mxu0 %v14573_v41  ;;  %2475 = vmatmul.mubr.bf16.gmra.mrb[16].mxu1 %v14573_v41  ;;  %v11206_v36 = vcombine.high %v634_v3, %v638_v11  ;;  %v11205_v40 = vcombine.low %v634_v3, %v638_v11  ;;  %v11203_v60 = vcombine.low %v633_v28, %v637_v23  ;;  %v665_v11 = vld [vmem:[#allocation6 + $0x450] sm:$0xff] }
 0x167   :  { %2758 = vmatpush1.bf16.msra.mxu1 %v11165_v53  ;;  %2258 = vmatprep.mubr.bf16.mxu0 %v14591_v55  ;;  %v11204_v53 = vcombine.high %v633_v28, %v637_v23  ;;  %v669_v28 = vld [vmem:[#allocation6 + $0x470] sm:$0xff] }
 0x168   :  { %2484 = vmatprep.mubr.bf16.mxu1 %v14591_v55  ;;  %2532 = vmatpush1.bf16.msra.mxu0 %v11163_v1  ;;  %v642_v1 = vld [vmem:[#allocation6 + $0x398] sm:$0xff] }
 0x169   :  { %2759 = vmatprep.subr.bf16.mxu1 %v11174_v14  ;;  %2533 = vmatprep.subr.bf16.mxu0 %v11172_v21  ;;  %v646_v14 = vld [vmem:[#allocation6 + $0x3b8] sm:$0xff]  ;;  %v641_v21 = vld [vmem:[#allocation6 + $0x390] sm:$0xff] }
 0x16a   :  { %v11214_v2 = vcombine.high %v642_v1, %v646_v14  ;;  %v11213_v25 = vcombine.low %v642_v1, %v646_v14  ;;  %v11211_v43 = vcombine.low %v641_v21, %v645_v54  ;;  %v11236_v1 = vcombine.high %v665_v11, %v669_v28  ;;  %v673_v14 = vld [vmem:[#allocation6 + $0x490] sm:$0xff] }
 0x16b   :  { %2760 = vmatpush1.bf16.msra.mxu1 %v11173_v31  ;;  %v11212_v31 = vcombine.high %v641_v21, %v645_v54  ;;  %v677_v21 = vld [vmem:[#allocation6 + $0x4b0] sm:$0xff] }
 0x16c   :  { %2534 = vmatpush1.bf16.msra.mxu0 %v11171_v16  ;;  %2761 = vmatprep.subr.bf16.mxu1 %v11182_v47  ;;  %v650_v16 = vld [vmem:[#allocation6 + $0x3d8] sm:$0xff] }
 0x16d   :  { %2535 = vmatprep.subr.bf16.mxu0 %v11180_v22  ;;  %v654_v47 = vld [vmem:[#allocation6 + $0x3f8] sm:$0xff]  ;;  %v649_v22 = vld [vmem:[#allocation6 + $0x3d0] sm:$0xff] }
 0x16e   :  { %2259 = vmatmul.mubr.bf16.gmra.mrb[20].mxu0 %v14602_v42  ;;  %2485 = vmatmul.mubr.bf16.gmra.mrb[20].mxu1 %v14602_v42  ;;  %v11222_v62 = vcombine.high %v650_v16, %v654_v47  ;;  %v11221_v20 = vcombine.low %v650_v16, %v654_v47  ;;  %v11219_v46 = vcombine.low %v649_v22, %v653_v6  ;;  %v682_v16 = vld [vmem:[#allocation6 + $0x4d8] sm:$0xff] }
 0x16f   :  { %2762 = vmatpush1.bf16.msra.mxu1 %v11181_v32  ;;  %2268 = vmatprep.mubr.bf16.mxu0 %v14620_v30  ;;  %v11220_v32 = vcombine.high %v649_v22, %v653_v6  ;;  %v686_v47 = vld [vmem:[#allocation6 + $0x4f8] sm:$0xff]  ;;  %v681_v6 = vld [vmem:[#allocation6 + $0x4d0] sm:$0xff] }
 0x170   :  { %2494 = vmatprep.mubr.bf16.mxu1 %v14620_v30  ;;  %2536 = vmatpush1.bf16.msra.mxu0 %v11179_v18  ;;  %v658_v18 = vld [vmem:[#allocation6 + $0x418] sm:$0xff] }
 0x171   :  { %2763 = vmatprep.subr.bf16.mxu1 %v11190_v45  ;;  %2537 = vmatprep.subr.bf16.mxu0 %v11188_v9  ;;  %v662_v45 = vld [vmem:[#allocation6 + $0x438] sm:$0xff]  ;;  %v657_v9 = vld [vmem:[#allocation6 + $0x410] sm:$0xff] }
 0x172   :  { %v11229_v3 = vcombine.low %v658_v18, %v662_v45  ;;  %v11227_v23 = vcombine.low %v657_v9, %v661_v34 }
 0x173   :  { %2764 = vmatpush1.bf16.msra.mxu1 %v11189_v51  ;;  %v11230_v51 = vcombine.high %v658_v18, %v662_v45  ;;  %v694_v18 = vld [vmem:[#allocation6 + $0x538] sm:$0xff] }
 0x174   :  { %2538 = vmatpush1.bf16.msra.mxu0 %v11187_v17  ;;  %2765 = vmatprep.subr.bf16.mxu1 %v11198_v27  ;;  %v11228_v17 = vcombine.high %v657_v9, %v661_v34  ;;  %v666_v27 = vld [vmem:[#allocation6 + $0x458] sm:$0xff]  ;;  %v689_v9 = vld [vmem:[#allocation6 + $0x510] sm:$0xff] }
 0x175   :  { %2539 = vmatprep.subr.bf16.mxu0 %v11196_v37  ;;  %v670_v37 = vld [vmem:[#allocation6 + $0x478] sm:$0xff]  ;;  %v693_v34 = vld [vmem:[#allocation6 + $0x530] sm:$0xff] }
 0x176   :  { %2269 = vmatmul.mubr.bf16.gmra.mrb[24].mxu0 %v14625_v10  ;;  %2495 = vmatmul.mubr.bf16.gmra.mrb[24].mxu1 %v14625_v10  ;;  %v11237_v54 = vcombine.low %v666_v27, %v670_v37 }
 0x177   :  { %2766 = vmatpush1.bf16.msra.mxu1 %v11197_v56  ;;  %2278 = vmatprep.mubr.bf16.mxu0 %v14644_v29  ;;  %v11238_v56 = vcombine.high %v666_v27, %v670_v37  ;;  %v702_v27 = vld [vmem:[#allocation6 + $0x578] sm:$0xff] }
 0x178   :  { %2504 = vmatprep.mubr.bf16.mxu1 %v14644_v29  ;;  %2540 = vmatpush1.bf16.msra.mxu0 %v11195_v63  ;;  %v674_v63 = vld [vmem:[#allocation6 + $0x498] sm:$0xff] }
 0x179   :  { %2767 = vmatprep.subr.bf16.mxu1 %v11206_v36  ;;  %2541 = vmatprep.subr.bf16.mxu0 %v11204_v53  ;;  %v678_v36 = vld [vmem:[#allocation6 + $0x4b8] sm:$0xff]  ;;  %v18805_v53 = vld [vmem:[#allocation33_spill] sm:$0xff] }
 0x17a   :  { %v11245_v22 = vcombine.low %v674_v63, %v678_v36 }
 0x17b   :  { %2768 = vmatpush1.bf16.msra.mxu1 %v11205_v40  ;;  %v18806_v40 = vld [vmem:[#allocation34_spill] sm:$0xff] }
 0x17c   :  { %2542 = vmatpush1.bf16.msra.mxu0 %v11203_v60  ;;  %2769 = vmatprep.subr.bf16.mxu1 %v11214_v2  ;;  %v11235_v60 = vcombine.low %v665_v11, %v669_v28  ;;  %v11246_v2 = vcombine.high %v674_v63, %v678_v36  ;;  %v701_v11 = vld [vmem:[#allocation6 + $0x570] sm:$0xff] }
 0x17d   :  { %2543 = vmatprep.subr.bf16.mxu0 %v11212_v31  ;;  %v11244_v31 = vcombine.high %v673_v14, %v677_v21  ;;  %v709_v36 = vld [vmem:[#allocation6 + $0x5b0] sm:$0xff] }
 0x17e   :  { %2279 = vmatmul.mubr.bf16.gmra.mrb[28].mxu0 %v14658_v50  ;;  %2505 = vmatmul.mubr.bf16.gmra.mrb[28].mxu1 %v14658_v50 }
 0x17f   :  { %2770 = vmatpush1.bf16.msra.mxu1 %v11213_v25  ;;  %2547 = vmatprep.mubr.bf16.mxu0 %v18804_v39  ;;  %v685_v25 = vld [vmem:[#allocation6 + $0x4f0] sm:$0xff] }
 0x180   :  { %2544 = vmatpush1.bf16.msra.mxu0 %v11211_v43  ;;  %2773 = vmatprep.mubr.bf16.mxu1 %v18804_v39  ;;  %v11243_v43 = vcombine.low %v673_v14, %v677_v21  ;;  %v11252_v45 = vcombine.high %v681_v6, %v685_v25  ;;  %v11253_v39 = vcombine.low %v682_v16, %v686_v47 }
 0x181   :  { %2771 = vmatprep.subr.bf16.mxu1 %v11222_v62  ;;  %2545 = vmatprep.subr.bf16.mxu0 %v11220_v32  ;;  %v11254_v62 = vcombine.high %v682_v16, %v686_v47  ;;  %v690_v32 = vld [vmem:[#allocation6 + $0x518] sm:$0xff] }
 0x182   :  { %v11261_v37 = vcombine.low %v690_v32, %v694_v18  ;;  %v722_v47 = vld [vmem:[#allocation6 + $0x618] sm:$0xff] }
 0x183   :  { %2772 = vmatpush1.bf16.msra.mxu1 %v11221_v20  ;;  %v11251_v20 = vcombine.low %v681_v6, %v685_v25  ;;  %v725_v25 = vld [vmem:[#allocation6 + $0x630] sm:$0xff] }
 0x184   :  { %2546 = vmatpush1.bf16.msra.mxu0 %v11219_v46  ;;  %2854 = vmatprep.subr.bf16.mxu1 %v11230_v51  ;;  %v11262_v46 = vcombine.high %v690_v32, %v694_v18  ;;  %v11260_v51 = vcombine.high %v689_v9, %v693_v34 }
 0x185   :  { %2628 = vmatprep.subr.bf16.mxu0 %v11228_v17  ;;  %v698_v17 = vld [vmem:[#allocation6 + $0x558] sm:$0xff] }
 0x186   :  { %2774 = vmatmul.mubr.bf16.vlgmr.msra.gmra.mrb[32].mxu1 %v18805_v53  ;;  %v11270_v28 = vcombine.high %v698_v17, %v702_v27 }
 0x187   :  { %2548 = vmatmul.mubr.bf16.vlgmr.msra.gmra.mrb[32].mxu0 %v18805_v53  ;;  %2855 = vmatpush1.bf16.msra.mxu1 %v11229_v3  ;;  %v697_v3 = vld [vmem:[#allocation6 + $0x550] sm:$0xff]  ;;  %v11269_v53 = vcombine.low %v698_v17, %v702_v27  ;;  %v742_v17 = vld [vmem:[#allocation6 + $0x6b8] sm:$0xff] }
 0x188   :  { %2557 = vmatprep.mubr.bf16.mxu0 %v18806_v40  ;;  %2629 = vmatpush1.bf16.msra.mxu0 %v11227_v23  ;;  %v706_v23 = vld [vmem:[#allocation6 + $0x598] sm:$0xff]  ;;  %v11268_v63 = vcombine.high %v697_v3, %v701_v11 }
 0x189   :  { %2783 = vmatprep.mubr.bf16.mxu1 %v18806_v40  ;;  %2856 = vmatprep.subr.bf16.mxu1 %v11238_v56  ;;  %v710_v56 = vld [vmem:[#allocation6 + $0x5b8] sm:$0xff] }
 0x18a   :  { %2630 = vmatprep.subr.bf16.mxu0 %v11236_v1  ;;  %v11267_v1 = vcombine.low %v697_v3, %v701_v11  ;;  %v11278_v14 = vcombine.high %v706_v23, %v710_v56  ;;  %v718_v40 = vld [vmem:[#allocation6 + $0x5f8] sm:$0xff] }
 0x18b   :  { %2857 = vmatpush1.bf16.msra.mxu1 %v11237_v54  ;;  %v714_v54 = vld [vmem:[#allocation6 + $0x5d8] sm:$0xff] }
 0x18c   :  { %2631 = vmatpush1.bf16.msra.mxu0 %v11235_v60  ;;  %2858 = vmatprep.subr.bf16.mxu1 %v11246_v2  ;;  %v11277_v60 = vcombine.low %v706_v23, %v710_v56  ;;  %v713_v2 = vld [vmem:[#allocation6 + $0x5d0] sm:$0xff]  ;;  %v11286_v16 = vcombine.high %v714_v54, %v718_v40  ;;  %v746_v23 = vld [vmem:[#allocation6 + $0x6d8] sm:$0xff] }
 0x18d   :  { %2632 = vmatprep.subr.bf16.mxu0 %v11244_v31  ;;  %v717_v31 = vld [vmem:[#allocation6 + $0x5f0] sm:$0xff]  ;;  %v750_v56 = vld [vmem:[#allocation6 + $0x6f8] sm:$0xff] }
 0x18e   :  { %2784 = vmatmul.mubr.bf16.gmra.mrb[36].mxu1 %v14340_v4  ;;  %v11284_v6 = vcombine.high %v713_v2, %v717_v31 }
 0x18f   :  { %2558 = vmatmul.mubr.bf16.gmra.mrb[36].mxu0 %v14340_v4  ;;  %2859 = vmatpush1.bf16.msra.mxu1 %v11245_v22  ;;  %v11259_v4 = vcombine.low %v689_v9, %v693_v34  ;;  %v726_v22 = vld [vmem:[#allocation6 + $0x638] sm:$0xff] }
 0x190   :  { %2567 = vmatprep.mubr.bf16.mxu0 %v14347_v58  ;;  %2633 = vmatpush1.bf16.msra.mxu0 %v11243_v43  ;;  %v11285_v43 = vcombine.low %v714_v54, %v718_v40  ;;  %v11294_v32 = vcombine.high %v722_v47, %v726_v22  ;;  %v734_v9 = vld [vmem:[#allocation6 + $0x678] sm:$0xff]  ;;  %v11293_v34 = vcombine.low %v722_v47, %v726_v22  ;;  %v757_v54 = vld [vmem:[#allocation6 + $0x730] sm:$0xff] }
 0x191   :  { %2793 = vmatprep.mubr.bf16.mxu1 %v14347_v58  ;;  %2860 = vmatprep.subr.bf16.mxu1 %v11254_v62  ;;  %v705_v58 = vld [vmem:[#allocation6 + $0x590] sm:$0xff]  ;;  %v11283_v62 = vcombine.low %v713_v2, %v717_v31  ;;  %v11317_v40 = vcombine.low %v746_v23, %v750_v56 }
 0x192   :  { %2634 = vmatprep.subr.bf16.mxu0 %v11252_v45  ;;  %v11276_v21 = vcombine.high %v705_v58, %v709_v36  ;;  %v730_v45 = vld [vmem:[#allocation6 + $0x658] sm:$0xff]  ;;  %v761_v22 = vld [vmem:[#allocation6 + $0x750] sm:$0xff] }
 0x193   :  { %2861 = vmatpush1.bf16.msra.mxu1 %v11253_v39  ;;  %v729_v39 = vld [vmem:[#allocation6 + $0x650] sm:$0xff]  ;;  %v11301_v3 = vcombine.low %v730_v45, %v734_v9 }
 0x194   :  { %2635 = vmatpush1.bf16.msra.mxu0 %v11251_v20  ;;  %2862 = vmatprep.subr.bf16.mxu1 %v11262_v46  ;;  %v733_v20 = vld [vmem:[#allocation6 + $0x670] sm:$0xff]  ;;  %v11302_v46 = vcombine.high %v730_v45, %v734_v9 }
 0x195   :  { %2636 = vmatprep.subr.bf16.mxu0 %v11260_v51  ;;  %v738_v51 = vld [vmem:[#allocation6 + $0x698] sm:$0xff]  ;;  %v11300_v27 = vcombine.high %v729_v39, %v733_v20  ;;  %v11299_v11 = vcombine.low %v729_v39, %v733_v20 }
 0x196   :  { %2794 = vmatmul.mubr.bf16.gmra.mrb[40].mxu1 %v14349_v12  ;;  %v778_v39 = vld [vmem:[#allocation6 + $0x7d8] sm:$0xff] }
 0x197   :  { %2568 = vmatmul.mubr.bf16.gmra.mrb[40].mxu0 %v14349_v12  ;;  %2863 = vmatpush1.bf16.msra.mxu1 %v11261_v37  ;;  %v11275_v12 = vcombine.low %v705_v58, %v709_v36  ;;  %v741_v37 = vld [vmem:[#allocation6 + $0x6b0] sm:$0xff]  ;;  %v782_v20 = vld [vmem:[#allocation6 + $0x7f8] sm:$0xff] }
 0x198   :  { %2577 = vmatprep.mubr.bf16.mxu0 %v14378_v8  ;;  %2637 = vmatpush1.bf16.msra.mxu0 %v11259_v4  ;;  %v11310_v4 = vcombine.high %v738_v51, %v742_v17  ;;  %v745_v58 = vld [vmem:[#allocation6 + $0x6d0] sm:$0xff] }
 0x199   :  { %2803 = vmatprep.mubr.bf16.mxu1 %v14378_v8  ;;  %2864 = vmatprep.subr.bf16.mxu1 %v11270_v28  ;;  %v721_v8 = vld [vmem:[#allocation6 + $0x610] sm:$0xff] }
 0x19a   :  { %2638 = vmatprep.subr.bf16.mxu0 %v11268_v63  ;;  %v11292_v18 = vcombine.high %v721_v8, %v725_v25  ;;  %v11309_v63 = vcombine.low %v738_v51, %v742_v17  ;;  %v749_v36 = vld [vmem:[#allocation6 + $0x6f0] sm:$0xff]  ;;  %v11350_v17 = vcombine.high %v778_v39, %v782_v20 }
 0x19b   :  { %2865 = vmatpush1.bf16.msra.mxu1 %v11269_v53  ;;  %v11318_v53 = vcombine.high %v746_v23, %v750_v56  ;;  %v781_v51 = vld [vmem:[#allocation6 + $0x7f0] sm:$0xff] }
 0x19c   :  { %2639 = vmatpush1.bf16.msra.mxu0 %v11267_v1  ;;  %2866 = vmatprep.subr.bf16.mxu1 %v11278_v14  ;;  %v754_v1 = vld [vmem:[#allocation6 + $0x718] sm:$0xff] }
 0x19d   :  { %2640 = vmatprep.subr.bf16.mxu0 %v11276_v21  ;;  %v758_v14 = vld [vmem:[#allocation6 + $0x738] sm:$0xff]  ;;  %v11316_v21 = vcombine.high %v745_v58, %v749_v36 }
 0x19e   :  { %2804 = vmatmul.mubr.bf16.gmra.mrb[44].mxu1 %v14452_v33  ;;  %v11326_v2 = vcombine.high %v754_v1, %v758_v14  ;;  %v11325_v47 = vcombine.low %v754_v1, %v758_v14 }
 0x19f   :  { %2578 = vmatmul.mubr.bf16.gmra.mrb[44].mxu0 %v14452_v33  ;;  %2867 = vmatpush1.bf16.msra.mxu1 %v11277_v60  ;;  %v11291_v33 = vcombine.low %v721_v8, %v725_v25  ;;  %v11315_v60 = vcombine.low %v745_v58, %v749_v36  ;;  %v770_v25 = vld [vmem:[#allocation6 + $0x798] sm:$0xff] }
 0x1a0   :  { %2587 = vmatprep.mubr.bf16.mxu0 %v14458_v49  ;;  %2641 = vmatpush1.bf16.msra.mxu0 %v11275_v12  ;;  %v762_v12 = vld [vmem:[#allocation6 + $0x758] sm:$0xff] }
 0x1a1   :  { %2813 = vmatprep.mubr.bf16.mxu1 %v14458_v49  ;;  %2868 = vmatprep.subr.bf16.mxu1 %v11286_v16  ;;  %v737_v49 = vld [vmem:[#allocation6 + $0x690] sm:$0xff]  ;;  %v766_v16 = vld [vmem:[#allocation6 + $0x778] sm:$0xff] }
 0x1a2   :  { %2642 = vmatprep.subr.bf16.mxu0 %v11284_v6  ;;  %v11308_v28 = vcombine.high %v737_v49, %v741_v37  ;;  %v765_v6 = vld [vmem:[#allocation6 + $0x770] sm:$0xff]  ;;  %v11334_v8 = vcombine.high %v762_v12, %v766_v16 }
 0x1a3   :  { %2869 = vmatpush1.bf16.msra.mxu1 %v11285_v43  ;;  %v774_v43 = vld [vmem:[#allocation6 + $0x7b8] sm:$0xff]  ;;  %v11331_v45 = vcombine.low %v761_v22, %v765_v6 }
 0x1a4   :  { %2643 = vmatpush1.bf16.msra.mxu0 %v11283_v62  ;;  %2870 = vmatprep.subr.bf16.mxu1 %v11294_v32  ;;  %v11332_v62 = vcombine.high %v761_v22, %v765_v6  ;;  %v773_v32 = vld [vmem:[#allocation6 + $0x7b0] sm:$0xff]  ;;  %v11342_v9 = vcombine.high %v770_v25, %v774_v43 }
 0x1a5   :  { %2644 = vmatprep.subr.bf16.mxu0 %v11292_v18  ;;  %v11333_v18 = vcombine.low %v762_v12, %v766_v16 }
 0x1a6   :  { %2814 = vmatmul.mubr.bf16.gmra.mrb[48].mxu1 %v14460_v7 }
 0x1a7   :  { %2588 = vmatmul.mubr.bf16.gmra.mrb[48].mxu0 %v14460_v7  ;;  %2871 = vmatpush1.bf16.msra.mxu1 %v11293_v34  ;;  %v11307_v7 = vcombine.low %v737_v49, %v741_v37 }
 0x1a8   :  { %2597 = vmatprep.mubr.bf16.mxu0 %v14473_v26  ;;  %2645 = vmatpush1.bf16.msra.mxu0 %v11291_v33  ;;  %v11341_v33 = vcombine.low %v770_v25, %v774_v43 }
 0x1a9   :  { %2823 = vmatprep.mubr.bf16.mxu1 %v14473_v26  ;;  %2872 = vmatprep.subr.bf16.mxu1 %v11302_v46  ;;  %v753_v26 = vld [vmem:[#allocation6 + $0x710] sm:$0xff] }
 0x1aa   :  { %2646 = vmatprep.subr.bf16.mxu0 %v11300_v27  ;;  %v11324_v31 = vcombine.high %v753_v26, %v757_v54  ;;  %v777_v46 = vld [vmem:[#allocation6 + $0x7d0] sm:$0xff] }
 0x1ab   :  { %2873 = vmatpush1.bf16.msra.mxu1 %v11301_v3  ;;  %v11348_v27 = vcombine.high %v777_v46, %v781_v51  ;;  %v11347_v49 = vcombine.low %v777_v46, %v781_v51 }
 0x1ac   :  { %2647 = vmatpush1.bf16.msra.mxu0 %v11299_v11  ;;  %2874 = vmatprep.subr.bf16.mxu1 %v11310_v4 }
 0x1ad   :  { %2648 = vmatprep.subr.bf16.mxu0 %v11308_v28 }
 0x1ae   :  { %2824 = vmatmul.mubr.bf16.gmra.mrb[52].mxu1 %v14475_v19 }
 0x1af   :  { %2598 = vmatmul.mubr.bf16.gmra.mrb[52].mxu0 %v14475_v19  ;;  %2875 = vmatpush1.bf16.msra.mxu1 %v11309_v63  ;;  %v11323_v19 = vcombine.low %v753_v26, %v757_v54 }
 0x1b0   :  { %2607 = vmatprep.mubr.bf16.mxu0 %v14617_v44  ;;  %2649 = vmatpush1.bf16.msra.mxu0 %v11307_v7 }
 0x1b1   :  { %2833 = vmatprep.mubr.bf16.mxu1 %v14617_v44  ;;  %2876 = vmatprep.subr.bf16.mxu1 %v11318_v53  ;;  %v769_v44 = vld [vmem:[#allocation6 + $0x790] sm:$0xff] }
 0x1b2   :  { %2650 = vmatprep.subr.bf16.mxu0 %v11316_v21  ;;  %v11340_v34 = vcombine.high %v769_v44, %v773_v32 }
 0x1b3   :  { %2877 = vmatpush1.bf16.msra.mxu1 %v11317_v40 }
 0x1b4   :  { %2651 = vmatpush1.bf16.msra.mxu0 %v11315_v60  ;;  %2878 = vmatprep.subr.bf16.mxu1 %v11326_v2 }
 0x1b5   :  { %2652 = vmatprep.subr.bf16.mxu0 %v11324_v31 }
 0x1b6   :  { %2834 = vmatmul.mubr.bf16.gmra.mrb[56].mxu1 %v14654_v35 }
 0x1b7   :  { %2608 = vmatmul.mubr.bf16.gmra.mrb[56].mxu0 %v14654_v35  ;;  %2879 = vmatpush1.bf16.msra.mxu1 %v11325_v47  ;;  %v11339_v35 = vcombine.low %v769_v44, %v773_v32 }
 0x1b8   :  { %2617 = vmatprep.mubr.bf16.mxu0 %v14663_v0  ;;  %2653 = vmatpush1.bf16.msra.mxu0 %v11323_v19 }
 0x1b9   :  { %2843 = vmatprep.mubr.bf16.mxu1 %v14663_v0  ;;  %2880 = vmatprep.subr.bf16.mxu1 %v11334_v8  ;;  %v11349_v0 = vcombine.low %v778_v39, %v782_v20 }
 0x1ba   :  { %2654 = vmatprep.subr.bf16.mxu0 %v11332_v62 }
 0x1bb   :  { %2881 = vmatpush1.bf16.msra.mxu1 %v11333_v18 }
 0x1bc   :  { %2655 = vmatpush1.bf16.msra.mxu0 %v11331_v45  ;;  %2882 = vmatprep.subr.bf16.mxu1 %v11342_v9 }
 0x1bd   :  { %2656 = vmatprep.subr.bf16.mxu0 %v11340_v34 }
 0x1be   :  { %2844 = vmatmul.mubr.bf16.gmra.mrb[60].mxu1 %v14671_v52 }
 0x1bf   :  { %2618 = vmatmul.mubr.bf16.gmra.mrb[60].mxu0 %v14671_v52  ;;  %2883 = vmatpush1.bf16.msra.mxu1 %v11341_v33 }
 0x1c0   :  { %2657 = vmatpush1.bf16.msra.mxu0 %v11339_v35  ;;  %2660 = vmatprep.mubr.bf16.mxu0 %v18803_v15 }
 0x1c1   :  { %2886 = vmatprep.mubr.bf16.mxu1 %v18803_v15  ;;  %2884 = vmatprep.subr.bf16.mxu1 %v11350_v17 }
 0x1c2   :  { %2658 = vmatprep.subr.bf16.mxu0 %v11348_v27 }
 0x1c3   :  { %2885 = vmatpush1.bf16.msra.mxu1 %v11349_v0 }
 0x1c4   :  { %2659 = vmatpush1.bf16.msra.mxu0 %v11347_v49 }
 0x1c6   :  { %2887 = vmatmul.mubr.bf16.vlgmr.msra.gmra.mrb[32].mxu1 %v14400_v5 }
 0x1c7   :  { %2661 = vmatmul.mubr.bf16.vlgmr.msra.gmra.mrb[32].mxu0 %v14400_v5  ;;  %2896 = vmatprep.mubr.bf16.mxu1 %v14418_v24 }
 0x1c8   :  { %2670 = vmatprep.mubr.bf16.mxu0 %v14418_v24 }
 0x1ce   :  { %2897 = vmatmul.mubr.bf16.gmra.mrb[36].mxu1 %v14463_v13 }
 0x1cf   :  { %2671 = vmatmul.mubr.bf16.gmra.mrb[36].mxu0 %v14463_v13  ;;  %2906 = vmatprep.mubr.bf16.mxu1 %v14526_v48 }
 0x1d0   :  { %2680 = vmatprep.mubr.bf16.mxu0 %v14526_v48 }
 0x1d6   :  { %2907 = vmatmul.mubr.bf16.gmra.mrb[40].mxu1 %v14528_v61 }
 0x1d7   :  { %2681 = vmatmul.mubr.bf16.gmra.mrb[40].mxu0 %v14528_v61  ;;  %2916 = vmatprep.mubr.bf16.mxu1 %v14550_v57 }
 0x1d8   :  { %2690 = vmatprep.mubr.bf16.mxu0 %v14550_v57 }
 0x1de   :  { %2917 = vmatmul.mubr.bf16.gmra.mrb[44].mxu1 %v14554_v38 }
 0x1df   :  { %2691 = vmatmul.mubr.bf16.gmra.mrb[44].mxu0 %v14554_v38  ;;  %2926 = vmatprep.mubr.bf16.mxu1 %v14563_v59 }
 0x1e0   :  { %2700 = vmatprep.mubr.bf16.mxu0 %v14563_v59 }
 0x1e6   :  { %2927 = vmatmul.mubr.bf16.gmra.mrb[48].mxu1 %v14573_v41 }
 0x1e7   :  { %2701 = vmatmul.mubr.bf16.gmra.mrb[48].mxu0 %v14573_v41  ;;  %2936 = vmatprep.mubr.bf16.mxu1 %v14591_v55 }
 0x1e8   :  { %2710 = vmatprep.mubr.bf16.mxu0 %v14591_v55 }
 0x1ee   :  { %2937 = vmatmul.mubr.bf16.gmra.mrb[52].mxu1 %v14602_v42 }
 0x1ef   :  { %2711 = vmatmul.mubr.bf16.gmra.mrb[52].mxu0 %v14602_v42  ;;  %2946 = vmatprep.mubr.bf16.mxu1 %v14620_v30 }
 0x1f0   :  { %2720 = vmatprep.mubr.bf16.mxu0 %v14620_v30 }
 0x1f6   :  { %2947 = vmatmul.mubr.bf16.gmra.mrb[56].mxu1 %v14625_v10 }
 0x1f7   :  { %2721 = vmatmul.mubr.bf16.gmra.mrb[56].mxu0 %v14625_v10  ;;  %2956 = vmatprep.mubr.bf16.mxu1 %v14644_v29 }
 0x1f8   :  { %2730 = vmatprep.mubr.bf16.mxu0 %v14644_v29 }
 0x1fe   :  { %2957 = vmatmul.mubr.bf16.gmra.mrb[60].mxu1 %v14658_v50 }
 0x1ff   :  { %2731 = vmatmul.mubr.bf16.gmra.mrb[60].mxu0 %v14658_v50 }
 0x219   :  { %v14771_v5 = vpop.f32.mrb[0].mxu0  ;;  %v14773_v24 = vpop.f32.mrb[0].mxu1 }
 0x21a   :  { %3066 = vrot.lane.b32.xlu0 %v14773_v24, %s13925_s13  ;;  %v14777_v13 = vpop.f32.mrb[1].mxu0  ;;  %v2438_v48 = vpop.f32.mrb[1].mxu1 }
 0x21b   :  { %v14779_v61 = vpop.f32.mrb[2].mxu0  ;;  %v14781_v57 = vpop.f32.mrb[2].mxu1 }
 0x21c   :  { %3068 = vrot.lane.b32.xlu1 %v14781_v57, %s13925_s13  ;;  %v14785_v38 = vpop.f32.mrb[3].mxu0  ;;  %v2442_v59 = vpop.f32.mrb[3].mxu1 }
 0x21d   :  { %v3138_v41 = vpack.c.bf16 %v2442_v59, %v2438_v48 }
 0x21e   :  { %3162 = vrot.lane.b32.xlu0 %v14771_v5, %s13925_s13 }
 0x21f   :  { %12071 = vmatprep.subr.bf16.mxu1 %v3138_v41 }
 0x220   :  { %12072 = vmatpush3.bf16.msra.mxu1 %v3138_v41  ;;  %3164 = vrot.lane.b32.xlu1 %v14779_v61, %s13925_s13 }
 0x221   :  { %v14791_v55 = vpop.f32.mrb[4].mxu0  ;;  %v14793_v42 = vpop.f32.mrb[4].mxu1 }
 0x222   :  { %v2448_v30 = vpop.f32.mrb[5].mxu1  ;;  %3242 = vrot.lane.b32.xlu0 %v14777_v13, %s13925_s13  ;;  %v14797_v10 = vpop.f32.mrb[5].mxu0 }
 0x223   :  { %18807 = vst [vmem:[#allocation20_spill] sm:$0xff] %v14797_v10  ;;  %v14799_v29 = vpop.f32.mrb[6].mxu0  ;;  %v14801_v50 = vpop.f32.mrb[6].mxu1 }
 0x224   :  { %v2452_v52 = vpop.f32.mrb[7].mxu1  ;;  %3244 = vrot.lane.b32.xlu1 %v14785_v38, %s13925_s13  ;;  %v14805_v15 = vpop.f32.mrb[7].mxu0 }
 0x225   :  { %18808 = vst [vmem:[#allocation21_spill] sm:$0xff] %v14805_v15  ;;  %v3139_v37 = vpack.c.bf16 %v2452_v52, %v2448_v30 }
 0x226   :  { %3166 = vrot.lane.b32.xlu0 %v14791_v55, %s13925_s13 }
 0x227   :  { %12073 = vmatprep.subr.bf16.mxu1 %v3139_v37 }
 0x228   :  { %12074 = vmatpush3.bf16.msra.mxu1 %v3139_v37  ;;  %3070 = vrot.lane.b32.xlu1 %v14793_v42, %s13925_s13 }
 0x229   :  { %v14811_v3 = vpop.f32.mrb[8].mxu0  ;;  %v14813_v11 = vpop.f32.mrb[8].mxu1 }
 0x22a   :  { %v2458_v4 = vpop.f32.mrb[9].mxu1  ;;  %3074 = vrot.lane.b32.xlu0 %v14813_v11, %s13925_s13  ;;  %v14817_v28 = vpop.f32.mrb[9].mxu0 }
 0x22b   :  { %18809 = vst [vmem:[#allocation22_spill] sm:$0xff] %v14817_v28  ;;  %v14819_v23 = vpop.f32.mrb[10].mxu0  ;;  %v14821_v56 = vpop.f32.mrb[10].mxu1 }
 0x22c   :  { %v2462_v63 = vpop.f32.mrb[11].mxu1  ;;  %3072 = vrot.lane.b32.xlu1 %v14801_v50, %s13925_s13  ;;  %v14825_v58 = vpop.f32.mrb[11].mxu0 }
 0x22d   :  { %18810 = vst [vmem:[#allocation23_spill] sm:$0xff] %v14825_v58  ;;  %v3140_v36 = vpack.c.bf16 %v2462_v63, %v2458_v4 }
 0x22e   :  { %3170 = vrot.lane.b32.xlu0 %v14811_v3, %s13925_s13 }
 0x22f   :  { %12075 = vmatprep.subr.bf16.mxu1 %v3140_v36 }
 0x230   :  { %12076 = vmatpush3.bf16.msra.mxu1 %v3140_v36  ;;  %3168 = vrot.lane.b32.xlu1 %v14799_v29, %s13925_s13  ;;  %v14938_v36 = vld [vmem:[%s18449_s1 + $0x8] sm:$0xff] }
 0x231   :  { %v14831_v7 = vpop.f32.mrb[12].mxu0  ;;  %v14833_v53 = vpop.f32.mrb[12].mxu1 }
 0x232   :  { %v2468_v1 = vpop.f32.mrb[13].mxu1  ;;  %3078 = vrot.lane.b32.xlu0 %v14833_v53, %s13925_s13  ;;  %v14837_v14 = vpop.f32.mrb[13].mxu0 }
 0x233   :  { %18811 = vst [vmem:[#allocation24_spill] sm:$0xff] %v14837_v14  ;;  %v14839_v21 = vpop.f32.mrb[14].mxu0  ;;  %v14841_v26 = vpop.f32.mrb[14].mxu1 }
 0x234   :  { %v2472_v54 = vpop.f32.mrb[15].mxu1  ;;  %3076 = vrot.lane.b32.xlu1 %v14821_v56, %s13925_s13  ;;  %v14845_v40 = vpop.f32.mrb[15].mxu0 }
 0x235   :  { %18812 = vst [vmem:[#allocation25_spill] sm:$0xff] %v14845_v40  ;;  %v3141_v60 = vpack.c.bf16 %v2472_v54, %v2468_v1  ;;  %v14943_v1 = vld [vmem:[%s18449_s1] sm:$0xff]  ;;  %v14948_v54 = vld [vmem:[%s18449_s1 + $0x10] sm:$0xff] }
 0x236   :  { %3174 = vrot.lane.b32.xlu0 %v14831_v7, %s13925_s13  ;;  %18823 = vst [vmem:[#allocation36_spill] sm:$0xff] %v14943_v1  ;;  %18824 = vst [vmem:[#allocation37_spill] sm:$0xff] %v14948_v54 }
 0x237   :  { %12077 = vmatprep.subr.bf16.mxu1 %v3141_v60 }
 0x238   :  { %12078 = vmatpush3.bf16.msra.mxu1 %v3141_v60  ;;  %3172 = vrot.lane.b32.xlu1 %v14819_v23, %s13925_s13 }
 0x239   :  { %v14851_v2 = vpop.f32.mrb[16].mxu0  ;;  %v14853_v31 = vpop.f32.mrb[16].mxu1 }
 0x23a   :  { %v2478_v12 = vpop.f32.mrb[17].mxu1  ;;  %3082 = vrot.lane.b32.xlu0 %v14853_v31, %s13925_s13  ;;  %v14857_v16 = vpop.f32.mrb[17].mxu0 }
 0x23b   :  { %18813 = vst [vmem:[#allocation26_spill] sm:$0xff] %v14857_v16  ;;  %v14859_v47 = vpop.f32.mrb[18].mxu0  ;;  %v14861_v22 = vpop.f32.mrb[18].mxu1 }
 0x23c   :  { %v2482_v6 = vpop.f32.mrb[19].mxu1  ;;  %3080 = vrot.lane.b32.xlu1 %v14841_v26, %s13925_s13  ;;  %v14865_v19 = vpop.f32.mrb[19].mxu0 }
 0x23d   :  { %18814 = vst [vmem:[#allocation27_spill] sm:$0xff] %v14865_v19  ;;  %v3142_v8 = vpack.c.bf16 %v2482_v6, %v2478_v12  ;;  %v14953_v12 = vld [vmem:[%s18449_s1 + $0x18] sm:$0xff] }
 0x23e   :  { %3178 = vrot.lane.b32.xlu0 %v14851_v2, %s13925_s13  ;;  %18825 = vst [vmem:[#allocation38_spill] sm:$0xff] %v14953_v12 }
 0x23f   :  { %12079 = vmatprep.subr.bf16.mxu1 %v3142_v8 }
 0x240   :  { %12080 = vmatpush3.bf16.msra.mxu1 %v3142_v8  ;;  %3176 = vrot.lane.b32.xlu1 %v14839_v21, %s13925_s13 }
 0x241   :  { %v14871_v25 = vpop.f32.mrb[20].mxu0  ;;  %v14873_v43 = vpop.f32.mrb[20].mxu1 }
 0x242   :  { %v2488_v62 = vpop.f32.mrb[21].mxu1  ;;  %3086 = vrot.lane.b32.xlu0 %v14873_v43, %s13925_s13  ;;  %v14877_v44 = vpop.f32.mrb[21].mxu0 }
 0x243   :  { %18815 = vst [vmem:[#allocation28_spill] sm:$0xff] %v14877_v44  ;;  %v14879_v32 = vpop.f32.mrb[22].mxu0  ;;  %v14881_v18 = vpop.f32.mrb[22].mxu1 }
 0x244   :  { %v2492_v45 = vpop.f32.mrb[23].mxu1  ;;  %3084 = vrot.lane.b32.xlu1 %v14861_v22, %s13925_s13  ;;  %v14885_v9 = vpop.f32.mrb[23].mxu0 }
 0x245   :  { %18816 = vst [vmem:[#allocation29_spill] sm:$0xff] %v14885_v9  ;;  %v3143_v34 = vpack.c.bf16 %v2492_v45, %v2488_v62  ;;  %v3050_v62 = vmul.f32 %v14943_v1, %v14773_v24  ;;  %v3051_v45 = vmul.f32 %v14948_v54, %v14781_v57 }
 0x246   :  { %3182 = vrot.lane.b32.xlu0 %v14871_v25, %s13925_s13 }
 0x247   :  { %12081 = vmatprep.subr.bf16.mxu1 %v3143_v34 }
 0x248   :  { %12082 = vmatpush3.bf16.msra.mxu1 %v3143_v34  ;;  %3180 = vrot.lane.b32.xlu1 %v14859_v47, %s13925_s13 }
 0x249   :  { %v14891_v39 = vpop.f32.mrb[24].mxu0  ;;  %v14893_v20 = vpop.f32.mrb[24].mxu1 }
 0x24a   :  { %v2498_v33 = vpop.f32.mrb[25].mxu1  ;;  %3090 = vrot.lane.b32.xlu0 %v14893_v20, %s13925_s13  ;;  %v14897_v46 = vpop.f32.mrb[25].mxu0 }
 0x24b   :  { %18817 = vst [vmem:[#allocation30_spill] sm:$0xff] %v14897_v46  ;;  %v14899_v51 = vpop.f32.mrb[26].mxu0  ;;  %v14901_v35 = vpop.f32.mrb[26].mxu1 }
 0x24c   :  { %v2502_v17 = vpop.f32.mrb[27].mxu1  ;;  %3088 = vrot.lane.b32.xlu1 %v14881_v18, %s13925_s13  ;;  %v14905_v27 = vpop.f32.mrb[27].mxu0 }
 0x24d   :  { %18818 = vst [vmem:[#allocation31_spill] sm:$0xff] %v14905_v27  ;;  %v3144_v0 = vpack.c.bf16 %v2502_v17, %v2498_v33 }
 0x24e   :  { %3186 = vrot.lane.b32.xlu0 %v14891_v39, %s13925_s13 }
 0x24f   :  { %12083 = vmatprep.subr.bf16.mxu1 %v3144_v0 }
 0x250   :  { %12084 = vmatpush3.bf16.msra.mxu1 %v3144_v0  ;;  %3184 = vrot.lane.b32.xlu1 %v14879_v32, %s13925_s13 }
 0x251   :  { %v14911_v49 = vpop.f32.mrb[28].mxu0  ;;  %v14913_v48 = vpop.f32.mrb[28].mxu1 }
 0x252   :  { %18819 = vst [vmem:[#allocation35_spill] sm:$0xff] %v14911_v49  ;;  %v2508_v59 = vpop.f32.mrb[29].mxu1  ;;  %3094 = vrot.lane.b32.xlu0 %v14913_v48, %s13925_s13  ;;  %v14917_v41 = vpop.f32.mrb[29].mxu0 }
 0x253   :  { %18820 = vst [vmem:[#allocation32_spill] sm:$0xff] %v14917_v41  ;;  %v14919_v30 = vpop.f32.mrb[30].mxu0  ;;  %v14921_v52 = vpop.f32.mrb[30].mxu1 }
 0x254   :  { %18821 = vst [vmem:[#allocation33_spill] sm:$0xff] %v14919_v30  ;;  %v2512_v37 = vpop.f32.mrb[31].mxu1  ;;  %3092 = vrot.lane.b32.xlu1 %v14901_v35, %s13925_s13  ;;  %v14925_v4 = vpop.f32.mrb[31].mxu0 }
 0x255   :  { %18822 = vst [vmem:[#allocation34_spill] sm:$0xff] %v14925_v4  ;;  %v3145_v63 = vpack.c.bf16 %v2512_v37, %v2508_v59 }
 0x256   :  { %3190 = vrot.lane.b32.xlu0 %v14911_v49, %s13925_s13 }
 0x257   :  { %12085 = vmatprep.subr.bf16.mxu1 %v3145_v63 }
 0x258   :  { %12086 = vmatpush3.bf16.msra.mxu1 %v3145_v63  ;;  %3188 = vrot.lane.b32.xlu1 %v14899_v51, %s13925_s13  ;;  %v3146_v63 = vmul.f32 %v14943_v1, %v14771_v5  ;;  %v3227_v5 = vmul.f32 %v14948_v54, %v14785_v38 }
 0x25c   :  { %3096 = vrot.lane.b32.xlu1 %v14921_v52, %s13925_s13 }
 0x260   :  { %3192 = vrot.lane.b32.xlu1 %v14919_v30, %s13925_s13 }
 0x28c   :  { %v3067_v60 = vpop.permute.xlu0 %3066 }
 0x28d   :  { %v3098_v6 = vmul.f32 %v3067_v60, %v14938_v36  ;;  %v3147_v60 = vmul.f32 %v14948_v54, %v14779_v61 }
 0x28e   :  { %v3069_v8 = vpop.permute.xlu1 %3068 }
 0x28f   :  { %v3099_v34 = vmul.f32 %v3069_v8, %v14953_v12  ;;  %v3114_v17 = vadd.f32 %v3098_v6, %v3050_v62  ;;  %v3226_v62 = vmul.f32 %v14943_v1, %v14777_v13 }
 0x290   :  { %v3163_v33 = vpop.permute.xlu0 %3162 }
 0x291   :  { %v3115_v0 = vadd.f32 %v3099_v34, %v3051_v45  ;;  %v3194_v59 = vmul.f32 %v3163_v33, %v14938_v36 }
 0x292   :  { %v3165_v37 = vpop.permute.xlu1 %3164 }
 0x293   :  { %v3195_v30 = vmul.f32 %v3165_v37, %v14953_v12  ;;  %v3130_v24 = vpack.c.bf16 %v3115_v0, %v3114_v17  ;;  %v3210_v4 = vadd.f32 %v3194_v59, %v3146_v63 }
 0x294   :  { %v3243_v49 = vpop.permute.xlu0 %3242 }
 0x295   :  { %v3211_v57 = vadd.f32 %v3195_v30, %v3147_v60  ;;  %v3274_v8 = vmul.f32 %v3243_v49, %v14938_v36  ;;  %12023 = vmatprep.subr.bf16.mxu0 %v3130_v24  ;;  %v14999_v60 = vld [vmem:[%s18449_s1 + $0x30] sm:$0xff] }
 0x296   :  { %12024 = vmatpush3.bf16.xpose.msra.mxu0 %v3130_v24  ;;  %v3245_v6 = vpop.permute.xlu1 %3244  ;;  %18829 = vst [vmem:[#allocation42_spill] sm:$0xff] %v14999_v60  ;;  %v15004_v24 = vld [vmem:[%s18449_s1 + $0x28] sm:$0xff] }
 0x297   :  { %v3275_v45 = vmul.f32 %v3245_v6, %v14953_v12  ;;  %v3306_v61 = vpack.c.bf16 %v3211_v57, %v3210_v4  ;;  %v14973_v33 = vadd.f32 %v3274_v8, %v3226_v62  ;;  %v14990_v4 = vld [vmem:[%s18449_s1 + $0x20] sm:$0xff]  ;;  %18830 = vst [vmem:[#allocation43_spill] sm:$0xff] %v15004_v24  ;;  %v15011_v6 = vld [vmem:[%s18449_s1 + $0x38] sm:$0xff]  ;;  %v3053_v12 = vmul.f32 %v14999_v60, %v14801_v50 }
 0x298   :  { %v3167_v34 = vpop.permute.xlu0 %3166  ;;  %18827 = vst [vmem:[#allocation40_spill] sm:$0xff] %v14990_v4  ;;  %18831 = vst [vmem:[#allocation44_spill] sm:$0xff] %v15011_v6  ;;  %v3052_v38 = vmul.f32 %v14990_v4, %v14793_v42  ;;  %v3148_v50 = vmul.f32 %v14990_v4, %v14791_v55  ;;  %v15054_v55 = vld [vmem:[%s18449_s1 + $0x40] sm:$0xff] }
 0x299   :  { %v14975_v17 = vadd.f32 %v3275_v45, %v3227_v5  ;;  %v14977_v30 = vpop.f32.mrb[32].mxu1  ;;  %12039 = vmatprep.mubr.bf16.mxu0 %v3306_v61  ;;  %18838 = vst [vmem:[#allocation51_spill] sm:$0xff] %v15054_v55 }
 0x29a   :  { %v14979_v49 = vpop.f32.mrb[32].mxu0  ;;  %v2890_v0 = vpop.f32.mrb[33].mxu1  ;;  %4060 = vrot.lane.b32.xlu0 %v14977_v30, %s13925_s13 }
 0x29b   :  { %v3071_v13 = vpop.permute.xlu1 %3070  ;;  %v14983_v59 = vpop.f32.mrb[33].mxu0 }
 0x29c   :  { %18826 = vst [vmem:[#allocation39_spill] sm:$0xff] %v14983_v59  ;;  %v14992_v37 = vpop.f32.mrb[34].mxu0  ;;  %v14994_v63 = vpop.f32.mrb[34].mxu1  ;;  %v3100_v62 = vmul.f32 %v3071_v13, %v15004_v24  ;;  %v3196_v13 = vmul.f32 %v3167_v34, %v15004_v24  ;;  %v15040_v34 = vld [vmem:[%s18449_s1 + $0x48] sm:$0xff] }
 0x29d   :  { %18828 = vst [vmem:[#allocation41_spill] sm:$0xff] %v14994_v63  ;;  %v2894_v57 = vpop.f32.mrb[35].mxu1  ;;  %v3075_v8 = vpop.permute.xlu0 %3074  ;;  %4062 = vrot.lane.b32.xlu1 %v14994_v63, %s13925_s13  ;;  %18835 = vst [vmem:[#allocation48_spill] sm:$0xff] %v15040_v34 }
 0x29e   :  { %v15014_v5 = vpack.c.bf16 %v2894_v57, %v2890_v0  ;;  %v15016_v45 = vpop.f32.mrb[35].mxu0  ;;  %3246 = vrot.lane.b32.xlu0 %v14797_v10, %s13925_s13  ;;  %v3116_v10 = vadd.f32 %v3100_v62, %v3052_v38  ;;  %v15061_v4 = vadd.f32 %v3196_v13, %v3148_v50  ;;  %v3054_v50 = vmul.f32 %v15054_v55, %v14813_v11 }
 0x29f   :  { %18833 = vst [vmem:[#allocation46_spill] sm:$0xff] %v15016_v45  ;;  %v3073_v61 = vpop.permute.xlu1 %3072 }
 0x2a0   :  { %18832 = vst [vmem:[#allocation45_spill] sm:$0xff] %v15014_v5  ;;  %v3101_v54 = vmul.f32 %v3073_v61, %v15011_v6  ;;  %12167 = vmatprep.subr.bf16.mxu1 %v15014_v5 }
 0x2a1   :  { %v3171_v0 = vpop.permute.xlu0 %3170  ;;  %3248 = vrot.lane.b32.xlu1 %v14805_v15, %s13925_s13  ;;  %v15029_v57 = vpop.f32.mrb[36].mxu1  ;;  %v15059_v15 = vld [vmem:[%s18449_s1 + $0x50] sm:$0xff] }
 0x2a2   :  { %18834 = vst [vmem:[#allocation47_spill] sm:$0xff] %v15029_v57  ;;  %v3117_v63 = vadd.f32 %v3101_v54, %v3053_v12  ;;  %v15031_v1 = vpop.f32.mrb[36].mxu0  ;;  %v2900_v42 = vpop.f32.mrb[37].mxu1  ;;  %4064 = vrot.lane.b32.xlu0 %v15029_v57, %s13925_s13  ;;  %v3149_v54 = vmul.f32 %v14999_v60, %v14799_v29  ;;  %18839 = vst [vmem:[#allocation52_spill] sm:$0xff] %v15059_v15 }
 0x2a3   :  { %v3169_v61 = vpop.permute.xlu1 %3168  ;;  %v15042_v5 = vpop.f32.mrb[37].mxu0 }
 0x2a4   :  { %18836 = vst [vmem:[#allocation49_spill] sm:$0xff] %v15042_v5  ;;  %v3197_v12 = vmul.f32 %v3169_v61, %v15011_v6  ;;  %v15047_v38 = vpop.f32.mrb[38].mxu0  ;;  %v15049_v62 = vpop.f32.mrb[38].mxu1  ;;  %v3131_v57 = vpack.c.bf16 %v3117_v63, %v3116_v10  ;;  %v15068_v10 = vld [vmem:[%s18449_s1 + $0x58] sm:$0xff]  ;;  %v3102_v63 = vmul.f32 %v3075_v8, %v15040_v34 }
 0x2a5   :  { %18837 = vst [vmem:[#allocation50_spill] sm:$0xff] %v15049_v62  ;;  %v2904_v29 = vpop.f32.mrb[39].mxu1  ;;  %v3079_v60 = vpop.permute.xlu0 %3078  ;;  %4066 = vrot.lane.b32.xlu1 %v15049_v62, %s13925_s13  ;;  %18840 = vst [vmem:[#allocation53_spill] sm:$0xff] %v15068_v10  ;;  %v3055_v62 = vmul.f32 %v15059_v15, %v14821_v56  ;;  %v3150_v56 = vmul.f32 %v15054_v55, %v14811_v3  ;;  %v15114_v3 = vld [vmem:[%s18449_s1 + $0x60] sm:$0xff] }
 0x2a6   :  { %v15071_v61 = vadd.f32 %v3197_v12, %v3149_v54  ;;  %v15073_v6 = vpack.c.bf16 %v2904_v29, %v2900_v42  ;;  %v15075_v24 = vpop.f32.mrb[39].mxu0  ;;  %12025 = vmatprep.subr.bf16.mxu0 %v3131_v57  ;;  %3250 = vrot.lane.b32.xlu0 %v14817_v28, %s13925_s13  ;;  %v3198_v54 = vmul.f32 %v3171_v0, %v15040_v34  ;;  %v15100_v0 = vld [vmem:[%s18449_s1 + $0x68] sm:$0xff] }
 0x2a7   :  { %18842 = vst [vmem:[#allocation55_spill] sm:$0xff] %v15075_v24  ;;  %12026 = vmatpush3.bf16.xpose.msra.mxu0 %v3131_v57  ;;  %v3077_v13 = vpop.permute.xlu1 %3076  ;;  %v3118_v57 = vadd.f32 %v3102_v63, %v3054_v50  ;;  %18844 = vst [vmem:[#allocation57_spill] sm:$0xff] %v15100_v0 }
 0x2a8   :  { %18841 = vst [vmem:[#allocation54_spill] sm:$0xff] %v15073_v6  ;;  %v3103_v42 = vmul.f32 %v3077_v13, %v15068_v10  ;;  %18847 = vst [vmem:[#allocation60_spill] sm:$0xff] %v15114_v3  ;;  %v15121_v55 = vadd.f32 %v3198_v54, %v3150_v56  ;;  %v3056_v56 = vmul.f32 %v15114_v3, %v14833_v53 }
 0x2a9   :  { %v3175_v12 = vpop.permute.xlu0 %3174  ;;  %3252 = vrot.lane.b32.xlu1 %v14825_v58, %s13925_s13  ;;  %v15089_v29 = vpop.f32.mrb[40].mxu1  ;;  %v15119_v58 = vld [vmem:[%s18449_s1 + $0x70] sm:$0xff] }
 0x2aa   :  { %18843 = vst [vmem:[#allocation56_spill] sm:$0xff] %v15089_v29  ;;  %v3119_v6 = vadd.f32 %v3103_v42, %v3055_v62  ;;  %v15091_v28 = vpop.f32.mrb[40].mxu0  ;;  %v2910_v11 = vpop.f32.mrb[41].mxu1  ;;  %4068 = vrot.lane.b32.xlu0 %v15089_v29, %s13925_s13  ;;  %v3151_v62 = vmul.f32 %v15059_v15, %v14819_v23  ;;  %18848 = vst [vmem:[#allocation61_spill] sm:$0xff] %v15119_v58 }
 0x2ab   :  { %v3173_v13 = vpop.permute.xlu1 %3172  ;;  %v15102_v8 = vpop.f32.mrb[41].mxu0 }
 0x2ac   :  { %18845 = vst [vmem:[#allocation58_spill] sm:$0xff] %v15102_v8  ;;  %v3199_v63 = vmul.f32 %v3173_v13, %v15068_v10  ;;  %v15107_v50 = vpop.f32.mrb[42].mxu0  ;;  %v15109_v42 = vpop.f32.mrb[42].mxu1  ;;  %v3132_v29 = vpack.c.bf16 %v3119_v6, %v3118_v57  ;;  %v15128_v6 = vld [vmem:[%s18449_s1 + $0x78] sm:$0xff]  ;;  %v3104_v57 = vmul.f32 %v3079_v60, %v15100_v0 }
 0x2ad   :  { %18846 = vst [vmem:[#allocation59_spill] sm:$0xff] %v15109_v42  ;;  %v2914_v23 = vpop.f32.mrb[43].mxu1  ;;  %v3083_v15 = vpop.permute.xlu0 %3082  ;;  %4070 = vrot.lane.b32.xlu1 %v15109_v42, %s13925_s13  ;;  %18849 = vst [vmem:[#allocation62_spill] sm:$0xff] %v15128_v6  ;;  %v3057_v42 = vmul.f32 %v15119_v58, %v14841_v26  ;;  %v3152_v26 = vmul.f32 %v15114_v3, %v14831_v7  ;;  %v15174_v7 = vld [vmem:[%s18449_s1 + $0x80] sm:$0xff] }
 0x2ae   :  { %v15131_v13 = vadd.f32 %v3199_v63, %v3151_v62  ;;  %v15133_v10 = vpack.c.bf16 %v2914_v23, %v2910_v11  ;;  %v15135_v34 = vpop.f32.mrb[43].mxu0  ;;  %12027 = vmatprep.subr.bf16.mxu0 %v3132_v29  ;;  %3254 = vrot.lane.b32.xlu0 %v14837_v14, %s13925_s13  ;;  %v3200_v62 = vmul.f32 %v3175_v12, %v15100_v0  ;;  %v15160_v12 = vld [vmem:[%s18449_s1 + $0x88] sm:$0xff] }
 0x2af   :  { %18851 = vst [vmem:[#allocation64_spill] sm:$0xff] %v15135_v34  ;;  %12028 = vmatpush3.bf16.xpose.msra.mxu0 %v3132_v29  ;;  %v3081_v54 = vpop.permute.xlu1 %3080  ;;  %v3120_v29 = vadd.f32 %v3104_v57, %v3056_v56  ;;  %18853 = vst [vmem:[#allocation66_spill] sm:$0xff] %v15160_v12 }
 0x2b0   :  { %18850 = vst [vmem:[#allocation63_spill] sm:$0xff] %v15133_v10  ;;  %v3105_v60 = vmul.f32 %v3081_v54, %v15128_v6  ;;  %18856 = vst [vmem:[#allocation69_spill] sm:$0xff] %v15174_v7  ;;  %v15181_v3 = vadd.f32 %v3200_v62, %v3152_v26  ;;  %v3058_v26 = vmul.f32 %v15174_v7, %v14853_v31 }
 0x2b1   :  { %v3179_v63 = vpop.permute.xlu0 %3178  ;;  %3256 = vrot.lane.b32.xlu1 %v14845_v40, %s13925_s13  ;;  %v15149_v23 = vpop.f32.mrb[44].mxu1  ;;  %v15179_v40 = vld [vmem:[%s18449_s1 + $0x90] sm:$0xff] }
 0x2b2   :  { %18852 = vst [vmem:[#allocation65_spill] sm:$0xff] %v15149_v23  ;;  %v3121_v10 = vadd.f32 %v3105_v60, %v3057_v42  ;;  %v15151_v14 = vpop.f32.mrb[44].mxu0  ;;  %v2920_v53 = vpop.f32.mrb[45].mxu1  ;;  %4072 = vrot.lane.b32.xlu0 %v15149_v23, %s13925_s13  ;;  %v3153_v42 = vmul.f32 %v15119_v58, %v14839_v21  ;;  %18857 = vst [vmem:[#allocation70_spill] sm:$0xff] %v15179_v40 }
 0x2b3   :  { %v3177_v54 = vpop.permute.xlu1 %3176  ;;  %v15162_v11 = vpop.f32.mrb[45].mxu0 }
 0x2b4   :  { %18854 = vst [vmem:[#allocation67_spill] sm:$0xff] %v15162_v11  ;;  %v3201_v57 = vmul.f32 %v3177_v54, %v15128_v6  ;;  %v15167_v56 = vpop.f32.mrb[46].mxu0  ;;  %v15169_v60 = vpop.f32.mrb[46].mxu1  ;;  %v3133_v23 = vpack.c.bf16 %v3121_v10, %v3120_v29  ;;  %v15188_v10 = vld [vmem:[%s18449_s1 + $0x98] sm:$0xff]  ;;  %v3106_v29 = vmul.f32 %v3083_v15, %v15160_v12 }
 0x2b5   :  { %18855 = vst [vmem:[#allocation68_spill] sm:$0xff] %v15169_v60  ;;  %v2924_v21 = vpop.f32.mrb[47].mxu1  ;;  %v3087_v58 = vpop.permute.xlu0 %3086  ;;  %4074 = vrot.lane.b32.xlu1 %v15169_v60, %s13925_s13  ;;  %18858 = vst [vmem:[#allocation71_spill] sm:$0xff] %v15188_v10  ;;  %v3059_v60 = vmul.f32 %v15179_v40, %v14861_v22  ;;  %v3154_v22 = vmul.f32 %v15174_v7, %v14851_v2  ;;  %v15234_v2 = vld [vmem:[%s18449_s1 + $0xa0] sm:$0xff] }
 0x2b6   :  { %v15191_v54 = vadd.f32 %v3201_v57, %v3153_v42  ;;  %v15193_v6 = vpack.c.bf16 %v2924_v21, %v2920_v53  ;;  %v15195_v0 = vpop.f32.mrb[47].mxu0  ;;  %12029 = vmatprep.subr.bf16.mxu0 %v3133_v23  ;;  %3258 = vrot.lane.b32.xlu0 %v14857_v16, %s13925_s13  ;;  %v3202_v42 = vmul.f32 %v3179_v63, %v15160_v12  ;;  %v15220_v63 = vld [vmem:[%s18449_s1 + $0xa8] sm:$0xff] }
 0x2b7   :  { %18860 = vst [vmem:[#allocation73_spill] sm:$0xff] %v15195_v0  ;;  %12030 = vmatpush3.bf16.xpose.msra.mxu0 %v3133_v23  ;;  %v3085_v62 = vpop.permute.xlu1 %3084  ;;  %v3122_v23 = vadd.f32 %v3106_v29, %v3058_v26  ;;  %18862 = vst [vmem:[#allocation75_spill] sm:$0xff] %v15220_v63 }
 0x2b8   :  { %18859 = vst [vmem:[#allocation72_spill] sm:$0xff] %v15193_v6  ;;  %v3107_v15 = vmul.f32 %v3085_v62, %v15188_v10  ;;  %18865 = vst [vmem:[#allocation78_spill] sm:$0xff] %v15234_v2  ;;  %v15241_v7 = vadd.f32 %v3202_v42, %v3154_v22  ;;  %v3060_v22 = vmul.f32 %v15234_v2, %v14873_v43 }
 0x2b9   :  { %v3183_v57 = vpop.permute.xlu0 %3182  ;;  %3260 = vrot.lane.b32.xlu1 %v14865_v19, %s13925_s13  ;;  %v15209_v21 = vpop.f32.mrb[48].mxu1  ;;  %v15239_v19 = vld [vmem:[%s18449_s1 + $0xb0] sm:$0xff] }
 0x2ba   :  { %18861 = vst [vmem:[#allocation74_spill] sm:$0xff] %v15209_v21  ;;  %v3123_v6 = vadd.f32 %v3107_v15, %v3059_v60  ;;  %v15211_v16 = vpop.f32.mrb[48].mxu0  ;;  %v2930_v31 = vpop.f32.mrb[49].mxu1  ;;  %4076 = vrot.lane.b32.xlu0 %v15209_v21, %s13925_s13  ;;  %v3155_v60 = vmul.f32 %v15179_v40, %v14859_v47  ;;  %18866 = vst [vmem:[#allocation79_spill] sm:$0xff] %v15239_v19 }
 0x2bb   :  { %v3181_v62 = vpop.permute.xlu1 %3180  ;;  %v15222_v53 = vpop.f32.mrb[49].mxu0 }
 0x2bc   :  { %18863 = vst [vmem:[#allocation76_spill] sm:$0xff] %v15222_v53  ;;  %v3203_v29 = vmul.f32 %v3181_v62, %v15188_v10  ;;  %v15227_v26 = vpop.f32.mrb[50].mxu0  ;;  %v15229_v15 = vpop.f32.mrb[50].mxu1  ;;  %v3134_v21 = vpack.c.bf16 %v3123_v6, %v3122_v23  ;;  %v15248_v6 = vld [vmem:[%s18449_s1 + $0xb8] sm:$0xff]  ;;  %v3108_v23 = vmul.f32 %v3087_v58, %v15220_v63 }
 0x2bd   :  { %18864 = vst [vmem:[#allocation77_spill] sm:$0xff] %v15229_v15  ;;  %v2934_v47 = vpop.f32.mrb[51].mxu1  ;;  %v3091_v40 = vpop.permute.xlu0 %3090  ;;  %4078 = vrot.lane.b32.xlu1 %v15229_v15, %s13925_s13  ;;  %18867 = vst [vmem:[#allocation80_spill] sm:$0xff] %v15248_v6  ;;  %v3061_v15 = vmul.f32 %v15239_v19, %v14881_v18  ;;  %v3156_v18 = vmul.f32 %v15234_v2, %v14871_v25  ;;  %v15294_v25 = vld [vmem:[%s18449_s1 + $0xc0] sm:$0xff] }
 0x2be   :  { %v15251_v62 = vadd.f32 %v3203_v29, %v3155_v60  ;;  %v15253_v10 = vpack.c.bf16 %v2934_v47, %v2930_v31  ;;  %v15255_v12 = vpop.f32.mrb[51].mxu0  ;;  %12031 = vmatprep.subr.bf16.mxu0 %v3134_v21  ;;  %3262 = vrot.lane.b32.xlu0 %v14877_v44, %s13925_s13  ;;  %v3204_v60 = vmul.f32 %v3183_v57, %v15220_v63  ;;  %v15280_v57 = vld [vmem:[%s18449_s1 + $0xc8] sm:$0xff] }
 0x2bf   :  { %18869 = vst [vmem:[#allocation82_spill] sm:$0xff] %v15255_v12  ;;  %12032 = vmatpush3.bf16.xpose.msra.mxu0 %v3134_v21  ;;  %v3089_v42 = vpop.permute.xlu1 %3088  ;;  %v3124_v21 = vadd.f32 %v3108_v23, %v3060_v22  ;;  %18871 = vst [vmem:[#allocation84_spill] sm:$0xff] %v15280_v57 }
 0x2c0   :  { %18868 = vst [vmem:[#allocation81_spill] sm:$0xff] %v15253_v10  ;;  %v3109_v58 = vmul.f32 %v3089_v42, %v15248_v6  ;;  %18874 = vst [vmem:[#allocation87_spill] sm:$0xff] %v15294_v25  ;;  %v15301_v2 = vadd.f32 %v3204_v60, %v3156_v18  ;;  %v3062_v18 = vmul.f32 %v15294_v25, %v14893_v20 }
 0x2c1   :  { %v3187_v29 = vpop.permute.xlu0 %3186  ;;  %3264 = vrot.lane.b32.xlu1 %v14885_v9, %s13925_s13  ;;  %v15269_v47 = vpop.f32.mrb[52].mxu1  ;;  %v15299_v9 = vld [vmem:[%s18449_s1 + $0xd0] sm:$0xff] }
 0x2c2   :  { %18870 = vst [vmem:[#allocation83_spill] sm:$0xff] %v15269_v47  ;;  %v3125_v10 = vadd.f32 %v3109_v58, %v3061_v15  ;;  %v15271_v44 = vpop.f32.mrb[52].mxu0  ;;  %v2940_v43 = vpop.f32.mrb[53].mxu1  ;;  %4080 = vrot.lane.b32.xlu0 %v15269_v47, %s13925_s13  ;;  %v3157_v15 = vmul.f32 %v15239_v19, %v14879_v32  ;;  %18875 = vst [vmem:[#allocation88_spill] sm:$0xff] %v15299_v9 }
 0x2c3   :  { %v3185_v42 = vpop.permute.xlu1 %3184  ;;  %v15282_v31 = vpop.f32.mrb[53].mxu0 }
 0x2c4   :  { %18872 = vst [vmem:[#allocation85_spill] sm:$0xff] %v15282_v31  ;;  %v3205_v23 = vmul.f32 %v3185_v42, %v15248_v6  ;;  %v15287_v22 = vpop.f32.mrb[54].mxu0  ;;  %v15289_v58 = vpop.f32.mrb[54].mxu1  ;;  %v3135_v47 = vpack.c.bf16 %v3125_v10, %v3124_v21  ;;  %v15308_v10 = vld [vmem:[%s18449_s1 + $0xd8] sm:$0xff]  ;;  %v3110_v21 = vmul.f32 %v3091_v40, %v15280_v57 }
 0x2c5   :  { %18873 = vst [vmem:[#allocation86_spill] sm:$0xff] %v15289_v58  ;;  %v2944_v32 = vpop.f32.mrb[55].mxu1  ;;  %4082 = vrot.lane.b32.xlu1 %v15289_v58, %s13925_s13  ;;  %18876 = vst [vmem:[#allocation89_spill] sm:$0xff] %v15308_v10  ;;  %v15315_v19 = vpop.f32.mrb[55].mxu0  ;;  %v3063_v58 = vmul.f32 %v15299_v9, %v14901_v35  ;;  %v3158_v35 = vmul.f32 %v15294_v25, %v14891_v39  ;;  %v15354_v39 = vld [vmem:[%s18449_s1 + $0xe0] sm:$0xff] }
 0x2c6   :  { %v15311_v42 = vadd.f32 %v3205_v23, %v3157_v15  ;;  %v15313_v6 = vpack.c.bf16 %v2944_v32, %v2940_v43  ;;  %18878 = vst [vmem:[#allocation91_spill] sm:$0xff] %v15315_v19  ;;  %12033 = vmatprep.subr.bf16.mxu0 %v3135_v47  ;;  %3266 = vrot.lane.b32.xlu0 %v14897_v46, %s13925_s13  ;;  %v3095_v23 = vpop.permute.xlu0 %3094 }
 0x2c7   :  { %12034 = vmatpush3.bf16.xpose.msra.mxu0 %v3135_v47  ;;  %v3093_v60 = vpop.permute.xlu1 %3092  ;;  %v3206_v15 = vmul.f32 %v3187_v29, %v15280_v57  ;;  %v3126_v47 = vadd.f32 %v3110_v21, %v3062_v18  ;;  %v15340_v29 = vld [vmem:[%s18449_s1 + $0xe8] sm:$0xff] }
 0x2c8   :  { %18877 = vst [vmem:[#allocation90_spill] sm:$0xff] %v15313_v6  ;;  %v3111_v40 = vmul.f32 %v3093_v60, %v15308_v10  ;;  %18881 = vst [vmem:[#allocation94_spill] sm:$0xff] %v15340_v29 }
 0x2c9   :  { %3268 = vrot.lane.b32.xlu1 %v14905_v27, %s13925_s13  ;;  %v15329_v32 = vpop.f32.mrb[56].mxu1  ;;  %v15359_v27 = vld [vmem:[%s18449_s1 + $0xf0] sm:$0xff]  ;;  %v3222_v25 = vadd.f32 %v3206_v15, %v3158_v35 }
 0x2ca   :  { %18879 = vst [vmem:[#allocation92_spill] sm:$0xff] %v15329_v32  ;;  %v3127_v6 = vadd.f32 %v3111_v40, %v3063_v58  ;;  %v15331_v46 = vpop.f32.mrb[56].mxu0  ;;  %v2950_v20 = vpop.f32.mrb[57].mxu1  ;;  %4084 = vrot.lane.b32.xlu0 %v15329_v32, %s13925_s13  ;;  %v3159_v58 = vmul.f32 %v15299_v9, %v14899_v51  ;;  %v3065_v9 = vmul.f32 %v15359_v27, %v14921_v52 }
 0x2cb   :  { %18880 = vst [vmem:[#allocation93_spill] sm:$0xff] %v15331_v46  ;;  %v3189_v60 = vpop.permute.xlu1 %3188  ;;  %v15342_v43 = vpop.f32.mrb[57].mxu0 }
 0x2cc   :  { %18882 = vst [vmem:[#allocation95_spill] sm:$0xff] %v15342_v43  ;;  %v3207_v21 = vmul.f32 %v3189_v60, %v15308_v10  ;;  %v15347_v18 = vpop.f32.mrb[58].mxu0  ;;  %v15349_v40 = vpop.f32.mrb[58].mxu1  ;;  %v3136_v32 = vpack.c.bf16 %v3127_v6, %v3126_v47  ;;  %v15368_v6 = vld [vmem:[%s18449_s1 + $0xf8] sm:$0xff]  ;;  %v3112_v47 = vmul.f32 %v3095_v23, %v15340_v29 }
 0x2cd   :  { %18883 = vst [vmem:[#allocation96_spill] sm:$0xff] %v15347_v18  ;;  %18884 = vst [vmem:[#allocation97_spill] sm:$0xff] %v15349_v40  ;;  %v2954_v57 = vpop.f32.mrb[59].mxu1  ;;  %4086 = vrot.lane.b32.xlu1 %v15349_v40, %s13925_s13  ;;  %v15363_v51 = vpop.f32.mrb[59].mxu0  ;;  %v3064_v40 = vmul.f32 %v15354_v39, %v14913_v48  ;;  %v18887_v23 = vld [vmem:[#allocation34_spill] sm:$0xff] }
 0x2ce   :  { %18885 = vst [vmem:[#allocation98_spill] sm:$0xff] %v15363_v51  ;;  %v3223_v60 = vadd.f32 %v3207_v21, %v3159_v58  ;;  %v15371_v10 = vpack.c.bf16 %v2954_v57, %v2950_v20  ;;  %12035 = vmatprep.subr.bf16.mxu0 %v3136_v32  ;;  %3270 = vrot.lane.b32.xlu0 %v14917_v41, %s13925_s13  ;;  %v3191_v15 = vpop.permute.xlu0 %3190 }
 0x2cf   :  { %12036 = vmatpush3.bf16.xpose.msra.mxu0 %v3136_v32  ;;  %v3097_v35 = vpop.permute.xlu1 %3096  ;;  %v3128_v20 = vadd.f32 %v3112_v47, %v3064_v40  ;;  %v3208_v58 = vmul.f32 %v3191_v15, %v15340_v29 }
 0x2d0   :  { %18886 = vst [vmem:[#allocation99_spill] sm:$0xff] %v15371_v10  ;;  %v3113_v63 = vmul.f32 %v3097_v35, %v15368_v6  ;;  %v3312_v51 = vpack.c.bf16 %v3223_v60, %v3222_v25  ;;  %v18891_v35 = vld [vmem:[#allocation35_spill] sm:$0xff]  ;;  %v18892_v60 = vld [vmem:[#allocation33_spill] sm:$0xff] }
 0x2d1   :  { %3272 = vrot.lane.b32.xlu1 %v18887_v23, %s13925_s13  ;;  %v15382_v57 = vpop.f32.mrb[60].mxu1  ;;  %v3160_v25 = vmul.f32 %v15354_v39, %v18891_v35  ;;  %v3161_v23 = vmul.f32 %v15359_v27, %v18892_v60  ;;  %v18907_v35 = vld [vmem:[#allocation43_spill] sm:$0xff] }
 0x2d2   :  { %18888 = vst [vmem:[#allocation100_spill] sm:$0xff] %v15382_v57  ;;  %v3129_v21 = vadd.f32 %v3113_v63, %v3065_v9  ;;  %v15385_v32 = vpop.f32.mrb[60].mxu0  ;;  %v2960_v10 = vpop.f32.mrb[61].mxu1  ;;  %4088 = vrot.lane.b32.xlu0 %v15382_v57, %s13925_s13 }
 0x2d3   :  { %18889 = vst [vmem:[#allocation101_spill] sm:$0xff] %v15385_v32  ;;  %v3193_v48 = vpop.permute.xlu1 %3192  ;;  %v15389_v52 = vpop.f32.mrb[61].mxu0  ;;  %v3224_v41 = vadd.f32 %v3208_v58, %v3160_v25 }
 0x2d4   :  { %18890 = vst [vmem:[#allocation102_spill] sm:$0xff] %v15389_v52  ;;  %v3209_v40 = vmul.f32 %v3193_v48, %v15368_v6  ;;  %v15396_v47 = vpop.f32.mrb[62].mxu0  ;;  %v15398_v9 = vpop.f32.mrb[62].mxu1  ;;  %v3137_v63 = vpack.c.bf16 %v3129_v21, %v3128_v20 }
 0x2d5   :  { %18893 = vst [vmem:[#allocation35_spill] sm:$0xff] %v15396_v47  ;;  %v2964_v15 = vpop.f32.mrb[63].mxu1  ;;  %4090 = vrot.lane.b32.xlu1 %v15398_v9, %s13925_s13  ;;  %v15402_v57 = vpop.f32.mrb[63].mxu0  ;;  %v18906_v20 = vld [vmem:[#allocation98_spill] sm:$0xff] }
 0x2d6   :  { %18894 = vst [vmem:[#allocation33_spill] sm:$0xff] %v15402_v57  ;;  %v3225_v29 = vadd.f32 %v3209_v40, %v3161_v23  ;;  %v15404_v52 = vpack.c.bf16 %v2964_v15, %v2960_v10  ;;  %12037 = vmatprep.subr.bf16.mxu0 %v3137_v63  ;;  %4156 = vrot.lane.b32.xlu0 %v14979_v49, %s13925_s13  ;;  %v18910_v15 = vld [vmem:[#allocation40_spill] sm:$0xff] }
 0x2d7   :  { %12038 = vmatpush3.bf16.xpose.msra.mxu0 %v3137_v63  ;;  %v18896_v23 = vpack.c.bf16 %v15071_v61, %v15061_v4  ;;  %v18897_v10 = vpack.c.bf16 %v15131_v13, %v15121_v55  ;;  %v18899_v4 = vpack.c.bf16 %v15251_v62, %v15241_v7  ;;  %v18900_v55 = vpack.c.bf16 %v15311_v42, %v15301_v2  ;;  %v18902_v13 = vld [vmem:[#allocation36_spill] sm:$0xff]  ;;  %v18904_v2 = vld [vmem:[#allocation37_spill] sm:$0xff]  ;;  %v18905_v42 = vld [vmem:[#allocation38_spill] sm:$0xff] }
 0x2d8   :  { %18895 = vst [vmem:[#allocation103_spill] sm:$0xff] %v15404_v52  ;;  %v3313_v48 = vpack.c.bf16 %v3225_v29, %v3224_v41  ;;  %v18898_v41 = vpack.c.bf16 %v15191_v54, %v15181_v3  ;;  %v18901_v61 = vpack.c.bf16 %v14975_v17, %v14973_v33  ;;  %v4044_v7 = vmul.f32 %v18902_v13, %v14977_v30  ;;  %v18903_v54 = vld [vmem:[#allocation41_spill] sm:$0xff]  ;;  %v18909_v63 = vld [vmem:[#allocation20_spill] sm:$0xff] }
 0x2d9   :  { %4158 = vrot.lane.b32.xlu1 %v14992_v37, %s13925_s13  ;;  %v4045_v62 = vmul.f32 %v18904_v2, %v18903_v54  ;;  %v3228_v30 = vmul.f32 %v18910_v15, %v18909_v63  ;;  %v18914_v54 = vld [vmem:[#allocation47_spill] sm:$0xff]  ;;  %v18916_v52 = vld [vmem:[#allocation48_spill] sm:$0xff] }
 0x2da   :  { %4160 = vrot.lane.b32.xlu0 %v15031_v1, %s13925_s13 }
 0x2db   :  { %v18908_v60 = vld [vmem:[#allocation102_spill] sm:$0xff] }
 0x2dd   :  { %4162 = vrot.lane.b32.xlu1 %v15047_v38, %s13925_s13 }
 0x2de   :  { %12040 = vmatmul.mubr.bf16.vlgmr.msra.gmra.mrb[64].mxu0 %v18896_v23  ;;  %4164 = vrot.lane.b32.xlu0 %v15091_v28, %s13925_s13  ;;  %v18912_v23 = vld [vmem:[#allocation42_spill] sm:$0xff] }
 0x2df   :  { %12043 = vmatprep.mubr.bf16.mxu0 %v18897_v10 }
 0x2e1   :  { %4166 = vrot.lane.b32.xlu1 %v15107_v50, %s13925_s13 }
 0x2e2   :  { %4168 = vrot.lane.b32.xlu0 %v15151_v14, %s13925_s13 }
 0x2e5   :  { %4170 = vrot.lane.b32.xlu1 %v15167_v56, %s13925_s13 }
 0x2e6   :  { %12044 = vmatmul.mubr.bf16.gmra.mrb[68].mxu0 %v18898_v41  ;;  %4172 = vrot.lane.b32.xlu0 %v15211_v16, %s13925_s13  ;;  %v18913_v41 = vld [vmem:[#allocation44_spill] sm:$0xff] }
 0x2e7   :  { %12047 = vmatprep.mubr.bf16.mxu0 %v18899_v4 }
 0x2e9   :  { %4174 = vrot.lane.b32.xlu1 %v15227_v26, %s13925_s13 }
 0x2ea   :  { %4176 = vrot.lane.b32.xlu0 %v15271_v44, %s13925_s13 }
 0x2ed   :  { %4178 = vrot.lane.b32.xlu1 %v15287_v22, %s13925_s13 }
 0x2ee   :  { %12048 = vmatmul.mubr.bf16.gmra.mrb[72].mxu0 %v18900_v55  ;;  %4180 = vrot.lane.b32.xlu0 %v15331_v46, %s13925_s13 }
 0x2ef   :  { %12051 = vmatprep.mubr.bf16.mxu0 %v3312_v51 }
 0x2f1   :  { %4182 = vrot.lane.b32.xlu1 %v15347_v18, %s13925_s13 }
 0x2f2   :  { %4184 = vrot.lane.b32.xlu0 %v15385_v32, %s13925_s13 }
 0x2f5   :  { %4186 = vrot.lane.b32.xlu1 %v15396_v47, %s13925_s13 }
 0x2f6   :  { %12052 = vmatmul.mubr.bf16.gmra.mrb[76].mxu0 %v3313_v48  ;;  %4236 = vrot.lane.b32.xlu0 %v14983_v59, %s13925_s13  ;;  %v18911_v48 = vld [vmem:[#allocation21_spill] sm:$0xff] }
 0x2f7   :  { %12055 = vmatprep.mubr.bf16.mxu0 %v18901_v61  ;;  %v3229_v10 = vmul.f32 %v18912_v23, %v18911_v48 }
 0x2f9   :  { %4238 = vrot.lane.b32.xlu1 %v15016_v45, %s13925_s13 }
 0x2fa   :  { %4240 = vrot.lane.b32.xlu0 %v15042_v5, %s13925_s13 }
 0x2fd   :  { %4242 = vrot.lane.b32.xlu1 %v15075_v24, %s13925_s13 }
 0x2fe   :  { %4244 = vrot.lane.b32.xlu0 %v15102_v8, %s13925_s13 }
 0x301   :  { %4246 = vrot.lane.b32.xlu1 %v15135_v34, %s13925_s13 }
 0x302   :  { %4248 = vrot.lane.b32.xlu0 %v15162_v11, %s13925_s13 }
 0x305   :  { %4250 = vrot.lane.b32.xlu1 %v15195_v0, %s13925_s13 }
 0x306   :  { %4252 = vrot.lane.b32.xlu0 %v15222_v53, %s13925_s13 }
 0x309   :  { %4254 = vrot.lane.b32.xlu1 %v15255_v12, %s13925_s13 }
 0x30a   :  { %4256 = vrot.lane.b32.xlu0 %v15282_v31, %s13925_s13 }
 0x30c   :  { %v4061_v33 = vpop.permute.xlu0 %4060 }
 0x30d   :  { %4258 = vrot.lane.b32.xlu1 %v15315_v19, %s13925_s13  ;;  %v4092_v17 = vmul.f32 %v4061_v33, %v14938_v36 }
 0x30e   :  { %4260 = vrot.lane.b32.xlu0 %v15342_v43, %s13925_s13 }
 0x30f   :  { %v4063_v3 = vpop.permute.xlu1 %4062  ;;  %v4108_v58 = vadd.f32 %v4092_v17, %v4044_v7 }
 0x310   :  { %v4093_v29 = vmul.f32 %v4063_v3, %v18905_v42  ;;  %v3247_v51 = vpop.permute.xlu0 %3246 }
 0x311   :  { %4262 = vrot.lane.b32.xlu1 %v18906_v20, %s13925_s13  ;;  %v3276_v25 = vmul.f32 %v3247_v51, %v18907_v35 }
 0x312   :  { %v4109_v21 = vadd.f32 %v4093_v29, %v4045_v62  ;;  %4264 = vrot.lane.b32.xlu0 %v18908_v60, %s13925_s13  ;;  %v4046_v62 = vmul.f32 %v18910_v15, %v18914_v54  ;;  %v18915_v29 = vld [vmem:[#allocation50_spill] sm:$0xff]  ;;  %v18921_v54 = vld [vmem:[#allocation53_spill] sm:$0xff] }
 0x313   :  { %v3249_v40 = vpop.permute.xlu1 %3248  ;;  %v3292_v33 = vadd.f32 %v3276_v25, %v3228_v30  ;;  %v4047_v51 = vmul.f32 %v18912_v23, %v18915_v29 }
 0x314   :  { %v3277_v4 = vmul.f32 %v3249_v40, %v18913_v41  ;;  %v4065_v55 = vpop.permute.xlu0 %4064  ;;  %v4124_v61 = vpack.c.bf16 %v4109_v21, %v4108_v58 }
 0x315   :  { %4266 = vrot.lane.b32.xlu1 %v15402_v57, %s13925_s13  ;;  %v4094_v3 = vmul.f32 %v4065_v55, %v18907_v35  ;;  %v18920_v57 = vld [vmem:[#allocation52_spill] sm:$0xff] }
 0x316   :  { %v3293_v17 = vadd.f32 %v3277_v4, %v3229_v10  ;;  %12119 = vmatprep.subr.bf16.mxu0 %v4124_v61  ;;  %v18917_v10 = vld [vmem:[#allocation22_spill] sm:$0xff]  ;;  %v18918_v4 = vld [vmem:[#allocation51_spill] sm:$0xff] }
 0x317   :  { %12120 = vmatpush3.bf16.xpose.msra.mxu0 %v4124_v61  ;;  %v4067_v7 = vpop.permute.xlu1 %4066  ;;  %v4110_v21 = vadd.f32 %v4094_v3, %v4046_v62  ;;  %v3230_v55 = vmul.f32 %v18918_v4, %v18917_v10  ;;  %v18919_v61 = vld [vmem:[#allocation23_spill] sm:$0xff]  ;;  %v18922_v3 = vld [vmem:[#allocation56_spill] sm:$0xff] }
 0x318   :  { %v4095_v40 = vmul.f32 %v4067_v7, %v18913_v41  ;;  %v3251_v63 = vpop.permute.xlu0 %3250  ;;  %v3315_v58 = vpack.c.bf16 %v3293_v17, %v3292_v33  ;;  %v3231_v60 = vmul.f32 %v18920_v57, %v18919_v61  ;;  %v4048_v62 = vmul.f32 %v18918_v4, %v18922_v3  ;;  %v18929_v3 = vld [vmem:[#allocation62_spill] sm:$0xff] }
 0x319   :  { %v3278_v25 = vmul.f32 %v3251_v63, %v18916_v52 }
 0x31a   :  { %v4111_v48 = vadd.f32 %v4095_v40, %v4047_v51  ;;  %12056 = vmatmul.mubr.bf16.gmra.mrb[80].mxu0 %v3315_v58  ;;  %v18923_v51 = vld [vmem:[#allocation59_spill] sm:$0xff] }
 0x31b   :  { %v3253_v30 = vpop.permute.xlu1 %3252  ;;  %v3294_v19 = vadd.f32 %v3278_v25, %v3230_v55  ;;  %v4049_v40 = vmul.f32 %v18920_v57, %v18923_v51  ;;  %v18927_v55 = vld [vmem:[#allocation25_spill] sm:$0xff] }
 0x31c   :  { %v3279_v20 = vmul.f32 %v3253_v30, %v18921_v54  ;;  %v4069_v43 = vpop.permute.xlu0 %4068  ;;  %v4125_v29 = vpack.c.bf16 %v4111_v48, %v4110_v21  ;;  %v18924_v21 = vld [vmem:[#allocation57_spill] sm:$0xff] }
 0x31d   :  { %v4096_v33 = vmul.f32 %v4069_v43, %v18916_v52  ;;  %v18925_v43 = vld [vmem:[#allocation24_spill] sm:$0xff] }
 0x31e   :  { %v3295_v7 = vadd.f32 %v3279_v20, %v3231_v60  ;;  %12121 = vmatprep.subr.bf16.mxu0 %v4125_v29  ;;  %v18926_v60 = vld [vmem:[#allocation60_spill] sm:$0xff] }
 0x31f   :  { %12122 = vmatpush3.bf16.xpose.msra.mxu0 %v4125_v29  ;;  %v4071_v17 = vpop.permute.xlu1 %4070  ;;  %v4112_v30 = vadd.f32 %v4096_v33, %v4048_v62  ;;  %v3232_v25 = vmul.f32 %v18926_v60, %v18925_v43  ;;  %v18928_v29 = vld [vmem:[#allocation61_spill] sm:$0xff] }
 0x320   :  { %v4097_v63 = vmul.f32 %v4071_v17, %v18921_v54  ;;  %v3255_v58 = vpop.permute.xlu0 %3254  ;;  %v3316_v10 = vpack.c.bf16 %v3295_v7, %v3294_v19  ;;  %v3233_v31 = vmul.f32 %v18928_v29, %v18927_v55  ;;  %v18930_v33 = vld [vmem:[#allocation65_spill] sm:$0xff] }
 0x321   :  { %v3280_v48 = vmul.f32 %v3255_v58, %v18924_v21  ;;  %v4050_v62 = vmul.f32 %v18926_v60, %v18930_v33  ;;  %v18937_v33 = vld [vmem:[#allocation71_spill] sm:$0xff] }
 0x322   :  { %v4113_v61 = vadd.f32 %v4097_v63, %v4049_v40  ;;  %12059 = vmatprep.mubr.bf16.mxu0 %v3316_v10  ;;  %v18931_v40 = vld [vmem:[#allocation68_spill] sm:$0xff] }
 0x323   :  { %v3257_v20 = vpop.permute.xlu1 %3256  ;;  %v3296_v0 = vadd.f32 %v3280_v48, %v3232_v25  ;;  %v4051_v63 = vmul.f32 %v18928_v29, %v18931_v40  ;;  %v18935_v25 = vld [vmem:[#allocation27_spill] sm:$0xff] }
 0x324   :  { %v3281_v12 = vmul.f32 %v3257_v20, %v18929_v3  ;;  %v4073_v53 = vpop.permute.xlu0 %4072  ;;  %v4126_v51 = vpack.c.bf16 %v4113_v61, %v4112_v30  ;;  %v18932_v30 = vld [vmem:[#allocation66_spill] sm:$0xff] }
 0x325   :  { %v4098_v19 = vmul.f32 %v4073_v53, %v18924_v21  ;;  %v18933_v53 = vld [vmem:[#allocation26_spill] sm:$0xff] }
 0x326   :  { %v3297_v17 = vadd.f32 %v3281_v12, %v3233_v31  ;;  %12123 = vmatprep.subr.bf16.mxu0 %v4126_v51  ;;  %v18934_v31 = vld [vmem:[#allocation69_spill] sm:$0xff] }
 0x327   :  { %12124 = vmatpush3.bf16.xpose.msra.mxu0 %v4126_v51  ;;  %v4075_v7 = vpop.permute.xlu1 %4074  ;;  %v4114_v20 = vadd.f32 %v4098_v19, %v4050_v62  ;;  %v3234_v48 = vmul.f32 %v18934_v31, %v18933_v53  ;;  %v18936_v51 = vld [vmem:[#allocation70_spill] sm:$0xff] }
 0x328   :  { %v4099_v58 = vmul.f32 %v4075_v7, %v18929_v3  ;;  %v3259_v10 = vpop.permute.xlu0 %3258  ;;  %v3317_v43 = vpack.c.bf16 %v3297_v17, %v3296_v0  ;;  %v3235_v11 = vmul.f32 %v18936_v51, %v18935_v25  ;;  %v18938_v19 = vld [vmem:[#allocation74_spill] sm:$0xff] }
 0x329   :  { %v3282_v61 = vmul.f32 %v3259_v10, %v18932_v30  ;;  %v4052_v62 = vmul.f32 %v18934_v31, %v18938_v19  ;;  %v18945_v19 = vld [vmem:[#allocation80_spill] sm:$0xff] }
 0x32a   :  { %v4115_v55 = vadd.f32 %v4099_v58, %v4051_v63  ;;  %12060 = vmatmul.mubr.bf16.gmra.mrb[84].mxu0 %v3317_v43  ;;  %v18939_v63 = vld [vmem:[#allocation77_spill] sm:$0xff] }
 0x32b   :  { %v3261_v12 = vpop.permute.xlu1 %3260  ;;  %v3298_v24 = vadd.f32 %v3282_v61, %v3234_v48  ;;  %v4053_v58 = vmul.f32 %v18936_v51, %v18939_v63  ;;  %v18943_v48 = vld [vmem:[#allocation29_spill] sm:$0xff] }
 0x32c   :  { %v3283_v34 = vmul.f32 %v3261_v12, %v18937_v33  ;;  %v4077_v8 = vpop.permute.xlu0 %4076  ;;  %v4127_v40 = vpack.c.bf16 %v4115_v55, %v4114_v20  ;;  %v18940_v20 = vld [vmem:[#allocation75_spill] sm:$0xff] }
 0x32d   :  { %v4100_v0 = vmul.f32 %v4077_v8, %v18932_v30  ;;  %v18941_v8 = vld [vmem:[#allocation28_spill] sm:$0xff] }
 0x32e   :  { %v3299_v7 = vadd.f32 %v3283_v34, %v3235_v11  ;;  %12125 = vmatprep.subr.bf16.mxu0 %v4127_v40  ;;  %v18942_v11 = vld [vmem:[#allocation78_spill] sm:$0xff] }
 0x32f   :  { %12126 = vmatpush3.bf16.xpose.msra.mxu0 %v4127_v40  ;;  %v4079_v17 = vpop.permute.xlu1 %4078  ;;  %v4116_v12 = vadd.f32 %v4100_v0, %v4052_v62  ;;  %v3236_v61 = vmul.f32 %v18942_v11, %v18941_v8  ;;  %v18944_v40 = vld [vmem:[#allocation79_spill] sm:$0xff] }
 0x330   :  { %v4101_v10 = vmul.f32 %v4079_v17, %v18937_v33  ;;  %v3263_v43 = vpop.permute.xlu0 %3262  ;;  %v3318_v53 = vpack.c.bf16 %v3299_v7, %v3298_v24  ;;  %v3237_v5 = vmul.f32 %v18944_v40, %v18943_v48  ;;  %v18946_v0 = vld [vmem:[#allocation83_spill] sm:$0xff] }
 0x331   :  { %v3284_v55 = vmul.f32 %v3263_v43, %v18940_v20  ;;  %v4054_v62 = vmul.f32 %v18942_v11, %v18946_v0  ;;  %v18953_v0 = vld [vmem:[#allocation89_spill] sm:$0xff] }
 0x332   :  { %v4117_v25 = vadd.f32 %v4101_v10, %v4053_v58  ;;  %12063 = vmatprep.mubr.bf16.mxu0 %v3318_v53  ;;  %v18947_v58 = vld [vmem:[#allocation86_spill] sm:$0xff] }
 0x333   :  { %v3265_v34 = vpop.permute.xlu1 %3264  ;;  %v3300_v47 = vadd.f32 %v3284_v55, %v3236_v61  ;;  %v4055_v10 = vmul.f32 %v18944_v40, %v18947_v58  ;;  %v18951_v61 = vld [vmem:[#allocation31_spill] sm:$0xff] }
 0x334   :  { %v3285_v45 = vmul.f32 %v3265_v34, %v18945_v19  ;;  %v4081_v59 = vpop.permute.xlu0 %4080  ;;  %v4128_v63 = vpack.c.bf16 %v4117_v25, %v4116_v12  ;;  %v18948_v12 = vld [vmem:[#allocation84_spill] sm:$0xff] }
 0x335   :  { %v4102_v24 = vmul.f32 %v4081_v59, %v18940_v20  ;;  %v18949_v59 = vld [vmem:[#allocation30_spill] sm:$0xff] }
 0x336   :  { %v3301_v17 = vadd.f32 %v3285_v45, %v3237_v5  ;;  %12127 = vmatprep.subr.bf16.mxu0 %v4128_v63  ;;  %v18950_v45 = vld [vmem:[#allocation87_spill] sm:$0xff] }
 0x337   :  { %12128 = vmatpush3.bf16.xpose.msra.mxu0 %v4128_v63  ;;  %v4083_v7 = vpop.permute.xlu1 %4082  ;;  %v4118_v34 = vadd.f32 %v4102_v24, %v4054_v62  ;;  %v3238_v55 = vmul.f32 %v18950_v45, %v18949_v59  ;;  %v18952_v63 = vld [vmem:[#allocation88_spill] sm:$0xff] }
 0x338   :  { %v4103_v43 = vmul.f32 %v4083_v7, %v18945_v19  ;;  %v3267_v53 = vpop.permute.xlu0 %3266  ;;  %v3319_v8 = vpack.c.bf16 %v3301_v17, %v3300_v47  ;;  %v3239_v32 = vmul.f32 %v18952_v63, %v18951_v61  ;;  %v18954_v24 = vld [vmem:[#allocation92_spill] sm:$0xff] }
 0x339   :  { %v3286_v25 = vmul.f32 %v3267_v53, %v18948_v12  ;;  %v4056_v62 = vmul.f32 %v18950_v45, %v18954_v24 }
 0x33a   :  { %v4119_v48 = vadd.f32 %v4103_v43, %v4055_v10  ;;  %12064 = vmatmul.mubr.bf16.gmra.mrb[88].mxu0 %v3319_v8  ;;  %v18955_v10 = vld [vmem:[#allocation97_spill] sm:$0xff] }
 0x33b   :  { %v3269_v5 = vpop.permute.xlu1 %3268  ;;  %v3302_v40 = vadd.f32 %v3286_v25, %v3238_v55  ;;  %v4057_v43 = vmul.f32 %v18952_v63, %v18955_v10  ;;  %v18958_v25 = vld [vmem:[#allocation34_spill] sm:$0xff] }
 0x33c   :  { %v3287_v18 = vmul.f32 %v3269_v5, %v18953_v0  ;;  %v4085_v46 = vpop.permute.xlu0 %4084  ;;  %v4129_v58 = vpack.c.bf16 %v4119_v48, %v4118_v34  ;;  %v18956_v34 = vld [vmem:[#allocation94_spill] sm:$0xff]  ;;  %v3241_v55 = vmul.f32 %v15359_v27, %v18958_v25 }
 0x33d   :  { %v4104_v47 = vmul.f32 %v4085_v46, %v18948_v12  ;;  %v18957_v46 = vld [vmem:[#allocation32_spill] sm:$0xff] }
 0x33e   :  { %v3303_v7 = vadd.f32 %v3287_v18, %v3239_v32  ;;  %12129 = vmatprep.subr.bf16.mxu0 %v4129_v58  ;;  %v3240_v32 = vmul.f32 %v15354_v39, %v18957_v46 }
 0x33f   :  { %12130 = vmatpush3.bf16.xpose.msra.mxu0 %v4129_v58  ;;  %v4087_v17 = vpop.permute.xlu1 %4086  ;;  %v4120_v5 = vadd.f32 %v4104_v47, %v4056_v62  ;;  %v18959_v47 = vld [vmem:[#allocation100_spill] sm:$0xff] }
 0x340   :  { %v4105_v53 = vmul.f32 %v4087_v17, %v18953_v0  ;;  %v3271_v8 = vpop.permute.xlu0 %3270  ;;  %v3320_v59 = vpack.c.bf16 %v3303_v7, %v3302_v40  ;;  %v4058_v62 = vmul.f32 %v15354_v39, %v18959_v47  ;;  %v4145_v47 = vmul.f32 %v18920_v57, %v15107_v50 }
 0x341   :  { %v3288_v48 = vmul.f32 %v3271_v8, %v18956_v34 }
 0x342   :  { %v4121_v61 = vadd.f32 %v4105_v53, %v4057_v43  ;;  %12067 = vmatprep.mubr.bf16.mxu0 %v3320_v59  ;;  %v4059_v43 = vmul.f32 %v15359_v27, %v15398_v9 }
 0x343   :  { %v3273_v18 = vpop.permute.xlu1 %3272  ;;  %v3304_v63 = vadd.f32 %v3288_v48, %v3240_v32  ;;  %v4140_v48 = vmul.f32 %v18902_v13, %v14979_v49  ;;  %v4141_v32 = vmul.f32 %v18904_v2, %v14992_v37  ;;  %v4143_v49 = vmul.f32 %v18912_v23, %v15047_v38 }
 0x344   :  { %v3289_v58 = vmul.f32 %v3273_v18, %v15368_v6  ;;  %v4089_v24 = vpop.permute.xlu0 %4088  ;;  %v4130_v10 = vpack.c.bf16 %v4121_v61, %v4120_v5 }
 0x345   :  { %v4106_v40 = vmul.f32 %v4089_v24, %v18956_v34 }
 0x346   :  { %v3305_v17 = vadd.f32 %v3289_v58, %v3241_v55  ;;  %12131 = vmatprep.subr.bf16.mxu0 %v4130_v10 }
 0x347   :  { %12132 = vmatpush3.bf16.xpose.msra.mxu0 %v4130_v10  ;;  %v4091_v7 = vpop.permute.xlu1 %4090  ;;  %v4122_v18 = vadd.f32 %v4106_v40, %v4058_v62 }
 0x348   :  { %v4107_v53 = vmul.f32 %v4091_v7, %v15368_v6  ;;  %v4157_v8 = vpop.permute.xlu0 %4156  ;;  %v3321_v59 = vpack.c.bf16 %v3305_v17, %v3304_v63 }
 0x349   :  { %v4188_v5 = vmul.f32 %v4157_v8, %v14938_v36  ;;  %v4142_v36 = vmul.f32 %v18910_v15, %v15031_v1 }
 0x34a   :  { %v4123_v46 = vadd.f32 %v4107_v53, %v4059_v43  ;;  %12068 = vmatmul.mubr.bf16.gmra.mrb[92].mxu0 %v3321_v59  ;;  %v4147_v53 = vmul.f32 %v18928_v29, %v15167_v56 }
 0x34b   :  { %v4159_v61 = vpop.permute.xlu1 %4158  ;;  %v4204_v58 = vadd.f32 %v4188_v5, %v4140_v48 }
 0x34c   :  { %v4189_v25 = vmul.f32 %v4159_v61, %v18905_v42  ;;  %v4161_v55 = vpop.permute.xlu0 %4160  ;;  %v4131_v9 = vpack.c.bf16 %v4123_v46, %v4122_v18  ;;  %v4148_v18 = vmul.f32 %v18934_v31, %v15211_v16  ;;  %v4149_v46 = vmul.f32 %v18936_v51, %v15227_v26 }
 0x34d   :  { %v4190_v63 = vmul.f32 %v4161_v55, %v18907_v35  ;;  %v4144_v35 = vmul.f32 %v18918_v4, %v15091_v28  ;;  %v4150_v55 = vmul.f32 %v18942_v11, %v15271_v44 }
 0x34e   :  { %v4205_v24 = vadd.f32 %v4189_v25, %v4141_v32  ;;  %12133 = vmatprep.subr.bf16.mxu0 %v4131_v9 }
 0x34f   :  { %12134 = vmatpush3.bf16.xpose.msra.mxu0 %v4131_v9  ;;  %v4163_v10 = vpop.permute.xlu1 %4162  ;;  %v4206_v42 = vadd.f32 %v4190_v63, %v4142_v36  ;;  %v18960_v9 = vld [vmem:[#allocation79_spill] sm:$0xff] }
 0x350   :  { %v4191_v13 = vmul.f32 %v4163_v10, %v18913_v41  ;;  %v4165_v37 = vpop.permute.xlu0 %4164  ;;  %v4300_v2 = vpack.c.bf16 %v4205_v24, %v4204_v58  ;;  %v4151_v58 = vmul.f32 %v18960_v9, %v15287_v22 }
 0x351   :  { %v4192_v40 = vmul.f32 %v4165_v37, %v18916_v52  ;;  %v4146_v52 = vmul.f32 %v18926_v60, %v15151_v14 }
 0x352   :  { %v4207_v17 = vadd.f32 %v4191_v13, %v4143_v49  ;;  %12135 = vmatprep.mubr.bf16.mxu0 %v4300_v2  ;;  %v18961_v13 = vld [vmem:[#allocation93_spill] sm:$0xff]  ;;  %v18962_v2 = vld [vmem:[#allocation96_spill] sm:$0xff] }
 0x353   :  { %v4167_v7 = vpop.permute.xlu1 %4166  ;;  %v4208_v23 = vadd.f32 %v4192_v40, %v4144_v35  ;;  %v4152_v37 = vmul.f32 %v18950_v45, %v18961_v13  ;;  %v13706_v13 = vld [vmem:[%s18449_s1 + $0x38] sm:$0xff] }
 0x354   :  { %v4301_v1 = vpack.c.bf16 %v4207_v17, %v4206_v42  ;;  %v4193_v15 = vmul.f32 %v4167_v7, %v18921_v54  ;;  %v4169_v38 = vpop.permute.xlu0 %4168  ;;  %v18963_v42 = vld [vmem:[#allocation88_spill] sm:$0xff] }
 0x355   :  { %v4194_v62 = vmul.f32 %v4169_v38, %v18924_v21  ;;  %v4153_v17 = vmul.f32 %v18963_v42, %v18962_v2 }
 0x356   :  { %v4209_v41 = vadd.f32 %v4193_v15, %v4145_v47  ;;  %12136 = vmatmul.mubr.bf16.vlgmr.msra.gmra.mrb[96].mxu0 %v4301_v1  ;;  %v18964_v15 = vld [vmem:[#allocation101_spill] sm:$0xff] }
 0x357   :  { %v4171_v43 = vpop.permute.xlu1 %4170  ;;  %v4210_v57 = vadd.f32 %v4194_v62, %v4146_v52  ;;  %v4154_v38 = vmul.f32 %v15354_v39, %v18964_v15 }
 0x358   :  { %v4195_v28 = vmul.f32 %v4171_v43, %v18929_v3  ;;  %v4173_v4 = vpop.permute.xlu0 %4172  ;;  %v4302_v50 = vpack.c.bf16 %v4209_v41, %v4208_v23  ;;  %v18965_v23 = vld [vmem:[#allocation35_spill] sm:$0xff] }
 0x359   :  { %v4196_v54 = vmul.f32 %v4173_v4, %v18932_v30  ;;  %v4155_v41 = vmul.f32 %v15359_v27, %v18965_v23  ;;  %v13699_v4 = vld [vmem:[%s18449_s1 + $0x8] sm:$0xff] }
 0x35a   :  { %v4211_v8 = vadd.f32 %v4195_v28, %v4147_v53  ;;  %12139 = vmatprep.mubr.bf16.mxu0 %v4302_v50  ;;  %v18971_v23 = vld [vmem:[#allocation64_spill] sm:$0xff] }
 0x35b   :  { %v4175_v59 = vpop.permute.xlu1 %4174  ;;  %v4212_v61 = vadd.f32 %v4196_v54, %v4148_v18  ;;  %v18966_v54 = vld [vmem:[#allocation39_spill] sm:$0xff]  ;;  %v13701_v18 = vld [vmem:[%s18449_s1 + $0x10] sm:$0xff] }
 0x35c   :  { %v4197_v14 = vmul.f32 %v4175_v59, %v18937_v33  ;;  %v4177_v5 = vpop.permute.xlu0 %4176  ;;  %v4303_v56 = vpack.c.bf16 %v4211_v8, %v4210_v57  ;;  %v13700_v8 = vld [vmem:[%s18449_s1] sm:$0xff] }
 0x35d   :  { %v4198_v32 = vmul.f32 %v4177_v5, %v18940_v20  ;;  %v4220_v59 = vmul.f32 %v13700_v8, %v18966_v54  ;;  %v13702_v5 = vld [vmem:[%s18449_s1 + $0x18] sm:$0xff]  ;;  %v18972_v8 = vld [vmem:[#allocation67_spill] sm:$0xff] }
 0x35e   :  { %v4213_v48 = vadd.f32 %v4197_v14, %v4149_v46  ;;  %12140 = vmatmul.mubr.bf16.gmra.mrb[100].mxu0 %v4303_v56  ;;  %v18967_v46 = vld [vmem:[#allocation46_spill] sm:$0xff]  ;;  %v4226_v54 = vmul.f32 %v18926_v60, %v18972_v8 }
 0x35f   :  { %v4179_v25 = vpop.permute.xlu1 %4178  ;;  %v4214_v63 = vadd.f32 %v4198_v32, %v4150_v55  ;;  %v4221_v14 = vmul.f32 %v13701_v18, %v18967_v46  ;;  %v13703_v55 = vld [vmem:[%s18449_s1 + $0x28] sm:$0xff] }
 0x360   :  { %v4199_v16 = vmul.f32 %v4179_v25, %v18945_v19  ;;  %v4181_v24 = vpop.permute.xlu0 %4180  ;;  %v4304_v26 = vpack.c.bf16 %v4213_v48, %v4212_v61 }
 0x361   :  { %v4200_v36 = vmul.f32 %v4181_v24, %v18948_v12  ;;  %v13704_v24 = vld [vmem:[%s18449_s1 + $0x20] sm:$0xff] }
 0x362   :  { %v4215_v10 = vadd.f32 %v4199_v16, %v4151_v58  ;;  %12143 = vmatprep.mubr.bf16.mxu0 %v4304_v26  ;;  %v18968_v26 = vld [vmem:[#allocation49_spill] sm:$0xff] }
 0x363   :  { %v4183_v49 = vpop.permute.xlu1 %4182  ;;  %v4216_v7 = vadd.f32 %v4200_v36, %v4152_v37  ;;  %v18969_v36 = vld [vmem:[#allocation55_spill] sm:$0xff] }
 0x364   :  { %v4201_v44 = vmul.f32 %v4183_v49, %v18953_v0  ;;  %v4185_v40 = vpop.permute.xlu0 %4184  ;;  %v4305_v22 = vpack.c.bf16 %v4215_v10, %v4214_v63  ;;  %v4222_v63 = vmul.f32 %v13704_v24, %v18968_v26  ;;  %v13705_v10 = vld [vmem:[%s18449_s1 + $0x30] sm:$0xff] }
 0x365   :  { %v4202_v47 = vmul.f32 %v4185_v40, %v18956_v34  ;;  %v4223_v49 = vmul.f32 %v13705_v10, %v18969_v36  ;;  %v18976_v10 = vld [vmem:[#allocation85_spill] sm:$0xff]  ;;  %v18977_v36 = vld [vmem:[#allocation91_spill] sm:$0xff] }
 0x366   :  { %v4217_v35 = vadd.f32 %v4201_v44, %v4153_v17  ;;  %12144 = vmatmul.mubr.bf16.gmra.mrb[104].mxu0 %v4305_v22  ;;  %v13707_v22 = vld [vmem:[%s18449_s1 + $0x48] sm:$0xff] }
 0x367   :  { %v4187_v1 = vpop.permute.xlu1 %4186  ;;  %v4218_v53 = vadd.f32 %v4202_v47, %v4154_v38  ;;  %v13708_v47 = vld [vmem:[%s18449_s1 + $0x40] sm:$0xff]  ;;  %v13709_v38 = vld [vmem:[%s18449_s1 + $0x50] sm:$0xff] }
 0x368   :  { %v4203_v62 = vmul.f32 %v4187_v1, %v15368_v6  ;;  %v4237_v43 = vpop.permute.xlu0 %4236  ;;  %v4306_v52 = vpack.c.bf16 %v4217_v35, %v4216_v7  ;;  %v18970_v1 = vld [vmem:[#allocation58_spill] sm:$0xff] }
 0x369   :  { %v4268_v50 = vmul.f32 %v13699_v4, %v4237_v43  ;;  %v4224_v15 = vmul.f32 %v13708_v47, %v18970_v1 }
 0x36a   :  { %v4219_v28 = vadd.f32 %v4203_v62, %v4155_v41  ;;  %12147 = vmatprep.mubr.bf16.mxu0 %v4306_v52  ;;  %v4225_v41 = vmul.f32 %v13709_v38, %v18971_v23  ;;  %v13710_v62 = vld [vmem:[%s18449_s1 + $0x58] sm:$0xff]  ;;  %v18981_v38 = vld [vmem:[#allocation33_spill] sm:$0xff] }
 0x36b   :  { %v4239_v57 = vpop.permute.xlu1 %4238  ;;  %v4284_v32 = vadd.f32 %v4268_v50, %v4220_v59  ;;  %v18973_v59 = vld [vmem:[#allocation73_spill] sm:$0xff]  ;;  %v4235_v23 = vmul.f32 %v15359_v27, %v18981_v38 }
 0x36c   :  { %v4269_v56 = vmul.f32 %v13702_v5, %v4239_v57  ;;  %v4241_v61 = vpop.permute.xlu0 %4240  ;;  %v4307_v48 = vpack.c.bf16 %v4219_v28, %v4218_v53  ;;  %v4227_v18 = vmul.f32 %v18928_v29, %v18973_v59 }
 0x36d   :  { %v4270_v58 = vmul.f32 %v13703_v55, %v4241_v61  ;;  %v18975_v55 = vld [vmem:[#allocation82_spill] sm:$0xff] }
 0x36e   :  { %v4285_v25 = vadd.f32 %v4269_v56, %v4221_v14  ;;  %12148 = vmatmul.mubr.bf16.gmra.mrb[108].mxu0 %v4307_v48 }
 0x36f   :  { %v4243_v16 = vpop.permute.xlu1 %4242  ;;  %v4286_v44 = vadd.f32 %v4270_v58, %v4222_v63  ;;  %v4229_v58 = vmul.f32 %v18936_v51, %v18975_v55 }
 0x370   :  { %v4271_v37 = vmul.f32 %v13706_v13, %v4243_v16  ;;  %v4245_v2 = vpop.permute.xlu0 %4244  ;;  %v4308_v17 = vpack.c.bf16 %v4285_v25, %v4284_v32  ;;  %v18974_v25 = vld [vmem:[#allocation76_spill] sm:$0xff] }
 0x371   :  { %v4272_v7 = vmul.f32 %v13707_v22, %v4245_v2 }
 0x372   :  { %v4287_v40 = vadd.f32 %v4271_v37, %v4223_v49  ;;  %12151 = vmatprep.mubr.bf16.mxu0 %v4308_v17  ;;  %v4231_v49 = vmul.f32 %v18960_v9, %v18977_v36 }
 0x373   :  { %v4247_v35 = vpop.permute.xlu1 %4246  ;;  %v4288_v28 = vadd.f32 %v4272_v7, %v4224_v15  ;;  %v18980_v15 = vld [vmem:[#allocation102_spill] sm:$0xff] }
 0x374   :  { %v4273_v43 = vmul.f32 %v13710_v62, %v4247_v35  ;;  %v4249_v52 = vpop.permute.xlu0 %4248  ;;  %v4309_v53 = vpack.c.bf16 %v4287_v40, %v4286_v44  ;;  %v18978_v44 = vld [vmem:[#allocation95_spill] sm:$0xff]  ;;  %v18979_v40 = vld [vmem:[#allocation98_spill] sm:$0xff] }
 0x375   :  { %v4274_v50 = vmul.f32 %v4249_v52, %v18924_v21  ;;  %v4228_v21 = vmul.f32 %v18934_v31, %v18974_v25  ;;  %v4233_v22 = vmul.f32 %v18963_v42, %v18979_v40 }
 0x376   :  { %v4289_v4 = vadd.f32 %v4273_v43, %v4225_v41  ;;  %12152 = vmatmul.mubr.bf16.gmra.mrb[112].mxu0 %v4309_v53  ;;  %v18982_v43 = vld [vmem:[#allocation19_spill] sm:$0xff]  ;;  %v18983_v53 = vlaneseq }
 0x377   :  { %v4251_v57 = vpop.permute.xlu1 %4250  ;;  %v4290_v56 = vadd.f32 %v4274_v50, %v4226_v54  ;;  %v3002_v52 = vadd.s32 16, %v18982_v43  ;;  %v3008_v40 = vadd.s32 64, %v18982_v43 }
 0x378   :  { %v4275_v46 = vmul.f32 %v4251_v57, %v18929_v3  ;;  %v4253_v14 = vpop.permute.xlu0 %4252  ;;  %v4310_v5 = vpack.c.bf16 %v4289_v4, %v4288_v28  ;;  %v3001_v28 = vadd.s32 8, %v18982_v43  ;;  %v3003_v57 = vadd.s32 24, %v18982_v43 }
 0x379   :  { %v4276_v48 = vmul.f32 %v4253_v14, %v18932_v30  ;;  %v4230_v30 = vmul.f32 %v18942_v11, %v18976_v10  ;;  %v3007_v14 = vadd.s32 56, %v18982_v43 }
 0x37a   :  { %v4291_v61 = vadd.f32 %v4275_v46, %v4227_v18  ;;  %12155 = vmatprep.mubr.bf16.mxu0 %v4310_v5 }
 0x37b   :  { %v4255_v32 = vpop.permute.xlu1 %4254  ;;  %v4292_v24 = vadd.f32 %v4276_v48, %v4228_v21 }
 0x37c   :  { %v4277_v60 = vmul.f32 %v4255_v32, %v18937_v33  ;;  %v4257_v16 = vpop.permute.xlu0 %4256  ;;  %v4311_v29 = vpack.c.bf16 %v4291_v61, %v4290_v56  ;;  %v3006_v61 = vadd.s32 48, %v18982_v43  ;;  %v3005_v32 = vadd.s32 40, %v18982_v43 }
 0x37d   :  { %v4278_v26 = vmul.f32 %v4257_v16, %v18940_v20  ;;  %v4232_v20 = vmul.f32 %v18950_v45, %v18978_v44 }
 0x37e   :  { %v4293_v3 = vadd.f32 %v4277_v60, %v4229_v58  ;;  %12156 = vmatmul.mubr.bf16.gmra.mrb[116].mxu0 %v4311_v29  ;;  %v3004_v60 = vadd.s32 32, %v18982_v43 }
 0x37f   :  { %v4259_v63 = vpop.permute.xlu1 %4258  ;;  %v4294_v37 = vadd.f32 %v4278_v26, %v4230_v30  ;;  %v3011_v30 = vadd.s32 88, %v18982_v43 }
 0x380   :  { %v4279_v31 = vmul.f32 %v4259_v63, %v18945_v19  ;;  %v4261_v13 = vpop.permute.xlu0 %4260  ;;  %v4312_v51 = vpack.c.bf16 %v4293_v3, %v4292_v24 }
 0x381   :  { %v4280_v2 = vmul.f32 %v4261_v13, %v18948_v12  ;;  %v4234_v12 = vmul.f32 %v15354_v39, %v18980_v15  ;;  %v13926_v39 = vmov -1e+30   ;;  %v3010_v13 = vadd.s32 80, %v18982_v43 }
 0x382   :  { %v4295_v33 = vadd.f32 %v4279_v31, %v4231_v49  ;;  %12159 = vmatprep.mubr.bf16.mxu0 %v4312_v51 }
 0x383   :  { %v4263_v17 = vpop.permute.xlu1 %4262  ;;  %v4296_v35 = vadd.f32 %v4280_v2, %v4232_v20 }
 0x384   :  { %v4281_v11 = vmul.f32 %v4263_v17, %v18953_v0  ;;  %v4265_v7 = vpop.permute.xlu0 %4264  ;;  %v4313_v9 = vpack.c.bf16 %v4295_v33, %v4294_v37  ;;  %v3009_v37 = vadd.s32 72, %v18982_v43 }
 0x385   :  { %v4282_v47 = vmul.f32 %v4265_v7, %v18956_v34  ;;  %v15700_v34 = vand.u32 127, %v18983_v53 }
 0x386   :  { %v4297_v19 = vadd.f32 %v4281_v11, %v4233_v22  ;;  %12160 = vmatmul.mubr.bf16.gmra.mrb[120].mxu0 %v4313_v9 }
 0x387   :  { %v4267_v1 = vpop.permute.xlu1 %4266  ;;  %v4298_v42 = vadd.f32 %v4282_v47, %v4234_v12  ;;  %vm3020_vm0 = vcmp.le.s32.totalorder %v15700_v34, %v3002_v52  ;;  %vm3019_vm1 = vcmp.le.s32.totalorder %v15700_v34, %v3001_v28  ;;  %vm3018_vm2 = vcmp.le.s32.totalorder %v15700_v34, %v18982_v43 }
 0x388   :  { %v4283_v45 = vmul.f32 %v4267_v1, %v15368_v6  ;;  %v4314_v41 = vpack.c.bf16 %v4297_v19, %v4296_v35  ;;  %v15705_v27 = vsel %vm3020_vm0, 0.0, %v13926_v39  ;;  %v15715_v18 = vsel %vm3019_vm1, 0.0, %v13926_v39 }
 0x389   :  { %v15719_v5 = vsel %vm3018_vm2, 0.0, %v13926_v39  ;;  %vm3021_vm3 = vcmp.le.s32.totalorder %v15700_v34, %v3003_v57  ;;  %vm3025_vm4 = vcmp.le.s32.totalorder %v15700_v34, %v3007_v14  ;;  %vm3024_vm5 = vcmp.le.s32.totalorder %v15700_v34, %v3006_v61 }
 0x38a   :  { %v4299_v62 = vadd.f32 %v4283_v45, %v4235_v23  ;;  %12163 = vmatprep.mubr.bf16.mxu0 %v4314_v41  ;;  %v15733_v55 = vsel %vm3021_vm3, 0.0, %v13926_v39  ;;  %v15740_v29 = vsel %vm3025_vm4, 0.0, %v13926_v39  ;;  %vm3023_vm6 = vcmp.le.s32.totalorder %v15700_v34, %v3005_v32 }
 0x38b   :  { %v15748_v36 = vsel %vm3024_vm5, 0.0, %v13926_v39  ;;  %vm3022_vm7 = vcmp.le.s32.totalorder %v15700_v34, %v3004_v60  ;;  %v15757_v51 = vsel %vm3023_vm6, 0.0, %v13926_v39  ;;  %vm3029_vm8 = vcmp.le.s32.totalorder %v15700_v34, %v3011_v30 }
 0x38c   :  { %v4315_v0 = vpack.c.bf16 %v4299_v62, %v4298_v42  ;;  %v15766_v17 = vsel %vm3022_vm7, 0.0, %v13926_v39  ;;  %vm3028_vm9 = vcmp.le.s32.totalorder %v15700_v34, %v3010_v13  ;;  %v15775_v11 = vsel %vm3029_vm8, 0.0, %v13926_v39 }
 0x38d   :  { %vm3027_vm10 = vcmp.le.s32.totalorder %v15700_v34, %v3009_v37  ;;  %v3015_v1 = vadd.s32 120, %v18982_v43  ;;  %v15784_v15 = vsel %vm3028_vm9, 0.0, %v13926_v39  ;;  %vm3026_vm11 = vcmp.le.s32.totalorder %v15700_v34, %v3008_v40 }
 0x38e   :  { %12164 = vmatmul.mubr.bf16.gmra.mrb[124].mxu0 %v4315_v0  ;;  %v3014_v23 = vadd.s32 112, %v18982_v43  ;;  %v15793_v45 = vsel %vm3027_vm10, 0.0, %v13926_v39  ;;  %v3013_v62 = vadd.s32 104, %v18982_v43  ;;  %v15802_v0 = vsel %vm3026_vm11, 0.0, %v13926_v39 }
 0x38f   :  { %vm3033_vm12 = vcmp.le.s32.totalorder %v15700_v34, %v3015_v1  ;;  %v3012_v28 = vadd.s32 96, %v18982_v43 }
 0x390   :  { %vm3032_vm13 = vcmp.le.s32.totalorder %v15700_v34, %v3014_v23  ;;  %vm3031_vm14 = vcmp.le.s32.totalorder %v15700_v34, %v3013_v62 }
 0x391   :  { %v15819_v14 = vsel %vm3032_vm13, 0.0, %v13926_v39  ;;  %vm3030_vm15 = vcmp.le.s32.totalorder %v15700_v34, %v3012_v28  ;;  %v15827_v32 = vsel %vm3031_vm14, 0.0, %v13926_v39 }
 0x392   :  { %18985 = vst [vmem:[#allocation41_spill] sm:$0xff] %v15819_v14  ;;  %v15834_v60 = vsel %vm3030_vm15, 0.0, %v13926_v39 }
 0x3b1   :  { %v12041_v6 = vpop.f32.mrb[64].mxu0 }
 0x3b2   :  { %v3485_v4 = vmul.f32 0.088388346, %v12041_v6  ;;  %v3356_v50 = vpop.f32.mrb[65].mxu0 }
 0x3b3   :  { %v12042_v8 = vpop.f32.mrb[66].mxu0  ;;  %v3483_v59 = vmul.f32 0.088388346, %v3356_v50 }
 0x3b4   :  { %v15712_v54 = vadd.f32 %v3485_v4, %v15705_v27  ;;  %v3359_v46 = vpop.f32.mrb[67].mxu0  ;;  %v3486_v21 = vmul.f32 0.088388346, %v12042_v8  ;;  %v15811_v4 = vsel %vm3033_vm12, 0.0, %v13926_v39 }
 0x3b5   :  { %v3484_v56 = vmul.f32 0.088388346, %v3359_v46  ;;  %v15729_v25 = vadd.f32 %v3483_v59, %v15719_v5  ;;  %18984 = vst [vmem:[#allocation36_spill] sm:$0xff] %v15811_v4 }
 0x3b6   :  { %3551 = vmax.xlane.f32.xlu0 %v15712_v54  ;;  %v15744_v3 = vadd.f32 %v3486_v21, %v15733_v55 }
 0x3b7   :  { %v15725_v48 = vadd.f32 %v3484_v56, %v15715_v18 }
 0x3b9   :  { %3549 = vmax.xlane.f32.xlu1 %v15725_v48  ;;  %v12045_v58 = vpop.f32.mrb[68].mxu0 }
 0x3ba   :  { %3547 = vmax.xlane.f32.xlu0 %v15729_v25  ;;  %v3372_v16 = vpop.f32.mrb[69].mxu0  ;;  %v3489_v26 = vmul.f32 0.088388346, %v12045_v58 }
 0x3bb   :  { %v12046_v24 = vpop.f32.mrb[70].mxu0  ;;  %v3487_v2 = vmul.f32 0.088388346, %v3372_v16 }
 0x3bc   :  { %v3490_v63 = vmul.f32 0.088388346, %v12046_v24  ;;  %v3375_v10 = vpop.f32.mrb[71].mxu0  ;;  %v15761_v33 = vadd.f32 %v3489_v26, %v15748_v36 }
 0x3bd   :  { %v3488_v31 = vmul.f32 0.088388346, %v3375_v10  ;;  %v15779_v9 = vadd.f32 %v3487_v2, %v15766_v17 }
 0x3be   :  { %v15752_v49 = vadd.f32 %v3490_v63, %v15740_v29  ;;  %3553 = vmax.xlane.f32.xlu0 %v15744_v3 }
 0x3bf   :  { %v15769_v20 = vadd.f32 %v3488_v31, %v15757_v51 }
 0x3c0   :  { %3561 = vmax.xlane.f32.xlu1 %v15752_v49 }
 0x3c1   :  { %v12049_v44 = vpop.f32.mrb[72].mxu0 }
 0x3c2   :  { %3559 = vmax.xlane.f32.xlu0 %v15761_v33  ;;  %v3388_v22 = vpop.f32.mrb[73].mxu0  ;;  %v3493_v35 = vmul.f32 0.088388346, %v12049_v44 }
 0x3c3   :  { %v12050_v7 = vpop.f32.mrb[74].mxu0  ;;  %v3491_v42 = vmul.f32 0.088388346, %v3388_v22 }
 0x3c4   :  { %v3494_v19 = vmul.f32 0.088388346, %v12050_v7  ;;  %3557 = vmax.xlane.f32.xlu1 %v15769_v20  ;;  %v3391_v47 = vpop.f32.mrb[75].mxu0  ;;  %v15796_v41 = vadd.f32 %v3493_v35, %v15784_v15 }
 0x3c5   :  { %v3492_v38 = vmul.f32 0.088388346, %v3391_v47  ;;  %v15814_v57 = vadd.f32 %v3491_v42, %v15802_v0 }
 0x3c6   :  { %v15788_v12 = vadd.f32 %v3494_v19, %v15775_v11  ;;  %3555 = vmax.xlane.f32.xlu0 %v15779_v9 }
 0x3c7   :  { %v15805_v53 = vadd.f32 %v3492_v38, %v15793_v45 }
 0x3c8   :  { %3569 = vmax.xlane.f32.xlu1 %v15788_v12 }
 0x3c9   :  { %v12053_v52 = vpop.f32.mrb[76].mxu0 }
 0x3ca   :  { %3567 = vmax.xlane.f32.xlu0 %v15796_v41  ;;  %v3404_v6 = vpop.f32.mrb[77].mxu0  ;;  %v3497_v8 = vmul.f32 0.088388346, %v12053_v52 }
 0x3cb   :  { %v12054_v50 = vpop.f32.mrb[78].mxu0  ;;  %v3495_v58 = vmul.f32 0.088388346, %v3404_v6 }
 0x3cc   :  { %v3498_v59 = vmul.f32 0.088388346, %v12054_v50  ;;  %3565 = vmax.xlane.f32.xlu1 %v15805_v53  ;;  %v3407_v46 = vpop.f32.mrb[79].mxu0  ;;  %v15830_v21 = vadd.f32 %v3497_v8, %v15819_v14 }
 0x3cd   :  { %v3496_v61 = vmul.f32 0.088388346, %v3407_v46  ;;  %v15841_v16 = vadd.f32 %v3495_v58, %v15834_v60 }
 0x3ce   :  { %v15823_v56 = vadd.f32 %v3498_v59, %v15811_v4  ;;  %3563 = vmax.xlane.f32.xlu0 %v15814_v57 }
 0x3cf   :  { %v15837_v34 = vadd.f32 %v3496_v61, %v15827_v32 }
 0x3d0   :  { %3577 = vmax.xlane.f32.xlu1 %v15823_v56 }
 0x3d2   :  { %3575 = vmax.xlane.f32.xlu0 %v15830_v21 }
 0x3d4   :  { %3573 = vmax.xlane.f32.xlu1 %v15837_v34 }
 0x3d6   :  { %3571 = vmax.xlane.f32.xlu0 %v15841_v16 }
 0x3ed   :  { %v12057_v24 = vpop.f32.mrb[80].mxu0 }
 0x3ee   :  { %v3501_v26 = vmul.f32 0.088388346, %v12057_v24  ;;  %v3420_v63 = vpop.f32.mrb[81].mxu0 }
 0x3ef   :  { %v12058_v10 = vpop.f32.mrb[82].mxu0  ;;  %v3499_v39 = vmul.f32 0.088388346, %v3420_v63 }
 0x3f0   :  { %v15846_v30 = vadd.f32 %v3501_v26, %v15705_v27  ;;  %v3502_v31 = vmul.f32 0.088388346, %v12058_v10  ;;  %v3423_v13 = vpop.f32.mrb[83].mxu0 }
 0x3f1   :  { %v3500_v2 = vmul.f32 0.088388346, %v3423_v13  ;;  %v15853_v44 = vadd.f32 %v3499_v39, %v15719_v5 }
 0x3f2   :  { %v15849_v37 = vadd.f32 %v3502_v31, %v15733_v55  ;;  %3583 = vmax.xlane.f32.xlu0 %v15846_v30 }
 0x3f3   :  { %v15857_v40 = vadd.f32 %v3500_v2, %v15715_v18 }
 0x3f4   :  { %3585 = vmax.xlane.f32.xlu1 %v15849_v37 }
 0x3f6   :  { %3579 = vmax.xlane.f32.xlu0 %v15853_v44 }
 0x3f8   :  { %3581 = vmax.xlane.f32.xlu1 %v15857_v40 }
 0x3fd   :  { %v12061_v22 = vpop.f32.mrb[84].mxu0 }
 0x3fe   :  { %v3505_v7 = vmul.f32 0.088388346, %v12061_v22  ;;  %v3436_v35 = vpop.f32.mrb[85].mxu0 }
 0x3ff   :  { %v12062_v19 = vpop.f32.mrb[86].mxu0  ;;  %v3503_v1 = vmul.f32 0.088388346, %v3436_v35 }
 0x400   :  { %v15862_v47 = vadd.f32 %v3505_v7, %v15748_v36  ;;  %v3506_v38 = vmul.f32 0.088388346, %v12062_v19  ;;  %v3439_v23 = vpop.f32.mrb[87].mxu0 }
 0x401   :  { %v3504_v62 = vmul.f32 0.088388346, %v3439_v23  ;;  %v15869_v52 = vadd.f32 %v3503_v1, %v15766_v17 }
 0x402   :  { %v15865_v42 = vadd.f32 %v3506_v38, %v15740_v29  ;;  %3591 = vmax.xlane.f32.xlu0 %v15862_v47 }
 0x403   :  { %v15873_v28 = vadd.f32 %v3504_v62, %v15757_v51 }
 0x404   :  { %3593 = vmax.xlane.f32.xlu1 %v15865_v42 }
 0x406   :  { %3587 = vmax.xlane.f32.xlu0 %v15869_v52 }
 0x408   :  { %3589 = vmax.xlane.f32.xlu1 %v15873_v28 }
 0x40d   :  { %v12065_v6 = vpop.f32.mrb[88].mxu0 }
 0x40e   :  { %v3509_v50 = vmul.f32 0.088388346, %v12065_v6  ;;  %v3452_v8 = vpop.f32.mrb[89].mxu0 }
 0x40f   :  { %v12066_v59 = vpop.f32.mrb[90].mxu0  ;;  %v3507_v61 = vmul.f32 0.088388346, %v3452_v8 }
 0x410   :  { %v15878_v46 = vadd.f32 %v3509_v50, %v15784_v15  ;;  %v3510_v58 = vmul.f32 0.088388346, %v12066_v59  ;;  %v3455_v24 = vpop.f32.mrb[91].mxu0 }
 0x411   :  { %v3508_v63 = vmul.f32 0.088388346, %v3455_v24  ;;  %v15885_v10 = vadd.f32 %v3507_v61, %v15802_v0 }
 0x412   :  { %v15881_v26 = vadd.f32 %v3510_v58, %v15775_v11  ;;  %3599 = vmax.xlane.f32.xlu0 %v15878_v46 }
 0x413   :  { %v15889_v39 = vadd.f32 %v3508_v63, %v15793_v45 }
 0x414   :  { %3601 = vmax.xlane.f32.xlu1 %v15881_v26 }
 0x416   :  { %3595 = vmax.xlane.f32.xlu0 %v15885_v10 }
 0x418   :  { %3597 = vmax.xlane.f32.xlu1 %v15889_v39 }
 0x41d   :  { %v12069_v31 = vpop.f32.mrb[92].mxu0 }
 0x41e   :  { %v3513_v13 = vmul.f32 0.088388346, %v12069_v31  ;;  %v3468_v2 = vpop.f32.mrb[93].mxu0 }
 0x41f   :  { %v12070_v22 = vpop.f32.mrb[94].mxu0  ;;  %v3511_v35 = vmul.f32 0.088388346, %v3468_v2 }
 0x420   :  { %v15894_v7 = vadd.f32 %v3513_v13, %v15819_v14  ;;  %v3514_v19 = vmul.f32 0.088388346, %v12070_v22  ;;  %v3471_v1 = vpop.f32.mrb[95].mxu0 }
 0x421   :  { %v3512_v23 = vmul.f32 0.088388346, %v3471_v1  ;;  %v15901_v62 = vadd.f32 %v3511_v35, %v15834_v60 }
 0x422   :  { %v15897_v38 = vadd.f32 %v3514_v19, %v15811_v4  ;;  %3607 = vmax.xlane.f32.xlu0 %v15894_v7 }
 0x423   :  { %v15905_v6 = vadd.f32 %v3512_v23, %v15827_v32 }
 0x424   :  { %3609 = vmax.xlane.f32.xlu1 %v15897_v38 }
 0x426   :  { %3603 = vmax.xlane.f32.xlu0 %v15901_v62 }
 0x428   :  { %3605 = vmax.xlane.f32.xlu1 %v15905_v6 }
 0x429   :  { %v12137_v50 = vpop.f32.mrb[96].mxu0 }
 0x42a   :  { %v4479_v8 = vmul.f32 0.088388346, %v12137_v50  ;;  %v4350_v59 = vpop.f32.mrb[97].mxu0 }
 0x42b   :  { %v12138_v61 = vpop.f32.mrb[98].mxu0  ;;  %v4477_v24 = vmul.f32 0.088388346, %v4350_v59 }
 0x42c   :  { %v15910_v58 = vadd.f32 %v4479_v8, %v15705_v27  ;;  %v4480_v63 = vmul.f32 0.088388346, %v12138_v61  ;;  %v4353_v31 = vpop.f32.mrb[99].mxu0 }
 0x42d   :  { %v4478_v2 = vmul.f32 0.088388346, %v4353_v31  ;;  %v15917_v22 = vadd.f32 %v4477_v24, %v15719_v5 }
 0x42e   :  { %v15913_v13 = vadd.f32 %v4480_v63, %v15733_v55  ;;  %4545 = vmax.xlane.f32.xlu0 %v15910_v58 }
 0x42f   :  { %18987 = vst [vmem:[#allocation38_spill] sm:$0xff] %v15917_v22  ;;  %v15921_v19 = vadd.f32 %v4478_v2, %v15715_v18 }
 0x430   :  { %18986 = vst [vmem:[#allocation37_spill] sm:$0xff] %v15913_v13  ;;  %4547 = vmax.xlane.f32.xlu1 %v15913_v13 }
 0x431   :  { %v12141_v35 = vpop.f32.mrb[100].mxu0  ;;  %18988 = vst [vmem:[#allocation43_spill] sm:$0xff] %v15921_v19 }
 0x432   :  { %v4483_v1 = vmul.f32 0.088388346, %v12141_v35  ;;  %4541 = vmax.xlane.f32.xlu0 %v15917_v22  ;;  %v4366_v23 = vpop.f32.mrb[101].mxu0 }
 0x433   :  { %v12142_v50 = vpop.f32.mrb[102].mxu0  ;;  %v4481_v59 = vmul.f32 0.088388346, %v4366_v23 }
 0x434   :  { %v15925_v8 = vadd.f32 %v4483_v1, %v15748_v36  ;;  %v4484_v61 = vmul.f32 0.088388346, %v12142_v50  ;;  %v4369_v63 = vpop.f32.mrb[103].mxu0  ;;  %4543 = vmax.xlane.f32.xlu1 %v15921_v19 }
 0x435   :  { %v4482_v31 = vmul.f32 0.088388346, %v4369_v63  ;;  %v15933_v2 = vadd.f32 %v4481_v59, %v15766_v17 }
 0x436   :  { %18989 = vst [vmem:[#allocation20_spill] sm:$0xff] %v15925_v8  ;;  %v15929_v24 = vadd.f32 %v4484_v61, %v15740_v29  ;;  %4553 = vmax.xlane.f32.xlu0 %v15925_v8 }
 0x437   :  { %18991 = vst [vmem:[#allocation21_spill] sm:$0xff] %v15933_v2  ;;  %v15937_v1 = vadd.f32 %v4482_v31, %v15757_v51 }
 0x438   :  { %18990 = vst [vmem:[#allocation40_spill] sm:$0xff] %v15929_v24  ;;  %4555 = vmax.xlane.f32.xlu1 %v15929_v24 }
 0x439   :  { %v12145_v35 = vpop.f32.mrb[104].mxu0  ;;  %18992 = vst [vmem:[#allocation42_spill] sm:$0xff] %v15937_v1 }
 0x43a   :  { %v4487_v23 = vmul.f32 0.088388346, %v12145_v35  ;;  %4549 = vmax.xlane.f32.xlu0 %v15933_v2  ;;  %v4382_v50 = vpop.f32.mrb[105].mxu0 }
 0x43b   :  { %v12146_v43 = vpop.f32.mrb[106].mxu0  ;;  %v4485_v63 = vmul.f32 0.088388346, %v4382_v50 }
 0x43c   :  { %v15941_v61 = vadd.f32 %v4487_v23, %v15784_v15  ;;  %v4488_v19 = vmul.f32 0.088388346, %v12146_v43  ;;  %v4385_v8 = vpop.f32.mrb[107].mxu0  ;;  %4551 = vmax.xlane.f32.xlu1 %v15937_v1 }
 0x43d   :  { %v4486_v24 = vmul.f32 0.088388346, %v4385_v8  ;;  %v15949_v31 = vadd.f32 %v4485_v63, %v15802_v0 }
 0x43e   :  { %18993 = vst [vmem:[#allocation44_spill] sm:$0xff] %v15941_v61  ;;  %v15945_v59 = vadd.f32 %v4488_v19, %v15775_v11  ;;  %4561 = vmax.xlane.f32.xlu0 %v15941_v61 }
 0x43f   :  { %18995 = vst [vmem:[#allocation50_spill] sm:$0xff] %v15949_v31  ;;  %v15953_v23 = vadd.f32 %v4486_v24, %v15793_v45 }
 0x440   :  { %18994 = vst [vmem:[#allocation47_spill] sm:$0xff] %v15945_v59  ;;  %4563 = vmax.xlane.f32.xlu1 %v15945_v59 }
 0x441   :  { %v12149_v35 = vpop.f32.mrb[108].mxu0  ;;  %18996 = vst [vmem:[#allocation48_spill] sm:$0xff] %v15953_v23 }
 0x442   :  { %v4491_v50 = vmul.f32 0.088388346, %v12149_v35  ;;  %4557 = vmax.xlane.f32.xlu0 %v15949_v31  ;;  %v4398_v43 = vpop.f32.mrb[109].mxu0 }
 0x443   :  { %v3552_v1 = vpop.xlane.xlu0 %3551  ;;  %v12150_v2 = vpop.f32.mrb[110].mxu0  ;;  %v4489_v8 = vmul.f32 0.088388346, %v4398_v43 }
 0x444   :  { %v15957_v19 = vadd.f32 %v4491_v50, %v15819_v14  ;;  %v3613_v61 = vsub.f32 %v15712_v54, %v3552_v1  ;;  %v4492_v63 = vmul.f32 0.088388346, %v12150_v2  ;;  %v4401_v13 = vpop.f32.mrb[111].mxu0  ;;  %4559 = vmax.xlane.f32.xlu1 %v15953_v23 }
 0x445   :  { %v4490_v35 = vmul.f32 0.088388346, %v4401_v13  ;;  %v15966_v22 = vadd.f32 %v4489_v8, %v15834_v60 }
 0x446   :  { %18997 = vst [vmem:[#allocation22_spill] sm:$0xff] %v15957_v19  ;;  %v3647_v59 = vmul.f32 1.442695, %v3613_v61  ;;  %v15962_v24 = vadd.f32 %v4492_v63, %v15811_v4  ;;  %4569 = vmax.xlane.f32.xlu0 %v15957_v19  ;;  %v3550_v54 = vpop.xlane.xlu1 %3549 }
 0x447   :  { %v3548_v31 = vpop.xlane.xlu0 %3547  ;;  %18999 = vst [vmem:[#allocation23_spill] sm:$0xff] %v15966_v22  ;;  %v15971_v1 = vadd.f32 %v4490_v35, %v15827_v32  ;;  %v3612_v19 = vsub.f32 %v15725_v48, %v3550_v54 }
 0x448   :  { %18998 = vst [vmem:[#allocation51_spill] sm:$0xff] %v15962_v24  ;;  %13091 = vpow2.f32 %v3647_v59  ;;  %v3611_v50 = vsub.f32 %v15729_v25, %v3548_v31  ;;  %4571 = vmax.xlane.f32.xlu1 %v15962_v24 }
 0x449   :  { %v12153_v2 = vpop.f32.mrb[112].mxu0  ;;  %v3645_v24 = vmul.f32 1.442695, %v3612_v19 }
 0x44a   :  { %v3643_v61 = vmul.f32 1.442695, %v3611_v50  ;;  %4565 = vmax.xlane.f32.xlu0 %v15966_v22  ;;  %v4414_v13 = vpop.f32.mrb[113].mxu0  ;;  %v4495_v19 = vmul.f32 0.088388346, %v12153_v2 }
 0x44b   :  { %v3554_v43 = vpop.xlane.xlu0 %3553  ;;  %v12154_v63 = vpop.f32.mrb[114].mxu0 }
 0x44c   :  { %13093 = vpow2.f32 %v3643_v61  ;;  %v3614_v59 = vsub.f32 %v15744_v3, %v3554_v43  ;;  %v4417_v8 = vpop.f32.mrb[115].mxu0  ;;  %4567 = vmax.xlane.f32.xlu1 %v15971_v1 }
 0x44d   :  { %v3562_v22 = vpop.xlane.xlu1 %3561 }
 0x44e   :  { %v3649_v25 = vmul.f32 1.442695, %v3614_v59 }
 0x44f   :  { %v3560_v31 = vpop.xlane.xlu0 %3559 }
 0x450   :  { %13095 = vpow2.f32 %v3649_v25  ;;  %v3617_v35 = vsub.f32 %v15761_v33, %v3560_v31  ;;  %v3618_v33 = vsub.f32 %v15752_v49, %v3562_v22  ;;  %v15991_v25 = vadd.f32 %v4495_v19, %v15705_v27 }
 0x451   :  { %v12157_v50 = vpop.f32.mrb[116].mxu0  ;;  %13097 = vpow2.f32 %v3645_v24  ;;  %v4493_v31 = vmul.f32 0.088388346, %v4414_v13 }
 0x452   :  { %v15978_v23 = vpop.eup %13091  ;;  %v4430_v4 = vpop.f32.mrb[117].mxu0  ;;  %v3655_v3 = vmul.f32 1.442695, %v3617_v35  ;;  %v3657_v49 = vmul.f32 1.442695, %v3618_v33 }
 0x453   :  { %19000 = vst [vmem:[#allocation52_spill] sm:$0xff] %v15978_v23  ;;  %v3556_v14 = vpop.xlane.xlu0 %3555  ;;  %3711 = vadd.xlane.f32.xlu0 %v15978_v23  ;;  %v15981_v48 = vpop.f32.mrb[118].mxu0  ;;  %v16007_v13 = vadd.f32 %v4493_v31, %v15719_v5 }
 0x454   :  { %v3615_v54 = vsub.f32 %v15779_v9, %v3556_v14  ;;  %v15984_v61 = vpop.f32.mrb[119].mxu0  ;;  %13099 = vpow2.f32 %v3655_v3  ;;  %v3558_v23 = vpop.xlane.xlu1 %3557  ;;  %v4496_v3 = vmul.f32 0.088388346, %v12154_v63 }
 0x455   :  { %v3616_v22 = vsub.f32 %v15769_v20, %v3558_v23  ;;  %v4494_v20 = vmul.f32 0.088388346, %v4417_v8 }
 0x456   :  { %v15986_v43 = vpop.eup %13093  ;;  %v3651_v59 = vmul.f32 1.442695, %v3615_v54  ;;  %v16015_v33 = vadd.f32 %v4496_v3, %v15733_v55 }
 0x457   :  { %19001 = vst [vmem:[#allocation53_spill] sm:$0xff] %v15986_v43  ;;  %3707 = vadd.xlane.f32.xlu0 %v15986_v43  ;;  %v3568_v14 = vpop.xlane.xlu0 %3567  ;;  %v3653_v19 = vmul.f32 1.442695, %v3616_v22  ;;  %v16031_v8 = vadd.f32 %v4494_v20, %v15715_v18 }
 0x458   :  { %13101 = vpow2.f32 %v3651_v59  ;;  %v3621_v43 = vsub.f32 %v15796_v41, %v3568_v14  ;;  %v3570_v31 = vpop.xlane.xlu1 %3569 }
 0x459   :  { %v15993_v24 = vpop.f32.mrb[120].mxu0  ;;  %13103 = vpow2.f32 %v3657_v49  ;;  %v4499_v49 = vmul.f32 0.088388346, %v12157_v50  ;;  %v3622_v3 = vsub.f32 %v15788_v12, %v3570_v31  ;;  %v4500_v31 = vmul.f32 0.088388346, %v15981_v48 }
 0x45a   :  { %v15995_v35 = vpop.eup %13095  ;;  %v15997_v9 = vpop.f32.mrb[121].mxu0  ;;  %13105 = vpow2.f32 %v3653_v19  ;;  %v3663_v41 = vmul.f32 1.442695, %v3621_v43 }
 0x45b   :  { %19002 = vst [vmem:[#allocation56_spill] sm:$0xff] %v15995_v35  ;;  %4577 = vmax.xlane.f32.xlu0 %v15991_v25  ;;  %v16000_v2 = vpop.f32.mrb[122].mxu0  ;;  %3713 = vadd.xlane.f32.xlu1 %v15995_v35  ;;  %v16009_v54 = vpop.eup %13097  ;;  %v16039_v43 = vadd.f32 %v4499_v49, %v15748_v36  ;;  %v3665_v50 = vmul.f32 1.442695, %v3622_v3 }
 0x45c   :  { %v16004_v27 = vpop.f32.mrb[123].mxu0  ;;  %v3564_v23 = vpop.xlane.xlu0 %3563  ;;  %13107 = vpow2.f32 %v3663_v41 }
 0x45d   :  { %v3619_v55 = vsub.f32 %v15814_v57, %v3564_v23  ;;  %v4497_v57 = vmul.f32 0.088388346, %v4430_v4  ;;  %v3566_v19 = vpop.xlane.xlu1 %3565 }
 0x45e   :  { %v16019_v5 = vpop.eup %13099  ;;  %v3620_v20 = vsub.f32 %v15805_v53, %v3566_v19  ;;  %v4498_v53 = vmul.f32 0.088388346, %v15984_v61 }
 0x45f   :  { %4573 = vmax.xlane.f32.xlu0 %v16007_v13  ;;  %3709 = vadd.xlane.f32.xlu1 %v16009_v54  ;;  %19003 = vst [vmem:[#allocation59_spill] sm:$0xff] %v16019_v5  ;;  %v16047_v12 = vadd.f32 %v4497_v57, %v15766_v17 }
 0x460   :  { %v3576_v18 = vpop.xlane.xlu0 %3575  ;;  %v3661_v4 = vmul.f32 1.442695, %v3620_v20  ;;  %v16065_v57 = vadd.f32 %v4498_v53, %v15757_v51  ;;  %v4502_v53 = vmul.f32 0.088388346, %v16004_v27 }
 0x461   :  { %v16017_v59 = vpop.f32.mrb[124].mxu0  ;;  %v3625_v41 = vsub.f32 %v15830_v21, %v3576_v18  ;;  %v3578_v49 = vpop.xlane.xlu1 %3577 }
 0x462   :  { %v16021_v63 = vpop.f32.mrb[125].mxu0  ;;  %v16033_v22 = vpop.eup %13101  ;;  %v3626_v61 = vsub.f32 %v15823_v56, %v3578_v49 }
 0x463   :  { %3719 = vadd.xlane.f32.xlu0 %v16019_v5  ;;  %v16024_v35 = vpop.f32.mrb[126].mxu0  ;;  %4579 = vmax.xlane.f32.xlu1 %v16015_v33  ;;  %v3659_v5 = vmul.f32 1.442695, %v3619_v55  ;;  %v16041_v23 = vpop.eup %13103  ;;  %v16056_v55 = vadd.f32 %v4500_v31, %v15740_v29  ;;  %v3671_v48 = vmul.f32 1.442695, %v3625_v41 }
 0x464   :  { %v16028_v14 = vpop.f32.mrb[127].mxu0  ;;  %v16050_v36 = vpop.eup %13105  ;;  %v4503_v29 = vmul.f32 0.088388346, %v15993_v24  ;;  %v3673_v20 = vmul.f32 1.442695, %v3626_v61 }
 0x465   :  { %13109 = vpow2.f32 %v3659_v5  ;;  %v3572_v5 = vpop.xlane.xlu0 %3571  ;;  %v3574_v19 = vpop.xlane.xlu1 %3573  ;;  %v4504_v31 = vmul.f32 0.088388346, %v16000_v2  ;;  %v4505_v27 = vmul.f32 0.088388346, %v16021_v63 }
 0x466   :  { %13111 = vpow2.f32 %v3665_v50  ;;  %v16059_v17 = vpop.eup %13107  ;;  %v3623_v3 = vsub.f32 %v15841_v16, %v3572_v5  ;;  %v16074_v50 = vadd.f32 %v4503_v29, %v15784_v15  ;;  %v4501_v16 = vmul.f32 0.088388346, %v15997_v9 }
 0x467   :  { %3715 = vadd.xlane.f32.xlu0 %v16033_v22  ;;  %4575 = vmax.xlane.f32.xlu1 %v16031_v8  ;;  %13113 = vpow2.f32 %v3661_v4  ;;  %v3624_v24 = vsub.f32 %v15837_v34, %v3574_v19  ;;  %v16092_v9 = vadd.f32 %v4504_v31, %v15775_v11  ;;  %v16102_v11 = vadd.f32 %v4502_v53, %v15793_v45 }
 0x468   :  { %13115 = vpow2.f32 %v3671_v48  ;;  %v3667_v18 = vmul.f32 1.442695, %v3623_v3  ;;  %v16083_v56 = vadd.f32 %v4501_v16, %v15802_v0  ;;  %v4506_v16 = vmul.f32 0.088388346, %v16028_v14 }
 0x469   :  { %v3669_v15 = vmul.f32 1.442695, %v3624_v24 }
 0x46a   :  { %13117 = vpow2.f32 %v3667_v18 }
 0x46b   :  { %4585 = vmax.xlane.f32.xlu0 %v16039_v43  ;;  %3721 = vadd.xlane.f32.xlu1 %v16041_v23  ;;  %13119 = vpow2.f32 %v3673_v20 }
 0x46c   :  { %13121 = vpow2.f32 %v3669_v15 }
 0x46f   :  { %4581 = vmax.xlane.f32.xlu0 %v16047_v12  ;;  %3717 = vadd.xlane.f32.xlu1 %v16050_v36  ;;  %v16068_v21 = vpop.eup %13109 }
 0x470   :  { %v16077_v51 = vpop.eup %13111 }
 0x471   :  { %v16086_v4 = vpop.eup %13113 }
 0x472   :  { %v16095_v5 = vpop.eup %13115 }
 0x473   :  { %3727 = vadd.xlane.f32.xlu0 %v16059_v17  ;;  %4587 = vmax.xlane.f32.xlu1 %v16056_v55 }
 0x474   :  { %v16105_v29 = vpop.eup %13117 }
 0x477   :  { %3723 = vadd.xlane.f32.xlu0 %v16068_v21  ;;  %4583 = vmax.xlane.f32.xlu1 %v16065_v57 }
 0x47b   :  { %4593 = vmax.xlane.f32.xlu0 %v16074_v50  ;;  %3729 = vadd.xlane.f32.xlu1 %v16077_v51 }
 0x47f   :  { %v3584_v41 = vpop.xlane.xlu0 %3583  ;;  %4589 = vmax.xlane.f32.xlu0 %v16083_v56  ;;  %3725 = vadd.xlane.f32.xlu1 %v16086_v4 }
 0x480   :  { %v3629_v34 = vsub.f32 %v15846_v30, %v3584_v41 }
 0x481   :  { %v3586_v0 = vpop.xlane.xlu1 %3585 }
 0x482   :  { %v3679_v2 = vmul.f32 1.442695, %v3629_v34  ;;  %v3630_v48 = vsub.f32 %v15849_v37, %v3586_v0  ;;  %v16111_v37 = vadd.f32 %v4505_v27, %v15834_v60 }
 0x483   :  { %v3580_v49 = vpop.xlane.xlu0 %3579  ;;  %3735 = vadd.xlane.f32.xlu0 %v16095_v5  ;;  %4595 = vmax.xlane.f32.xlu1 %v16092_v9 }
 0x484   :  { %13123 = vpow2.f32 %v3679_v2  ;;  %v3627_v30 = vsub.f32 %v15853_v44, %v3580_v49  ;;  %v3681_v19 = vmul.f32 1.442695, %v3630_v48  ;;  %v16113_v44 = vpop.eup %13119 }
 0x485   :  { %v3582_v3 = vpop.xlane.xlu1 %3581  ;;  %v16117_v63 = vpop.eup %13121 }
 0x486   :  { %v3675_v61 = vmul.f32 1.442695, %v3627_v30  ;;  %v3628_v18 = vsub.f32 %v15857_v40, %v3582_v3  ;;  %v16126_v40 = vadd.f32 %v4506_v16, %v15827_v32 }
 0x487   :  { %3731 = vadd.xlane.f32.xlu0 %v16105_v29  ;;  %4591 = vmax.xlane.f32.xlu1 %v16102_v11 }
 0x488   :  { %13125 = vpow2.f32 %v3675_v61  ;;  %v3677_v45 = vmul.f32 1.442695, %v3628_v18 }
 0x489   :  { %13127 = vpow2.f32 %v3681_v19 }
 0x48a   :  { %13129 = vpow2.f32 %v3677_v45 }
 0x48b   :  { %4597 = vmax.xlane.f32.xlu0 %v16111_v37  ;;  %3737 = vadd.xlane.f32.xlu1 %v16113_v44 }
 0x48e   :  { %v16120_v24 = vpop.eup %13123 }
 0x48f   :  { %v3592_v20 = vpop.xlane.xlu0 %3591  ;;  %3743 = vadd.xlane.f32.xlu0 %v16120_v24  ;;  %3733 = vadd.xlane.f32.xlu1 %v16117_v63 }
 0x490   :  { %v3633_v60 = vsub.f32 %v15862_v47, %v3592_v20 }
 0x491   :  { %v3594_v31 = vpop.xlane.xlu1 %3593 }
 0x492   :  { %v16128_v15 = vpop.eup %13125  ;;  %v3687_v41 = vmul.f32 1.442695, %v3633_v60  ;;  %v3634_v34 = vsub.f32 %v15865_v42, %v3594_v31 }
 0x493   :  { %v3588_v14 = vpop.xlane.xlu0 %3587  ;;  %3739 = vadd.xlane.f32.xlu0 %v16128_v15  ;;  %4599 = vmax.xlane.f32.xlu1 %v16126_v40  ;;  %v16134_v47 = vpop.eup %13127 }
 0x494   :  { %13131 = vpow2.f32 %v3687_v41  ;;  %v3689_v53 = vmul.f32 1.442695, %v3634_v34  ;;  %v3631_v0 = vsub.f32 %v15869_v52, %v3588_v14  ;;  %v16138_v48 = vpop.eup %13129 }
 0x495   :  { %v3590_v2 = vpop.xlane.xlu1 %3589 }
 0x496   :  { %13133 = vpow2.f32 %v3689_v53  ;;  %v3683_v32 = vmul.f32 1.442695, %v3631_v0  ;;  %v3632_v49 = vsub.f32 %v15873_v28, %v3590_v2 }
 0x497   :  { %3745 = vadd.xlane.f32.xlu1 %v16134_v47 }
 0x498   :  { %13135 = vpow2.f32 %v3683_v32  ;;  %v3685_v42 = vmul.f32 1.442695, %v3632_v49 }
 0x49a   :  { %13137 = vpow2.f32 %v3685_v42 }
 0x49b   :  { %3741 = vadd.xlane.f32.xlu1 %v16138_v48 }
 0x49e   :  { %v16141_v30 = vpop.eup %13131 }
 0x49f   :  { %v3600_v27 = vpop.xlane.xlu0 %3599  ;;  %3751 = vadd.xlane.f32.xlu0 %v16141_v30 }
 0x4a0   :  { %v16144_v52 = vpop.eup %13133  ;;  %v3637_v3 = vsub.f32 %v15878_v46, %v3600_v27 }
 0x4a1   :  { %v3602_v61 = vpop.xlane.xlu1 %3601  ;;  %3753 = vadd.xlane.f32.xlu1 %v16144_v52 }
 0x4a2   :  { %v16148_v28 = vpop.eup %13135  ;;  %v3695_v19 = vmul.f32 1.442695, %v3637_v3  ;;  %v3638_v18 = vsub.f32 %v15881_v26, %v3602_v61 }
 0x4a3   :  { %v3596_v45 = vpop.xlane.xlu0 %3595  ;;  %3747 = vadd.xlane.f32.xlu0 %v16148_v28 }
 0x4a4   :  { %v16152_v16 = vpop.eup %13137  ;;  %13139 = vpow2.f32 %v3695_v19  ;;  %v3697_v20 = vmul.f32 1.442695, %v3638_v18  ;;  %v3635_v60 = vsub.f32 %v15885_v10, %v3596_v45 }
 0x4a5   :  { %v3598_v31 = vpop.xlane.xlu1 %3597  ;;  %3749 = vadd.xlane.f32.xlu1 %v16152_v16 }
 0x4a6   :  { %13141 = vpow2.f32 %v3697_v20  ;;  %v3691_v46 = vmul.f32 1.442695, %v3635_v60  ;;  %v3636_v41 = vsub.f32 %v15889_v39, %v3598_v31 }
 0x4a8   :  { %13143 = vpow2.f32 %v3691_v46  ;;  %v3693_v34 = vmul.f32 1.442695, %v3636_v41  ;;  %v19005_v46 = vld [vmem:[#allocation38_spill] sm:$0xff] }
 0x4aa   :  { %13145 = vpow2.f32 %v3693_v34  ;;  %v4507_v34 = vmul.f32 0.088388346, %v16017_v59 }
 0x4ae   :  { %v16157_v26 = vpop.eup %13139 }
 0x4af   :  { %v3608_v14 = vpop.xlane.xlu0 %3607  ;;  %3759 = vadd.xlane.f32.xlu0 %v16157_v26 }
 0x4b0   :  { %v16160_v53 = vpop.eup %13141  ;;  %v3641_v0 = vsub.f32 %v15894_v7, %v3608_v14 }
 0x4b1   :  { %v3610_v10 = vpop.xlane.xlu1 %3609  ;;  %3761 = vadd.xlane.f32.xlu1 %v16160_v53 }
 0x4b2   :  { %v16164_v2 = vpop.eup %13143  ;;  %v3703_v32 = vmul.f32 1.442695, %v3641_v0  ;;  %v3642_v39 = vsub.f32 %v15897_v38, %v3610_v10  ;;  %v19006_v0 = vld [vmem:[#allocation37_spill] sm:$0xff] }
 0x4b3   :  { %v3604_v49 = vpop.xlane.xlu0 %3603  ;;  %3755 = vadd.xlane.f32.xlu0 %v16164_v2 }
 0x4b4   :  { %v16168_v42 = vpop.eup %13145  ;;  %13147 = vpow2.f32 %v3703_v32  ;;  %v3705_v27 = vmul.f32 1.442695, %v3642_v39  ;;  %v3639_v3 = vsub.f32 %v15901_v62, %v3604_v49  ;;  %v19007_v39 = vld [vmem:[#allocation43_spill] sm:$0xff] }
 0x4b5   :  { %3757 = vadd.xlane.f32.xlu1 %v16168_v42  ;;  %v3606_v7 = vpop.xlane.xlu1 %3605 }
 0x4b6   :  { %13149 = vpow2.f32 %v3705_v27  ;;  %v3699_v61 = vmul.f32 1.442695, %v3639_v3  ;;  %v3640_v19 = vsub.f32 %v15905_v6, %v3606_v7  ;;  %v4508_v27 = vmul.f32 0.088388346, %v16024_v35 }
 0x4b8   :  { %13151 = vpow2.f32 %v3699_v61  ;;  %v3701_v18 = vmul.f32 1.442695, %v3640_v19  ;;  %v19008_v61 = vld [vmem:[#allocation41_spill] sm:$0xff] }
 0x4b9   :  { %v16191_v19 = vadd.f32 %v4507_v34, %v19008_v61 }
 0x4ba   :  { %13153 = vpow2.f32 %v3701_v18 }
 0x4bb   :  { %v4546_v38 = vpop.xlane.xlu0 %4545 }
 0x4bc   :  { %v4607_v62 = vsub.f32 %v15910_v58, %v4546_v38 }
 0x4bd   :  { %v4548_v45 = vpop.xlane.xlu1 %4547 }
 0x4be   :  { %v16173_v20 = vpop.eup %13147  ;;  %v4608_v10 = vsub.f32 %v19006_v0, %v4548_v45  ;;  %v4641_v7 = vmul.f32 1.442695, %v4607_v62  ;;  %v19009_v45 = vld [vmem:[#allocation36_spill] sm:$0xff]  ;;  %v19011_v62 = vld [vmem:[#allocation21_spill] sm:$0xff] }
 0x4bf   :  { %19004 = vst [vmem:[#allocation57_spill] sm:$0xff] %v16173_v20  ;;  %v4542_v60 = vpop.xlane.xlu0 %4541  ;;  %3767 = vadd.xlane.f32.xlu0 %v16173_v20  ;;  %v19012_v0 = vld [vmem:[#allocation40_spill] sm:$0xff] }
 0x4c0   :  { %v16176_v31 = vpop.eup %13149  ;;  %v4605_v41 = vsub.f32 %v19005_v46, %v4542_v60  ;;  %v4643_v38 = vmul.f32 1.442695, %v4608_v10  ;;  %v16195_v60 = vadd.f32 %v4508_v27, %v19009_v45  ;;  %v19010_v46 = vld [vmem:[#allocation20_spill] sm:$0xff]  ;;  %v19013_v10 = vld [vmem:[#allocation42_spill] sm:$0xff] }
 0x4c1   :  { %3769 = vadd.xlane.f32.xlu1 %v16176_v31  ;;  %v4544_v6 = vpop.xlane.xlu1 %4543 }
 0x4c2   :  { %v16182_v14 = vpop.eup %13151  ;;  %v4637_v32 = vmul.f32 1.442695, %v4605_v41  ;;  %v4606_v49 = vsub.f32 %v19007_v39, %v4544_v6 }
 0x4c3   :  { %v4554_v3 = vpop.xlane.xlu0 %4553  ;;  %3763 = vadd.xlane.f32.xlu0 %v16182_v14 }
 0x4c4   :  { %v16188_v58 = vpop.eup %13153  ;;  %13155 = vpow2.f32 %v4637_v32  ;;  %v4639_v59 = vmul.f32 1.442695, %v4606_v49  ;;  %v4611_v41 = vsub.f32 %v19010_v46, %v4554_v3  ;;  %v19015_v46 = vld [vmem:[#allocation50_spill] sm:$0xff] }
 0x4c5   :  { %3765 = vadd.xlane.f32.xlu1 %v16188_v58  ;;  %v4556_v18 = vpop.xlane.xlu1 %4555 }
 0x4c6   :  { %13157 = vpow2.f32 %v4639_v59  ;;  %v4612_v32 = vsub.f32 %v19012_v0, %v4556_v18  ;;  %v4649_v27 = vmul.f32 1.442695, %v4611_v41 }
 0x4c7   :  { %v4550_v35 = vpop.xlane.xlu0 %4549  ;;  %4601 = vmax.xlane.f32.xlu0 %v16191_v19  ;;  %13159 = vpow2.f32 %v4641_v7 }
 0x4c8   :  { %v4609_v6 = vsub.f32 %v19011_v62, %v4550_v35  ;;  %13161 = vpow2.f32 %v4643_v38  ;;  %v4651_v7 = vmul.f32 1.442695, %v4612_v32  ;;  %v19014_v38 = vld [vmem:[#allocation44_spill] sm:$0xff] }
 0x4c9   :  { %4603 = vmax.xlane.f32.xlu1 %v16195_v60  ;;  %v4552_v34 = vpop.xlane.xlu1 %4551 }
 0x4ca   :  { %v4645_v39 = vmul.f32 1.442695, %v4609_v6  ;;  %v4610_v49 = vsub.f32 %v19013_v10, %v4552_v34  ;;  %v19017_v34 = vld [vmem:[#allocation47_spill] sm:$0xff] }
 0x4cb   :  { %v4562_v59 = vpop.xlane.xlu0 %4561 }
 0x4cc   :  { %13163 = vpow2.f32 %v4645_v39  ;;  %v4647_v61 = vmul.f32 1.442695, %v4610_v49  ;;  %v4615_v18 = vsub.f32 %v19014_v38, %v4562_v59  ;;  %v19018_v39 = vld [vmem:[#allocation48_spill] sm:$0xff] }
 0x4cd   :  { %v4564_v45 = vpop.xlane.xlu1 %4563 }
 0x4ce   :  { %v16203_v20 = vpop.eup %13155  ;;  %13165 = vpow2.f32 %v4647_v61  ;;  %v4616_v0 = vsub.f32 %v19017_v34, %v4564_v45  ;;  %v19023_v34 = vld [vmem:[#allocation23_spill] sm:$0xff] }
 0x4cf   :  { %v4558_v3 = vpop.xlane.xlu0 %4557  ;;  %4701 = vadd.xlane.f32.xlu0 %v16203_v20  ;;  %13167 = vpow2.f32 %v4649_v27  ;;  %v4657_v27 = vmul.f32 1.442695, %v4615_v18 }
 0x4d0   :  { %v16206_v35 = vpop.eup %13157  ;;  %v4613_v62 = vsub.f32 %v19015_v46, %v4558_v3  ;;  %13169 = vpow2.f32 %v4651_v7  ;;  %v4659_v46 = vmul.f32 1.442695, %v4616_v0 }
 0x4d1   :  { %4703 = vadd.xlane.f32.xlu1 %v16206_v35  ;;  %v4560_v41 = vpop.xlane.xlu1 %4559  ;;  %v16211_v6 = vpop.eup %13159 }
 0x4d2   :  { %19016 = vst [vmem:[#allocation24_spill] sm:$0xff] %v16211_v6  ;;  %v4653_v32 = vmul.f32 1.442695, %v4613_v62  ;;  %v4614_v10 = vsub.f32 %v19018_v39, %v4560_v41  ;;  %v16216_v61 = vpop.eup %13161  ;;  %v19022_v62 = vld [vmem:[#allocation22_spill] sm:$0xff] }
 0x4d3   :  { %v4570_v49 = vpop.xlane.xlu0 %4569  ;;  %4705 = vadd.xlane.f32.xlu0 %v16211_v6  ;;  %19019 = vst [vmem:[#allocation60_spill] sm:$0xff] %v16216_v61  ;;  %v19037_v6 = vld [vmem:[#allocation52_spill] sm:$0xff] }
 0x4d4   :  { %13171 = vpow2.f32 %v4653_v32  ;;  %v4655_v59 = vmul.f32 1.442695, %v4614_v10  ;;  %v4619_v41 = vsub.f32 %v19022_v62, %v4570_v49  ;;  %v19025_v10 = vld [vmem:[#allocation51_spill] sm:$0xff] }
 0x4d5   :  { %4707 = vadd.xlane.f32.xlu1 %v16216_v61  ;;  %v4572_v3 = vpop.xlane.xlu1 %4571 }
 0x4d6   :  { %v16219_v38 = vpop.eup %13163  ;;  %13173 = vpow2.f32 %v4655_v59  ;;  %v4620_v61 = vsub.f32 %v19025_v10, %v4572_v3 }
 0x4d7   :  { %19020 = vst [vmem:[#allocation25_spill] sm:$0xff] %v16219_v38  ;;  %v4566_v7 = vpop.xlane.xlu0 %4565  ;;  %4709 = vadd.xlane.f32.xlu0 %v16219_v38  ;;  %13175 = vpow2.f32 %v4657_v27  ;;  %v4665_v27 = vmul.f32 1.442695, %v4619_v41 }
 0x4d8   :  { %v16222_v45 = vpop.eup %13165  ;;  %v4617_v39 = vsub.f32 %v19023_v34, %v4566_v7  ;;  %13177 = vpow2.f32 %v4659_v46  ;;  %v4667_v62 = vmul.f32 1.442695, %v4620_v61 }
 0x4d9   :  { %19021 = vst [vmem:[#allocation61_spill] sm:$0xff] %v16222_v45  ;;  %4711 = vadd.xlane.f32.xlu1 %v16222_v45  ;;  %v4568_v18 = vpop.xlane.xlu1 %4567  ;;  %v16227_v32 = vpop.eup %13167 }
 0x4da   :  { %19024 = vst [vmem:[#allocation62_spill] sm:$0xff] %v16227_v32  ;;  %v4661_v0 = vmul.f32 1.442695, %v4617_v39  ;;  %v4618_v59 = vsub.f32 %v15971_v1, %v4568_v18  ;;  %v16232_v38 = vpop.eup %13169 }
 0x4db   :  { %4713 = vadd.xlane.f32.xlu0 %v16227_v32  ;;  %19026 = vst [vmem:[#allocation65_spill] sm:$0xff] %v16232_v38 }
 0x4dc   :  { %13179 = vpow2.f32 %v4661_v0  ;;  %v4663_v49 = vmul.f32 1.442695, %v4618_v59 }
 0x4dd   :  { %4715 = vadd.xlane.f32.xlu1 %v16232_v38 }
 0x4de   :  { %v16235_v7 = vpop.eup %13171  ;;  %13181 = vpow2.f32 %v4663_v49 }
 0x4df   :  { %19027 = vst [vmem:[#allocation68_spill] sm:$0xff] %v16235_v7  ;;  %4717 = vadd.xlane.f32.xlu0 %v16235_v7  ;;  %13183 = vpow2.f32 %v4665_v27 }
 0x4e0   :  { %v16238_v46 = vpop.eup %13173  ;;  %v3712_v3 = vpop.xlane.xlu0 %3711  ;;  %13185 = vpow2.f32 %v4667_v62 }
 0x4e1   :  { %19028 = vst [vmem:[#allocation66_spill] sm:$0xff] %v16238_v46  ;;  %4719 = vadd.xlane.f32.xlu1 %v16238_v46  ;;  %v16241_v1 = vpop.eup %13175 }
 0x4e2   :  { %19029 = vst [vmem:[#allocation26_spill] sm:$0xff] %v16241_v1  ;;  %v16244_v41 = vpop.eup %13177 }
 0x4e3   :  { %4721 = vadd.xlane.f32.xlu0 %v16241_v1  ;;  %19030 = vst [vmem:[#allocation69_spill] sm:$0xff] %v16244_v41 }
 0x4e4   :  { %v3708_v34 = vpop.xlane.xlu0 %3707 }
 0x4e5   :  { %4723 = vadd.xlane.f32.xlu1 %v16244_v41 }
 0x4e6   :  { %v16247_v61 = vpop.eup %13179 }
 0x4e7   :  { %19031 = vst [vmem:[#allocation27_spill] sm:$0xff] %v16247_v61  ;;  %4725 = vadd.xlane.f32.xlu0 %v16247_v61 }
 0x4e8   :  { %v16250_v39 = vpop.eup %13181  ;;  %v4578_v18 = vpop.xlane.xlu0 %4577 }
 0x4e9   :  { %19032 = vst [vmem:[#allocation70_spill] sm:$0xff] %v16250_v39  ;;  %v3714_v10 = vpop.xlane.xlu1 %3713  ;;  %4727 = vadd.xlane.f32.xlu1 %v16250_v39  ;;  %v16253_v0 = vpop.eup %13183  ;;  %v4623_v62 = vsub.f32 %v15991_v25, %v4578_v18 }
 0x4ea   :  { %19033 = vst [vmem:[#allocation71_spill] sm:$0xff] %v16253_v0  ;;  %13187 = vrcp.f32 %v3714_v10  ;;  %v16256_v59 = vpop.eup %13185 }
 0x4eb   :  { %4729 = vadd.xlane.f32.xlu0 %v16253_v0  ;;  %19034 = vst [vmem:[#allocation74_spill] sm:$0xff] %v16256_v59  ;;  %13189 = vrcp.f32 %v3708_v34  ;;  %v4673_v46 = vmul.f32 1.442695, %v4623_v62  ;;  %v19036_v62 = vld [vmem:[#allocation53_spill] sm:$0xff] }
 0x4ec   :  { %v4574_v27 = vpop.xlane.xlu0 %4573  ;;  %13191 = vrcp.f32 %v3712_v3 }
 0x4ed   :  { %v3710_v49 = vpop.xlane.xlu1 %3709  ;;  %v4621_v61 = vsub.f32 %v16007_v13, %v4574_v27  ;;  %4731 = vadd.xlane.f32.xlu1 %v16256_v59  ;;  %v19035_v27 = vld [vmem:[#allocation56_spill] sm:$0xff] }
 0x4ee   :  { %13193 = vrcp.f32 %v3710_v49 }
 0x4ef   :  { %v4669_v41 = vmul.f32 1.442695, %v4621_v61 }
 0x4f0   :  { %v3720_v39 = vpop.xlane.xlu0 %3719 }
 0x4f1   :  { %v4580_v1 = vpop.xlane.xlu1 %4579  ;;  %13195 = vpow2.f32 %v4669_v41 }
 0x4f2   :  { %13197 = vpow2.f32 %v4673_v46  ;;  %v4624_v34 = vsub.f32 %v16015_v33, %v4580_v1 }
 0x4f4   :  { %v3716_v10 = vpop.xlane.xlu0 %3715  ;;  %v13188_v7 = vpop.eup %13187  ;;  %v4675_v32 = vmul.f32 1.442695, %v4624_v34 }
 0x4f5   :  { %v4576_v0 = vpop.xlane.xlu1 %4575  ;;  %v13190_v38 = vpop.eup %13189  ;;  %v3806_v59 = vmul.f32 %v13188_v7, %v19035_v27 }
 0x4f6   :  { %v4622_v3 = vsub.f32 %v16031_v8, %v4576_v0  ;;  %v13192_v25 = vpop.eup %13191  ;;  %v3803_v41 = vmul.f32 %v13190_v38, %v19036_v62 }
 0x4f7   :  { %v3805_v46 = vmul.f32 %v13192_v25, %v19037_v6 }
 0x4f8   :  { %v4671_v18 = vmul.f32 1.442695, %v4622_v3  ;;  %v13194_v13 = vpop.eup %13193  ;;  %v4586_v49 = vpop.xlane.xlu0 %4585 }
 0x4f9   :  { %v3722_v61 = vpop.xlane.xlu1 %3721  ;;  %v3804_v45 = vmul.f32 %v13194_v13, %v16009_v54  ;;  %v3836_v0 = vpack.c.bf16 %v3806_v59, %v3805_v46  ;;  %v4627_v34 = vsub.f32 %v16039_v43, %v4586_v49 }
 0x4fa   :  { %13199 = vpow2.f32 %v4671_v18 }
 0x4fb   :  { %13201 = vrcp.f32 %v3720_v39  ;;  %v16267_v33 = vpop.eup %13195  ;;  %v3835_v8 = vpack.c.bf16 %v3804_v45, %v3803_v41  ;;  %v19038_v39 = vld [vmem:[#allocation45_spill] sm:$0xff]  ;;  %v19039_v45 = vld [vmem:[#allocation54_spill] sm:$0xff]  ;;  %v4681_v59 = vmul.f32 1.442695, %v4627_v34 }
 0x4fc   :  { %13203 = vrcp.f32 %v3722_v61  ;;  %v4582_v1 = vpop.xlane.xlu0 %4581  ;;  %4733 = vadd.xlane.f32.xlu0 %v16267_v33  ;;  %v16272_v54 = vpop.eup %13197 }
 0x4fd   :  { %13205 = vrcp.f32 %v3716_v10  ;;  %v3718_v7 = vpop.xlane.xlu1 %3717  ;;  %v4625_v38 = vsub.f32 %v16047_v12, %v4582_v1  ;;  %12087 = vmatprep.mubr.bf16.mxu1 %v3835_v8  ;;  %v19040_v12 = vld [vmem:[#allocation63_spill] sm:$0xff]  ;;  %v19041_v8 = vld [vmem:[#allocation72_spill] sm:$0xff] }
 0x4fe   :  { %13207 = vpow2.f32 %v4675_v32  ;;  %12088 = vmatmul.mubr.bf16.vlgmr.msra.gmra.mrb[64].mxu1 %v3836_v0 }
 0x4ff   :  { %13209 = vrcp.f32 %v3718_v7  ;;  %v4677_v6 = vmul.f32 1.442695, %v4625_v38  ;;  %12168 = vmatpush3.bf16.msra.mxu1 %v19038_v39  ;;  %v19042_v38 = vld [vmem:[#allocation59_spill] sm:$0xff] }
 0x500   :  { %12169 = vmatprep.subr.bf16.mxu1 %v19039_v45  ;;  %v3728_v10 = vpop.xlane.xlu0 %3727  ;;  %4737 = vadd.xlane.f32.xlu0 %v16272_v54 }
 0x501   :  { %v4588_v3 = vpop.xlane.xlu1 %4587  ;;  %13211 = vpow2.f32 %v4677_v6 }
 0x502   :  { %13213 = vpow2.f32 %v4681_v59  ;;  %v4628_v27 = vsub.f32 %v16056_v55, %v4588_v3  ;;  %v19043_v3 = vld [vmem:[#allocation81_spill] sm:$0xff] }
 0x503   :  { %12170 = vmatpush3.bf16.msra.mxu1 %v19039_v45 }
 0x504   :  { %v16277_v32 = vpop.eup %13199  ;;  %12171 = vmatprep.subr.bf16.mxu1 %v19040_v12  ;;  %v3724_v25 = vpop.xlane.xlu0 %3723  ;;  %v4683_v34 = vmul.f32 1.442695, %v4628_v27 }
 0x505   :  { %v13202_v43 = vpop.eup %13201  ;;  %4735 = vadd.xlane.f32.xlu1 %v16277_v32  ;;  %v4584_v18 = vpop.xlane.xlu1 %4583 }
 0x506   :  { %v13204_v13 = vpop.eup %13203  ;;  %v4626_v49 = vsub.f32 %v16065_v57, %v4584_v18  ;;  %v3809_v6 = vmul.f32 %v13202_v43, %v19042_v38 }
 0x507   :  { %v13206_v61 = vpop.eup %13205  ;;  %12172 = vmatpush3.bf16.msra.mxu1 %v19040_v12  ;;  %v3810_v0 = vmul.f32 %v13204_v13, %v16041_v23 }
 0x508   :  { %v16284_v62 = vpop.eup %13207  ;;  %v4679_v41 = vmul.f32 1.442695, %v4626_v49  ;;  %12173 = vmatprep.subr.bf16.mxu1 %v19041_v8  ;;  %v4594_v1 = vpop.xlane.xlu0 %4593  ;;  %v3807_v55 = vmul.f32 %v13206_v61, %v16033_v22  ;;  %v19045_v61 = vld [vmem:[#allocation99_spill] sm:$0xff] }
 0x509   :  { %v13210_v46 = vpop.eup %13209  ;;  %4739 = vadd.xlane.f32.xlu1 %v16284_v62  ;;  %v3730_v7 = vpop.xlane.xlu1 %3729  ;;  %v3838_v12 = vpack.c.bf16 %v3810_v0, %v3809_v6  ;;  %v4631_v22 = vsub.f32 %v16074_v50, %v4594_v1 }
 0x50a   :  { %13215 = vpow2.f32 %v4679_v41  ;;  %v3808_v57 = vmul.f32 %v13210_v46, %v16050_v36 }
 0x50b   :  { %13217 = vrcp.f32 %v3728_v10  ;;  %v16293_v39 = vpop.eup %13211  ;;  %12174 = vmatpush3.bf16.msra.mxu1 %v19041_v8  ;;  %v4689_v27 = vmul.f32 1.442695, %v4631_v22 }
 0x50c   :  { %13219 = vrcp.f32 %v3730_v7  ;;  %v3837_v45 = vpack.c.bf16 %v3808_v57, %v3807_v55  ;;  %12175 = vmatprep.subr.bf16.mxu1 %v19043_v3  ;;  %v4590_v59 = vpop.xlane.xlu0 %4589  ;;  %4741 = vadd.xlane.f32.xlu0 %v16293_v39  ;;  %v16300_v10 = vpop.eup %13213  ;;  %v19046_v57 = vld [vmem:[#allocation103_spill] sm:$0xff] }
 0x50d   :  { %13221 = vrcp.f32 %v3724_v25  ;;  %v3726_v23 = vpop.xlane.xlu1 %3725  ;;  %v4629_v36 = vsub.f32 %v16083_v56, %v4590_v59  ;;  %v19044_v25 = vld [vmem:[#allocation90_spill] sm:$0xff] }
 0x50e   :  { %13223 = vpow2.f32 %v4683_v34  ;;  %12091 = vmatprep.mubr.bf16.mxu1 %v3837_v45 }
 0x50f   :  { %13225 = vrcp.f32 %v3726_v23  ;;  %12092 = vmatmul.mubr.bf16.gmra.mrb[68].mxu1 %v3838_v12  ;;  %v4685_v43 = vmul.f32 1.442695, %v4629_v36 }
 0x510   :  { %12176 = vmatpush3.bf16.msra.mxu1 %v19043_v3  ;;  %v3736_v18 = vpop.xlane.xlu0 %3735  ;;  %4745 = vadd.xlane.f32.xlu0 %v16300_v10 }
 0x511   :  { %12177 = vmatprep.subr.bf16.mxu1 %v19044_v25  ;;  %v4596_v13 = vpop.xlane.xlu1 %4595  ;;  %13227 = vpow2.f32 %v4685_v43 }
 0x512   :  { %v4632_v50 = vsub.f32 %v16092_v9, %v4596_v13  ;;  %13229 = vpow2.f32 %v4689_v27 }
 0x514   :  { %v16306_v49 = vpop.eup %13215  ;;  %12178 = vmatpush3.bf16.msra.mxu1 %v19044_v25  ;;  %v3732_v41 = vpop.xlane.xlu0 %3731  ;;  %v4691_v0 = vmul.f32 1.442695, %v4632_v50 }
 0x515   :  { %v13218_v56 = vpop.eup %13217  ;;  %12179 = vmatprep.subr.bf16.mxu1 %v19045_v61  ;;  %4743 = vadd.xlane.f32.xlu1 %v16306_v49  ;;  %v4592_v46 = vpop.xlane.xlu1 %4591 }
 0x516   :  { %v13220_v8 = vpop.eup %13219  ;;  %v4630_v1 = vsub.f32 %v16102_v11, %v4592_v46  ;;  %v3813_v23 = vmul.f32 %v13218_v56, %v16059_v17 }
 0x517   :  { %v13222_v7 = vpop.eup %13221  ;;  %v3814_v45 = vmul.f32 %v13220_v8, %v16077_v51 }
 0x518   :  { %v16312_v34 = vpop.eup %13223  ;;  %v4687_v9 = vmul.f32 1.442695, %v4630_v1  ;;  %12180 = vmatpush3.bf16.msra.mxu1 %v19045_v61  ;;  %v4598_v38 = vpop.xlane.xlu0 %4597  ;;  %v3811_v11 = vmul.f32 %v13222_v7, %v16068_v21 }
 0x519   :  { %v13226_v55 = vpop.eup %13225  ;;  %12181 = vmatprep.subr.bf16.mxu1 %v19046_v57  ;;  %4747 = vadd.xlane.f32.xlu1 %v16312_v34  ;;  %v3738_v6 = vpop.xlane.xlu1 %3737  ;;  %v4633_v3 = vsub.f32 %v16111_v37, %v4598_v38  ;;  %v3840_v43 = vpack.c.bf16 %v3814_v45, %v3813_v23 }
 0x51a   :  { %13231 = vpow2.f32 %v4687_v9  ;;  %v3812_v59 = vmul.f32 %v13226_v55, %v16086_v4 }
 0x51b   :  { %13233 = vpow2.f32 %v4691_v0  ;;  %v16322_v12 = vpop.eup %13227  ;;  %v4693_v22 = vmul.f32 1.442695, %v4633_v3 }
 0x51c   :  { %13235 = vrcp.f32 %v3732_v41  ;;  %12182 = vmatpush3.bf16.msra.mxu1 %v19046_v57  ;;  %v3839_v36 = vpack.c.bf16 %v3812_v59, %v3811_v11  ;;  %4749 = vadd.xlane.f32.xlu0 %v16322_v12  ;;  %v3744_v21 = vpop.xlane.xlu0 %3743  ;;  %v16326_v4 = vpop.eup %13229 }
 0x51d   :  { %13237 = vrcp.f32 %v3738_v6  ;;  %v3734_v51 = vpop.xlane.xlu1 %3733 }
 0x51e   :  { %13239 = vpow2.f32 %v4693_v22  ;;  %12095 = vmatprep.mubr.bf16.mxu1 %v3839_v36 }
 0x51f   :  { %13241 = vrcp.f32 %v3736_v18  ;;  %12096 = vmatmul.mubr.bf16.gmra.mrb[72].mxu1 %v3840_v43 }
 0x520   :  { %13243 = vrcp.f32 %v3734_v51  ;;  %4753 = vadd.xlane.f32.xlu0 %v16326_v4  ;;  %v3740_v50 = vpop.xlane.xlu0 %3739 }
 0x521   :  { %v4600_v17 = vpop.xlane.xlu1 %4599 }
 0x522   :  { %v4634_v37 = vsub.f32 %v16126_v40, %v4600_v17 }
 0x524   :  { %v16330_v25 = vpop.eup %13231  ;;  %v4695_v13 = vmul.f32 1.442695, %v4634_v37 }
 0x525   :  { %v16332_v27 = vpop.eup %13233  ;;  %4751 = vadd.xlane.f32.xlu1 %v16330_v25  ;;  %v3746_v56 = vpop.xlane.xlu1 %3745 }
 0x526   :  { %v13236_v18 = vpop.eup %13235  ;;  %13245 = vpow2.f32 %v4695_v13 }
 0x527   :  { %v13238_v61 = vpop.eup %13237  ;;  %13247 = vrcp.f32 %v3746_v56  ;;  %v3815_v7 = vmul.f32 %v13236_v18, %v16105_v29 }
 0x528   :  { %v16335_v41 = vpop.eup %13239  ;;  %13249 = vrcp.f32 %v3740_v50  ;;  %v3818_v1 = vmul.f32 %v13238_v61, %v16113_v44 }
 0x529   :  { %v13242_v46 = vpop.eup %13241  ;;  %13251 = vrcp.f32 %v3744_v21  ;;  %4757 = vadd.xlane.f32.xlu0 %v16335_v41  ;;  %4755 = vadd.xlane.f32.xlu1 %v16332_v27  ;;  %v3742_v40 = vpop.xlane.xlu1 %3741 }
 0x52a   :  { %v13244_v8 = vpop.eup %13243  ;;  %13253 = vrcp.f32 %v3742_v40  ;;  %v3817_v9 = vmul.f32 %v13242_v46, %v16095_v5 }
 0x52b   :  { %v3816_v0 = vmul.f32 %v13244_v8, %v16117_v63 }
 0x52c   :  { %v3752_v55 = vpop.xlane.xlu0 %3751  ;;  %v3842_v38 = vpack.c.bf16 %v3818_v1, %v3817_v9 }
 0x52d   :  { %v3841_v57 = vpack.c.bf16 %v3816_v0, %v3815_v7 }
 0x52e   :  { %v3754_v6 = vpop.xlane.xlu1 %3753 }
 0x52f   :  { %12099 = vmatprep.mubr.bf16.mxu1 %v3841_v57  ;;  %13255 = vrcp.f32 %v3754_v6 }
 0x530   :  { %v16343_v45 = vpop.eup %13245  ;;  %12100 = vmatmul.mubr.bf16.gmra.mrb[76].mxu1 %v3842_v38  ;;  %v3748_v11 = vpop.xlane.xlu0 %3747 }
 0x531   :  { %v13248_v3 = vpop.eup %13247  ;;  %4759 = vadd.xlane.f32.xlu1 %v16343_v45  ;;  %13257 = vrcp.f32 %v3748_v11 }
 0x532   :  { %v13250_v44 = vpop.eup %13249  ;;  %13259 = vrcp.f32 %v3752_v55  ;;  %v3750_v63 = vpop.xlane.xlu1 %3749  ;;  %v3822_v5 = vmul.f32 %v13248_v3, %v16134_v47 }
 0x533   :  { %v13252_v29 = vpop.eup %13251  ;;  %13261 = vrcp.f32 %v3750_v63  ;;  %v3819_v23 = vmul.f32 %v13250_v44, %v16128_v15  ;;  %v12680_v44 = vld [vmem:[%s18452_s4 + $0xc] ss:$16 sps:$4 sm:$0xff]  }
 0x534   :  { %v13254_v59 = vpop.eup %13253  ;;  %v3821_v36 = vmul.f32 %v13252_v29, %v16120_v24  ;;  %v12683_v29 = vld [vmem:[%s18452_s4 + $0x24] ss:$16 sps:$4 sm:$0xff]   ;;  %6128 = vmatprep.subr.bf16.mxu1 %v12680_v44 }
 0x535   :  { %v3820_v22 = vmul.f32 %v13254_v59, %v16138_v48  ;;  %v12681_v59 = vld [vmem:[%s18452_s4 + $0x20] ss:$16 sps:$4 sm:$0xff]  }
 0x536   :  { %v3844_v43 = vpack.c.bf16 %v3822_v5, %v3821_v36 }
 0x537   :  { %v3843_v51 = vpack.c.bf16 %v3820_v22, %v3819_v23  ;;  %v12689_v23 = vld [vmem:[%s18452_s4 + $0x44] ss:$16 sps:$4 sm:$0xff]  }
 0x539   :  { %12103 = vmatprep.mubr.bf16.mxu1 %v3843_v51  ;;  %v13256_v21 = vpop.eup %13255 }
 0x53a   :  { %12104 = vmatmul.mubr.bf16.gmra.mrb[80].mxu1 %v3844_v43  ;;  %v3826_v56 = vmul.f32 %v13256_v21, %v16144_v52 }
 0x53b   :  { %v13258_v17 = vpop.eup %13257 }
 0x53c   :  { %v13260_v37 = vpop.eup %13259  ;;  %v3760_v13 = vpop.xlane.xlu0 %3759  ;;  %v3823_v47 = vmul.f32 %v13258_v17, %v16148_v28 }
 0x53d   :  { %v13262_v50 = vpop.eup %13261  ;;  %v3825_v48 = vmul.f32 %v13260_v37, %v16141_v30  ;;  %v12695_v37 = vld [vmem:[%s18452_s4 + $0x64] ss:$16 sps:$4 sm:$0xff]  }
 0x53e   :  { %v3762_v18 = vpop.xlane.xlu1 %3761  ;;  %v3824_v15 = vmul.f32 %v13262_v50, %v16152_v16 }
 0x53f   :  { %13263 = vrcp.f32 %v3762_v18  ;;  %v3846_v46 = vpack.c.bf16 %v3826_v56, %v3825_v48  ;;  %v19047_v18 = vld [vmem:[#allocation57_spill] sm:$0xff] }
 0x540   :  { %v3756_v24 = vpop.xlane.xlu0 %3755  ;;  %v3845_v61 = vpack.c.bf16 %v3824_v15, %v3823_v47 }
 0x541   :  { %13265 = vrcp.f32 %v3756_v24 }
 0x542   :  { %13267 = vrcp.f32 %v3760_v13  ;;  %12107 = vmatprep.mubr.bf16.mxu1 %v3845_v61  ;;  %v3758_v40 = vpop.xlane.xlu1 %3757 }
 0x543   :  { %13269 = vrcp.f32 %v3758_v40  ;;  %12108 = vmatmul.mubr.bf16.gmra.mrb[84].mxu1 %v3846_v46  ;;  %v12699_v40 = vld [vmem:[%s18452_s4 + $0x80] ss:$16 sps:$4 sm:$0xff]  }
 0x549   :  { %v13264_v8 = vpop.eup %13263 }
 0x54a   :  { %v3830_v28 = vmul.f32 %v13264_v8, %v16160_v53  ;;  %v12701_v8 = vld [vmem:[%s18452_s4 + $0x84] ss:$16 sps:$4 sm:$0xff]  }
 0x54b   :  { %v13266_v1 = vpop.eup %13265 }
 0x54c   :  { %v13268_v52 = vpop.eup %13267  ;;  %v3768_v7 = vpop.xlane.xlu0 %3767  ;;  %v3827_v30 = vmul.f32 %v13266_v1, %v16164_v2  ;;  %v12675_v2 = vld [vmem:[%s18452_s4] ss:$16 sps:$4 sm:$0xff]  }
 0x54d   :  { %v13270_v0 = vpop.eup %13269  ;;  %v3829_v55 = vmul.f32 %v13268_v52, %v16157_v26  ;;  %v12677_v26 = vld [vmem:[%s18452_s4 + $0x4] ss:$16 sps:$4 sm:$0xff]  }
 0x54e   :  { %v3770_v16 = vpop.xlane.xlu1 %3769  ;;  %v3828_v9 = vmul.f32 %v13270_v0, %v16168_v42  ;;  %5902 = vmatprep.subr.bf16.mxu0 %v12677_v26  ;;  %v12707_v52 = vld [vmem:[%s18452_s4 + $0xa4] ss:$16 sps:$4 sm:$0xff]   ;;  %v19048_v26 = vld [vmem:[#allocation24_spill] sm:$0xff] }
 0x54f   :  { %13271 = vrcp.f32 %v3770_v16  ;;  %v3848_v6 = vpack.c.bf16 %v3830_v28, %v3829_v55  ;;  %5903 = vmatpush1.bf16.msra.mxu0 %v12675_v2  ;;  %v12705_v28 = vld [vmem:[%s18452_s4 + $0xa0] ss:$16 sps:$4 sm:$0xff]   ;;  %v12719_v2 = vld [vmem:[%s18452_s4 + $0xe4] ss:$16 sps:$4 sm:$0xff]  }
 0x550   :  { %v3764_v57 = vpop.xlane.xlu0 %3763  ;;  %v3847_v38 = vpack.c.bf16 %v3828_v9, %v3827_v30  ;;  %5904 = vmatprep.subr.bf16.mxu0 %v12683_v29  ;;  %v12713_v30 = vld [vmem:[%s18452_s4 + $0xc4] ss:$16 sps:$4 sm:$0xff]  }
 0x551   :  { %13273 = vrcp.f32 %v3764_v57 }
 0x552   :  { %13275 = vrcp.f32 %v3768_v7  ;;  %12111 = vmatprep.mubr.bf16.mxu1 %v3847_v38  ;;  %v3766_v3 = vpop.xlane.xlu1 %3765 }
 0x553   :  { %13277 = vrcp.f32 %v3766_v3  ;;  %12112 = vmatmul.mubr.bf16.gmra.mrb[88].mxu1 %v3848_v6  ;;  %5905 = vmatpush1.bf16.msra.mxu0 %v12681_v59 }
 0x554   :  { %v4602_v11 = vpop.xlane.xlu0 %4601  ;;  %5906 = vmatprep.subr.bf16.mxu0 %v12689_v23  ;;  %v12717_v23 = vld [vmem:[%s18452_s4 + $0xe0] ss:$16 sps:$4 sm:$0xff]  }
 0x555   :  { %v4635_v53 = vsub.f32 %v16191_v19, %v4602_v11  ;;  %v12711_v11 = vld [vmem:[%s18452_s4 + $0xc0] ss:$16 sps:$4 sm:$0xff]  }
 0x556   :  { %v4604_v42 = vpop.xlane.xlu1 %4603 }
 0x557   :  { %v4697_v63 = vmul.f32 1.442695, %v4635_v53  ;;  %v4636_v19 = vsub.f32 %v16195_v60, %v4604_v42  ;;  %v12687_v60 = vld [vmem:[%s18452_s4 + $0x40] ss:$16 sps:$4 sm:$0xff]   ;;  %v19049_v42 = vld [vmem:[#allocation60_spill] sm:$0xff] }
 0x558   :  { %5907 = vmatpush1.bf16.msra.mxu0 %v12687_v60  ;;  %v19051_v60 = vld [vmem:[#allocation61_spill] sm:$0xff] }
 0x559   :  { %13279 = vpow2.f32 %v4697_v63  ;;  %v4699_v5 = vmul.f32 1.442695, %v4636_v19  ;;  %v13272_v22 = vpop.eup %13271  ;;  %5908 = vmatprep.subr.bf16.mxu0 %v12695_v37  ;;  %v12678_v63 = vld [vmem:[%s18452_s4 + $0x8] ss:$16 sps:$4 sm:$0xff]  }
 0x55a   :  { %v3834_v17 = vmul.f32 %v13272_v22, %v16176_v31  ;;  %v12693_v31 = vld [vmem:[%s18452_s4 + $0x60] ss:$16 sps:$4 sm:$0xff]   ;;  %v12684_v37 = vld [vmem:[%s18452_s4 + $0x28] ss:$16 sps:$4 sm:$0xff]  }
 0x55b   :  { %v13274_v36 = vpop.eup %13273  ;;  %13281 = vpow2.f32 %v4699_v5  ;;  %v12686_v5 = vld [vmem:[%s18452_s4 + $0x2c] ss:$16 sps:$4 sm:$0xff]  }
 0x55c   :  { %v13276_v51 = vpop.eup %13275  ;;  %v4702_v43 = vpop.xlane.xlu0 %4701  ;;  %v3831_v50 = vmul.f32 %v13274_v36, %v16182_v14  ;;  %5909 = vmatpush1.bf16.msra.mxu0 %v12693_v31  ;;  %v19052_v31 = vld [vmem:[#allocation62_spill] sm:$0xff] }
 0x55d   :  { %v13278_v21 = vpop.eup %13277  ;;  %13283 = vrcp.f32 %v4702_v43  ;;  %v3833_v47 = vmul.f32 %v13276_v51, %v19047_v18  ;;  %5910 = vmatprep.subr.bf16.mxu0 %v12701_v8  ;;  %v19050_v51 = vld [vmem:[#allocation25_spill] sm:$0xff] }
 0x55e   :  { %v4704_v13 = vpop.xlane.xlu1 %4703  ;;  %v3832_v56 = vmul.f32 %v13278_v21, %v16188_v58 }
 0x55f   :  { %13285 = vrcp.f32 %v4704_v13  ;;  %v3850_v24 = vpack.c.bf16 %v3834_v17, %v3833_v47  ;;  %v12723_v47 = vld [vmem:[%s18452_s4 + $0x100] ss:$16 sps:$4 sm:$0xff]  }
 0x560   :  { %v4706_v15 = vpop.xlane.xlu0 %4705  ;;  %v3849_v48 = vpack.c.bf16 %v3832_v56, %v3831_v50  ;;  %5911 = vmatpush1.bf16.msra.mxu0 %v12699_v40  ;;  %v12692_v56 = vld [vmem:[%s18452_s4 + $0x4c] ss:$16 sps:$4 sm:$0xff]   ;;  %v12731_v40 = vld [vmem:[%s18452_s4 + $0x124] ss:$16 sps:$4 sm:$0xff]  }
 0x561   :  { %13287 = vrcp.f32 %v4706_v15  ;;  %5912 = vmatprep.subr.bf16.mxu0 %v12707_v52  ;;  %v12725_v15 = vld [vmem:[%s18452_s4 + $0x104] ss:$16 sps:$4 sm:$0xff]  }
 0x562   :  { %12115 = vmatprep.mubr.bf16.mxu1 %v3849_v48  ;;  %v4708_v61 = vpop.xlane.xlu1 %4707 }
 0x563   :  { %v16391_v46 = vpop.eup %13279  ;;  %13289 = vrcp.f32 %v4708_v61  ;;  %12116 = vmatmul.mubr.bf16.gmra.mrb[92].mxu1 %v3850_v24  ;;  %v19053_v61 = vld [vmem:[#allocation65_spill] sm:$0xff] }
 0x564   :  { %4761 = vadd.xlane.f32.xlu0 %v16391_v46  ;;  %v4710_v14 = vpop.xlane.xlu0 %4709  ;;  %5913 = vmatpush1.bf16.msra.mxu0 %v12705_v28  ;;  %v12729_v28 = vld [vmem:[%s18452_s4 + $0x120] ss:$16 sps:$4 sm:$0xff]  }
 0x565   :  { %v16394_v58 = vpop.eup %13281  ;;  %13291 = vrcp.f32 %v4710_v14  ;;  %5914 = vmatprep.subr.bf16.mxu0 %v12713_v30  ;;  %v12737_v30 = vld [vmem:[%s18452_s4 + $0x144] ss:$16 sps:$4 sm:$0xff]  }
 0x566   :  { %4763 = vadd.xlane.f32.xlu1 %v16394_v58  ;;  %v4712_v1 = vpop.xlane.xlu1 %4711 }
 0x567   :  { %v13284_v7 = vpop.eup %13283  ;;  %13293 = vrcp.f32 %v4712_v1  ;;  %v12690_v1 = vld [vmem:[%s18452_s4 + $0x48] ss:$16 sps:$4 sm:$0xff]  }
 0x568   :  { %v4714_v0 = vpop.xlane.xlu0 %4713  ;;  %v4797_v55 = vmul.f32 %v13284_v7, %v16203_v20  ;;  %5915 = vmatpush1.bf16.msra.mxu0 %v12711_v11  ;;  %v12696_v11 = vld [vmem:[%s18452_s4 + $0x68] ss:$16 sps:$4 sm:$0xff]  }
 0x569   :  { %v13286_v16 = vpop.eup %13285  ;;  %13295 = vrcp.f32 %v4714_v0  ;;  %5916 = vmatprep.subr.bf16.mxu0 %v12719_v2  ;;  %v12698_v0 = vld [vmem:[%s18452_s4 + $0x6c] ss:$16 sps:$4 sm:$0xff]  }
 0x56a   :  { %v4716_v9 = vpop.xlane.xlu1 %4715  ;;  %v4798_v57 = vmul.f32 %v13286_v16, %v16206_v35  ;;  %v12704_v2 = vld [vmem:[%s18452_s4 + $0x8c] ss:$16 sps:$4 sm:$0xff]  }
 0x56b   :  { %v13288_v38 = vpop.eup %13287  ;;  %13297 = vrcp.f32 %v4716_v9 }
 0x56c   :  { %v4718_v6 = vpop.xlane.xlu0 %4717  ;;  %v4829_v3 = vpack.c.bf16 %v4798_v57, %v4797_v55  ;;  %v4799_v20 = vmul.f32 %v13288_v38, %v19048_v26  ;;  %5917 = vmatpush1.bf16.msra.mxu0 %v12717_v23  ;;  %v19054_v55 = vld [vmem:[#allocation68_spill] sm:$0xff]  ;;  %v19055_v38 = vld [vmem:[#allocation66_spill] sm:$0xff]  ;;  %v12735_v26 = vld [vmem:[%s18452_s4 + $0x140] ss:$16 sps:$4 sm:$0xff]  }
 0x56d   :  { %v13290_v53 = vpop.eup %13289  ;;  %13299 = vrcp.f32 %v4718_v6  ;;  %5918 = vmatprep.subr.bf16.mxu0 %v12725_v15  ;;  %v12710_v23 = vld [vmem:[%s18452_s4 + $0xac] ss:$16 sps:$4 sm:$0xff]  }
 0x56e   :  { %v4800_v35 = vmul.f32 %v13290_v53, %v19049_v42  ;;  %12183 = vmatprep.mubr.bf16.mxu1 %v4829_v3  ;;  %v4720_v44 = vpop.xlane.xlu1 %4719  ;;  %v12743_v42 = vld [vmem:[%s18452_s4 + $0x164] ss:$16 sps:$4 sm:$0xff]   ;;  %v19061_v15 = vld [vmem:[#allocation74_spill] sm:$0xff] }
 0x56f   :  { %v13292_v29 = vpop.eup %13291  ;;  %13301 = vrcp.f32 %v4720_v44 }
 0x570   :  { %v4722_v19 = vpop.xlane.xlu0 %4721  ;;  %v4830_v59 = vpack.c.bf16 %v4800_v35, %v4799_v20  ;;  %v4801_v43 = vmul.f32 %v13292_v29, %v19050_v51  ;;  %5919 = vmatpush1.bf16.msra.mxu0 %v12723_v47  ;;  %v19056_v35 = vld [vmem:[#allocation26_spill] sm:$0xff]  ;;  %v19057_v29 = vld [vmem:[#allocation69_spill] sm:$0xff]  ;;  %v19058_v51 = vld [vmem:[#allocation27_spill] sm:$0xff] }
 0x571   :  { %v13294_v22 = vpop.eup %13293  ;;  %13303 = vrcp.f32 %v4722_v19  ;;  %5920 = vmatprep.subr.bf16.mxu0 %v12731_v40 }
 0x572   :  { %12184 = vmatmul.mubr.bf16.vlgmr.msra.gmra.mrb[96].mxu1 %v4830_v59  ;;  %v4724_v36 = vpop.xlane.xlu1 %4723  ;;  %v4802_v21 = vmul.f32 %v13294_v22, %v19051_v60  ;;  %v12702_v59 = vld [vmem:[%s18452_s4 + $0x88] ss:$16 sps:$4 sm:$0xff]   ;;  %v12741_v22 = vld [vmem:[%s18452_s4 + $0x160] ss:$16 sps:$4 sm:$0xff]  }
 0x573   :  { %v13296_v17 = vpop.eup %13295  ;;  %13305 = vrcp.f32 %v4724_v36  ;;  %6129 = vmatpush1.bf16.msra.mxu1 %v12678_v63  ;;  %v19059_v60 = vld [vmem:[#allocation70_spill] sm:$0xff] }
 0x574   :  { %v4726_v13 = vpop.xlane.xlu0 %4725  ;;  %v4831_v50 = vpack.c.bf16 %v4802_v21, %v4801_v43  ;;  %6130 = vmatprep.subr.bf16.mxu1 %v12686_v5  ;;  %v4803_v24 = vmul.f32 %v13296_v17, %v19052_v31  ;;  %5921 = vmatpush1.bf16.msra.mxu0 %v12729_v28  ;;  %v12747_v31 = vld [vmem:[%s18452_s4 + $0x180] ss:$16 sps:$4 sm:$0xff]   ;;  %v12728_v28 = vld [vmem:[%s18452_s4 + $0x10c] ss:$16 sps:$4 sm:$0xff]  }
 0x575   :  { %v13298_v18 = vpop.eup %13297  ;;  %13307 = vrcp.f32 %v4726_v13  ;;  %5922 = vmatprep.subr.bf16.mxu0 %v12737_v30  ;;  %v12726_v30 = vld [vmem:[%s18452_s4 + $0x108] ss:$16 sps:$4 sm:$0xff]  }
 0x576   :  { %12187 = vmatprep.mubr.bf16.mxu1 %v4831_v50  ;;  %v4728_v48 = vpop.xlane.xlu1 %4727  ;;  %v4804_v14 = vmul.f32 %v13298_v18, %v19053_v61  ;;  %v12716_v50 = vld [vmem:[%s18452_s4 + $0xcc] ss:$16 sps:$4 sm:$0xff]   ;;  %v19060_v18 = vld [vmem:[#allocation71_spill] sm:$0xff]  ;;  %v12714_v61 = vld [vmem:[%s18452_s4 + $0xc8] ss:$16 sps:$4 sm:$0xff]  }
 0x577   :  { %v13300_v8 = vpop.eup %13299  ;;  %13309 = vrcp.f32 %v4728_v48  ;;  %6131 = vmatpush1.bf16.msra.mxu1 %v12684_v37  ;;  %v12708_v37 = vld [vmem:[%s18452_s4 + $0xa8] ss:$16 sps:$4 sm:$0xff]  }
 0x578   :  { %v4730_v52 = vpop.xlane.xlu0 %4729  ;;  %v4832_v7 = vpack.c.bf16 %v4804_v14, %v4803_v24  ;;  %6132 = vmatprep.subr.bf16.mxu1 %v12692_v56  ;;  %v4805_v57 = vmul.f32 %v13300_v8, %v19054_v55  ;;  %5923 = vmatpush1.bf16.msra.mxu0 %v12735_v26  ;;  %v12749_v24 = vld [vmem:[%s18452_s4 + $0x184] ss:$16 sps:$4 sm:$0xff]   ;;  %v12722_v8 = vld [vmem:[%s18452_s4 + $0xec] ss:$16 sps:$4 sm:$0xff]  }
 0x579   :  { %v13302_v16 = vpop.eup %13301  ;;  %13311 = vrcp.f32 %v4730_v52  ;;  %5924 = vmatprep.subr.bf16.mxu0 %v12743_v42  ;;  %v12755_v14 = vld [vmem:[%s18452_s4 + $0x1a4] ss:$16 sps:$4 sm:$0xff]   ;;  %v12746_v26 = vld [vmem:[%s18452_s4 + $0x16c] ss:$16 sps:$4 sm:$0xff]  }
 0x57a   :  { %12188 = vmatmul.mubr.bf16.gmra.mrb[100].mxu1 %v4832_v7  ;;  %v4732_v9 = vpop.xlane.xlu1 %4731  ;;  %v4806_v6 = vmul.f32 %v13302_v16, %v19055_v38  ;;  %v12761_v52 = vld [vmem:[%s18452_s4 + $0x1c4] ss:$16 sps:$4 sm:$0xff]   ;;  %v12759_v16 = vld [vmem:[%s18452_s4 + $0x1c0] ss:$16 sps:$4 sm:$0xff]  }
 0x57b   :  { %v13304_v3 = vpop.eup %13303  ;;  %13313 = vrcp.f32 %v4732_v9  ;;  %6133 = vmatpush1.bf16.msra.mxu1 %v12690_v1  ;;  %v12753_v1 = vld [vmem:[%s18452_s4 + $0x1a0] ss:$16 sps:$4 sm:$0xff]   ;;  %v12734_v9 = vld [vmem:[%s18452_s4 + $0x12c] ss:$16 sps:$4 sm:$0xff]   ;;  %v12767_v55 = vld [vmem:[%s18452_s4 + $0x1e4] ss:$16 sps:$4 sm:$0xff]  }
 0x57c   :  { %v4833_v53 = vpack.c.bf16 %v4806_v6, %v4805_v57  ;;  %6134 = vmatprep.subr.bf16.mxu1 %v12698_v0  ;;  %v4807_v44 = vmul.f32 %v13304_v3, %v19056_v35  ;;  %5925 = vmatpush1.bf16.msra.mxu0 %v12741_v22  ;;  %v12720_v0 = vld [vmem:[%s18452_s4 + $0xe8] ss:$16 sps:$4 sm:$0xff]   ;;  %v12765_v6 = vld [vmem:[%s18452_s4 + $0x1e0] ss:$16 sps:$4 sm:$0xff]  }
 0x57d   :  { %v13306_v20 = vpop.eup %13305  ;;  %5926 = vmatprep.subr.bf16.mxu0 %v12749_v24  ;;  %v12732_v3 = vld [vmem:[%s18452_s4 + $0x128] ss:$16 sps:$4 sm:$0xff]  }
 0x57e   :  { %12191 = vmatprep.mubr.bf16.mxu1 %v4833_v53  ;;  %v4808_v63 = vmul.f32 %v13306_v20, %v19057_v29  ;;  %v12744_v35 = vld [vmem:[%s18452_s4 + $0x168] ss:$16 sps:$4 sm:$0xff]   ;;  %v12752_v29 = vld [vmem:[%s18452_s4 + $0x18c] ss:$16 sps:$4 sm:$0xff]  }
 0x57f   :  { %v13308_v19 = vpop.eup %13307  ;;  %6135 = vmatpush1.bf16.msra.mxu1 %v12696_v11  ;;  %v12740_v11 = vld [vmem:[%s18452_s4 + $0x14c] ss:$16 sps:$4 sm:$0xff]  }
 0x580   :  { %v4834_v5 = vpack.c.bf16 %v4808_v63, %v4807_v44  ;;  %6136 = vmatprep.subr.bf16.mxu1 %v12704_v2  ;;  %v4809_v43 = vmul.f32 %v13308_v19, %v19058_v51  ;;  %5927 = vmatpush1.bf16.msra.mxu0 %v12747_v31  ;;  %v12738_v2 = vld [vmem:[%s18452_s4 + $0x148] ss:$16 sps:$4 sm:$0xff]  }
 0x581   :  { %v13310_v36 = vpop.eup %13309  ;;  %5928 = vmatprep.subr.bf16.mxu0 %v12755_v14 }
 0x582   :  { %12192 = vmatmul.mubr.bf16.gmra.mrb[104].mxu1 %v4834_v5  ;;  %v4810_v21 = vmul.f32 %v13310_v36, %v19059_v60  ;;  %v12758_v36 = vld [vmem:[%s18452_s4 + $0x1ac] ss:$16 sps:$4 sm:$0xff]  }
 0x583   :  { %v13312_v17 = vpop.eup %13311  ;;  %6137 = vmatpush1.bf16.msra.mxu1 %v12702_v59 }
 0x584   :  { %v4835_v13 = vpack.c.bf16 %v4810_v21, %v4809_v43  ;;  %6138 = vmatprep.subr.bf16.mxu1 %v12710_v23  ;;  %v4811_v47 = vmul.f32 %v13312_v17, %v19060_v18  ;;  %5929 = vmatpush1.bf16.msra.mxu0 %v12753_v1  ;;  %v12750_v23 = vld [vmem:[%s18452_s4 + $0x188] ss:$16 sps:$4 sm:$0xff]   ;;  %v12764_v17 = vld [vmem:[%s18452_s4 + $0x1cc] ss:$16 sps:$4 sm:$0xff]  }
 0x585   :  { %v13314_v56 = vpop.eup %13313  ;;  %5930 = vmatprep.subr.bf16.mxu0 %v12761_v52  ;;  %v12756_v21 = vld [vmem:[%s18452_s4 + $0x1a8] ss:$16 sps:$4 sm:$0xff]  }
 0x586   :  { %12195 = vmatprep.mubr.bf16.mxu1 %v4835_v13  ;;  %v4812_v48 = vmul.f32 %v13314_v56, %v19061_v15 }
 0x587   :  { %6139 = vmatpush1.bf16.msra.mxu1 %v12708_v37 }
 0x588   :  { %v4836_v40 = vpack.c.bf16 %v4812_v48, %v4811_v47  ;;  %6140 = vmatprep.subr.bf16.mxu1 %v12716_v50  ;;  %5931 = vmatpush1.bf16.msra.mxu0 %v12759_v16  ;;  %v12768_v50 = vld [vmem:[%s18452_s4 + $0x1e8] ss:$16 sps:$4 sm:$0xff]   ;;  %v12776_v16 = vld [vmem:[%s18452_s4 + $0x20c] ss:$16 sps:$4 sm:$0xff]  }
 0x589   :  { %v4734_v7 = vpop.xlane.xlu0 %4733  ;;  %5932 = vmatprep.subr.bf16.mxu0 %v12767_v55 }
 0x58a   :  { %12196 = vmatmul.mubr.bf16.gmra.mrb[108].mxu1 %v4836_v40  ;;  %13315 = vrcp.f32 %v4734_v7 }
 0x58b   :  { %6141 = vmatpush1.bf16.msra.mxu1 %v12714_v61 }
 0x58c   :  { %6142 = vmatprep.subr.bf16.mxu1 %v12722_v8  ;;  %5933 = vmatpush1.bf16.msra.mxu0 %v12765_v6 }
 0x58d   :  { %v4738_v57 = vpop.xlane.xlu0 %4737 }
 0x58f   :  { %6143 = vmatpush1.bf16.msra.mxu1 %v12720_v0  ;;  %v12773_v0 = vld [vmem:[%s18452_s4 + $0x204] ss:$16 sps:$4 sm:$0xff]  }
 0x590   :  { %6144 = vmatprep.subr.bf16.mxu1 %v12728_v28  ;;  %6015 = vmatprep.subr.bf16.mxu0 %v12773_v0 }
 0x592   :  { %v4736_v38 = vpop.xlane.xlu1 %4735 }
 0x593   :  { %13317 = vrcp.f32 %v4736_v38  ;;  %6145 = vmatpush1.bf16.msra.mxu1 %v12726_v30 }
 0x594   :  { %13319 = vrcp.f32 %v4738_v57  ;;  %6146 = vmatprep.subr.bf16.mxu1 %v12734_v9  ;;  %v13316_v20 = vpop.eup %13315 }
 0x595   :  { %v4813_v63 = vmul.f32 %v13316_v20, %v16267_v33 }
 0x596   :  { %v4740_v53 = vpop.xlane.xlu1 %4739 }
 0x597   :  { %13321 = vrcp.f32 %v4740_v53  ;;  %6147 = vmatpush1.bf16.msra.mxu1 %v12732_v3 }
 0x598   :  { %6148 = vmatprep.subr.bf16.mxu1 %v12740_v11 }
 0x599   :  { %v4742_v42 = vpop.xlane.xlu0 %4741 }
 0x59a   :  { %13323 = vrcp.f32 %v4742_v42 }
 0x59b   :  { %6149 = vmatpush1.bf16.msra.mxu1 %v12738_v2 }
 0x59c   :  { %6150 = vmatprep.subr.bf16.mxu1 %v12746_v26 }
 0x59d   :  { %v13318_v44 = vpop.eup %13317  ;;  %v4746_v51 = vpop.xlane.xlu0 %4745 }
 0x59e   :  { %v4814_v19 = vmul.f32 %v13318_v44, %v16277_v32  ;;  %v13320_v59 = vpop.eup %13319 }
 0x59f   :  { %6151 = vmatpush1.bf16.msra.mxu1 %v12744_v35  ;;  %v4815_v33 = vmul.f32 %v13320_v59, %v16272_v54  ;;  %v12762_v54 = vld [vmem:[%s18452_s4 + $0x1c8] ss:$16 sps:$4 sm:$0xff]  }
 0x5a0   :  { %v4837_v5 = vpack.c.bf16 %v4814_v19, %v4813_v63  ;;  %6152 = vmatprep.subr.bf16.mxu1 %v12752_v29 }
 0x5a1   :  { %v13322_v22 = vpop.eup %13321 }
 0x5a2   :  { %12199 = vmatprep.mubr.bf16.mxu1 %v4837_v5  ;;  %v4744_v43 = vpop.xlane.xlu1 %4743  ;;  %v4816_v32 = vmul.f32 %v13322_v22, %v16284_v62  ;;  %v12770_v62 = vld [vmem:[%s18452_s4 + $0x1ec] ss:$16 sps:$4 sm:$0xff]  }
 0x5a3   :  { %13325 = vrcp.f32 %v4744_v43  ;;  %6153 = vmatpush1.bf16.msra.mxu1 %v12750_v23 }
 0x5a4   :  { %v4838_v60 = vpack.c.bf16 %v4816_v32, %v4815_v33  ;;  %13327 = vrcp.f32 %v4746_v51  ;;  %6154 = vmatprep.subr.bf16.mxu1 %v12758_v36  ;;  %v13324_v13 = vpop.eup %13323 }
 0x5a5   :  { %v4817_v47 = vmul.f32 %v13324_v13, %v16293_v39 }
 0x5a6   :  { %12200 = vmatmul.mubr.bf16.gmra.mrb[112].mxu1 %v4838_v60  ;;  %v4748_v37 = vpop.xlane.xlu1 %4747 }
 0x5a7   :  { %13329 = vrcp.f32 %v4748_v37  ;;  %6155 = vmatpush1.bf16.msra.mxu1 %v12756_v21 }
 0x5a8   :  { %6156 = vmatprep.subr.bf16.mxu1 %v12764_v17 }
 0x5a9   :  { %v4750_v18 = vpop.xlane.xlu0 %4749 }
 0x5aa   :  { %13331 = vrcp.f32 %v4750_v18 }
 0x5ab   :  { %6157 = vmatpush1.bf16.msra.mxu1 %v12762_v54 }
 0x5ac   :  { %6158 = vmatprep.subr.bf16.mxu1 %v12770_v62 }
 0x5ad   :  { %v13326_v56 = vpop.eup %13325  ;;  %v4754_v8 = vpop.xlane.xlu0 %4753 }
 0x5ae   :  { %v4818_v15 = vmul.f32 %v13326_v56, %v16306_v49  ;;  %v13328_v48 = vpop.eup %13327 }
 0x5af   :  { %6159 = vmatpush1.bf16.msra.mxu1 %v12768_v50  ;;  %v4819_v14 = vmul.f32 %v13328_v48, %v16300_v10 }
 0x5b0   :  { %v4839_v31 = vpack.c.bf16 %v4818_v15, %v4817_v47  ;;  %6241 = vmatprep.subr.bf16.mxu1 %v12776_v16 }
 0x5b1   :  { %v13330_v24 = vpop.eup %13329 }
 0x5b2   :  { %12203 = vmatprep.mubr.bf16.mxu1 %v4839_v31  ;;  %v4752_v61 = vpop.xlane.xlu1 %4751  ;;  %v4820_v40 = vmul.f32 %v13330_v24, %v16312_v34 }
 0x5b3   :  { %13333 = vrcp.f32 %v4752_v61  ;;  %v12779_v61 = vld [vmem:[%s18452_s4 + $0x224] ss:$16 sps:$4 sm:$0xff]  }
 0x5b4   :  { %v4840_v1 = vpack.c.bf16 %v4820_v40, %v4819_v14  ;;  %13335 = vrcp.f32 %v4754_v8  ;;  %v13332_v49 = vpop.eup %13331  ;;  %v12782_v14 = vld [vmem:[%s18452_s4 + $0x22c] ss:$16 sps:$4 sm:$0xff]   ;;  %v12777_v40 = vld [vmem:[%s18452_s4 + $0x220] ss:$16 sps:$4 sm:$0xff]   ;;  %v12780_v8 = vld [vmem:[%s18452_s4 + $0x228] ss:$16 sps:$4 sm:$0xff]  }
 0x5b5   :  { %v4821_v10 = vmul.f32 %v13332_v49, %v16322_v12 }
 0x5b6   :  { %12204 = vmatmul.mubr.bf16.gmra.mrb[116].mxu1 %v4840_v1  ;;  %v4756_v52 = vpop.xlane.xlu1 %4755  ;;  %v4758_v39 = vpop.xlane.xlu0 %4757 }
 0x5b7   :  { %13337 = vrcp.f32 %v4756_v52  ;;  %v12785_v52 = vld [vmem:[%s18452_s4 + $0x244] ss:$16 sps:$4 sm:$0xff]  }
 0x5b8   :  { %13339 = vrcp.f32 %v4758_v39  ;;  %v12788_v39 = vld [vmem:[%s18452_s4 + $0x24c] ss:$16 sps:$4 sm:$0xff]  }
 0x5bd   :  { %v13334_v7 = vpop.eup %13333 }
 0x5be   :  { %v4760_v28 = vpop.xlane.xlu1 %4759  ;;  %v4822_v34 = vmul.f32 %v13334_v7, %v16330_v25  ;;  %v13336_v30 = vpop.eup %13335 }
 0x5bf   :  { %13341 = vrcp.f32 %v4760_v28  ;;  %v4823_v57 = vmul.f32 %v13336_v30, %v16326_v4  ;;  %v12791_v30 = vld [vmem:[%s18452_s4 + $0x264] ss:$16 sps:$4 sm:$0xff]  }
 0x5c0   :  { %v4841_v9 = vpack.c.bf16 %v4822_v34, %v4821_v10  ;;  %v12783_v10 = vld [vmem:[%s18452_s4 + $0x240] ss:$16 sps:$4 sm:$0xff]   ;;  %v12786_v34 = vld [vmem:[%s18452_s4 + $0x248] ss:$16 sps:$4 sm:$0xff]  }
 0x5c1   :  { %v13338_v55 = vpop.eup %13337 }
 0x5c2   :  { %12207 = vmatprep.mubr.bf16.mxu1 %v4841_v9  ;;  %v4824_v38 = vmul.f32 %v13338_v55, %v16332_v27  ;;  %v13340_v3 = vpop.eup %13339  ;;  %v12794_v9 = vld [vmem:[%s18452_s4 + $0x26c] ss:$16 sps:$4 sm:$0xff]   ;;  %v12789_v55 = vld [vmem:[%s18452_s4 + $0x260] ss:$16 sps:$4 sm:$0xff]  }
 0x5c3   :  { %v4825_v25 = vmul.f32 %v13340_v3, %v16335_v41  ;;  %v12795_v3 = vld [vmem:[%s18452_s4 + $0x280] ss:$16 sps:$4 sm:$0xff]  }
 0x5c4   :  { %v4842_v6 = vpack.c.bf16 %v4824_v38, %v4823_v57  ;;  %v12792_v57 = vld [vmem:[%s18452_s4 + $0x268] ss:$16 sps:$4 sm:$0xff]   ;;  %v12797_v38 = vld [vmem:[%s18452_s4 + $0x284] ss:$16 sps:$4 sm:$0xff]  }
 0x5c6   :  { %12208 = vmatmul.mubr.bf16.gmra.mrb[120].mxu1 %v4842_v6  ;;  %v12800_v6 = vld [vmem:[%s18452_s4 + $0x28c] ss:$16 sps:$4 sm:$0xff]  }
 0x5c9   :  { %v13342_v12 = vpop.eup %13341 }
 0x5ca   :  { %v4826_v11 = vmul.f32 %v13342_v12, %v16343_v45  ;;  %v12798_v12 = vld [vmem:[%s18452_s4 + $0x288] ss:$16 sps:$4 sm:$0xff]  }
 0x5cc   :  { %v4843_v53 = vpack.c.bf16 %v4826_v11, %v4825_v25  ;;  %v12803_v25 = vld [vmem:[%s18452_s4 + $0x2a4] ss:$16 sps:$4 sm:$0xff]   ;;  %v12806_v11 = vld [vmem:[%s18452_s4 + $0x2ac] ss:$16 sps:$4 sm:$0xff]  }
 0x5ce   :  { %12211 = vmatprep.mubr.bf16.mxu1 %v4843_v53  ;;  %v12801_v53 = vld [vmem:[%s18452_s4 + $0x2a0] ss:$16 sps:$4 sm:$0xff]  }
 0x5d1   :  { %v12089_v2 = vpop.f32.mrb[64].mxu1 }
 0x5d2   :  { %v3885_v26 = vpop.f32.mrb[65].mxu1 }
 0x5d3   :  { %v12090_v20 = vpop.f32.mrb[66].mxu1 }
 0x5d4   :  { %v16598_v42 = vpack.c.bf16 %v12090_v20, %v12089_v2  ;;  %v3888_v35 = vpop.f32.mrb[67].mxu1  ;;  %v12804_v2 = vld [vmem:[%s18452_s4 + $0x2a8] ss:$16 sps:$4 sm:$0xff]   ;;  %v12809_v20 = vld [vmem:[%s18452_s4 + $0x2c4] ss:$16 sps:$4 sm:$0xff]  }
 0x5d5   :  { %v5102_v44 = vpack.c.bf16 %v3888_v35, %v3885_v26 }
 0x5e2   :  { %v12093_v4 = vpop.f32.mrb[68].mxu1 }
 0x5e3   :  { %v3901_v29 = vpop.f32.mrb[69].mxu1 }
 0x5e4   :  { %v12094_v27 = vpop.f32.mrb[70].mxu1 }
 0x5e5   :  { %v16600_v63 = vpack.c.bf16 %v12094_v27, %v12093_v4  ;;  %v3904_v19 = vpop.f32.mrb[71].mxu1  ;;  %v12807_v27 = vld [vmem:[%s18452_s4 + $0x2c0] ss:$16 sps:$4 sm:$0xff]  }
 0x5e6   :  { %v16602_v59 = vpack.c.bf16 %v3904_v19, %v3901_v29  ;;  %v12810_v19 = vld [vmem:[%s18452_s4 + $0x2c8] ss:$16 sps:$4 sm:$0xff]  }
 0x5f1   :  { %v4762_v5 = vpop.xlane.xlu0 %4761 }
 0x5f2   :  { %v12097_v41 = vpop.f32.mrb[72].mxu1  ;;  %13343 = vrcp.f32 %v4762_v5  ;;  %v12818_v5 = vld [vmem:[%s18452_s4 + $0x2ec] ss:$16 sps:$4 sm:$0xff]  }
 0x5f3   :  { %v3917_v45 = vpop.f32.mrb[73].mxu1  ;;  %v4764_v22 = vpop.xlane.xlu1 %4763 }
 0x5f4   :  { %v12098_v23 = vpop.f32.mrb[74].mxu1  ;;  %13345 = vrcp.f32 %v4764_v22  ;;  %v12821_v22 = vld [vmem:[%s18452_s4 + $0x304] ss:$16 sps:$4 sm:$0xff]  }
 0x5f5   :  { %v16604_v36 = vpack.c.bf16 %v12098_v23, %v12097_v41  ;;  %v3920_v51 = vpop.f32.mrb[75].mxu1  ;;  %v12815_v41 = vld [vmem:[%s18452_s4 + $0x2e4] ss:$16 sps:$4 sm:$0xff]   ;;  %v12816_v23 = vld [vmem:[%s18452_s4 + $0x2e8] ss:$16 sps:$4 sm:$0xff]  }
 0x5f6   :  { %v16606_v43 = vpack.c.bf16 %v3920_v51, %v3917_v45  ;;  %v12813_v45 = vld [vmem:[%s18452_s4 + $0x2e0] ss:$16 sps:$4 sm:$0xff]  }
 0x5f7   :  { %v12819_v51 = vld [vmem:[%s18452_s4 + $0x300] ss:$16 sps:$4 sm:$0xff]  }
 0x5fc   :  { %v13344_v33 = vpop.eup %13343 }
 0x5fd   :  { %v4827_v60 = vmul.f32 %v13344_v33, %v16391_v46  ;;  %v12771_v46 = vld [vmem:[%s18452_s4 + $0x200] ss:$16 sps:$4 sm:$0xff]   ;;  %v12822_v33 = vld [vmem:[%s18452_s4 + $0x308] ss:$16 sps:$4 sm:$0xff]  }
 0x5fe   :  { %v13346_v32 = vpop.eup %13345 }
 0x5ff   :  { %v4828_v21 = vmul.f32 %v13346_v32, %v16394_v58  ;;  %v12774_v58 = vld [vmem:[%s18452_s4 + $0x208] ss:$16 sps:$4 sm:$0xff]   ;;  %v12827_v32 = vld [vmem:[%s18452_s4 + $0x324] ss:$16 sps:$4 sm:$0xff]  }
 0x601   :  { %v4844_v17 = vpack.c.bf16 %v4828_v21, %v4827_v60  ;;  %v12830_v60 = vld [vmem:[%s18452_s4 + $0x32c] ss:$16 sps:$4 sm:$0xff]   ;;  %v12825_v21 = vld [vmem:[%s18452_s4 + $0x320] ss:$16 sps:$4 sm:$0xff]  }
 0x603   :  { %v12101_v37 = vpop.f32.mrb[76].mxu1  ;;  %12212 = vmatmul.mubr.bf16.gmra.mrb[124].mxu1 %v4844_v17  ;;  %v12828_v17 = vld [vmem:[%s18452_s4 + $0x328] ss:$16 sps:$4 sm:$0xff]  }
 0x604   :  { %v3933_v54 = vpop.f32.mrb[77].mxu1 }
 0x605   :  { %v12102_v62 = vpop.f32.mrb[78].mxu1 }
 0x606   :  { %v16610_v13 = vpack.c.bf16 %v12102_v62, %v12101_v37  ;;  %v3936_v50 = vpop.f32.mrb[79].mxu1 }
 0x607   :  { %v16612_v56 = vpack.c.bf16 %v3936_v50, %v3933_v54  ;;  %v12833_v54 = vld [vmem:[%s18452_s4 + $0x344] ss:$16 sps:$4 sm:$0xff]  }
 0x60d   :  { %v12105_v18 = vpop.f32.mrb[80].mxu1 }
 0x60e   :  { %v3949_v47 = vpop.f32.mrb[81].mxu1 }
 0x60f   :  { %v12106_v15 = vpop.f32.mrb[82].mxu1 }
 0x610   :  { %v5107_v48 = vpack.c.bf16 %v12106_v15, %v12105_v18  ;;  %v3952_v31 = vpop.f32.mrb[83].mxu1  ;;  %v12831_v15 = vld [vmem:[%s18452_s4 + $0x340] ss:$16 sps:$4 sm:$0xff]  }
 0x611   :  { %v5103_v24 = vpack.c.bf16 %v3952_v31, %v3949_v47 }
 0x613   :  { %5934 = vmatprep.mubr.bf16.mxu0 %v5103_v24  ;;  %6160 = vmatprep.mubr.bf16.mxu1 %v5103_v24  ;;  %v12839_v24 = vld [vmem:[%s18452_s4 + $0x364] ss:$16 sps:$4 sm:$0xff]  }
 0x614   :  { %5935 = vmatmul.mubr.bf16.vlgmr.msra.gmra.mrb[128].mxu0 %v5102_v44  ;;  %6161 = vmatmul.mubr.bf16.vlgmr.msra.gmra.mrb[128].mxu1 %v5102_v44 }
 0x615   :  { %5944 = vmatprep.mubr.bf16.mxu0 %v5107_v48  ;;  %6170 = vmatprep.mubr.bf16.mxu1 %v5107_v48  ;;  %v12834_v48 = vld [vmem:[%s18452_s4 + $0x348] ss:$16 sps:$4 sm:$0xff]  }
 0x616   :  { %6016 = vmatpush1.bf16.msra.mxu0 %v12771_v46  ;;  %6242 = vmatpush1.bf16.msra.mxu1 %v12774_v58  ;;  %v12109_v1 = vpop.f32.mrb[84].mxu1  ;;  %v12842_v46 = vld [vmem:[%s18452_s4 + $0x36c] ss:$16 sps:$4 sm:$0xff]   ;;  %v12837_v58 = vld [vmem:[%s18452_s4 + $0x360] ss:$16 sps:$4 sm:$0xff]  }
 0x617   :  { %6017 = vmatprep.subr.bf16.mxu0 %v12779_v61  ;;  %6243 = vmatprep.subr.bf16.mxu1 %v12782_v14  ;;  %v3965_v49 = vpop.f32.mrb[85].mxu1  ;;  %v12840_v61 = vld [vmem:[%s18452_s4 + $0x368] ss:$16 sps:$4 sm:$0xff]   ;;  %v12845_v14 = vld [vmem:[%s18452_s4 + $0x384] ss:$16 sps:$4 sm:$0xff]  }
 0x618   :  { %v12110_v7 = vpop.f32.mrb[86].mxu1 }
 0x619   :  { %v5115_v0 = vpack.c.bf16 %v12110_v7, %v12109_v1  ;;  %v3968_v28 = vpop.f32.mrb[87].mxu1  ;;  %v12851_v1 = vld [vmem:[%s18452_s4 + $0x3a4] ss:$16 sps:$4 sm:$0xff]   ;;  %v12852_v7 = vld [vmem:[%s18452_s4 + $0x3a8] ss:$16 sps:$4 sm:$0xff]  }
 0x61a   :  { %6018 = vmatpush1.bf16.msra.mxu0 %v12777_v40  ;;  %6244 = vmatpush1.bf16.msra.mxu1 %v12780_v8  ;;  %v5111_v16 = vpack.c.bf16 %v3968_v28, %v3965_v49  ;;  %v12843_v40 = vld [vmem:[%s18452_s4 + $0x380] ss:$16 sps:$4 sm:$0xff]   ;;  %v12846_v8 = vld [vmem:[%s18452_s4 + $0x388] ss:$16 sps:$4 sm:$0xff]   ;;  %v12860_v28 = vld [vmem:[%s18452_s4 + $0x3cc] ss:$16 sps:$4 sm:$0xff]  }
 0x61b   :  { %6019 = vmatprep.subr.bf16.mxu0 %v12785_v52  ;;  %6245 = vmatprep.subr.bf16.mxu1 %v12788_v39  ;;  %v12854_v52 = vld [vmem:[%s18452_s4 + $0x3ac] ss:$16 sps:$4 sm:$0xff]   ;;  %v12849_v49 = vld [vmem:[%s18452_s4 + $0x3a0] ss:$16 sps:$4 sm:$0xff]  }
 0x61c   :  { %5945 = vmatmul.mubr.bf16.gmra.mrb[132].mxu0 %v16598_v42  ;;  %6171 = vmatmul.mubr.bf16.gmra.mrb[132].mxu1 %v16598_v42  ;;  %v12812_v42 = vld [vmem:[%s18452_s4 + $0x2cc] ss:$16 sps:$4 sm:$0xff]  }
 0x61d   :  { %5954 = vmatprep.mubr.bf16.mxu0 %v5111_v16  ;;  %6180 = vmatprep.mubr.bf16.mxu1 %v5111_v16 }
 0x61e   :  { %6020 = vmatpush1.bf16.msra.mxu0 %v12783_v10  ;;  %6246 = vmatpush1.bf16.msra.mxu1 %v12786_v34 }
 0x61f   :  { %6021 = vmatprep.subr.bf16.mxu0 %v12791_v30  ;;  %6247 = vmatprep.subr.bf16.mxu1 %v12794_v9  ;;  %v12855_v9 = vld [vmem:[%s18452_s4 + $0x3c0] ss:$16 sps:$4 sm:$0xff]  }
 0x622   :  { %6022 = vmatpush1.bf16.msra.mxu0 %v12789_v55  ;;  %6248 = vmatpush1.bf16.msra.mxu1 %v12792_v57  ;;  %v12858_v55 = vld [vmem:[%s18452_s4 + $0x3c8] ss:$16 sps:$4 sm:$0xff]   ;;  %v12863_v57 = vld [vmem:[%s18452_s4 + $0x3e4] ss:$16 sps:$4 sm:$0xff]  }
 0x623   :  { %6023 = vmatprep.subr.bf16.mxu0 %v12797_v38  ;;  %6249 = vmatprep.subr.bf16.mxu1 %v12800_v6  ;;  %v12866_v38 = vld [vmem:[%s18452_s4 + $0x3ec] ss:$16 sps:$4 sm:$0xff]  }
 0x624   :  { %5955 = vmatmul.mubr.bf16.gmra.mrb[136].mxu0 %v16602_v59  ;;  %6181 = vmatmul.mubr.bf16.gmra.mrb[136].mxu1 %v16602_v59 }
 0x625   :  { %5964 = vmatprep.mubr.bf16.mxu0 %v5115_v0  ;;  %6190 = vmatprep.mubr.bf16.mxu1 %v5115_v0 }
 0x626   :  { %6024 = vmatpush1.bf16.msra.mxu0 %v12795_v3  ;;  %6250 = vmatpush1.bf16.msra.mxu1 %v12798_v12  ;;  %v12113_v26 = vpop.f32.mrb[88].mxu1  ;;  %v12861_v3 = vld [vmem:[%s18452_s4 + $0x3e0] ss:$16 sps:$4 sm:$0xff]   ;;  %v12864_v12 = vld [vmem:[%s18452_s4 + $0x3e8] ss:$16 sps:$4 sm:$0xff]  }
 0x627   :  { %6025 = vmatprep.subr.bf16.mxu0 %v12803_v25  ;;  %6251 = vmatprep.subr.bf16.mxu1 %v12806_v11  ;;  %v3981_v35 = vpop.f32.mrb[89].mxu1 }
 0x628   :  { %v12114_v44 = vpop.f32.mrb[90].mxu1 }
 0x629   :  { %v5123_v4 = vpack.c.bf16 %v12114_v44, %v12113_v26  ;;  %v3984_v29 = vpop.f32.mrb[91].mxu1 }
 0x62a   :  { %6026 = vmatpush1.bf16.msra.mxu0 %v12801_v53  ;;  %6252 = vmatpush1.bf16.msra.mxu1 %v12804_v2  ;;  %v5119_v59 = vpack.c.bf16 %v3984_v29, %v3981_v35 }
 0x62b   :  { %6027 = vmatprep.subr.bf16.mxu0 %v12809_v20  ;;  %6253 = vmatprep.subr.bf16.mxu1 %v12812_v42 }
 0x62c   :  { %5965 = vmatmul.mubr.bf16.gmra.mrb[140].mxu0 %v16600_v63  ;;  %6191 = vmatmul.mubr.bf16.gmra.mrb[140].mxu1 %v16600_v63  ;;  %v12824_v63 = vld [vmem:[%s18452_s4 + $0x30c] ss:$16 sps:$4 sm:$0xff]  }
 0x62d   :  { %5974 = vmatprep.mubr.bf16.mxu0 %v5119_v59  ;;  %6200 = vmatprep.mubr.bf16.mxu1 %v5119_v59 }
 0x62e   :  { %6028 = vmatpush1.bf16.msra.mxu0 %v12807_v27  ;;  %6254 = vmatpush1.bf16.msra.mxu1 %v12810_v19 }
 0x62f   :  { %6029 = vmatprep.subr.bf16.mxu0 %v12815_v41  ;;  %6255 = vmatprep.subr.bf16.mxu1 %v12818_v5 }
 0x632   :  { %6030 = vmatpush1.bf16.msra.mxu0 %v12813_v45  ;;  %6256 = vmatpush1.bf16.msra.mxu1 %v12816_v23 }
 0x633   :  { %6031 = vmatprep.subr.bf16.mxu0 %v12821_v22  ;;  %6257 = vmatprep.subr.bf16.mxu1 %v12824_v63 }
 0x634   :  { %5975 = vmatmul.mubr.bf16.gmra.mrb[144].mxu0 %v16606_v43  ;;  %6201 = vmatmul.mubr.bf16.gmra.mrb[144].mxu1 %v16606_v43  ;;  %v12836_v43 = vld [vmem:[%s18452_s4 + $0x34c] ss:$16 sps:$4 sm:$0xff]  }
 0x635   :  { %5984 = vmatprep.mubr.bf16.mxu0 %v5123_v4  ;;  %6210 = vmatprep.mubr.bf16.mxu1 %v5123_v4 }
 0x636   :  { %6032 = vmatpush1.bf16.msra.mxu0 %v12819_v51  ;;  %6258 = vmatpush1.bf16.msra.mxu1 %v12822_v33  ;;  %v12117_v37 = vpop.f32.mrb[92].mxu1 }
 0x637   :  { %6033 = vmatprep.subr.bf16.mxu0 %v12827_v32  ;;  %6259 = vmatprep.subr.bf16.mxu1 %v12830_v60  ;;  %v3997_v62 = vpop.f32.mrb[93].mxu1 }
 0x638   :  { %v12118_v50 = vpop.f32.mrb[94].mxu1 }
 0x639   :  { %v5131_v18 = vpack.c.bf16 %v12118_v50, %v12117_v37  ;;  %v4000_v47 = vpop.f32.mrb[95].mxu1 }
 0x63a   :  { %6034 = vmatpush1.bf16.msra.mxu0 %v12825_v21  ;;  %6260 = vmatpush1.bf16.msra.mxu1 %v12828_v17  ;;  %v5127_v31 = vpack.c.bf16 %v4000_v47, %v3997_v62 }
 0x63b   :  { %6035 = vmatprep.subr.bf16.mxu0 %v12833_v54  ;;  %6261 = vmatprep.subr.bf16.mxu1 %v12836_v43 }
 0x63c   :  { %5985 = vmatmul.mubr.bf16.gmra.mrb[148].mxu0 %v16604_v36  ;;  %6211 = vmatmul.mubr.bf16.gmra.mrb[148].mxu1 %v16604_v36  ;;  %v12848_v36 = vld [vmem:[%s18452_s4 + $0x38c] ss:$16 sps:$4 sm:$0xff]  }
 0x63d   :  { %5994 = vmatprep.mubr.bf16.mxu0 %v5127_v31  ;;  %6220 = vmatprep.mubr.bf16.mxu1 %v5127_v31 }
 0x63e   :  { %6036 = vmatpush1.bf16.msra.mxu0 %v12831_v15  ;;  %6262 = vmatpush1.bf16.msra.mxu1 %v12834_v48 }
 0x63f   :  { %6037 = vmatprep.subr.bf16.mxu0 %v12839_v24  ;;  %6263 = vmatprep.subr.bf16.mxu1 %v12842_v46 }
 0x642   :  { %6038 = vmatpush1.bf16.msra.mxu0 %v12837_v58  ;;  %6264 = vmatpush1.bf16.msra.mxu1 %v12840_v61 }
 0x643   :  { %6039 = vmatprep.subr.bf16.mxu0 %v12845_v14  ;;  %6265 = vmatprep.subr.bf16.mxu1 %v12848_v36  ;;  %v6791_v14 = vld [vmem:[#allocation8] sm:$0xff] }
 0x644   :  { %5995 = vmatmul.mubr.bf16.gmra.mrb[152].mxu0 %v16612_v56  ;;  %6221 = vmatmul.mubr.bf16.gmra.mrb[152].mxu1 %v16612_v56  ;;  %v12857_v56 = vld [vmem:[%s18452_s4 + $0x3c4] ss:$16 sps:$4 sm:$0xff]  }
 0x645   :  { %6004 = vmatprep.mubr.bf16.mxu0 %v5131_v18  ;;  %6230 = vmatprep.mubr.bf16.mxu1 %v5131_v18  ;;  %v12185_v39 = vpop.f32.mrb[96].mxu1  ;;  %v6795_v36 = vld [vmem:[#allocation8 + $0x20] sm:$0xff] }
 0x646   :  { %6040 = vmatpush1.bf16.msra.mxu0 %v12843_v40  ;;  %6266 = vmatpush1.bf16.msra.mxu1 %v12846_v8  ;;  %v4879_v0 = vpop.f32.mrb[97].mxu1  ;;  %v6792_v40 = vld [vmem:[#allocation8 + $0x8] sm:$0xff]  ;;  %v11479_v8 = vcombine.low %v6791_v14, %v6795_v36 }
 0x647   :  { %6041 = vmatprep.subr.bf16.mxu0 %v12851_v1  ;;  %6267 = vmatprep.subr.bf16.mxu1 %v12854_v52  ;;  %v12186_v10 = vpop.f32.mrb[98].mxu1  ;;  %v11480_v1 = vcombine.high %v6791_v14, %v6795_v36  ;;  %v6796_v52 = vld [vmem:[#allocation8 + $0x28] sm:$0xff]  ;;  %v13716_v36 = vld [vmem:[#allocation3 + $0x30] sm:$0xff] }
 0x648   :  { %v5108_v34 = vpack.c.bf16 %v12186_v10, %v12185_v39  ;;  %v4882_v16 = vpop.f32.mrb[99].mxu1  ;;  %v11481_v39 = vcombine.low %v6792_v40, %v6796_v52 }
 0x649   :  { %v5104_v30 = vpack.c.bf16 %v4882_v16, %v4879_v0  ;;  %v6803_v0 = vld [vmem:[#allocation8 + $0x60] sm:$0xff] }
 0x64a   :  { %6042 = vmatpush1.bf16.msra.mxu0 %v12849_v49  ;;  %6268 = vmatpush1.bf16.msra.mxu1 %v12852_v7  ;;  %v11482_v49 = vcombine.high %v6792_v40, %v6796_v52  ;;  %v6799_v7 = vld [vmem:[#allocation8 + $0x40] sm:$0xff]  ;;  %v16850_v52 = vld [vmem:[#allocation8 + $0x188] sm:$0xff] }
 0x64b   :  { %6043 = vmatprep.subr.bf16.mxu0 %v12857_v56  ;;  %6269 = vmatprep.subr.bf16.mxu1 %v12860_v28  ;;  %v6800_v56 = vld [vmem:[#allocation8 + $0x48] sm:$0xff]  ;;  %v11487_v28 = vcombine.low %v6799_v7, %v6803_v0  ;;  %v11488_v10 = vcombine.high %v6799_v7, %v6803_v0  ;;  %v6807_v16 = vld [vmem:[#allocation8 + $0x80] sm:$0xff] }
 0x64c   :  { %6005 = vmatmul.mubr.bf16.gmra.mrb[156].mxu0 %v16610_v13  ;;  %6231 = vmatmul.mubr.bf16.gmra.mrb[156].mxu1 %v16610_v13  ;;  %v13717_v7 = vld [vmem:[#allocation3 + $0x28] sm:$0xff] }
 0x64d   :  { %v12189_v6 = vpop.f32.mrb[100].mxu1 }
 0x64e   :  { %6044 = vmatpush1.bf16.msra.mxu0 %v12855_v9  ;;  %6270 = vmatpush1.bf16.msra.mxu1 %v12858_v55  ;;  %v4895_v25 = vpop.f32.mrb[101].mxu1 }
 0x64f   :  { %6045 = vmatprep.subr.bf16.mxu0 %v12863_v57  ;;  %6271 = vmatprep.subr.bf16.mxu1 %v12866_v38  ;;  %v12190_v11 = vpop.f32.mrb[102].mxu1  ;;  %v6808_v38 = vld [vmem:[#allocation8 + $0x88] sm:$0xff] }
 0x650   :  { %v5116_v53 = vpack.c.bf16 %v12190_v11, %v12189_v6  ;;  %v4898_v2 = vpop.f32.mrb[103].mxu1  ;;  %v6812_v6 = vld [vmem:[#allocation8 + $0xa8] sm:$0xff] }
 0x651   :  { %v5112_v26 = vpack.c.bf16 %v4898_v2, %v4895_v25  ;;  %v6819_v25 = vld [vmem:[#allocation8 + $0xe0] sm:$0xff]  ;;  %v6816_v11 = vld [vmem:[#allocation8 + $0xc8] sm:$0xff] }
 0x652   :  { %6046 = vmatpush1.bf16.msra.mxu0 %v12861_v3  ;;  %6272 = vmatpush1.bf16.msra.mxu1 %v12864_v12  ;;  %v6815_v3 = vld [vmem:[#allocation8 + $0xc0] sm:$0xff]  ;;  %v11498_v12 = vcombine.high %v6808_v38, %v6812_v6 }
 0x653   :  { %8327 = vmatprep.subr.bf16.mxu0 %v11480_v1  ;;  %8553 = vmatprep.subr.bf16.mxu1 %v11482_v49 }
 0x655   :  { %v12193_v13 = vpop.f32.mrb[104].mxu1 }
 0x656   :  { %v4911_v20 = vpop.f32.mrb[105].mxu1 }
 0x657   :  { %v12194_v42 = vpop.f32.mrb[106].mxu1 }
 0x658   :  { %v5124_v35 = vpack.c.bf16 %v12194_v42, %v12193_v13  ;;  %v4914_v44 = vpop.f32.mrb[107].mxu1  ;;  %v11504_v13 = vcombine.high %v6815_v3, %v6819_v25  ;;  %v6823_v42 = vld [vmem:[#allocation8 + $0x100] sm:$0xff] }
 0x659   :  { %v5120_v4 = vpack.c.bf16 %v4914_v44, %v4911_v20  ;;  %v16814_v44 = vld [vmem:[#allocation8 + $0x108] sm:$0xff] }
 0x65d   :  { %v12197_v29 = vpop.f32.mrb[108].mxu1 }
 0x65e   :  { %v4927_v27 = vpop.f32.mrb[109].mxu1 }
 0x65f   :  { %v12198_v19 = vpop.f32.mrb[110].mxu1 }
 0x660   :  { %v5132_v59 = vpack.c.bf16 %v12198_v19, %v12197_v29  ;;  %v4930_v41 = vpop.f32.mrb[111].mxu1  ;;  %v11503_v29 = vcombine.low %v6815_v3, %v6819_v25  ;;  %v16886_v25 = vld [vmem:[#allocation8 + $0x1e8] sm:$0xff] }
 0x661   :  { %v5128_v5 = vpack.c.bf16 %v4930_v41, %v4927_v27  ;;  %v16817_v41 = vld [vmem:[#allocation8 + $0x140] sm:$0xff] }
 0x679   :  { %v12201_v45 = vpop.f32.mrb[112].mxu1 }
 0x67a   :  { %v4943_v23 = vpop.f32.mrb[113].mxu1 }
 0x67b   :  { %v12202_v22 = vpop.f32.mrb[114].mxu1 }
 0x67c   :  { %v5109_v63 = vpack.c.bf16 %v12202_v22, %v12201_v45  ;;  %v4946_v51 = vpop.f32.mrb[115].mxu1  ;;  %v16821_v45 = vld [vmem:[#allocation8 + $0x148] sm:$0xff] }
 0x67d   :  { %v5105_v33 = vpack.c.bf16 %v4946_v51, %v4943_v23  ;;  %v16823_v23 = vld [vmem:[#allocation8 + $0x168] sm:$0xff] }
 0x67f   :  { %6047 = vmatprep.mubr.bf16.mxu0 %v5105_v33  ;;  %6273 = vmatprep.mubr.bf16.mxu1 %v5105_v33 }
 0x680   :  { %6048 = vmatmul.mubr.bf16.vlgmr.msra.gmra.mrb[128].mxu0 %v5104_v30  ;;  %6274 = vmatmul.mubr.bf16.vlgmr.msra.gmra.mrb[128].mxu1 %v5104_v30  ;;  %v6811_v30 = vld [vmem:[#allocation8 + $0xa0] sm:$0xff] }
 0x681   :  { %6057 = vmatprep.mubr.bf16.mxu0 %v5109_v63  ;;  %6283 = vmatprep.mubr.bf16.mxu1 %v5109_v63  ;;  %v11496_v57 = vcombine.high %v6807_v16, %v6811_v30  ;;  %v11495_v2 = vcombine.low %v6807_v16, %v6811_v30  ;;  %v16866_v16 = vld [vmem:[#allocation8 + $0x1e0] sm:$0xff] }
 0x682   :  { %8328 = vmatpush1.bf16.msra.mxu0 %v11479_v8  ;;  %8554 = vmatpush1.bf16.msra.mxu1 %v11481_v39  ;;  %v16852_v39 = vld [vmem:[#allocation8 + $0x1a8] sm:$0xff] }
 0x683   :  { %8329 = vmatprep.subr.bf16.mxu0 %v11488_v10  ;;  %v11530_v3 = vcombine.high %v16850_v52, %v16852_v39 }
 0x686   :  { %8330 = vmatpush1.bf16.msra.mxu0 %v11487_v28 }
 0x687   :  { %8331 = vmatprep.subr.bf16.mxu0 %v11496_v57 }
 0x688   :  { %6058 = vmatmul.mubr.bf16.gmra.mrb[132].mxu0 %v5108_v34  ;;  %6284 = vmatmul.mubr.bf16.gmra.mrb[132].mxu1 %v5108_v34  ;;  %v6804_v34 = vld [vmem:[#allocation8 + $0x68] sm:$0xff] }
 0x689   :  { %v12205_v32 = vpop.f32.mrb[116].mxu1  ;;  %v11489_v9 = vcombine.low %v6800_v56, %v6804_v34  ;;  %v11490_v55 = vcombine.high %v6800_v56, %v6804_v34  ;;  %v13718_v56 = vld [vmem:[#allocation3 + $0x38] sm:$0xff]  ;;  %v16864_v34 = vld [vmem:[#allocation8 + $0x1c0] sm:$0xff] }
 0x68a   :  { %v4959_v60 = vpop.f32.mrb[117].mxu1  ;;  %8332 = vmatpush1.bf16.msra.mxu0 %v11495_v2  ;;  %v11535_v2 = vcombine.low %v16864_v34, %v16866_v16 }
 0x68b   :  { %v12206_v21 = vpop.f32.mrb[118].mxu1  ;;  %8555 = vmatprep.subr.bf16.mxu1 %v11490_v55  ;;  %8333 = vmatprep.subr.bf16.mxu0 %v11504_v13 }
 0x68c   :  { %v5117_v17 = vpack.c.bf16 %v12206_v21, %v12205_v32  ;;  %v4962_v37 = vpop.f32.mrb[119].mxu1  ;;  %8556 = vmatpush1.bf16.msra.mxu1 %v11489_v9  ;;  %v13711_v32 = vld [vmem:[#allocation3] sm:$0xff]  ;;  %v13712_v21 = vld [vmem:[#allocation3 + $0x10] sm:$0xff]  ;;  %v11521_v9 = vcombine.low %v16821_v45, %v16823_v23 }
 0x68d   :  { %v5113_v54 = vpack.c.bf16 %v4962_v37, %v4959_v60  ;;  %8557 = vmatprep.subr.bf16.mxu1 %v11498_v12  ;;  %v16884_v12 = vld [vmem:[#allocation8 + $0x1c8] sm:$0xff] }
 0x68e   :  { %8334 = vmatpush1.bf16.msra.mxu0 %v11503_v29  ;;  %v13719_v29 = vld [vmem:[#allocation3 + $0x40] sm:$0xff] }
 0x68f   :  { %6067 = vmatprep.mubr.bf16.mxu0 %v5113_v54  ;;  %6293 = vmatprep.mubr.bf16.mxu1 %v5113_v54 }
 0x690   :  { %6068 = vmatmul.mubr.bf16.gmra.mrb[136].mxu0 %v5112_v26  ;;  %6294 = vmatmul.mubr.bf16.gmra.mrb[136].mxu1 %v5112_v26  ;;  %v11497_v26 = vcombine.low %v6808_v38, %v6812_v6 }
 0x691   :  { %6077 = vmatprep.mubr.bf16.mxu0 %v5117_v17  ;;  %6303 = vmatprep.mubr.bf16.mxu1 %v5117_v17 }
 0x692   :  { %8558 = vmatpush1.bf16.msra.mxu1 %v11497_v26  ;;  %v11536_v26 = vcombine.high %v16864_v34, %v16866_v16  ;;  %v13731_v16 = vld [vmem:[#allocation3 + $0xa0] sm:$0xff] }
 0x698   :  { %6078 = vmatmul.mubr.bf16.gmra.mrb[140].mxu0 %v5116_v53  ;;  %6304 = vmatmul.mubr.bf16.gmra.mrb[140].mxu1 %v5116_v53  ;;  %v6820_v53 = vld [vmem:[#allocation8 + $0xe8] sm:$0xff] }
 0x699   :  { %v12209_v43 = vpop.f32.mrb[120].mxu1  ;;  %v11506_v20 = vcombine.high %v6816_v11, %v6820_v53  ;;  %v11505_v27 = vcombine.low %v6816_v11, %v6820_v53  ;;  %v11529_v53 = vcombine.low %v16850_v52, %v16852_v39  ;;  %v13726_v52 = vld [vmem:[#allocation3 + $0x78] sm:$0xff] }
 0x69a   :  { %v4975_v62 = vpop.f32.mrb[121].mxu1 }
 0x69b   :  { %v12210_v50 = vpop.f32.mrb[122].mxu1  ;;  %8559 = vmatprep.subr.bf16.mxu1 %v11506_v20 }
 0x69c   :  { %v5125_v18 = vpack.c.bf16 %v12210_v50, %v12209_v43  ;;  %v4978_v47 = vpop.f32.mrb[123].mxu1  ;;  %8560 = vmatpush1.bf16.msra.mxu1 %v11505_v27 }
 0x69d   :  { %v5121_v15 = vpack.c.bf16 %v4978_v47, %v4975_v62  ;;  %v13713_v62 = vld [vmem:[#allocation3 + $0x8] sm:$0xff] }
 0x69f   :  { %6087 = vmatprep.mubr.bf16.mxu0 %v5121_v15  ;;  %6313 = vmatprep.mubr.bf16.mxu1 %v5121_v15 }
 0x6a0   :  { %6088 = vmatmul.mubr.bf16.gmra.mrb[144].mxu0 %v5120_v4  ;;  %6314 = vmatmul.mubr.bf16.gmra.mrb[144].mxu1 %v5120_v4  ;;  %v6828_v4 = vld [vmem:[#allocation8 + $0x128] sm:$0xff] }
 0x6a1   :  { %6097 = vmatprep.mubr.bf16.mxu0 %v5125_v18  ;;  %6323 = vmatprep.mubr.bf16.mxu1 %v5125_v18  ;;  %v11513_v33 = vcombine.low %v16814_v44, %v6828_v4  ;;  %v13714_v18 = vld [vmem:[#allocation3 + $0x18] sm:$0xff] }
 0x6a8   :  { %6098 = vmatmul.mubr.bf16.gmra.mrb[148].mxu0 %v5124_v35  ;;  %6324 = vmatmul.mubr.bf16.gmra.mrb[148].mxu1 %v5124_v35  ;;  %v6827_v35 = vld [vmem:[#allocation8 + $0x120] sm:$0xff] }
 0x6a9   :  { %v11512_v19 = vcombine.high %v6823_v42, %v6827_v35  ;;  %v11511_v51 = vcombine.low %v6823_v42, %v6827_v35 }
 0x6ab   :  { %8335 = vmatprep.subr.bf16.mxu0 %v11512_v19  ;;  %v13720_v19 = vld [vmem:[#allocation3 + $0x50] sm:$0xff] }
 0x6ac   :  { %8336 = vmatpush1.bf16.msra.mxu0 %v11511_v51 }
 0x6d6   :  { %v12213_v48 = vpop.f32.mrb[124].mxu1 }
 0x6d7   :  { %v4991_v31 = vpop.f32.mrb[125].mxu1 }
 0x6d8   :  { %v12214_v24 = vpop.f32.mrb[126].mxu1 }
 0x6d9   :  { %v5133_v46 = vpack.c.bf16 %v12214_v24, %v12213_v48  ;;  %v4994_v58 = vpop.f32.mrb[127].mxu1  ;;  %v16838_v24 = vld [vmem:[#allocation8 + $0x180] sm:$0xff] }
 0x6da   :  { %v5129_v61 = vpack.c.bf16 %v4994_v58, %v4991_v31  ;;  %v11522_v31 = vcombine.high %v16821_v45, %v16823_v23  ;;  %v11538_v45 = vcombine.high %v16884_v12, %v16886_v25  ;;  %v13721_v23 = vld [vmem:[#allocation3 + $0x48] sm:$0xff] }
 0x6dc   :  { %6107 = vmatprep.mubr.bf16.mxu0 %v5129_v61  ;;  %6333 = vmatprep.mubr.bf16.mxu1 %v5129_v61  ;;  %v13715_v61 = vld [vmem:[#allocation3 + $0x20] sm:$0xff] }
 0x6dd   :  { %6108 = vmatmul.mubr.bf16.gmra.mrb[152].mxu0 %v5128_v5  ;;  %6334 = vmatmul.mubr.bf16.gmra.mrb[152].mxu1 %v5128_v5  ;;  %v16819_v5 = vld [vmem:[#allocation8 + $0x160] sm:$0xff] }
 0x6de   :  { %6117 = vmatprep.mubr.bf16.mxu0 %v5133_v46  ;;  %6343 = vmatprep.mubr.bf16.mxu1 %v5133_v46  ;;  %v11520_v43 = vcombine.high %v16817_v41, %v16819_v5  ;;  %v16840_v46 = vld [vmem:[#allocation8 + $0x1a0] sm:$0xff]  ;;  %v11519_v10 = vcombine.low %v16817_v41, %v16819_v5 }
 0x6df   :  { %v11528_v55 = vcombine.high %v16838_v24, %v16840_v46  ;;  %v11527_v11 = vcombine.low %v16838_v24, %v16840_v46 }
 0x6e0   :  { %8337 = vmatprep.subr.bf16.mxu0 %v11520_v43  ;;  %v16912_v43 = vld [vmem:[#allocation8 + $0x220] sm:$0xff] }
 0x6e1   :  { %8338 = vmatpush1.bf16.msra.mxu0 %v11519_v10  ;;  %v16940_v10 = vld [vmem:[#allocation8 + $0x260] sm:$0xff] }
 0x6e2   :  { %8339 = vmatprep.subr.bf16.mxu0 %v11528_v55 }
 0x6e5   :  { %6118 = vmatmul.mubr.bf16.gmra.mrb[156].mxu0 %v5132_v59  ;;  %6344 = vmatmul.mubr.bf16.gmra.mrb[156].mxu1 %v5132_v59  ;;  %v11514_v59 = vcombine.high %v16814_v44, %v6828_v4 }
 0x6e6   :  { %8340 = vmatpush1.bf16.msra.mxu0 %v11527_v11 }
 0x6e7   :  { %8561 = vmatprep.subr.bf16.mxu1 %v11514_v59  ;;  %8341 = vmatprep.subr.bf16.mxu0 %v11536_v26 }
 0x6e8   :  { %8562 = vmatpush1.bf16.msra.mxu1 %v11513_v33 }
 0x6e9   :  { %8563 = vmatprep.subr.bf16.mxu1 %v11522_v31  ;;  %v13724_v31 = vld [vmem:[#allocation3 + $0x70] sm:$0xff] }
 0x6ea   :  { %8342 = vmatpush1.bf16.msra.mxu0 %v11535_v2 }
 0x6ec   :  { %8564 = vmatpush1.bf16.msra.mxu1 %v11521_v9 }
 0x6ed   :  { %8565 = vmatprep.subr.bf16.mxu1 %v11530_v3  ;;  %v16954_v3 = vld [vmem:[#allocation8 + $0x248] sm:$0xff] }
 0x6f0   :  { %8566 = vmatpush1.bf16.msra.mxu1 %v11529_v53 }
 0x6f1   :  { %8567 = vmatprep.subr.bf16.mxu1 %v11538_v45 }
 0x753   :  { %v6049_v22 = vpop.f32.mrb[128].mxu0  ;;  %v6275_v63 = vpop.f32.mrb[128].mxu1 }
 0x754   :  { %v16826_v60 = vadd.f32 %v13711_v32, %v6049_v22  ;;  %v16828_v17 = vadd.f32 %v13712_v21, %v6275_v63  ;;  %v6051_v37 = vpop.f32.mrb[129].mxu0  ;;  %v6277_v54 = vpop.f32.mrb[129].mxu1  ;;  %v13722_v63 = vld [vmem:[#allocation3 + $0x58] sm:$0xff] }
 0x755   :  { %v16832_v50 = vadd.f32 %v13713_v62, %v6051_v37  ;;  %v16834_v47 = vadd.f32 %v13714_v18, %v6277_v54  ;;  %v6053_v15 = vpop.f32.mrb[130].mxu0  ;;  %v6279_v48 = vpop.f32.mrb[130].mxu1  ;;  %v16910_v54 = vld [vmem:[#allocation8 + $0x200] sm:$0xff] }
 0x756   :  { %6354 = vst [vmem:[#allocation12] sm:$0xff] %v16826_v60  ;;  %v6418_v58 = vmul.f32 %v16826_v60, %v16826_v60  ;;  %6356 = vst [vmem:[#allocation12 + $0x10] sm:$0xff] %v16828_v17  ;;  %v16846_v14 = vadd.f32 %v13715_v61, %v6053_v15  ;;  %v16848_v40 = vadd.f32 %v13716_v36, %v6279_v48  ;;  %v6055_v8 = vpop.f32.mrb[131].mxu0  ;;  %v6281_v1 = vpop.f32.mrb[131].mxu1  ;;  %v13723_v15 = vld [vmem:[#allocation3 + $0x60] sm:$0xff]  ;;  %v16924_v61 = vld [vmem:[#allocation8 + $0x208] sm:$0xff] }
 0x757   :  { %6355 = vst [vmem:[#allocation12 + $0x8] sm:$0xff] %v16832_v50  ;;  %v6419_v49 = vmul.f32 %v16832_v50, %v16832_v50  ;;  %6357 = vst [vmem:[#allocation12 + $0x18] sm:$0xff] %v16834_v47  ;;  %v16858_v0 = vadd.f32 %v13717_v7, %v6055_v8  ;;  %v16860_v28 = vadd.f32 %v13718_v56, %v6281_v1  ;;  %v13725_v8 = vld [vmem:[#allocation3 + $0x68] sm:$0xff]  ;;  %v16938_v56 = vld [vmem:[#allocation8 + $0x240] sm:$0xff] }
 0x758   :  { %6358 = vst [vmem:[#allocation12 + $0x20] sm:$0xff] %v16846_v14  ;;  %v6422_v30 = vmul.f32 %v16846_v14, %v16846_v14  ;;  %6360 = vst [vmem:[#allocation12 + $0x30] sm:$0xff] %v16848_v40  ;;  %v6420_v57 = vmul.f32 %v16828_v17, %v16828_v17  ;;  %v6421_v13 = vmul.f32 %v16834_v47, %v16834_v47  ;;  %v16936_v7 = vld [vmem:[#allocation8 + $0x228] sm:$0xff] }
 0x759   :  { %v6482_v38 = vadd.f32 %v6419_v49, %v6418_v58  ;;  %6359 = vst [vmem:[#allocation12 + $0x28] sm:$0xff] %v16858_v0  ;;  %v6423_v6 = vmul.f32 %v16858_v0, %v16858_v0  ;;  %6361 = vst [vmem:[#allocation12 + $0x38] sm:$0xff] %v16860_v28  ;;  %v6424_v20 = vmul.f32 %v16848_v40, %v16848_v40 }
 0x75a   :  { %v6425_v62 = vmul.f32 %v16860_v28, %v16860_v28  ;;  %v11537_v49 = vcombine.low %v16884_v12, %v16886_v25  ;;  %v11544_v55 = vcombine.high %v16910_v54, %v16912_v43  ;;  %v16956_v12 = vld [vmem:[#allocation8 + $0x268] sm:$0xff]  ;;  %v11543_v25 = vcombine.low %v16910_v54, %v16912_v43 }
 0x75b   :  { %v6487_v42 = vadd.f32 %v6423_v6, %v6422_v30  ;;  %v6059_v35 = vpop.f32.mrb[132].mxu0  ;;  %v6285_v44 = vpop.f32.mrb[132].mxu1  ;;  %v6483_v4 = vadd.f32 %v6482_v38, %v6420_v57  ;;  %v11545_v11 = vcombine.low %v16924_v61, %v16936_v7  ;;  %v11546_v53 = vcombine.high %v16924_v61, %v16936_v7 }
 0x75c   :  { %v16900_v27 = vadd.f32 %v13719_v29, %v6059_v35  ;;  %v16902_v59 = vadd.f32 %v13720_v19, %v6285_v44  ;;  %v6061_v41 = vpop.f32.mrb[133].mxu0  ;;  %v6287_v5 = vpop.f32.mrb[133].mxu1  ;;  %v13727_v29 = vld [vmem:[#allocation3 + $0x80] sm:$0xff]  ;;  %8568 = vmatpush1.bf16.msra.mxu1 %v11537_v49  ;;  %8343 = vmatprep.subr.bf16.mxu0 %v11544_v55  ;;  %v13734_v49 = vld [vmem:[#allocation3 + $0xb8] sm:$0xff] }
 0x75d   :  { %v16906_v22 = vadd.f32 %v13721_v23, %v6061_v41  ;;  %v16908_v51 = vadd.f32 %v13722_v63, %v6287_v5  ;;  %v6063_v33 = vpop.f32.mrb[134].mxu0  ;;  %v6289_v32 = vpop.f32.mrb[134].mxu1  ;;  %v6484_v21 = vadd.f32 %v6483_v4, %v6421_v13  ;;  %v6488_v37 = vadd.f32 %v6487_v42, %v6424_v20  ;;  %v13728_v41 = vld [vmem:[#allocation3 + $0x90] sm:$0xff]  ;;  %8569 = vmatprep.subr.bf16.mxu1 %v11546_v53 }
 0x75e   :  { %6362 = vst [vmem:[#allocation12 + $0x40] sm:$0xff] %v16900_v27  ;;  %v6426_v18 = vmul.f32 %v16900_v27, %v16900_v27  ;;  %6364 = vst [vmem:[#allocation12 + $0x50] sm:$0xff] %v16902_v59  ;;  %v16920_v48 = vadd.f32 %v13723_v15, %v6063_v33  ;;  %v16922_v24 = vadd.f32 %v13724_v31, %v6289_v32  ;;  %v6065_v46 = vpop.f32.mrb[135].mxu0  ;;  %v6291_v58 = vpop.f32.mrb[135].mxu1  ;;  %v13729_v33 = vld [vmem:[#allocation3 + $0x88] sm:$0xff]  ;;  %v13732_v31 = vld [vmem:[#allocation3 + $0xb0] sm:$0xff]  ;;  %8344 = vmatpush1.bf16.msra.mxu0 %v11543_v25 }
 0x75f   :  { %6363 = vst [vmem:[#allocation12 + $0x48] sm:$0xff] %v16906_v22  ;;  %v6427_v36 = vmul.f32 %v16906_v22, %v16906_v22  ;;  %6365 = vst [vmem:[#allocation12 + $0x58] sm:$0xff] %v16908_v51  ;;  %v16930_v1 = vadd.f32 %v13725_v8, %v6065_v46  ;;  %v16932_v39 = vadd.f32 %v13726_v52, %v6291_v58  ;;  %6485 = vadd.xlane.f32.xlu0 %v6484_v21  ;;  %v13730_v21 = vld [vmem:[#allocation3 + $0x98] sm:$0xff]  ;;  %v13733_v8 = vld [vmem:[#allocation3 + $0xa8] sm:$0xff] }
 0x760   :  { %6366 = vst [vmem:[#allocation12 + $0x60] sm:$0xff] %v16920_v48  ;;  %v6430_v30 = vmul.f32 %v16920_v48, %v16920_v48  ;;  %6368 = vst [vmem:[#allocation12 + $0x70] sm:$0xff] %v16922_v24  ;;  %v6489_v9 = vadd.f32 %v6488_v37, %v6425_v62  ;;  %v6428_v57 = vmul.f32 %v16902_v59, %v16902_v59  ;;  %8570 = vmatpush1.bf16.msra.mxu1 %v11545_v11 }
 0x761   :  { %v6492_v38 = vadd.f32 %v6427_v36, %v6426_v18  ;;  %6367 = vst [vmem:[#allocation12 + $0x68] sm:$0xff] %v16930_v1  ;;  %v6431_v6 = vmul.f32 %v16930_v1, %v16930_v1  ;;  %6369 = vst [vmem:[#allocation12 + $0x78] sm:$0xff] %v16932_v39  ;;  %v11552_v13 = vcombine.high %v16938_v56, %v16940_v10 }
 0x762   :  { %6490 = vadd.xlane.f32.xlu1 %v6489_v9  ;;  %v6429_v26 = vmul.f32 %v16908_v51, %v16908_v51  ;;  %v6432_v20 = vmul.f32 %v16922_v24, %v16922_v24  ;;  %v11554_v63 = vcombine.high %v16954_v3, %v16956_v12  ;;  %v6433_v15 = vmul.f32 %v16932_v39, %v16932_v39 }
 0x763   :  { %v6497_v42 = vadd.f32 %v6431_v6, %v6430_v30  ;;  %v6069_v35 = vpop.f32.mrb[136].mxu0  ;;  %v6295_v44 = vpop.f32.mrb[136].mxu1  ;;  %v6493_v4 = vadd.f32 %v6492_v38, %v6428_v57  ;;  %v11551_v30 = vcombine.low %v16938_v56, %v16940_v10  ;;  %v11553_v57 = vcombine.low %v16954_v3, %v16956_v12  ;;  %8345 = vmatprep.subr.bf16.mxu0 %v11552_v13 }
 0x764   :  { %v16970_v19 = vadd.f32 %v13727_v29, %v6069_v35  ;;  %v16972_v5 = vadd.f32 %v13728_v41, %v6295_v44  ;;  %v6071_v45 = vpop.f32.mrb[137].mxu0  ;;  %v6297_v23 = vpop.f32.mrb[137].mxu1  ;;  %8571 = vmatprep.subr.bf16.mxu1 %v11554_v63  ;;  %v13738_v41 = vld [vmem:[#allocation3 + $0xd8] sm:$0xff] }
 0x765   :  { %v16979_v32 = vadd.f32 %v13729_v33, %v6071_v45  ;;  %v16981_v37 = vadd.f32 %v13730_v21, %v6297_v23  ;;  %v6073_v54 = vpop.f32.mrb[138].mxu0  ;;  %v6299_v43 = vpop.f32.mrb[138].mxu1  ;;  %v6494_v62 = vadd.f32 %v6493_v4, %v6429_v26  ;;  %v6498_v18 = vadd.f32 %v6497_v42, %v6432_v20  ;;  %v13735_v26 = vld [vmem:[#allocation3 + $0xc0] sm:$0xff]  ;;  %v13736_v42 = vld [vmem:[#allocation3 + $0xd0] sm:$0xff]  ;;  %8346 = vmatpush1.bf16.msra.mxu0 %v11551_v30  ;;  %v13737_v4 = vld [vmem:[#allocation3 + $0xc8] sm:$0xff] }
 0x766   :  { %6370 = vst [vmem:[#allocation12 + $0x80] sm:$0xff] %v16970_v19  ;;  %v6434_v34 = vmul.f32 %v16970_v19, %v16970_v19  ;;  %6372 = vst [vmem:[#allocation12 + $0x90] sm:$0xff] %v16972_v5  ;;  %v16989_v2 = vadd.f32 %v13731_v16, %v6073_v54  ;;  %v16991_v46 = vadd.f32 %v13732_v31, %v6299_v43  ;;  %v6075_v58 = vpop.f32.mrb[139].mxu0  ;;  %v6301_v61 = vpop.f32.mrb[139].mxu1  ;;  %8572 = vmatpush1.bf16.msra.mxu1 %v11553_v57 }
 0x767   :  { %6371 = vst [vmem:[#allocation12 + $0x88] sm:$0xff] %v16979_v32  ;;  %v6435_v36 = vmul.f32 %v16979_v32, %v16979_v32  ;;  %6373 = vst [vmem:[#allocation12 + $0x98] sm:$0xff] %v16981_v37  ;;  %v16997_v52 = vadd.f32 %v13733_v8, %v6075_v58  ;;  %v16999_v7 = vadd.f32 %v13734_v49, %v6301_v61  ;;  %6495 = vadd.xlane.f32.xlu0 %v6494_v62  ;;  %v13739_v62 = vld [vmem:[#allocation3 + $0xe0] sm:$0xff]  ;;  %v13741_v61 = vld [vmem:[#allocation3 + $0xe8] sm:$0xff] }
 0x768   :  { %6374 = vst [vmem:[#allocation12 + $0xa0] sm:$0xff] %v16989_v2  ;;  %v6438_v9 = vmul.f32 %v16989_v2, %v16989_v2  ;;  %6376 = vst [vmem:[#allocation12 + $0xb0] sm:$0xff] %v16991_v46  ;;  %v6499_v55 = vadd.f32 %v6498_v18, %v6433_v15  ;;  %v6436_v38 = vmul.f32 %v16972_v5, %v16972_v5  ;;  %v13740_v15 = vld [vmem:[#allocation3 + $0xf0] sm:$0xff]  ;;  %v13742_v8 = vld [vmem:[#allocation3 + $0xf8] sm:$0xff] }
 0x769   :  { %v6502_v6 = vadd.f32 %v6435_v36, %v6434_v34  ;;  %6375 = vst [vmem:[#allocation12 + $0xa8] sm:$0xff] %v16997_v52  ;;  %v6439_v56 = vmul.f32 %v16997_v52, %v16997_v52  ;;  %6377 = vst [vmem:[#allocation12 + $0xb8] sm:$0xff] %v16999_v7  ;;  %v6437_v10 = vmul.f32 %v16981_v37, %v16981_v37 }
 0x76a   :  { %6500 = vadd.xlane.f32.xlu1 %v6499_v55  ;;  %v6440_v3 = vmul.f32 %v16991_v46, %v16991_v46  ;;  %v6441_v54 = vmul.f32 %v16999_v7, %v16999_v7 }
 0x76b   :  { %v6507_v12 = vadd.f32 %v6439_v56, %v6438_v9  ;;  %v6079_v25 = vpop.f32.mrb[140].mxu0  ;;  %v6305_v11 = vpop.f32.mrb[140].mxu1  ;;  %v6503_v53 = vadd.f32 %v6502_v6, %v6436_v38  ;;  %v6871_v6 = vld [vmem:[#allocation8 + $0x280] sm:$0xff] }
 0x76c   :  { %v17019_v20 = vadd.f32 %v13735_v26, %v6079_v25  ;;  %v17021_v35 = vadd.f32 %v13736_v42, %v6305_v11  ;;  %v6081_v44 = vpop.f32.mrb[141].mxu0  ;;  %v6307_v13 = vpop.f32.mrb[141].mxu1  ;;  %v6875_v56 = vld [vmem:[#allocation8 + $0x2a0] sm:$0xff] }
 0x76d   :  { %v17023_v29 = vadd.f32 %v13737_v4, %v6081_v44  ;;  %v17025_v45 = vadd.f32 %v13738_v41, %v6307_v13  ;;  %v6083_v23 = vpop.f32.mrb[142].mxu0  ;;  %v6309_v63 = vpop.f32.mrb[142].mxu1  ;;  %v6504_v33 = vadd.f32 %v6503_v53, %v6437_v10  ;;  %v6508_v21 = vadd.f32 %v6507_v12, %v6440_v3  ;;  %v6872_v10 = vld [vmem:[#allocation8 + $0x288] sm:$0xff] }
 0x76e   :  { %6378 = vst [vmem:[#allocation12 + $0xc0] sm:$0xff] %v17019_v20  ;;  %v6442_v43 = vmul.f32 %v17019_v20, %v17019_v20  ;;  %6380 = vst [vmem:[#allocation12 + $0xd0] sm:$0xff] %v17021_v35  ;;  %v17033_v18 = vadd.f32 %v13739_v62, %v6083_v23  ;;  %v17035_v34 = vadd.f32 %v13740_v15, %v6309_v63  ;;  %v6085_v16 = vpop.f32.mrb[143].mxu0  ;;  %v6311_v31 = vpop.f32.mrb[143].mxu1  ;;  %v6876_v53 = vld [vmem:[#allocation8 + $0x2a8] sm:$0xff]  ;;  %v13743_v23 = vld [vmem:[#allocation3 + $0x100] sm:$0xff] }
 0x76f   :  { %6379 = vst [vmem:[#allocation12 + $0xc8] sm:$0xff] %v17023_v29  ;;  %v6443_v58 = vmul.f32 %v17023_v29, %v17023_v29  ;;  %6381 = vst [vmem:[#allocation12 + $0xd8] sm:$0xff] %v17025_v45  ;;  %v17041_v36 = vadd.f32 %v13741_v61, %v6085_v16  ;;  %v17043_v49 = vadd.f32 %v13742_v8, %v6311_v31  ;;  %6505 = vadd.xlane.f32.xlu0 %v6504_v33  ;;  %v13744_v33 = vld [vmem:[#allocation3 + $0x110] sm:$0xff]  ;;  %v6879_v16 = vld [vmem:[#allocation8 + $0x2c0] sm:$0xff] }
 0x770   :  { %19062 = vst [vmem:[#allocation77_spill] sm:$0xff] %v17033_v18  ;;  %19063 = vst [vmem:[#allocation75_spill] sm:$0xff] %v17035_v34  ;;  %v6446_v30 = vmul.f32 %v17033_v18, %v17033_v18  ;;  %v6509_v9 = vadd.f32 %v6508_v21, %v6441_v54  ;;  %v6444_v55 = vmul.f32 %v17021_v35, %v17021_v35  ;;  %v6883_v31 = vld [vmem:[#allocation8 + $0x2e0] sm:$0xff]  ;;  %v13746_v8 = vld [vmem:[#allocation3 + $0x118] sm:$0xff] }
 0x771   :  { %19064 = vst [vmem:[#allocation28_spill] sm:$0xff] %v17041_v36  ;;  %19065 = vst [vmem:[#allocation78_spill] sm:$0xff] %v17043_v49  ;;  %v6512_v57 = vadd.f32 %v6443_v58, %v6442_v43  ;;  %v6447_v38 = vmul.f32 %v17041_v36, %v17041_v36  ;;  %v6445_v3 = vmul.f32 %v17025_v45, %v17025_v45  ;;  %v13745_v58 = vld [vmem:[#allocation3 + $0x108] sm:$0xff] }
 0x772   :  { %6382 = vst [vmem:[#allocation12 + $0xe0] sm:$0xff] %v17033_v18  ;;  %6384 = vst [vmem:[#allocation12 + $0xf0] sm:$0xff] %v17035_v34  ;;  %v6448_v12 = vmul.f32 %v17035_v34, %v17035_v34  ;;  %6510 = vadd.xlane.f32.xlu1 %v6509_v9  ;;  %v11559_v25 = vcombine.low %v6871_v6, %v6875_v56  ;;  %v11560_v11 = vcombine.high %v6871_v6, %v6875_v56  ;;  %v13747_v6 = vld [vmem:[#allocation3 + $0x120] sm:$0xff] }
 0x773   :  { %6383 = vst [vmem:[#allocation12 + $0xe8] sm:$0xff] %v17041_v36  ;;  %6385 = vst [vmem:[#allocation12 + $0xf8] sm:$0xff] %v17043_v49  ;;  %v6517_v26 = vadd.f32 %v6447_v38, %v6446_v30  ;;  %v6513_v42 = vadd.f32 %v6512_v57, %v6444_v55  ;;  %v11561_v44 = vcombine.low %v6872_v10, %v6876_v53  ;;  %v6089_v4 = vpop.f32.mrb[144].mxu0  ;;  %v6315_v41 = vpop.f32.mrb[144].mxu1 }
 0x774   :  { %v11562_v13 = vcombine.high %v6872_v10, %v6876_v53  ;;  %8347 = vmatprep.subr.bf16.mxu0 %v11560_v11  ;;  %v17059_v63 = vadd.f32 %v13743_v23, %v6089_v4  ;;  %v17061_v21 = vadd.f32 %v13744_v33, %v6315_v41  ;;  %v6091_v54 = vpop.f32.mrb[145].mxu0  ;;  %v6317_v43 = vpop.f32.mrb[145].mxu1  ;;  %v6449_v57 = vmul.f32 %v17043_v49, %v17043_v49  ;;  %v13748_v10 = vld [vmem:[#allocation3 + $0x130] sm:$0xff]  ;;  %v6884_v53 = vld [vmem:[#allocation8 + $0x2e8] sm:$0xff] }
 0x775   :  { %v6514_v62 = vadd.f32 %v6513_v42, %v6445_v3  ;;  %v6518_v15 = vadd.f32 %v6517_v26, %v6448_v12  ;;  %v17063_v61 = vadd.f32 %v13745_v58, %v6091_v54  ;;  %v17065_v30 = vadd.f32 %v13746_v8, %v6317_v43  ;;  %v6093_v9 = vpop.f32.mrb[146].mxu0  ;;  %v6319_v55 = vpop.f32.mrb[146].mxu1  ;;  %8348 = vmatpush1.bf16.msra.mxu0 %v11559_v25  ;;  %v6880_v25 = vld [vmem:[#allocation8 + $0x2c8] sm:$0xff]  ;;  %v17093_v58 = vld [vmem:[#allocation8 + $0x320] sm:$0xff] }
 0x776   :  { %19066 = vst [vmem:[#allocation29_spill] sm:$0xff] %v17059_v63  ;;  %19067 = vst [vmem:[#allocation80_spill] sm:$0xff] %v17061_v21  ;;  %8573 = vmatprep.subr.bf16.mxu1 %v11562_v13  ;;  %v6450_v38 = vmul.f32 %v17059_v63, %v17059_v63  ;;  %v17073_v56 = vadd.f32 %v13747_v6, %v6093_v9  ;;  %v17075_v3 = vadd.f32 %v13748_v10, %v6319_v55  ;;  %v6095_v12 = vpop.f32.mrb[147].mxu0  ;;  %v6321_v11 = vpop.f32.mrb[147].mxu1  ;;  %v13749_v42 = vld [vmem:[#allocation3 + $0x128] sm:$0xff]  ;;  %v13750_v13 = vld [vmem:[#allocation3 + $0x138] sm:$0xff] }
 0x777   :  { %19068 = vst [vmem:[#allocation83_spill] sm:$0xff] %v17063_v61  ;;  %19069 = vst [vmem:[#allocation86_spill] sm:$0xff] %v17065_v30  ;;  %8574 = vmatpush1.bf16.msra.mxu1 %v11561_v44  ;;  %6515 = vadd.xlane.f32.xlu0 %v6514_v62  ;;  %v6451_v26 = vmul.f32 %v17063_v61, %v17063_v61  ;;  %v17081_v44 = vadd.f32 %v13749_v42, %v6095_v12  ;;  %v17091_v62 = vld [vmem:[#allocation8 + $0x300] sm:$0xff]  ;;  %v17095_v8 = vld [vmem:[#allocation8 + $0x308] sm:$0xff] }
 0x778   :  { %6386 = vst [vmem:[#allocation12 + $0x100] sm:$0xff] %v17059_v63  ;;  %6388 = vst [vmem:[#allocation12 + $0x110] sm:$0xff] %v17061_v21  ;;  %v17083_v4 = vadd.f32 %v13750_v13, %v6321_v11  ;;  %v11567_v41 = vcombine.low %v6879_v16, %v6883_v31  ;;  %v6452_v23 = vmul.f32 %v17061_v21, %v17061_v21  ;;  %v13751_v21 = vld [vmem:[#allocation3 + $0x140] sm:$0xff]  ;;  %v17319_v63 = vld [vmem:[#allocation8 + $0x4c8] sm:$0xff] }
 0x779   :  { %19070 = vst [vmem:[#allocation84_spill] sm:$0xff] %v17073_v56  ;;  %19071 = vst [vmem:[#allocation30_spill] sm:$0xff] %v17075_v3  ;;  %v6454_v33 = vmul.f32 %v17073_v56, %v17073_v56  ;;  %v6519_v54 = vadd.f32 %v6518_v15, %v6449_v57  ;;  %v11568_v43 = vcombine.high %v6879_v16, %v6883_v31  ;;  %v17103_v15 = vld [vmem:[#allocation8 + $0x328] sm:$0xff] }
 0x77a   :  { %6387 = vst [vmem:[#allocation12 + $0x108] sm:$0xff] %v17063_v61  ;;  %6389 = vst [vmem:[#allocation12 + $0x118] sm:$0xff] %v17065_v30  ;;  %v6522_v9 = vadd.f32 %v6451_v26, %v6450_v38  ;;  %v6453_v55 = vmul.f32 %v17065_v30, %v17065_v30  ;;  %v6455_v6 = vmul.f32 %v17081_v44, %v17081_v44 }
 0x77b   :  { %19072 = vst [vmem:[#allocation87_spill] sm:$0xff] %v17081_v44  ;;  %19073 = vst [vmem:[#allocation31_spill] sm:$0xff] %v17083_v4  ;;  %v11569_v10 = vcombine.low %v6880_v25, %v6884_v53  ;;  %v6456_v16 = vmul.f32 %v17075_v3, %v17075_v3  ;;  %6520 = vadd.xlane.f32.xlu1 %v6519_v54  ;;  %8349 = vmatprep.subr.bf16.mxu0 %v11568_v43  ;;  %v6099_v12 = vpop.f32.mrb[148].mxu0  ;;  %v6325_v11 = vpop.f32.mrb[148].mxu1  ;;  %v13752_v54 = vld [vmem:[#allocation3 + $0x150] sm:$0xff] }
 0x77c   :  { %6390 = vst [vmem:[#allocation12 + $0x120] sm:$0xff] %v17073_v56  ;;  %6392 = vst [vmem:[#allocation12 + $0x130] sm:$0xff] %v17075_v3  ;;  %v11570_v31 = vcombine.high %v6880_v25, %v6884_v53  ;;  %v11576_v57 = vcombine.high %v17091_v62, %v17093_v58  ;;  %v6527_v38 = vadd.f32 %v6455_v6, %v6454_v33  ;;  %8350 = vmatpush1.bf16.msra.mxu0 %v11567_v41  ;;  %v6101_v25 = vpop.f32.mrb[149].mxu0  ;;  %v6327_v53 = vpop.f32.mrb[149].mxu1  ;;  %v13753_v41 = vld [vmem:[#allocation3 + $0x148] sm:$0xff]  ;;  %v6907_v3 = vld [vmem:[#allocation8 + $0x3a0] sm:$0xff] }
 0x77d   :  { %6391 = vst [vmem:[#allocation12 + $0x128] sm:$0xff] %v17081_v44  ;;  %6393 = vst [vmem:[#allocation12 + $0x138] sm:$0xff] %v17083_v4  ;;  %v6523_v26 = vadd.f32 %v6522_v9, %v6452_v23  ;;  %v11575_v42 = vcombine.low %v17091_v62, %v17093_v58  ;;  %v11578_v13 = vcombine.high %v17095_v8, %v17103_v15  ;;  %v13754_v62 = vld [vmem:[#allocation3 + $0x158] sm:$0xff]  ;;  %v6103_v9 = vpop.f32.mrb[150].mxu0  ;;  %v6329_v6 = vpop.f32.mrb[150].mxu1 }
 0x77e   :  { %v17113_v56 = vadd.f32 %v13751_v21, %v6099_v12  ;;  %v17115_v43 = vadd.f32 %v13752_v54, %v6325_v11  ;;  %8575 = vmatprep.subr.bf16.mxu1 %v11570_v31  ;;  %8351 = vmatprep.subr.bf16.mxu0 %v11576_v57  ;;  %v11577_v23 = vcombine.low %v17095_v8, %v17103_v15  ;;  %v6895_v11 = vld [vmem:[#allocation8 + $0x340] sm:$0xff] }
 0x77f   :  { %v17119_v33 = vadd.f32 %v13753_v41, %v6101_v25  ;;  %v17121_v58 = vadd.f32 %v13754_v62, %v6327_v53  ;;  %v6524_v21 = vadd.f32 %v6523_v26, %v6453_v55  ;;  %v6528_v12 = vadd.f32 %v6527_v38, %v6456_v16  ;;  %8576 = vmatpush1.bf16.msra.mxu1 %v11569_v10  ;;  %v6899_v54 = vld [vmem:[#allocation8 + $0x360] sm:$0xff]  ;;  %v13756_v25 = vld [vmem:[#allocation3 + $0x170] sm:$0xff]  ;;  %v6105_v55 = vpop.f32.mrb[151].mxu0  ;;  %v6331_v10 = vpop.f32.mrb[151].mxu1  ;;  %v6896_v16 = vld [vmem:[#allocation8 + $0x348] sm:$0xff] }
 0x780   :  { %19074 = vst [vmem:[#allocation89_spill] sm:$0xff] %v17113_v56  ;;  %19075 = vst [vmem:[#allocation92_spill] sm:$0xff] %v17115_v43  ;;  %v6457_v31 = vmul.f32 %v17083_v4, %v17083_v4  ;;  %v6458_v8 = vmul.f32 %v17113_v56, %v17113_v56  ;;  %v13755_v15 = vld [vmem:[#allocation3 + $0x160] sm:$0xff]  ;;  %v17131_v53 = vadd.f32 %v13756_v25, %v6329_v6  ;;  %8577 = vmatprep.subr.bf16.mxu1 %v11578_v13  ;;  %v6900_v38 = vld [vmem:[#allocation8 + $0x368] sm:$0xff] }
 0x781   :  { %19076 = vst [vmem:[#allocation97_spill] sm:$0xff] %v17119_v33  ;;  %19077 = vst [vmem:[#allocation94_spill] sm:$0xff] %v17121_v58  ;;  %v17129_v57 = vadd.f32 %v13755_v15, %v6103_v9  ;;  %v6459_v26 = vmul.f32 %v17119_v33, %v17119_v33  ;;  %v13757_v41 = vld [vmem:[#allocation3 + $0x168] sm:$0xff]  ;;  %v13758_v9 = vld [vmem:[#allocation3 + $0x178] sm:$0xff]  ;;  %6525 = vadd.xlane.f32.xlu0 %v6524_v21  ;;  %8352 = vmatpush1.bf16.msra.mxu0 %v11575_v42 }
 0x782   :  { %6394 = vst [vmem:[#allocation12 + $0x140] sm:$0xff] %v17113_v56  ;;  %6396 = vst [vmem:[#allocation12 + $0x150] sm:$0xff] %v17115_v43  ;;  %v17137_v62 = vadd.f32 %v13757_v41, %v6105_v55  ;;  %v17139_v15 = vadd.f32 %v13758_v9, %v6331_v10  ;;  %v6529_v6 = vadd.f32 %v6528_v12, %v6457_v31  ;;  %v6904_v4 = vld [vmem:[#allocation8 + $0x388] sm:$0xff] }
 0x783   :  { %19078 = vst [vmem:[#allocation32_spill] sm:$0xff] %v17129_v57  ;;  %19079 = vst [vmem:[#allocation34_spill] sm:$0xff] %v17131_v53  ;;  %v6462_v13 = vmul.f32 %v17129_v57, %v17129_v57  ;;  %v11583_v25 = vcombine.low %v6895_v11, %v6899_v54  ;;  %v11584_v56 = vcombine.high %v6895_v11, %v6899_v54  ;;  %8578 = vmatpush1.bf16.msra.mxu1 %v11577_v23  ;;  %v6908_v12 = vld [vmem:[#allocation8 + $0x3a8] sm:$0xff] }
 0x784   :  { %6395 = vst [vmem:[#allocation12 + $0x148] sm:$0xff] %v17119_v33  ;;  %6397 = vst [vmem:[#allocation12 + $0x158] sm:$0xff] %v17121_v58  ;;  %v6903_v33 = vld [vmem:[#allocation8 + $0x380] sm:$0xff]  ;;  %v6460_v55 = vmul.f32 %v17115_v43, %v17115_v43  ;;  %v6532_v10 = vadd.f32 %v6459_v26, %v6458_v8  ;;  %v6463_v21 = vmul.f32 %v17137_v62, %v17137_v62  ;;  %6530 = vadd.xlane.f32.xlu1 %v6529_v6 }
 0x785   :  { %19080 = vst [vmem:[#allocation100_spill] sm:$0xff] %v17137_v62  ;;  %19081 = vst [vmem:[#allocation79_spill] sm:$0xff] %v17139_v15  ;;  %v11585_v41 = vcombine.low %v6896_v16, %v6900_v38  ;;  %v6461_v42 = vmul.f32 %v17121_v58, %v17121_v58  ;;  %8353 = vmatprep.subr.bf16.mxu0 %v11584_v56  ;;  %v11586_v11 = vcombine.high %v6896_v16, %v6900_v38  ;;  %v6911_v43 = vld [vmem:[#allocation8 + $0x3c0] sm:$0xff]  ;;  %v6916_v58 = vld [vmem:[#allocation8 + $0x3e8] sm:$0xff] }
 0x786   :  { %6398 = vst [vmem:[#allocation12 + $0x160] sm:$0xff] %v17129_v57  ;;  %6400 = vst [vmem:[#allocation12 + $0x170] sm:$0xff] %v17131_v53  ;;  %v11592_v54 = vcombine.high %v6903_v33, %v6907_v3  ;;  %v6464_v31 = vmul.f32 %v17131_v53, %v17131_v53  ;;  %v6537_v8 = vadd.f32 %v6463_v21, %v6462_v13  ;;  %v6915_v57 = vld [vmem:[#allocation8 + $0x3e0] sm:$0xff]  ;;  %8354 = vmatpush1.bf16.msra.mxu0 %v11583_v25  ;;  %v17161_v25 = vld [vmem:[#allocation8 + $0x408] sm:$0xff] }
 0x787   :  { %6399 = vst [vmem:[#allocation12 + $0x168] sm:$0xff] %v17137_v62  ;;  %6401 = vst [vmem:[#allocation12 + $0x178] sm:$0xff] %v17139_v15  ;;  %v6533_v26 = vadd.f32 %v6532_v10, %v6460_v55  ;;  %v11594_v9 = vcombine.high %v6904_v4, %v6908_v12  ;;  %v6912_v62 = vld [vmem:[#allocation8 + $0x3c8] sm:$0xff]  ;;  %v6465_v23 = vmul.f32 %v17139_v15, %v17139_v15  ;;  %8579 = vmatprep.subr.bf16.mxu1 %v11586_v11  ;;  %v13760_v11 = vld [vmem:[#allocation3 + $0x190] sm:$0xff] }
 0x788   :  { %v11591_v44 = vcombine.low %v6903_v33, %v6907_v3  ;;  %v6538_v56 = vadd.f32 %v6537_v8, %v6464_v31  ;;  %8580 = vmatpush1.bf16.msra.mxu1 %v11585_v41  ;;  %8355 = vmatprep.subr.bf16.mxu0 %v11592_v54  ;;  %v11593_v16 = vcombine.low %v6904_v4, %v6908_v12  ;;  %v17157_v3 = vld [vmem:[#allocation8 + $0x400] sm:$0xff] }
 0x789   :  { %v6534_v6 = vadd.f32 %v6533_v26, %v6461_v42  ;;  %8581 = vmatprep.subr.bf16.mxu1 %v11594_v9  ;;  %v11600_v38 = vcombine.high %v6911_v43, %v6915_v57  ;;  %v11602_v13 = vcombine.high %v6912_v62, %v6916_v58  ;;  %v11599_v10 = vcombine.low %v6911_v43, %v6915_v57  ;;  %v17159_v33 = vld [vmem:[#allocation8 + $0x420] sm:$0xff]  ;;  %v17167_v43 = vld [vmem:[#allocation8 + $0x428] sm:$0xff] }
 0x78a   :  { %v6539_v55 = vadd.f32 %v6538_v56, %v6465_v23  ;;  %8356 = vmatpush1.bf16.msra.mxu0 %v11591_v44  ;;  %v11601_v21 = vcombine.low %v6912_v62, %v6916_v58  ;;  %v11608_v44 = vcombine.high %v17157_v3, %v17159_v33  ;;  %v11610_v41 = vcombine.high %v17161_v25, %v17167_v43  ;;  %v13759_v12 = vld [vmem:[#allocation3 + $0x180] sm:$0xff]  ;;  %v13761_v26 = vld [vmem:[#allocation3 + $0x188] sm:$0xff]  ;;  %v13762_v23 = vld [vmem:[#allocation3 + $0x198] sm:$0xff] }
 0x78b   :  { %6535 = vadd.xlane.f32.xlu0 %v6534_v6  ;;  %8357 = vmatprep.subr.bf16.mxu0 %v11600_v38 }
 0x78c   :  { %6540 = vadd.xlane.f32.xlu1 %v6539_v55  ;;  %8582 = vmatpush1.bf16.msra.mxu1 %v11593_v16 }
 0x78d   :  { %8583 = vmatprep.subr.bf16.mxu1 %v11602_v13  ;;  %v13763_v13 = vld [vmem:[#allocation3 + $0x1a0] sm:$0xff] }
 0x78e   :  { %8358 = vmatpush1.bf16.msra.mxu0 %v11599_v10  ;;  %v13764_v10 = vld [vmem:[#allocation3 + $0x1b0] sm:$0xff] }
 0x78f   :  { %8440 = vmatprep.subr.bf16.mxu0 %v11608_v44 }
 0x790   :  { %8584 = vmatpush1.bf16.msra.mxu1 %v11601_v21 }
 0x791   :  { %8666 = vmatprep.subr.bf16.mxu1 %v11610_v41  ;;  %v13765_v41 = vld [vmem:[#allocation3 + $0x1a8] sm:$0xff] }
 0x7b0   :  { %v6109_v57 = vpop.f32.mrb[152].mxu0  ;;  %v6335_v58 = vpop.f32.mrb[152].mxu1 }
 0x7b1   :  { %v17173_v42 = vadd.f32 %v13759_v12, %v6109_v57  ;;  %v17175_v54 = vadd.f32 %v13760_v11, %v6335_v58  ;;  %v6111_v31 = vpop.f32.mrb[153].mxu0  ;;  %v6337_v8 = vpop.f32.mrb[153].mxu1  ;;  %v13766_v11 = vld [vmem:[#allocation3 + $0x1b8] sm:$0xff] }
 0x7b2   :  { %v17177_v9 = vadd.f32 %v13761_v26, %v6111_v31  ;;  %v17179_v6 = vadd.f32 %v13762_v23, %v6337_v8  ;;  %v6113_v56 = vpop.f32.mrb[154].mxu0  ;;  %v6339_v16 = vpop.f32.mrb[154].mxu1 }
 0x7b3   :  { %19082 = vst [vmem:[#allocation93_spill] sm:$0xff] %v17173_v42  ;;  %19083 = vst [vmem:[#allocation96_spill] sm:$0xff] %v17175_v54  ;;  %v6466_v38 = vmul.f32 %v17173_v42, %v17173_v42  ;;  %v17185_v55 = vadd.f32 %v13763_v13, %v6113_v56  ;;  %v17187_v21 = vadd.f32 %v13764_v10, %v6339_v16  ;;  %v6115_v44 = vpop.f32.mrb[155].mxu0  ;;  %v6341_v57 = vpop.f32.mrb[155].mxu1 }
 0x7b4   :  { %19084 = vst [vmem:[#allocation88_spill] sm:$0xff] %v17177_v9  ;;  %19085 = vst [vmem:[#allocation101_spill] sm:$0xff] %v17179_v6  ;;  %v6467_v58 = vmul.f32 %v17177_v9, %v17177_v9  ;;  %v17193_v12 = vadd.f32 %v13765_v41, %v6115_v44  ;;  %v17195_v31 = vadd.f32 %v13766_v11, %v6341_v57  ;;  %v13767_v11 = vld [vmem:[#allocation3 + $0x1c0] sm:$0xff] }
 0x7b5   :  { %6402 = vst [vmem:[#allocation12 + $0x180] sm:$0xff] %v17173_v42  ;;  %6404 = vst [vmem:[#allocation12 + $0x190] sm:$0xff] %v17175_v54  ;;  %v6470_v8 = vmul.f32 %v17185_v55, %v17185_v55  ;;  %v6468_v26 = vmul.f32 %v17175_v54, %v17175_v54  ;;  %v6469_v16 = vmul.f32 %v17179_v6, %v17179_v6  ;;  %v13770_v42 = vld [vmem:[#allocation3 + $0x1d8] sm:$0xff] }
 0x7b6   :  { %19086 = vst [vmem:[#allocation35_spill] sm:$0xff] %v17185_v55  ;;  %19087 = vst [vmem:[#allocation39_spill] sm:$0xff] %v17187_v21  ;;  %v6542_v23 = vadd.f32 %v6467_v58, %v6466_v38  ;;  %v6471_v56 = vmul.f32 %v17193_v12, %v17193_v12  ;;  %v6472_v13 = vmul.f32 %v17187_v21, %v17187_v21  ;;  %v13768_v38 = vld [vmem:[#allocation3 + $0x1d0] sm:$0xff] }
 0x7b7   :  { %6403 = vst [vmem:[#allocation12 + $0x188] sm:$0xff] %v17177_v9  ;;  %6405 = vst [vmem:[#allocation12 + $0x198] sm:$0xff] %v17179_v6 }
 0x7b8   :  { %19088 = vst [vmem:[#allocation46_spill] sm:$0xff] %v17193_v12  ;;  %19089 = vst [vmem:[#allocation49_spill] sm:$0xff] %v17195_v31  ;;  %v6547_v10 = vadd.f32 %v6471_v56, %v6470_v8  ;;  %v6119_v44 = vpop.f32.mrb[156].mxu0  ;;  %v6345_v57 = vpop.f32.mrb[156].mxu1  ;;  %v6543_v41 = vadd.f32 %v6542_v23, %v6468_v26  ;;  %v6473_v26 = vmul.f32 %v17195_v31, %v17195_v31 }
 0x7b9   :  { %6406 = vst [vmem:[#allocation12 + $0x1a0] sm:$0xff] %v17185_v55  ;;  %6408 = vst [vmem:[#allocation12 + $0x1b0] sm:$0xff] %v17187_v21  ;;  %v17211_v62 = vadd.f32 %v13767_v11, %v6119_v44  ;;  %v17213_v58 = vadd.f32 %v13768_v38, %v6345_v57  ;;  %v6121_v4 = vpop.f32.mrb[157].mxu0  ;;  %v6347_v55 = vpop.f32.mrb[157].mxu1  ;;  %v13771_v44 = vld [vmem:[#allocation3 + $0x1e0] sm:$0xff] }
 0x7ba   :  { %6407 = vst [vmem:[#allocation12 + $0x1a8] sm:$0xff] %v17193_v12  ;;  %6409 = vst [vmem:[#allocation12 + $0x1b8] sm:$0xff] %v17195_v31  ;;  %v13769_v12 = vld [vmem:[#allocation3 + $0x1c8] sm:$0xff]  ;;  %v17217_v6 = vadd.f32 %v13770_v42, %v6347_v55  ;;  %v6123_v9 = vpop.f32.mrb[158].mxu0  ;;  %v6349_v21 = vpop.f32.mrb[158].mxu1  ;;  %v6544_v8 = vadd.f32 %v6543_v41, %v6469_v16  ;;  %v6548_v56 = vadd.f32 %v6547_v10, %v6472_v13  ;;  %v13774_v41 = vld [vmem:[#allocation3 + $0x1f8] sm:$0xff] }
 0x7bb   :  { %19090 = vst [vmem:[#allocation55_spill] sm:$0xff] %v17211_v62  ;;  %19091 = vst [vmem:[#allocation58_spill] sm:$0xff] %v17213_v58  ;;  %v17215_v54 = vadd.f32 %v13769_v12, %v6121_v4  ;;  %v6474_v23 = vmul.f32 %v17211_v62, %v17211_v62  ;;  %v17225_v4 = vadd.f32 %v13771_v44, %v6123_v9  ;;  %v13772_v12 = vld [vmem:[#allocation3 + $0x1f0] sm:$0xff]  ;;  %v6125_v55 = vpop.f32.mrb[159].mxu0  ;;  %v6351_v57 = vpop.f32.mrb[159].mxu1  ;;  %v13773_v13 = vld [vmem:[#allocation3 + $0x1e8] sm:$0xff] }
 0x7bc   :  { %19093 = vst [vmem:[#allocation67_spill] sm:$0xff] %v17217_v6  ;;  %6410 = vst [vmem:[#allocation12 + $0x1c0] sm:$0xff] %v17211_v62  ;;  %v17227_v42 = vadd.f32 %v13772_v12, %v6349_v21  ;;  %v17233_v10 = vadd.f32 %v13773_v13, %v6125_v55  ;;  %v17235_v11 = vadd.f32 %v13774_v41, %v6351_v57  ;;  %6545 = vadd.xlane.f32.xlu0 %v6544_v8  ;;  %v17298_v31 = vld [vmem:[#allocation8 + $0x4c0] sm:$0xff] }
 0x7bd   :  { %19092 = vst [vmem:[#allocation64_spill] sm:$0xff] %v17215_v54  ;;  %6412 = vst [vmem:[#allocation12 + $0x1d0] sm:$0xff] %v17213_v58  ;;  %v6475_v16 = vmul.f32 %v17215_v54, %v17215_v54  ;;  %v6478_v9 = vmul.f32 %v17225_v4, %v17225_v4  ;;  %v6549_v21 = vadd.f32 %v6548_v56, %v6473_v26 }
 0x7be   :  { %19094 = vst [vmem:[#allocation73_spill] sm:$0xff] %v17225_v4  ;;  %19095 = vst [vmem:[#allocation76_spill] sm:$0xff] %v17227_v42  ;;  %v6476_v38 = vmul.f32 %v17213_v58, %v17213_v58  ;;  %v6479_v12 = vmul.f32 %v17233_v10, %v17233_v10  ;;  %v6477_v8 = vmul.f32 %v17217_v6, %v17217_v6 }
 0x7bf   :  { %6411 = vst [vmem:[#allocation12 + $0x1c8] sm:$0xff] %v17215_v54  ;;  %6413 = vst [vmem:[#allocation12 + $0x1d8] sm:$0xff] %v17217_v6  ;;  %v6552_v44 = vadd.f32 %v6475_v16, %v6474_v23  ;;  %6550 = vadd.xlane.f32.xlu1 %v6549_v21  ;;  %v6480_v55 = vmul.f32 %v17227_v42, %v17227_v42  ;;  %v6481_v26 = vmul.f32 %v17235_v11, %v17235_v11  ;;  %v17321_v54 = vld [vmem:[#allocation8 + $0x4e8] sm:$0xff] }
 0x7c0   :  { %19096 = vst [vmem:[#allocation82_spill] sm:$0xff] %v17233_v10  ;;  %19097 = vst [vmem:[#allocation85_spill] sm:$0xff] %v17235_v11  ;;  %v6557_v57 = vadd.f32 %v6479_v12, %v6478_v9  ;;  %v11094_v9 = vld [vmem:[%s18450_s2 + $0x1] ss:$2 sm:$0xf]  ;;  %s13927_s2 = smov [#allocation12]  }
 0x7c1   :  { %6414 = vst [vmem:[#allocation12 + $0x1e0] sm:$0xff] %v17225_v4  ;;  %6416 = vst [vmem:[#allocation12 + $0x1f0] sm:$0xff] %v17227_v42  ;;  %v6553_v56 = vadd.f32 %v6552_v44, %v6476_v38  ;;  %v17256_v12 = vld [vmem:[#allocation8 + $0x440] sm:$0xff]  ;;  %s11076_s14 = sshll.u32 %s13927_s2, 4  ;;  %s11077_s14 = int_to_ptr.vmem [resolvable:$true] %s11076_s14 }
 0x7c2   :  { %6415 = vst [vmem:[#allocation12 + $0x1e8] sm:$0xff] %v17233_v10  ;;  %6417 = vst [vmem:[#allocation12 + $0x1f8] sm:$0xff] %v17235_v11  ;;  %v6558_v16 = vadd.f32 %v6557_v57, %v6480_v55  ;;  %v17260_v55 = vld [vmem:[#allocation8 + $0x448] sm:$0xff]  ;;  %s13863_s15 = scalar_lea.vmem %s11077_s14, 8192  ;;  %p13868_p5 = scmp.lt.s32.totalorder %s11077_s14, %s11077_s14 }
 0x7c3   :  { %v6554_v23 = vadd.f32 %v6553_v56, %v6477_v8  ;;  %v17258_v8 = vld [vmem:[#allocation8 + $0x460] sm:$0xff]  ;;  %v17262_v57 = vld [vmem:[#allocation8 + $0x468] sm:$0xff]  ;;  %p13864_p4 = scmp.ne.s32.totalorder %s11077_s14, %s13863_s15  ;;  %p13869_p6 = scmp.lt.s32.totalorder %s13863_s15, %s13863_s15 }
 0x7c4   :  { %v6559_v13 = vadd.f32 %v6558_v16, %v6481_v26 }
 0x7c5   :  { %6555 = vadd.xlane.f32.xlu0 %v6554_v23  ;;  %p13870_p7 = por %p13869_p6, %p13868_p5 }
 0x7c6   :  { %6560 = vadd.xlane.f32.xlu1 %v6559_v13  ;;  %v17278_v13 = vld [vmem:[#allocation8 + $0x488] sm:$0xff] }
 0x7c7   :  { %p13871_p8 = pnand %p13870_p7, %p13864_p4 }
 0x7ec   :  { %v6486_v41 = vpop.xlane.xlu0 %6485 }
 0x7ed   :  { %v6562_v4 = vmul.f32 0.001953125, %v6486_v41  ;;  %v17280_v41 = vld [vmem:[#allocation8 + $0x4a8] sm:$0xff] }
 0x7ef   :  { %v6578_v10 = vadd.f32 1e-06, %v6562_v4  ;;  %v6491_v21 = vpop.xlane.xlu1 %6490 }
 0x7f0   :  { %v6563_v58 = vmul.f32 0.001953125, %v6491_v21 }
 0x7f1   :  { %13347 = vrsqrt.f32 %v6578_v10  ;;  %v17264_v10 = vld [vmem:[#allocation8 + $0x480] sm:$0xff] }
 0x7f2   :  { %v6579_v6 = vadd.f32 1e-06, %v6563_v58 }
 0x7f4   :  { %13349 = vrsqrt.f32 %v6579_v6  ;;  %v6496_v62 = vpop.xlane.xlu0 %6495  ;;  %v17266_v6 = vld [vmem:[#allocation8 + $0x4a0] sm:$0xff] }
 0x7f5   :  { %v6564_v42 = vmul.f32 0.001953125, %v6496_v62  ;;  %v19098_v62 = vld [vmem:[#allocation19_spill] sm:$0xff] }
 0x7f6   :  { %v19099_v58 = vsub.s32 0, %v19098_v62  ;;  %v19101_v21 = vsub.s32 3, %v19098_v62 }
 0x7f7   :  { %v6580_v38 = vadd.f32 1e-06, %v6564_v42  ;;  %v6501_v44 = vpop.xlane.xlu1 %6500  ;;  %v19100_v42 = vsub.s32 1, %v19098_v62 }
 0x7f8   :  { %v6565_v4 = vmul.f32 0.001953125, %v6501_v44  ;;  %v17270_v56 = vrot.slane %v11094_v9, %v19099_v58  ;;  %v17284_v44 = vrot.slane %v11094_v9, %v19101_v21  ;;  %v19102_v58 = vsub.s32 2, %v19098_v62  ;;  %v17300_v21 = vld [vmem:[#allocation8 + $0x4e0] sm:$0xff] }
 0x7f9   :  { %13351 = vrsqrt.f32 %v6580_v38  ;;  %v17274_v26 = vrot.slane %v11094_v9, %v19100_v42 }
 0x7fa   :  { %v6581_v23 = vadd.f32 1e-06, %v6565_v4  ;;  %v17288_v11 = vrot.slane %v11094_v9, %v19102_v58 }
 0x7fb   :  { %v13348_v38 = vpop.eup %13347 }
 0x7fc   :  { %13353 = vrsqrt.f32 %v6581_v23  ;;  %v6506_v9 = vpop.xlane.xlu0 %6505  ;;  %v6611_v62 = vmul.f32 %v13348_v38, %v16832_v50  ;;  %v6610_v58 = vmul.f32 %v13348_v38, %v16826_v60  ;;  %v6613_v42 = vmul.f32 %v13348_v38, %v16834_v47 }
 0x7fd   :  { %v6566_v53 = vmul.f32 0.001953125, %v6506_v9  ;;  %v6612_v47 = vmul.f32 %v13348_v38, %v16828_v17 }
 0x7fe   :  { %v13350_v15 = vpop.eup %13349  ;;  %v6696_v23 = vmul.f32 %v17274_v26, %v6611_v62  ;;  %v6695_v50 = vmul.f32 %v17270_v56, %v6610_v58  ;;  %v6698_v34 = vmul.f32 %v17284_v44, %v6613_v42  ;;  %v17336_v58 = vld [vmem:[#allocation8 + $0x508] sm:$0xff] }
 0x7ff   :  { %v6582_v9 = vadd.f32 1e-06, %v6566_v53  ;;  %v6511_v30 = vpop.xlane.xlu1 %6510  ;;  %v6615_v4 = vmul.f32 %v13350_v15, %v16858_v0  ;;  %v6614_v16 = vmul.f32 %v13350_v15, %v16846_v14  ;;  %v6617_v62 = vmul.f32 %v13350_v15, %v16860_v28  ;;  %v17329_v53 = vld [vmem:[#allocation8 + $0x500] sm:$0xff]  ;;  %v17338_v42 = vld [vmem:[#allocation8 + $0x528] sm:$0xff] }
 0x800   :  { %v6567_v61 = vmul.f32 0.001953125, %v6511_v30  ;;  %v6616_v60 = vmul.f32 %v13350_v15, %v16848_v40  ;;  %v17334_v30 = vld [vmem:[#allocation8 + $0x520] sm:$0xff]  ;;  %v6697_v40 = vmul.f32 %v17288_v11, %v6612_v47 }
 0x801   :  { %13355 = vrsqrt.f32 %v6582_v9  ;;  %v6700_v17 = vmul.f32 %v17274_v26, %v6615_v4  ;;  %v6699_v0 = vmul.f32 %v17270_v56, %v6614_v16  ;;  %v6702_v14 = vmul.f32 %v17284_v44, %v6617_v62 }
 0x802   :  { %v6583_v38 = vadd.f32 1e-06, %v6567_v61  ;;  %v6701_v15 = vmul.f32 %v17288_v11, %v6616_v60  ;;  %v11634_v61 = vcombine.high %v17319_v63, %v17321_v54 }
 0x803   :  { %v13352_v4 = vpop.eup %13351  ;;  %v17342_v16 = vpack.c.bf16 %v6700_v17, %v6696_v23  ;;  %v17344_v9 = vpack.c.bf16 %v6699_v0, %v6695_v50  ;;  %v17348_v62 = vpack.c.bf16 %v6702_v14, %v6698_v34  ;;  %v11639_v23 = vcombine.low %v17329_v53, %v17334_v30  ;;  %v17378_v50 = vld [vmem:[#allocation8 + $0x560] sm:$0xff] }
 0x804   :  { %13357 = vrsqrt.f32 %v6583_v38  ;;  %v6516_v28 = vpop.xlane.xlu0 %6515  ;;  %v6619_v49 = vmul.f32 %v13352_v4, %v16906_v22  ;;  %v6618_v18 = vmul.f32 %v13352_v4, %v16900_v27  ;;  %v17352_v36 = vpack.c.bf16 %v6701_v15, %v6697_v40  ;;  %v17376_v15 = vld [vmem:[#allocation8 + $0x540] sm:$0xff] }
 0x805   :  { %v6568_v47 = vmul.f32 0.001953125, %v6516_v28  ;;  %8359 = vmatprep.mubr.bf16.mxu0 %v17342_v16  ;;  %8585 = vmatprep.mubr.bf16.mxu1 %v17342_v16  ;;  %v11640_v34 = vcombine.high %v17329_v53, %v17334_v30  ;;  %v11642_v27 = vcombine.high %v17336_v58, %v17338_v42  ;;  %v6621_v22 = vmul.f32 %v13352_v4, %v16908_v51  ;;  %v17525_v30 = vld [vmem:[#allocation8 + $0x5c8] sm:$0xff] }
 0x806   :  { %v13354_v60 = vpop.eup %13353  ;;  %8360 = vmatmul.mubr.bf16.vlgmr.msra.gmra.mrb[160].mxu0 %v17344_v9  ;;  %8586 = vmatmul.mubr.bf16.vlgmr.msra.gmra.mrb[160].mxu1 %v17344_v9  ;;  %v6620_v17 = vmul.f32 %v13352_v4, %v16902_v59  ;;  %v19103_v28 = vcombine.low %v17157_v3, %v17159_v33  ;;  %v19104_v40 = vcombine.low %v17161_v25, %v17167_v43 }
 0x807   :  { %v6584_v0 = vadd.f32 1e-06, %v6568_v47  ;;  %v6623_v14 = vmul.f32 %v13354_v60, %v16930_v1  ;;  %v6622_v38 = vmul.f32 %v13354_v60, %v16920_v48  ;;  %v6625_v51 = vmul.f32 %v13354_v60, %v16932_v39 }
 0x808   :  { %8441 = vmatpush1.bf16.msra.mxu0 %v19103_v28  ;;  %8667 = vmatpush1.bf16.msra.mxu1 %v19104_v40  ;;  %v6521_v59 = vpop.xlane.xlu1 %6520  ;;  %v6704_v4 = vmul.f32 %v17274_v26, %v6619_v49  ;;  %v6703_v1 = vmul.f32 %v17270_v56, %v6618_v18  ;;  %v19105_v48 = vcombine.high %v17256_v12, %v17258_v8 }
 0x809   :  { %v19106_v3 = vcombine.high %v17260_v55, %v17262_v57  ;;  %v6624_v33 = vmul.f32 %v13354_v60, %v16922_v24  ;;  %13359 = vrsqrt.f32 %v6584_v0  ;;  %v6569_v25 = vmul.f32 0.001953125, %v6521_v59 }
 0x80a   :  { %8442 = vmatprep.subr.bf16.mxu0 %v19105_v48  ;;  %v6708_v43 = vmul.f32 %v17274_v26, %v6623_v14  ;;  %v6707_v39 = vmul.f32 %v17270_v56, %v6622_v38  ;;  %v11647_v49 = vcombine.low %v17376_v15, %v17378_v50  ;;  %v6706_v18 = vmul.f32 %v17284_v44, %v6621_v22  ;;  %v17407_v14 = vld [vmem:[#allocation8 + $0x548] sm:$0xff] }
 0x80b   :  { %8668 = vmatprep.subr.bf16.mxu1 %v19106_v3  ;;  %v6710_v47 = vmul.f32 %v17284_v44, %v6625_v51  ;;  %v6709_v28 = vmul.f32 %v17288_v11, %v6624_v33  ;;  %v13356_v40 = vpop.eup %13355  ;;  %v6585_v48 = vadd.f32 1e-06, %v6569_v25  ;;  %v19107_v60 = vcombine.low %v17256_v12, %v17258_v8  ;;  %v17409_v22 = vld [vmem:[#allocation8 + $0x568] sm:$0xff] }
 0x80c   :  { %v17397_v3 = vpack.c.bf16 %v6708_v43, %v6704_v4  ;;  %v17399_v24 = vpack.c.bf16 %v6707_v39, %v6703_v1  ;;  %v19108_v0 = vcombine.low %v17260_v55, %v17262_v57  ;;  %v6705_v38 = vmul.f32 %v17288_v11, %v6620_v17 }
 0x80d   :  { %8443 = vmatpush1.bf16.msra.mxu0 %v19107_v60  ;;  %v6627_v51 = vmul.f32 %v13356_v40, %v16979_v32  ;;  %v6626_v59 = vmul.f32 %v13356_v40, %v16970_v19  ;;  %v19109_v4 = vcombine.high %v17264_v10, %v17266_v6  ;;  %v19110_v12 = vcombine.high %v17278_v13, %v17280_v41 }
 0x80e   :  { %8669 = vmatpush1.bf16.msra.mxu1 %v19108_v0  ;;  %v17420_v8 = vpack.c.bf16 %v6710_v47, %v6706_v18  ;;  %13361 = vrsqrt.f32 %v6585_v48  ;;  %v6526_v55 = vpop.xlane.xlu0 %6525  ;;  %8369 = vmatprep.mubr.bf16.mxu0 %v17397_v3  ;;  %v11648_v32 = vcombine.high %v17376_v15, %v17378_v50  ;;  %v17426_v19 = vpack.c.bf16 %v6709_v28, %v6705_v38  ;;  %v13358_v17 = vpop.eup %13357 }
 0x80f   :  { %8444 = vmatprep.subr.bf16.mxu0 %v19109_v4  ;;  %8670 = vmatprep.subr.bf16.mxu1 %v19110_v12  ;;  %v6629_v57 = vmul.f32 %v13356_v40, %v16981_v37  ;;  %v6570_v1 = vmul.f32 0.001953125, %v6526_v55  ;;  %v6712_v33 = vmul.f32 %v17274_v26, %v6627_v51  ;;  %v11649_v25 = vcombine.low %v17407_v14, %v17409_v22 }
 0x810   :  { %8595 = vmatprep.mubr.bf16.mxu1 %v17397_v3  ;;  %8370 = vmatmul.mubr.bf16.gmra.mrb[164].mxu0 %v17399_v24  ;;  %v6628_v43 = vmul.f32 %v13356_v40, %v16972_v5  ;;  %v6631_v39 = vmul.f32 %v13358_v17, %v16997_v52  ;;  %v6630_v18 = vmul.f32 %v13358_v17, %v16989_v2 }
 0x811   :  { %8596 = vmatmul.mubr.bf16.gmra.mrb[164].mxu1 %v17399_v24  ;;  %v19111_v37 = vcombine.low %v17264_v10, %v17266_v6  ;;  %v19112_v47 = vcombine.low %v17278_v13, %v17280_v41  ;;  %v6633_v28 = vmul.f32 %v13358_v17, %v16999_v7  ;;  %v6586_v48 = vadd.f32 1e-06, %v6570_v1  ;;  %v6531_v60 = vpop.xlane.xlu1 %6530  ;;  %v17455_v13 = vld [vmem:[#allocation8 + $0x580] sm:$0xff]  ;;  %v17476_v1 = vld [vmem:[#allocation8 + $0x5a8] sm:$0xff] }
 0x812   :  { %v6711_v0 = vmul.f32 %v17270_v56, %v6626_v59  ;;  %v19113_v5 = vcombine.high %v17298_v31, %v17300_v21  ;;  %v6714_v2 = vmul.f32 %v17284_v44, %v6629_v57  ;;  %v6632_v52 = vmul.f32 %v13358_v17, %v16991_v46  ;;  %v17457_v41 = vld [vmem:[#allocation8 + $0x5a0] sm:$0xff] }
 0x813   :  { %8445 = vmatpush1.bf16.msra.mxu0 %v19111_v37  ;;  %8671 = vmatpush1.bf16.msra.mxu1 %v19112_v47  ;;  %v6571_v10 = vmul.f32 0.001953125, %v6531_v60  ;;  %v6716_v6 = vmul.f32 %v17274_v26, %v6631_v39  ;;  %v6715_v7 = vmul.f32 %v17270_v56, %v6630_v18  ;;  %v6718_v40 = vmul.f32 %v17284_v44, %v6633_v28  ;;  %v13360_v59 = vpop.eup %13359  ;;  %v17478_v39 = vld [vmem:[#allocation8 + $0x5c0] sm:$0xff] }
 0x814   :  { %8446 = vmatprep.subr.bf16.mxu0 %v19113_v5  ;;  %8672 = vmatprep.subr.bf16.mxu1 %v11634_v61  ;;  %13363 = vrsqrt.f32 %v6586_v48  ;;  %v11650_v38 = vcombine.high %v17407_v14, %v17409_v22  ;;  %v17462_v61 = vld [vmem:[#allocation8 + $0x588] sm:$0xff]  ;;  %v6713_v51 = vmul.f32 %v17288_v11, %v6628_v43  ;;  %v6717_v46 = vmul.f32 %v17288_v11, %v6632_v52  ;;  %v17480_v43 = vld [vmem:[#allocation8 + $0x5e0] sm:$0xff] }
 0x815   :  { %v6587_v4 = vadd.f32 1e-06, %v6571_v10  ;;  %v17466_v12 = vpack.c.bf16 %v6716_v6, %v6712_v33  ;;  %v17468_v55 = vpack.c.bf16 %v6715_v7, %v6711_v0  ;;  %v19114_v57 = vcombine.low %v17298_v31, %v17300_v21  ;;  %v19117_v10 = vld [vmem:[#allocation28_spill] sm:$0xff]  ;;  %v19118_v7 = vld [vmem:[#allocation77_spill] sm:$0xff]  ;;  %v19121_v22 = vld [vmem:[#allocation83_spill] sm:$0xff] }
 0x816   :  { %v19115_v17 = vcombine.low %v17319_v63, %v17321_v54  ;;  %v17482_v18 = vpack.c.bf16 %v6718_v40, %v6714_v2  ;;  %v6635_v33 = vmul.f32 %v13360_v59, %v17023_v29  ;;  %v11655_v63 = vcombine.low %v17455_v13, %v17457_v41  ;;  %v17555_v14 = vld [vmem:[#allocation8 + $0x628] sm:$0xff] }
 0x817   :  { %8447 = vmatpush1.bf16.msra.mxu0 %v19114_v57  ;;  %v17493_v54 = vpack.c.bf16 %v6717_v46, %v6713_v51  ;;  %13365 = vrsqrt.f32 %v6587_v4  ;;  %8379 = vmatprep.mubr.bf16.mxu0 %v17466_v12  ;;  %v6634_v29 = vmul.f32 %v13360_v59, %v17019_v20  ;;  %v11656_v21 = vcombine.high %v17455_v13, %v17457_v41 }
 0x818   :  { %8673 = vmatpush1.bf16.msra.mxu1 %v19115_v17  ;;  %8448 = vmatprep.subr.bf16.mxu0 %v11640_v34  ;;  %v6536_v31 = vpop.xlane.xlu0 %6535  ;;  %v6637_v34 = vmul.f32 %v13360_v59, %v17025_v45  ;;  %v11658_v47 = vcombine.high %v17462_v61, %v17476_v1  ;;  %v11663_v28 = vcombine.low %v17478_v39, %v17480_v43  ;;  %v13362_v20 = vpop.eup %13361 }
 0x819   :  { %8674 = vmatprep.subr.bf16.mxu1 %v11642_v27  ;;  %8605 = vmatprep.mubr.bf16.mxu1 %v17466_v12  ;;  %v6572_v37 = vmul.f32 0.001953125, %v6536_v31  ;;  %v11657_v27 = vcombine.low %v17462_v61, %v17476_v1  ;;  %v6541_v48 = vpop.xlane.xlu1 %6540  ;;  %v6720_v60 = vmul.f32 %v17274_v26, %v6635_v33  ;;  %v19116_v45 = vcombine.low %v17336_v58, %v17338_v42  ;;  %v17527_v58 = vld [vmem:[#allocation8 + $0x5e8] sm:$0xff]  ;;  %v19119_v42 = vld [vmem:[#allocation78_spill] sm:$0xff]  ;;  %v19120_v61 = vld [vmem:[#allocation75_spill] sm:$0xff] }
 0x81a   :  { %8380 = vmatmul.mubr.bf16.gmra.mrb[168].mxu0 %v17468_v55  ;;  %8606 = vmatmul.mubr.bf16.gmra.mrb[168].mxu1 %v17468_v55  ;;  %v11664_v0 = vcombine.high %v17478_v39, %v17480_v43  ;;  %v6636_v5 = vmul.f32 %v13360_v59, %v17021_v35  ;;  %v6573_v52 = vmul.f32 0.001953125, %v6541_v48  ;;  %v6639_v6 = vmul.f32 %v13362_v20, %v19117_v10  ;;  %v19123_v48 = vld [vmem:[#allocation86_spill] sm:$0xff]  ;;  %v17577_v10 = vld [vmem:[#allocation8 + $0x640] sm:$0xff] }
 0x81b   :  { %8449 = vmatpush1.bf16.msra.mxu0 %v11639_v23  ;;  %v6588_v2 = vadd.f32 1e-06, %v6572_v37  ;;  %v6638_v40 = vmul.f32 %v13362_v20, %v19118_v7  ;;  %v6719_v53 = vmul.f32 %v17270_v56, %v6634_v29  ;;  %v6641_v23 = vmul.f32 %v13362_v20, %v19119_v42  ;;  %v19122_v29 = vld [vmem:[#allocation29_spill] sm:$0xff]  ;;  %v17588_v42 = vld [vmem:[#allocation8 + $0x668] sm:$0xff] }
 0x81c   :  { %8675 = vmatpush1.bf16.msra.mxu1 %v19116_v45  ;;  %8450 = vmatprep.subr.bf16.mxu0 %v11648_v32  ;;  %v6722_v35 = vmul.f32 %v17284_v44, %v6637_v34  ;;  %v6640_v51 = vmul.f32 %v13362_v20, %v19120_v61  ;;  %v6589_v46 = vadd.f32 1e-06, %v6573_v52  ;;  %v6724_v59 = vmul.f32 %v17274_v26, %v6639_v6  ;;  %v17540_v32 = vld [vmem:[#allocation8 + $0x600] sm:$0xff] }
 0x81d   :  { %8676 = vmatprep.subr.bf16.mxu1 %v11650_v38  ;;  %13367 = vrsqrt.f32 %v6588_v2  ;;  %v6723_v4 = vmul.f32 %v17270_v56, %v6638_v40  ;;  %v17542_v38 = vld [vmem:[#allocation8 + $0x620] sm:$0xff]  ;;  %v6726_v57 = vmul.f32 %v17284_v44, %v6641_v23  ;;  %v6721_v17 = vmul.f32 %v17288_v11, %v6636_v5  ;;  %v19125_v40 = vld [vmem:[#allocation84_spill] sm:$0xff] }
 0x81e   :  { %v6725_v1 = vmul.f32 %v17288_v11, %v6640_v51  ;;  %v13364_v33 = vpop.eup %13363  ;;  %13369 = vrsqrt.f32 %v6589_v46  ;;  %v17547_v31 = vpack.c.bf16 %v6724_v59, %v6720_v60  ;;  %v11666_v15 = vcombine.high %v17525_v30, %v17527_v58  ;;  %v19124_v6 = vld [vmem:[#allocation87_spill] sm:$0xff]  ;;  %v19127_v46 = vld [vmem:[#allocation80_spill] sm:$0xff] }
 0x81f   :  { %8451 = vmatpush1.bf16.msra.mxu0 %v11647_v49  ;;  %v17549_v50 = vpack.c.bf16 %v6723_v4, %v6719_v53  ;;  %v17553_v49 = vld [vmem:[#allocation8 + $0x608] sm:$0xff]  ;;  %v6642_v34 = vmul.f32 %v13364_v33, %v19122_v29  ;;  %v17559_v37 = vpack.c.bf16 %v6726_v57, %v6722_v35  ;;  %v6645_v60 = vmul.f32 %v13364_v33, %v19123_v48  ;;  %v19126_v23 = vld [vmem:[#allocation31_spill] sm:$0xff]  ;;  %v19130_v29 = vld [vmem:[#allocation89_spill] sm:$0xff] }
 0x820   :  { %8677 = vmatpush1.bf16.msra.mxu1 %v11649_v25  ;;  %8452 = vmatprep.subr.bf16.mxu0 %v11656_v21  ;;  %v6643_v25 = vmul.f32 %v13364_v33, %v19121_v22  ;;  %v17561_v20 = vpack.c.bf16 %v6725_v1, %v6721_v17  ;;  %v11665_v21 = vcombine.low %v17525_v30, %v17527_v58  ;;  %v17584_v30 = vld [vmem:[#allocation8 + $0x660] sm:$0xff]  ;;  %v17586_v58 = vld [vmem:[#allocation8 + $0x648] sm:$0xff]  ;;  %v19129_v22 = vld [vmem:[#allocation97_spill] sm:$0xff] }
 0x821   :  { %8678 = vmatprep.subr.bf16.mxu1 %v11658_v47  ;;  %8389 = vmatprep.mubr.bf16.mxu0 %v17547_v31  ;;  %v11671_v47 = vcombine.low %v17540_v32, %v17542_v38  ;;  %v13366_v45 = vpop.eup %13365  ;;  %v11672_v2 = vcombine.high %v17540_v32, %v17542_v38  ;;  %v11674_v52 = vcombine.high %v17553_v49, %v17555_v14 }
 0x822   :  { %8615 = vmatprep.mubr.bf16.mxu1 %v17547_v31  ;;  %8390 = vmatmul.mubr.bf16.gmra.mrb[172].mxu0 %v17549_v50  ;;  %v6728_v5 = vmul.f32 %v17274_v26, %v6643_v25  ;;  %v6647_v7 = vmul.f32 %v13366_v45, %v19124_v6  ;;  %v6646_v53 = vmul.f32 %v13366_v45, %v19125_v40  ;;  %v7000_v6 = vld [vmem:[#allocation8 + $0x688] sm:$0xff] }
 0x823   :  { %8616 = vmatmul.mubr.bf16.gmra.mrb[172].mxu1 %v17549_v50  ;;  %8453 = vmatpush1.bf16.msra.mxu0 %v11655_v63  ;;  %v6649_v35 = vmul.f32 %v13366_v45, %v19126_v23  ;;  %v6727_v61 = vmul.f32 %v17270_v56, %v6642_v34  ;;  %v6730_v51 = vmul.f32 %v17284_v44, %v6645_v60 }
 0x824   :  { %8679 = vmatpush1.bf16.msra.mxu1 %v11657_v27  ;;  %8454 = vmatprep.subr.bf16.mxu0 %v11664_v0  ;;  %v6644_v59 = vmul.f32 %v13364_v33, %v19127_v46  ;;  %v6732_v13 = vmul.f32 %v17274_v26, %v6647_v7  ;;  %v6731_v41 = vmul.f32 %v17270_v56, %v6646_v53  ;;  %v19128_v27 = vld [vmem:[#allocation30_spill] sm:$0xff]  ;;  %v7004_v7 = vld [vmem:[#allocation8 + $0x6a8] sm:$0xff] }
 0x825   :  { %8680 = vmatprep.subr.bf16.mxu1 %v11666_v15  ;;  %v6734_v63 = vmul.f32 %v17284_v44, %v6649_v35  ;;  %v6648_v4 = vmul.f32 %v13366_v45, %v19128_v27  ;;  %v11673_v32 = vcombine.low %v17553_v49, %v17555_v14  ;;  %v11679_v38 = vcombine.low %v17577_v10, %v17584_v30  ;;  %v6999_v15 = vld [vmem:[#allocation8 + $0x680] sm:$0xff]  ;;  %v19132_v45 = vld [vmem:[#allocation100_spill] sm:$0xff] }
 0x826   :  { %v11680_v0 = vcombine.high %v17577_v10, %v17584_v30  ;;  %v11682_v57 = vcombine.high %v17586_v58, %v17588_v42  ;;  %v17606_v1 = vpack.c.bf16 %v6732_v13, %v6728_v5  ;;  %v17608_v33 = vpack.c.bf16 %v6731_v41, %v6727_v61  ;;  %v7003_v49 = vld [vmem:[#allocation8 + $0x6a0] sm:$0xff]  ;;  %v7008_v13 = vld [vmem:[#allocation8 + $0x6c8] sm:$0xff] }
 0x827   :  { %v13368_v17 = vpop.eup %13367  ;;  %8455 = vmatpush1.bf16.msra.mxu0 %v11663_v28  ;;  %v17613_v14 = vpack.c.bf16 %v6734_v63, %v6730_v51  ;;  %v6733_v48 = vmul.f32 %v17288_v11, %v6648_v4  ;;  %v11681_v39 = vcombine.low %v17586_v58, %v17588_v42  ;;  %v6729_v43 = vmul.f32 %v17288_v11, %v6644_v59  ;;  %v19131_v28 = vld [vmem:[#allocation94_spill] sm:$0xff]  ;;  %v19134_v30 = vld [vmem:[#allocation79_spill] sm:$0xff]  ;;  %v7012_v41 = vld [vmem:[#allocation8 + $0x6e8] sm:$0xff] }
 0x828   :  { %8681 = vmatpush1.bf16.msra.mxu1 %v11665_v21  ;;  %v6651_v25 = vmul.f32 %v13368_v17, %v19129_v22  ;;  %v6650_v34 = vmul.f32 %v13368_v17, %v19130_v29  ;;  %8456 = vmatprep.subr.bf16.mxu0 %v11672_v2  ;;  %v13370_v60 = vpop.eup %13369  ;;  %v6653_v21 = vmul.f32 %v13368_v17, %v19131_v28  ;;  %v19133_v2 = vld [vmem:[#allocation32_spill] sm:$0xff]  ;;  %v7007_v61 = vld [vmem:[#allocation8 + $0x6c0] sm:$0xff] }
 0x829   :  { %8682 = vmatprep.subr.bf16.mxu1 %v11674_v52  ;;  %8399 = vmatprep.mubr.bf16.mxu0 %v17606_v1  ;;  %v6655_v5 = vmul.f32 %v13370_v60, %v19132_v45  ;;  %v6654_v52 = vmul.f32 %v13370_v60, %v19133_v2  ;;  %v11687_v10 = vcombine.low %v6999_v15, %v7003_v49  ;;  %v7011_v51 = vld [vmem:[#allocation8 + $0x6e0] sm:$0xff] }
 0x82a   :  { %8625 = vmatprep.mubr.bf16.mxu1 %v17606_v1  ;;  %8400 = vmatmul.mubr.bf16.gmra.mrb[176].mxu0 %v17608_v33  ;;  %v6736_v40 = vmul.f32 %v17274_v26, %v6651_v25  ;;  %v17629_v53 = vpack.c.bf16 %v6733_v48, %v6729_v43  ;;  %v6657_v58 = vmul.f32 %v13370_v60, %v19134_v30  ;;  %v19136_v25 = vld [vmem:[#allocation34_spill] sm:$0xff]  ;;  %v7023_v2 = vld [vmem:[#allocation8 + $0x740] sm:$0xff] }
 0x82b   :  { %8626 = vmatmul.mubr.bf16.gmra.mrb[176].mxu1 %v17608_v33  ;;  %8457 = vmatpush1.bf16.msra.mxu0 %v11671_v47  ;;  %v6740_v42 = vmul.f32 %v17274_v26, %v6655_v5  ;;  %v6735_v23 = vmul.f32 %v17270_v56, %v6650_v34  ;;  %v6739_v35 = vmul.f32 %v17270_v56, %v6654_v52  ;;  %v7015_v34 = vld [vmem:[#allocation8 + $0x700] sm:$0xff] }
 0x82c   :  { %8683 = vmatpush1.bf16.msra.mxu1 %v11673_v32  ;;  %8458 = vmatprep.subr.bf16.mxu0 %v11680_v0  ;;  %v11688_v46 = vcombine.high %v6999_v15, %v7003_v49  ;;  %v11690_v59 = vcombine.high %v7000_v6, %v7004_v7  ;;  %v6738_v47 = vmul.f32 %v17284_v44, %v6653_v21  ;;  %v19135_v32 = vld [vmem:[#allocation92_spill] sm:$0xff]  ;;  %v7027_v52 = vld [vmem:[#allocation8 + $0x760] sm:$0xff] }
 0x82d   :  { %8684 = vmatprep.subr.bf16.mxu1 %v11682_v57  ;;  %v6742_v63 = vmul.f32 %v17284_v44, %v6657_v58  ;;  %v17637_v27 = vpack.c.bf16 %v6740_v42, %v6736_v40  ;;  %v17639_v4 = vpack.c.bf16 %v6739_v35, %v6735_v23  ;;  %v6652_v22 = vmul.f32 %v13368_v17, %v19135_v32  ;;  %v7019_v17 = vld [vmem:[#allocation8 + $0x720] sm:$0xff]  ;;  %v7032_v35 = vld [vmem:[#allocation8 + $0x788] sm:$0xff] }
 0x82e   :  { %v6656_v29 = vmul.f32 %v13370_v60, %v19136_v25  ;;  %v11689_v0 = vcombine.low %v7000_v6, %v7004_v7  ;;  %v11696_v57 = vcombine.high %v7007_v61, %v7011_v51  ;;  %v11698_v49 = vcombine.high %v7008_v13, %v7012_v41  ;;  %v7016_v60 = vld [vmem:[#allocation8 + $0x708] sm:$0xff]  ;;  %v7035_v23 = vld [vmem:[#allocation8 + $0x7a0] sm:$0xff] }
 0x82f   :  { %8459 = vmatpush1.bf16.msra.mxu0 %v11679_v38  ;;  %v17643_v15 = vpack.c.bf16 %v6742_v63, %v6738_v47  ;;  %8409 = vmatprep.mubr.bf16.mxu0 %v17637_v27  ;;  %v6737_v48 = vmul.f32 %v17288_v11, %v6652_v22  ;;  %v7020_v38 = vld [vmem:[#allocation8 + $0x728] sm:$0xff]  ;;  %v11695_v28 = vcombine.low %v7007_v61, %v7011_v51  ;;  %v7043_v47 = vld [vmem:[#allocation8 + $0x7e0] sm:$0xff] }
 0x830   :  { %8685 = vmatpush1.bf16.msra.mxu1 %v11681_v39  ;;  %8635 = vmatprep.mubr.bf16.mxu1 %v17637_v27  ;;  %v6741_v43 = vmul.f32 %v17288_v11, %v6656_v29  ;;  %v11697_v21 = vcombine.low %v7008_v13, %v7012_v41  ;;  %v11704_v45 = vcombine.high %v7015_v34, %v7019_v17  ;;  %v7024_v6 = vld [vmem:[#allocation8 + $0x748] sm:$0xff]  ;;  %v7039_v41 = vld [vmem:[#allocation8 + $0x7c0] sm:$0xff] }
 0x831   :  { %8460 = vmatprep.subr.bf16.mxu0 %v11688_v46  ;;  %8686 = vmatprep.subr.bf16.mxu1 %v11690_v59  ;;  %v11706_v5 = vcombine.high %v7016_v60, %v7020_v38  ;;  %v7028_v7 = vld [vmem:[#allocation8 + $0x768] sm:$0xff]  ;;  %v11703_v40 = vcombine.low %v7015_v34, %v7019_v17  ;;  %v11705_v30 = vcombine.low %v7016_v60, %v7020_v38  ;;  %v17657_v34 = vld [vmem:[#allocation8 + $0x18] sm:$0xff] }
 0x832   :  { %8410 = vmatmul.mubr.bf16.gmra.mrb[180].mxu0 %v17639_v4  ;;  %v17651_v39 = vpack.c.bf16 %v6741_v43, %v6737_v48  ;;  %v11712_v58 = vcombine.high %v7023_v2, %v7027_v52  ;;  %v11714_v42 = vcombine.high %v7024_v6, %v7028_v7  ;;  %v7036_v61 = vld [vmem:[#allocation8 + $0x7a8] sm:$0xff]  ;;  %v11711_v51 = vcombine.low %v7023_v2, %v7027_v52  ;;  %v17659_v48 = vld [vmem:[#allocation8 + $0x38] sm:$0xff] }
 0x833   :  { %8636 = vmatmul.mubr.bf16.gmra.mrb[180].mxu1 %v17639_v4  ;;  %8461 = vmatpush1.bf16.msra.mxu0 %v11687_v10  ;;  %v7031_v10 = vld [vmem:[#allocation8 + $0x780] sm:$0xff]  ;;  %v11713_v46 = vcombine.low %v7024_v6, %v7028_v7  ;;  %v11722_v13 = vcombine.high %v7032_v35, %v7036_v61  ;;  %v7040_v63 = vld [vmem:[#allocation8 + $0x7c8] sm:$0xff]  ;;  %v11721_v25 = vcombine.low %v7032_v35, %v7036_v61  ;;  %v19138_v61 = vld [vmem:[#allocation93_spill] sm:$0xff] }
 0x834   :  { %8687 = vmatpush1.bf16.msra.mxu1 %v11689_v0  ;;  %8462 = vmatprep.subr.bf16.mxu0 %v11696_v57  ;;  %v11720_v59 = vcombine.high %v7031_v10, %v7035_v23  ;;  %v7044_v32 = vld [vmem:[#allocation8 + $0x7e8] sm:$0xff]  ;;  %v11719_v22 = vcombine.low %v7031_v10, %v7035_v23  ;;  %v11728_v29 = vcombine.high %v7039_v41, %v7043_v47  ;;  %v17653_v57 = vld [vmem:[#allocation8 + $0x10] sm:$0xff] }
 0x835   :  { %8688 = vmatprep.subr.bf16.mxu1 %v11698_v49  ;;  %v11730_v0 = vcombine.high %v7040_v63, %v7044_v32  ;;  %v17655_v49 = vld [vmem:[#allocation8 + $0x30] sm:$0xff]  ;;  %v11727_v43 = vcombine.low %v7039_v41, %v7043_v47  ;;  %v11729_v17 = vcombine.low %v7040_v63, %v7044_v32  ;;  %v11486_v38 = vcombine.high %v17657_v34, %v17659_v48  ;;  %v19137_v23 = vld [vmem:[#allocation88_spill] sm:$0xff]  ;;  %v19141_v63 = vld [vmem:[#allocation46_spill] sm:$0xff] }
 0x836   :  { %v11484_v60 = vcombine.high %v17653_v57, %v17655_v49 }
 0x837   :  { %8463 = vmatpush1.bf16.msra.mxu0 %v11695_v28 }
 0x838   :  { %8689 = vmatpush1.bf16.msra.mxu1 %v11697_v21  ;;  %8464 = vmatprep.subr.bf16.mxu0 %v11704_v45 }
 0x839   :  { %8690 = vmatprep.subr.bf16.mxu1 %v11706_v5 }
 0x83b   :  { %8465 = vmatpush1.bf16.msra.mxu0 %v11703_v40 }
 0x83c   :  { %8691 = vmatpush1.bf16.msra.mxu1 %v11705_v30  ;;  %8466 = vmatprep.subr.bf16.mxu0 %v11712_v58 }
 0x83d   :  { %8692 = vmatprep.subr.bf16.mxu1 %v11714_v42 }
 0x83f   :  { %8467 = vmatpush1.bf16.msra.mxu0 %v11711_v51 }
 0x840   :  { %8693 = vmatpush1.bf16.msra.mxu1 %v11713_v46  ;;  %8468 = vmatprep.subr.bf16.mxu0 %v11720_v59  ;;  %v19139_v46 = vld [vmem:[#allocation101_spill] sm:$0xff] }
 0x841   :  { %8694 = vmatprep.subr.bf16.mxu1 %v11722_v13  ;;  %v19140_v13 = vld [vmem:[#allocation96_spill] sm:$0xff] }
 0x843   :  { %8469 = vmatpush1.bf16.msra.mxu0 %v11719_v22  ;;  %v19142_v22 = vld [vmem:[#allocation35_spill] sm:$0xff] }
 0x844   :  { %8695 = vmatpush1.bf16.msra.mxu1 %v11721_v25  ;;  %8470 = vmatprep.subr.bf16.mxu0 %v11728_v29  ;;  %v19143_v29 = vld [vmem:[#allocation49_spill] sm:$0xff] }
 0x845   :  { %8696 = vmatprep.subr.bf16.mxu1 %v11730_v0 }
 0x847   :  { %8471 = vmatpush1.bf16.msra.mxu0 %v11727_v43  ;;  %v19144_v43 = vld [vmem:[#allocation39_spill] sm:$0xff] }
 0x848   :  { %8697 = vmatpush1.bf16.msra.mxu1 %v11729_v17  ;;  %8779 = vmatprep.subr.bf16.mxu0 %v11484_v60 }
 0x849   :  { %9005 = vmatprep.subr.bf16.mxu1 %v11486_v38  ;;  %v6546_v28 = vpop.xlane.xlu0 %6545 }
 0x84a   :  { %v6574_v21 = vmul.f32 0.001953125, %v6546_v28 }
 0x84c   :  { %v6590_v45 = vadd.f32 1e-06, %v6574_v21  ;;  %v6551_v5 = vpop.xlane.xlu1 %6550 }
 0x84d   :  { %v6575_v2 = vmul.f32 0.001953125, %v6551_v5 }
 0x84e   :  { %13371 = vrsqrt.f32 %v6590_v45 }
 0x84f   :  { %v6591_v52 = vadd.f32 1e-06, %v6575_v2 }
 0x851   :  { %13373 = vrsqrt.f32 %v6591_v52 }
 0x852   :  { %v6556_v6 = vpop.xlane.xlu0 %6555 }
 0x853   :  { %v6576_v7 = vmul.f32 0.001953125, %v6556_v6  ;;  %v6561_v40 = vpop.xlane.xlu1 %6560 }
 0x854   :  { %v6577_v58 = vmul.f32 0.001953125, %v6561_v40 }
 0x855   :  { %v6592_v30 = vadd.f32 1e-06, %v6576_v7 }
 0x856   :  { %v6593_v42 = vadd.f32 1e-06, %v6577_v58 }
 0x857   :  { %13375 = vrsqrt.f32 %v6592_v30 }
 0x858   :  { %v13372_v10 = vpop.eup %13371  ;;  %13377 = vrsqrt.f32 %v6593_v42  ;;  %v19145_v42 = vld [vmem:[#allocation64_spill] sm:$0xff] }
 0x859   :  { %v6659_v35 = vmul.f32 %v13372_v10, %v19137_v23  ;;  %v6658_v51 = vmul.f32 %v13372_v10, %v19138_v61  ;;  %v6661_v59 = vmul.f32 %v13372_v10, %v19139_v46  ;;  %v6660_v41 = vmul.f32 %v13372_v10, %v19140_v13  ;;  %v19146_v23 = vld [vmem:[#allocation55_spill] sm:$0xff] }
 0x85b   :  { %v13374_v47 = vpop.eup %13373  ;;  %v6744_v60 = vmul.f32 %v17274_v26, %v6659_v35  ;;  %v6743_v38 = vmul.f32 %v17270_v56, %v6658_v51  ;;  %v6746_v28 = vmul.f32 %v17284_v44, %v6661_v59  ;;  %v6745_v21 = vmul.f32 %v17288_v11, %v6660_v41  ;;  %v19147_v51 = vld [vmem:[#allocation67_spill] sm:$0xff]  ;;  %v19148_v59 = vld [vmem:[#allocation58_spill] sm:$0xff] }
 0x85c   :  { %v6663_v32 = vmul.f32 %v13374_v47, %v19141_v63  ;;  %v6662_v25 = vmul.f32 %v13374_v47, %v19142_v22  ;;  %v6665_v0 = vmul.f32 %v13374_v47, %v19143_v29  ;;  %v6664_v17 = vmul.f32 %v13374_v47, %v19144_v43  ;;  %v19149_v41 = vld [vmem:[#allocation82_spill] sm:$0xff]  ;;  %v19150_v63 = vld [vmem:[#allocation73_spill] sm:$0xff]  ;;  %v19152_v29 = vld [vmem:[#allocation76_spill] sm:$0xff] }
 0x85d   :  { %v19151_v22 = vld [vmem:[#allocation85_spill] sm:$0xff] }
 0x85e   :  { %v6748_v45 = vmul.f32 %v17274_v26, %v6663_v32  ;;  %v6747_v5 = vmul.f32 %v17270_v56, %v6662_v25  ;;  %v6750_v2 = vmul.f32 %v17284_v44, %v6665_v0  ;;  %v6749_v52 = vmul.f32 %v17288_v11, %v6664_v17 }
 0x860   :  { %v17681_v7 = vpack.c.bf16 %v6748_v45, %v6744_v60  ;;  %v17683_v40 = vpack.c.bf16 %v6747_v5, %v6743_v38  ;;  %v17685_v30 = vpack.c.bf16 %v6750_v2, %v6746_v28  ;;  %v17687_v58 = vpack.c.bf16 %v6749_v52, %v6745_v21 }
 0x861   :  { %v13376_v6 = vpop.eup %13375 }
 0x862   :  { %v6667_v10 = vmul.f32 %v13376_v6, %v19145_v42  ;;  %v6666_v35 = vmul.f32 %v13376_v6, %v19146_v23  ;;  %v13378_v61 = vpop.eup %13377  ;;  %8419 = vmatprep.mubr.bf16.mxu0 %v17681_v7  ;;  %8645 = vmatprep.mubr.bf16.mxu1 %v17681_v7  ;;  %v6669_v46 = vmul.f32 %v13376_v6, %v19147_v51  ;;  %v6809_v51 = vld [vmem:[#allocation8 + $0x90] sm:$0xff] }
 0x863   :  { %v6668_v13 = vmul.f32 %v13376_v6, %v19148_v59  ;;  %8420 = vmatmul.mubr.bf16.gmra.mrb[184].mxu0 %v17683_v40  ;;  %8646 = vmatmul.mubr.bf16.gmra.mrb[184].mxu1 %v17683_v40  ;;  %v6671_v47 = vmul.f32 %v13378_v61, %v19149_v41  ;;  %v6670_v32 = vmul.f32 %v13378_v61, %v19150_v63  ;;  %v6810_v59 = vld [vmem:[#allocation8 + $0x98] sm:$0xff] }
 0x864   :  { %v6673_v25 = vmul.f32 %v13378_v61, %v19151_v22  ;;  %v6672_v0 = vmul.f32 %v13378_v61, %v19152_v29  ;;  %v6752_v43 = vmul.f32 %v17274_v26, %v6667_v10  ;;  %v6751_v60 = vmul.f32 %v17270_v56, %v6666_v35  ;;  %v6818_v63 = vld [vmem:[#allocation8 + $0xd8] sm:$0xff] }
 0x865   :  { %v6756_v17 = vmul.f32 %v17274_v26, %v6671_v47  ;;  %v6755_v38 = vmul.f32 %v17270_v56, %v6670_v32  ;;  %v6754_v28 = vmul.f32 %v17284_v44, %v6669_v46  ;;  %v6753_v45 = vmul.f32 %v17288_v11, %v6668_v13  ;;  %v6805_v56 = vld [vmem:[#allocation8 + $0x70] sm:$0xff]  ;;  %v6802_v26 = vld [vmem:[#allocation8 + $0x58] sm:$0xff] }
 0x866   :  { %v6758_v21 = vmul.f32 %v17284_v44, %v6673_v25  ;;  %v6757_v5 = vmul.f32 %v17288_v11, %v6672_v0  ;;  %v6801_v11 = vld [vmem:[#allocation8 + $0x50] sm:$0xff]  ;;  %v6806_v44 = vld [vmem:[#allocation8 + $0x78] sm:$0xff]  ;;  %v11483_v10 = vcombine.low %v17653_v57, %v17655_v49  ;;  %v11485_v23 = vcombine.low %v17657_v34, %v17659_v48 }
 0x867   :  { %v17709_v2 = vpack.c.bf16 %v6756_v17, %v6752_v43  ;;  %v17711_v52 = vpack.c.bf16 %v6755_v38, %v6751_v60  ;;  %v11492_v35 = vcombine.high %v6801_v11, %v6805_v56  ;;  %v11494_v61 = vcombine.high %v6802_v26, %v6806_v44  ;;  %v6813_v46 = vld [vmem:[#allocation8 + $0xb0] sm:$0xff]  ;;  %v6814_v13 = vld [vmem:[#allocation8 + $0xb8] sm:$0xff] }
 0x868   :  { %v17713_v6 = vpack.c.bf16 %v6758_v21, %v6754_v28  ;;  %v17715_v42 = vpack.c.bf16 %v6757_v5, %v6753_v45  ;;  %v11491_v41 = vcombine.low %v6801_v11, %v6805_v56  ;;  %v11493_v57 = vcombine.low %v6802_v26, %v6806_v44  ;;  %v6817_v48 = vld [vmem:[#allocation8 + $0xd0] sm:$0xff]  ;;  %v6822_v32 = vld [vmem:[#allocation8 + $0xf8] sm:$0xff] }
 0x869   :  { %8429 = vmatprep.mubr.bf16.mxu0 %v17709_v2  ;;  %8655 = vmatprep.mubr.bf16.mxu1 %v17709_v2  ;;  %v11500_v49 = vcombine.high %v6809_v51, %v6813_v46  ;;  %v11502_v34 = vcombine.high %v6810_v59, %v6814_v13  ;;  %v6821_v47 = vld [vmem:[#allocation8 + $0xf0] sm:$0xff]  ;;  %v11499_v22 = vcombine.low %v6809_v51, %v6813_v46  ;;  %v6826_v60 = vld [vmem:[#allocation8 + $0x118] sm:$0xff] }
 0x86a   :  { %v11501_v25 = vcombine.low %v6810_v59, %v6814_v13  ;;  %v11508_v29 = vcombine.high %v6817_v48, %v6821_v47  ;;  %v11510_v0 = vcombine.high %v6818_v63, %v6822_v32  ;;  %v6825_v43 = vld [vmem:[#allocation8 + $0x110] sm:$0xff]  ;;  %v6830_v38 = vld [vmem:[#allocation8 + $0x138] sm:$0xff]  ;;  %v11507_v28 = vcombine.low %v6817_v48, %v6821_v47 }
 0x86b   :  { %8430 = vmatmul.mubr.bf16.gmra.mrb[188].mxu0 %v17711_v52  ;;  %8656 = vmatmul.mubr.bf16.gmra.mrb[188].mxu1 %v17711_v52  ;;  %v6829_v17 = vld [vmem:[#allocation8 + $0x130] sm:$0xff]  ;;  %v11509_v21 = vcombine.low %v6818_v63, %v6822_v32  ;;  %v11518_v5 = vcombine.high %v6826_v60, %v6830_v38  ;;  %v6834_v26 = vld [vmem:[#allocation8 + $0x158] sm:$0xff] }
 0x86c   :  { %8472 = vmatprep.mubr.bf16.mxu0 %v17348_v62  ;;  %8698 = vmatprep.mubr.bf16.mxu1 %v17348_v62  ;;  %v11516_v45 = vcombine.high %v6825_v43, %v6829_v17  ;;  %v6833_v11 = vld [vmem:[#allocation8 + $0x150] sm:$0xff]  ;;  %v6838_v44 = vld [vmem:[#allocation8 + $0x178] sm:$0xff] }
 0x86d   :  { %v6837_v56 = vld [vmem:[#allocation8 + $0x170] sm:$0xff]  ;;  %v6842_v59 = vld [vmem:[#allocation8 + $0x198] sm:$0xff] }
 0x86e   :  { %v6841_v51 = vld [vmem:[#allocation8 + $0x190] sm:$0xff]  ;;  %v6846_v13 = vld [vmem:[#allocation8 + $0x1b8] sm:$0xff] }
 0x86f   :  { %v6845_v46 = vld [vmem:[#allocation8 + $0x1b0] sm:$0xff]  ;;  %v6850_v63 = vld [vmem:[#allocation8 + $0x1d8] sm:$0xff] }
 0x870   :  { %v6849_v48 = vld [vmem:[#allocation8 + $0x1d0] sm:$0xff]  ;;  %v6854_v32 = vld [vmem:[#allocation8 + $0x1f8] sm:$0xff] }
 0x871   :  { %v6853_v47 = vld [vmem:[#allocation8 + $0x1f0] sm:$0xff] }
 0x873   :  { %8473 = vmatmul.mubr.bf16.vlgmr.msra.gmra.mrb[160].mxu0 %v17352_v36  ;;  %8699 = vmatmul.mubr.bf16.vlgmr.msra.gmra.mrb[160].mxu1 %v17352_v36 }
 0x874   :  { %8780 = vmatpush1.bf16.msra.mxu0 %v11483_v10  ;;  %8482 = vmatprep.mubr.bf16.mxu0 %v17420_v8  ;;  %v11515_v10 = vcombine.low %v6825_v43, %v6829_v17  ;;  %v6857_v43 = vld [vmem:[#allocation8 + $0x210] sm:$0xff] }
 0x875   :  { %8708 = vmatprep.mubr.bf16.mxu1 %v17420_v8  ;;  %9006 = vmatpush1.bf16.msra.mxu1 %v11485_v23  ;;  %v11517_v23 = vcombine.low %v6826_v60, %v6830_v38  ;;  %v6861_v17 = vld [vmem:[#allocation8 + $0x230] sm:$0xff]  ;;  %v6858_v60 = vld [vmem:[#allocation8 + $0x218] sm:$0xff] }
 0x876   :  { %8781 = vmatprep.subr.bf16.mxu0 %v11492_v35  ;;  %9007 = vmatprep.subr.bf16.mxu1 %v11494_v61  ;;  %v11524_v35 = vcombine.high %v6833_v11, %v6837_v56  ;;  %v11526_v61 = vcombine.high %v6834_v26, %v6838_v44  ;;  %v6862_v38 = vld [vmem:[#allocation8 + $0x238] sm:$0xff] }
 0x878   :  { %8782 = vmatpush1.bf16.msra.mxu0 %v11491_v41  ;;  %v11523_v41 = vcombine.low %v6833_v11, %v6837_v56  ;;  %v6865_v11 = vld [vmem:[#allocation8 + $0x250] sm:$0xff] }
 0x879   :  { %9008 = vmatpush1.bf16.msra.mxu1 %v11493_v57  ;;  %8783 = vmatprep.subr.bf16.mxu0 %v11500_v49  ;;  %v11525_v57 = vcombine.low %v6834_v26, %v6838_v44  ;;  %v11532_v49 = vcombine.high %v6841_v51, %v6845_v46  ;;  %v6869_v56 = vld [vmem:[#allocation8 + $0x270] sm:$0xff]  ;;  %v6866_v26 = vld [vmem:[#allocation8 + $0x258] sm:$0xff] }
 0x87a   :  { %9009 = vmatprep.subr.bf16.mxu1 %v11502_v34  ;;  %v11534_v34 = vcombine.high %v6842_v59, %v6846_v13  ;;  %v6870_v44 = vld [vmem:[#allocation8 + $0x278] sm:$0xff] }
 0x87b   :  { %8483 = vmatmul.mubr.bf16.gmra.mrb[164].mxu0 %v17426_v19  ;;  %8709 = vmatmul.mubr.bf16.gmra.mrb[164].mxu1 %v17426_v19 }
 0x87c   :  { %8784 = vmatpush1.bf16.msra.mxu0 %v11499_v22  ;;  %8492 = vmatprep.mubr.bf16.mxu0 %v17482_v18  ;;  %v11531_v22 = vcombine.low %v6841_v51, %v6845_v46  ;;  %v6873_v51 = vld [vmem:[#allocation8 + $0x290] sm:$0xff] }
 0x87d   :  { %8718 = vmatprep.mubr.bf16.mxu1 %v17482_v18  ;;  %9010 = vmatpush1.bf16.msra.mxu1 %v11501_v25  ;;  %v11533_v25 = vcombine.low %v6842_v59, %v6846_v13  ;;  %v6877_v46 = vld [vmem:[#allocation8 + $0x2b0] sm:$0xff]  ;;  %v6874_v59 = vld [vmem:[#allocation8 + $0x298] sm:$0xff] }
 0x87e   :  { %8785 = vmatprep.subr.bf16.mxu0 %v11508_v29  ;;  %9011 = vmatprep.subr.bf16.mxu1 %v11510_v0  ;;  %v11540_v29 = vcombine.high %v6849_v48, %v6853_v47  ;;  %v11542_v0 = vcombine.high %v6850_v63, %v6854_v32  ;;  %v6878_v13 = vld [vmem:[#allocation8 + $0x2b8] sm:$0xff] }
 0x880   :  { %8786 = vmatpush1.bf16.msra.mxu0 %v11507_v28  ;;  %v11539_v28 = vcombine.low %v6849_v48, %v6853_v47  ;;  %v6881_v48 = vld [vmem:[#allocation8 + $0x2d0] sm:$0xff] }
 0x881   :  { %9012 = vmatpush1.bf16.msra.mxu1 %v11509_v21  ;;  %8787 = vmatprep.subr.bf16.mxu0 %v11516_v45  ;;  %v11541_v21 = vcombine.low %v6850_v63, %v6854_v32  ;;  %v11548_v45 = vcombine.high %v6857_v43, %v6861_v17  ;;  %v6885_v47 = vld [vmem:[#allocation8 + $0x2f0] sm:$0xff]  ;;  %v6882_v63 = vld [vmem:[#allocation8 + $0x2d8] sm:$0xff] }
 0x882   :  { %9013 = vmatprep.subr.bf16.mxu1 %v11518_v5  ;;  %v11550_v5 = vcombine.high %v6858_v60, %v6862_v38  ;;  %v6886_v32 = vld [vmem:[#allocation8 + $0x2f8] sm:$0xff] }
 0x883   :  { %8493 = vmatmul.mubr.bf16.gmra.mrb[168].mxu0 %v17493_v54  ;;  %8719 = vmatmul.mubr.bf16.gmra.mrb[168].mxu1 %v17493_v54 }
 0x884   :  { %8788 = vmatpush1.bf16.msra.mxu0 %v11515_v10  ;;  %8502 = vmatprep.mubr.bf16.mxu0 %v17559_v37  ;;  %v11547_v10 = vcombine.low %v6857_v43, %v6861_v17  ;;  %v6889_v43 = vld [vmem:[#allocation8 + $0x310] sm:$0xff] }
 0x885   :  { %8728 = vmatprep.mubr.bf16.mxu1 %v17559_v37  ;;  %9014 = vmatpush1.bf16.msra.mxu1 %v11517_v23  ;;  %v11549_v23 = vcombine.low %v6858_v60, %v6862_v38  ;;  %v6893_v17 = vld [vmem:[#allocation8 + $0x330] sm:$0xff]  ;;  %v6890_v60 = vld [vmem:[#allocation8 + $0x318] sm:$0xff] }
 0x886   :  { %8789 = vmatprep.subr.bf16.mxu0 %v11524_v35  ;;  %9015 = vmatprep.subr.bf16.mxu1 %v11526_v61  ;;  %v11556_v35 = vcombine.high %v6865_v11, %v6869_v56  ;;  %v11558_v61 = vcombine.high %v6866_v26, %v6870_v44  ;;  %v6894_v38 = vld [vmem:[#allocation8 + $0x338] sm:$0xff] }
 0x888   :  { %8790 = vmatpush1.bf16.msra.mxu0 %v11523_v41  ;;  %v11555_v41 = vcombine.low %v6865_v11, %v6869_v56  ;;  %v6897_v11 = vld [vmem:[#allocation8 + $0x350] sm:$0xff] }
 0x889   :  { %9016 = vmatpush1.bf16.msra.mxu1 %v11525_v57  ;;  %8791 = vmatprep.subr.bf16.mxu0 %v11532_v49  ;;  %v11557_v57 = vcombine.low %v6866_v26, %v6870_v44  ;;  %v11564_v49 = vcombine.high %v6873_v51, %v6877_v46  ;;  %v6901_v56 = vld [vmem:[#allocation8 + $0x370] sm:$0xff]  ;;  %v6898_v26 = vld [vmem:[#allocation8 + $0x358] sm:$0xff] }
 0x88a   :  { %9017 = vmatprep.subr.bf16.mxu1 %v11534_v34  ;;  %v11566_v34 = vcombine.high %v6874_v59, %v6878_v13  ;;  %v6902_v44 = vld [vmem:[#allocation8 + $0x378] sm:$0xff] }
 0x88b   :  { %8503 = vmatmul.mubr.bf16.gmra.mrb[172].mxu0 %v17561_v20  ;;  %8729 = vmatmul.mubr.bf16.gmra.mrb[172].mxu1 %v17561_v20 }
 0x88c   :  { %8792 = vmatpush1.bf16.msra.mxu0 %v11531_v22  ;;  %8512 = vmatprep.mubr.bf16.mxu0 %v17613_v14  ;;  %v11563_v22 = vcombine.low %v6873_v51, %v6877_v46  ;;  %v6905_v51 = vld [vmem:[#allocation8 + $0x390] sm:$0xff] }
 0x88d   :  { %8738 = vmatprep.mubr.bf16.mxu1 %v17613_v14  ;;  %9018 = vmatpush1.bf16.msra.mxu1 %v11533_v25  ;;  %v11565_v25 = vcombine.low %v6874_v59, %v6878_v13  ;;  %v6909_v46 = vld [vmem:[#allocation8 + $0x3b0] sm:$0xff]  ;;  %v6906_v59 = vld [vmem:[#allocation8 + $0x398] sm:$0xff] }
 0x88e   :  { %8793 = vmatprep.subr.bf16.mxu0 %v11540_v29  ;;  %9019 = vmatprep.subr.bf16.mxu1 %v11542_v0  ;;  %v11572_v29 = vcombine.high %v6881_v48, %v6885_v47  ;;  %v11574_v0 = vcombine.high %v6882_v63, %v6886_v32  ;;  %v6910_v13 = vld [vmem:[#allocation8 + $0x3b8] sm:$0xff] }
 0x890   :  { %8794 = vmatpush1.bf16.msra.mxu0 %v11539_v28  ;;  %v11571_v28 = vcombine.low %v6881_v48, %v6885_v47  ;;  %v6913_v48 = vld [vmem:[#allocation8 + $0x3d0] sm:$0xff] }
 0x891   :  { %9020 = vmatpush1.bf16.msra.mxu1 %v11541_v21  ;;  %8795 = vmatprep.subr.bf16.mxu0 %v11548_v45  ;;  %v11573_v21 = vcombine.low %v6882_v63, %v6886_v32  ;;  %v11580_v45 = vcombine.high %v6889_v43, %v6893_v17  ;;  %v6917_v47 = vld [vmem:[#allocation8 + $0x3f0] sm:$0xff]  ;;  %v6914_v63 = vld [vmem:[#allocation8 + $0x3d8] sm:$0xff] }
 0x892   :  { %9021 = vmatprep.subr.bf16.mxu1 %v11550_v5  ;;  %v11582_v5 = vcombine.high %v6890_v60, %v6894_v38  ;;  %v6918_v32 = vld [vmem:[#allocation8 + $0x3f8] sm:$0xff] }
 0x893   :  { %8513 = vmatmul.mubr.bf16.gmra.mrb[176].mxu0 %v17629_v53  ;;  %8739 = vmatmul.mubr.bf16.gmra.mrb[176].mxu1 %v17629_v53 }
 0x894   :  { %8796 = vmatpush1.bf16.msra.mxu0 %v11547_v10  ;;  %8522 = vmatprep.mubr.bf16.mxu0 %v17643_v15  ;;  %v11579_v10 = vcombine.low %v6889_v43, %v6893_v17  ;;  %v6921_v43 = vld [vmem:[#allocation8 + $0x410] sm:$0xff] }
 0x895   :  { %8748 = vmatprep.mubr.bf16.mxu1 %v17643_v15  ;;  %9022 = vmatpush1.bf16.msra.mxu1 %v11549_v23  ;;  %v11581_v23 = vcombine.low %v6890_v60, %v6894_v38  ;;  %v6925_v17 = vld [vmem:[#allocation8 + $0x430] sm:$0xff]  ;;  %v6922_v60 = vld [vmem:[#allocation8 + $0x418] sm:$0xff] }
 0x896   :  { %8797 = vmatprep.subr.bf16.mxu0 %v11556_v35  ;;  %9023 = vmatprep.subr.bf16.mxu1 %v11558_v61  ;;  %v11588_v35 = vcombine.high %v6897_v11, %v6901_v56  ;;  %v11590_v61 = vcombine.high %v6898_v26, %v6902_v44  ;;  %v6926_v38 = vld [vmem:[#allocation8 + $0x438] sm:$0xff] }
 0x898   :  { %8798 = vmatpush1.bf16.msra.mxu0 %v11555_v41  ;;  %v11587_v41 = vcombine.low %v6897_v11, %v6901_v56  ;;  %v6929_v11 = vld [vmem:[#allocation8 + $0x450] sm:$0xff] }
 0x899   :  { %9024 = vmatpush1.bf16.msra.mxu1 %v11557_v57  ;;  %8799 = vmatprep.subr.bf16.mxu0 %v11564_v49  ;;  %v11589_v57 = vcombine.low %v6898_v26, %v6902_v44  ;;  %v11596_v49 = vcombine.high %v6905_v51, %v6909_v46  ;;  %v6933_v56 = vld [vmem:[#allocation8 + $0x470] sm:$0xff]  ;;  %v11611_v26 = vcombine.low %v6921_v43, %v6925_v17  ;;  %v6930_v44 = vld [vmem:[#allocation8 + $0x458] sm:$0xff] }
 0x89a   :  { %9025 = vmatprep.subr.bf16.mxu1 %v11566_v34  ;;  %v11598_v34 = vcombine.high %v6906_v59, %v6910_v13 }
 0x89b   :  { %8523 = vmatmul.mubr.bf16.gmra.mrb[180].mxu0 %v17651_v39  ;;  %8749 = vmatmul.mubr.bf16.gmra.mrb[180].mxu1 %v17651_v39 }
 0x89c   :  { %8800 = vmatpush1.bf16.msra.mxu0 %v11563_v22  ;;  %8532 = vmatprep.mubr.bf16.mxu0 %v17685_v30  ;;  %v11595_v22 = vcombine.low %v6905_v51, %v6909_v46  ;;  %v6941_v51 = vld [vmem:[#allocation8 + $0x4b0] sm:$0xff]  ;;  %v11619_v46 = vcombine.low %v6929_v11, %v6933_v56 }
 0x89d   :  { %8758 = vmatprep.mubr.bf16.mxu1 %v17685_v30  ;;  %9026 = vmatpush1.bf16.msra.mxu1 %v11565_v25  ;;  %v11597_v25 = vcombine.low %v6906_v59, %v6910_v13  ;;  %v6938_v59 = vld [vmem:[#allocation8 + $0x498] sm:$0xff] }
 0x89e   :  { %8801 = vmatprep.subr.bf16.mxu0 %v11572_v29  ;;  %9027 = vmatprep.subr.bf16.mxu1 %v11574_v0  ;;  %v11604_v29 = vcombine.high %v6913_v48, %v6917_v47  ;;  %v11606_v0 = vcombine.high %v6914_v63, %v6918_v32  ;;  %v6942_v13 = vld [vmem:[#allocation8 + $0x4b8] sm:$0xff] }
 0x8a0   :  { %8802 = vmatpush1.bf16.msra.mxu0 %v11571_v28  ;;  %v11603_v28 = vcombine.low %v6913_v48, %v6917_v47  ;;  %v6949_v48 = vld [vmem:[#allocation8 + $0x4f0] sm:$0xff] }
 0x8a1   :  { %9028 = vmatpush1.bf16.msra.mxu1 %v11573_v21  ;;  %8803 = vmatprep.subr.bf16.mxu0 %v11580_v45  ;;  %v11605_v21 = vcombine.low %v6914_v63, %v6918_v32  ;;  %v11612_v45 = vcombine.high %v6921_v43, %v6925_v17  ;;  %v6946_v63 = vld [vmem:[#allocation8 + $0x4d8] sm:$0xff] }
 0x8a2   :  { %9029 = vmatprep.subr.bf16.mxu1 %v11582_v5  ;;  %v11614_v5 = vcombine.high %v6922_v60, %v6926_v38  ;;  %v6950_v32 = vld [vmem:[#allocation8 + $0x4f8] sm:$0xff] }
 0x8a3   :  { %8533 = vmatmul.mubr.bf16.gmra.mrb[184].mxu0 %v17687_v58  ;;  %8759 = vmatmul.mubr.bf16.gmra.mrb[184].mxu1 %v17687_v58  ;;  %v6954_v43 = vld [vmem:[#allocation8 + $0x518] sm:$0xff] }
 0x8a4   :  { %8804 = vmatpush1.bf16.msra.mxu0 %v11579_v10  ;;  %8542 = vmatprep.mubr.bf16.mxu0 %v17713_v6  ;;  %v6934_v10 = vld [vmem:[#allocation8 + $0x478] sm:$0xff] }
 0x8a5   :  { %8768 = vmatprep.mubr.bf16.mxu1 %v17713_v6  ;;  %9030 = vmatpush1.bf16.msra.mxu1 %v11581_v23  ;;  %v11613_v23 = vcombine.low %v6922_v60, %v6926_v38  ;;  %v6958_v17 = vld [vmem:[#allocation8 + $0x538] sm:$0xff]  ;;  %v11637_v38 = vcombine.low %v6946_v63, %v6950_v32 }
 0x8a6   :  { %8805 = vmatprep.subr.bf16.mxu0 %v11588_v35  ;;  %9031 = vmatprep.subr.bf16.mxu1 %v11590_v61  ;;  %v11620_v35 = vcombine.high %v6929_v11, %v6933_v56  ;;  %v6937_v61 = vld [vmem:[#allocation8 + $0x490] sm:$0xff]  ;;  %v6962_v11 = vld [vmem:[#allocation8 + $0x558] sm:$0xff] }
 0x8a7   :  { %v11627_v47 = vcombine.low %v6937_v61, %v6941_v51  ;;  %v6966_v56 = vld [vmem:[#allocation8 + $0x578] sm:$0xff] }
 0x8a8   :  { %8806 = vmatpush1.bf16.msra.mxu0 %v11587_v41  ;;  %v11628_v41 = vcombine.high %v6937_v61, %v6941_v51  ;;  %v6974_v61 = vld [vmem:[#allocation8 + $0x5b8] sm:$0xff] }
 0x8a9   :  { %9032 = vmatpush1.bf16.msra.mxu1 %v11589_v57  ;;  %8807 = vmatprep.subr.bf16.mxu0 %v11596_v49  ;;  %v11621_v57 = vcombine.low %v6930_v44, %v6934_v10  ;;  %v11630_v49 = vcombine.high %v6938_v59, %v6942_v13 }
 0x8aa   :  { %9033 = vmatprep.subr.bf16.mxu1 %v11598_v34  ;;  %v6945_v34 = vld [vmem:[#allocation8 + $0x4d0] sm:$0xff] }
 0x8ab   :  { %8543 = vmatmul.mubr.bf16.gmra.mrb[188].mxu0 %v17715_v42  ;;  %8769 = vmatmul.mubr.bf16.gmra.mrb[188].mxu1 %v17715_v42 }
 0x8ac   :  { %8808 = vmatpush1.bf16.msra.mxu0 %v11595_v22  ;;  %8811 = vmatprep.mubr.bf16.mxu0 %v17342_v16  ;;  %v11636_v22 = vcombine.high %v6945_v34, %v6949_v48 }
 0x8ad   :  { %9034 = vmatpush1.bf16.msra.mxu1 %v11597_v25  ;;  %9037 = vmatprep.mubr.bf16.mxu1 %v17342_v16  ;;  %v11622_v16 = vcombine.high %v6930_v44, %v6934_v10  ;;  %v6953_v25 = vld [vmem:[#allocation8 + $0x510] sm:$0xff] }
 0x8ae   :  { %8809 = vmatprep.subr.bf16.mxu0 %v11604_v29  ;;  %9035 = vmatprep.subr.bf16.mxu1 %v11606_v0  ;;  %v6957_v29 = vld [vmem:[#allocation8 + $0x530] sm:$0xff]  ;;  %v11635_v0 = vcombine.low %v6945_v34, %v6949_v48 }
 0x8af   :  { %v11644_v60 = vcombine.high %v6953_v25, %v6957_v29  ;;  %v6969_v44 = vld [vmem:[#allocation8 + $0x590] sm:$0xff] }
 0x8b0   :  { %8810 = vmatpush1.bf16.msra.mxu0 %v11603_v28  ;;  %v11646_v28 = vcombine.high %v6954_v43, %v6958_v17  ;;  %v6973_v10 = vld [vmem:[#allocation8 + $0x5b0] sm:$0xff] }
 0x8b1   :  { %9036 = vmatpush1.bf16.msra.mxu1 %v11605_v21  ;;  %8892 = vmatprep.subr.bf16.mxu0 %v11612_v45  ;;  %v6961_v21 = vld [vmem:[#allocation8 + $0x550] sm:$0xff]  ;;  %v11660_v51 = vcombine.high %v6969_v44, %v6973_v10 }
 0x8b2   :  { %9118 = vmatprep.subr.bf16.mxu1 %v11614_v5  ;;  %v6965_v45 = vld [vmem:[#allocation8 + $0x570] sm:$0xff]  ;;  %v11643_v5 = vcombine.low %v6953_v25, %v6957_v29 }
 0x8b3   :  { %8812 = vmatmul.mubr.bf16.vlgmr.msra.gmra.mrb[192].mxu0 %v17344_v9  ;;  %v6985_v48 = vld [vmem:[#allocation8 + $0x610] sm:$0xff] }
 0x8b4   :  { %8893 = vmatpush1.bf16.msra.mxu0 %v11611_v26  ;;  %9038 = vmatmul.mubr.bf16.vlgmr.msra.gmra.mrb[192].mxu1 %v17344_v9  ;;  %v11629_v9 = vcombine.low %v6938_v59, %v6942_v13  ;;  %v11652_v26 = vcombine.high %v6961_v21, %v6965_v45  ;;  %v6977_v59 = vld [vmem:[#allocation8 + $0x5d0] sm:$0xff] }
 0x8b5   :  { %8821 = vmatprep.mubr.bf16.mxu0 %v17397_v3  ;;  %9047 = vmatprep.mubr.bf16.mxu1 %v17397_v3  ;;  %v11638_v3 = vcombine.high %v6946_v63, %v6950_v32  ;;  %v6981_v13 = vld [vmem:[#allocation8 + $0x5f0] sm:$0xff]  ;;  %v6986_v32 = vld [vmem:[#allocation8 + $0x618] sm:$0xff] }
 0x8b6   :  { %9119 = vmatpush1.bf16.msra.mxu1 %v11613_v23  ;;  %8894 = vmatprep.subr.bf16.mxu0 %v11620_v35  ;;  %v11651_v23 = vcombine.low %v6961_v21, %v6965_v45  ;;  %v6970_v35 = vld [vmem:[#allocation8 + $0x598] sm:$0xff]  ;;  %v11668_v34 = vcombine.high %v6977_v59, %v6981_v13  ;;  %v11667_v63 = vcombine.low %v6977_v59, %v6981_v13  ;;  %v7005_v21 = vld [vmem:[#allocation8 + $0x6b0] sm:$0xff] }
 0x8b7   :  { %9120 = vmatprep.subr.bf16.mxu1 %v11622_v16  ;;  %v11653_v16 = vcombine.low %v6962_v11, %v6966_v56  ;;  %v7018_v59 = vld [vmem:[#allocation8 + $0x718] sm:$0xff] }
 0x8b8   :  { %8895 = vmatpush1.bf16.msra.mxu0 %v11619_v46  ;;  %v11662_v46 = vcombine.high %v6970_v35, %v6974_v61  ;;  %v7022_v13 = vld [vmem:[#allocation8 + $0x738] sm:$0xff] }
 0x8b9   :  { %8896 = vmatprep.subr.bf16.mxu0 %v11628_v41  ;;  %v11659_v41 = vcombine.low %v6969_v44, %v6973_v10  ;;  %v7009_v44 = vld [vmem:[#allocation8 + $0x6d0] sm:$0xff] }
 0x8ba   :  { %9121 = vmatpush1.bf16.msra.mxu1 %v11621_v57  ;;  %v6978_v57 = vld [vmem:[#allocation8 + $0x5d8] sm:$0xff]  ;;  %v7013_v10 = vld [vmem:[#allocation8 + $0x6f0] sm:$0xff] }
 0x8bb   :  { %8822 = vmatmul.mubr.bf16.gmra.mrb[196].mxu0 %v17399_v24  ;;  %9122 = vmatprep.subr.bf16.mxu1 %v11630_v49  ;;  %v6982_v49 = vld [vmem:[#allocation8 + $0x5f8] sm:$0xff] }
 0x8bc   :  { %8897 = vmatpush1.bf16.msra.mxu0 %v11627_v47  ;;  %9048 = vmatmul.mubr.bf16.gmra.mrb[196].mxu1 %v17399_v24  ;;  %v11645_v24 = vcombine.low %v6954_v43, %v6958_v17  ;;  %v6989_v47 = vld [vmem:[#allocation8 + $0x630] sm:$0xff]  ;;  %v11669_v25 = vcombine.low %v6978_v57, %v6982_v49  ;;  %v6994_v17 = vld [vmem:[#allocation8 + $0x658] sm:$0xff] }
 0x8bd   :  { %8831 = vmatprep.mubr.bf16.mxu0 %v17466_v12  ;;  %9057 = vmatprep.mubr.bf16.mxu1 %v17466_v12  ;;  %v11654_v12 = vcombine.high %v6962_v11, %v6966_v56  ;;  %v11675_v43 = vcombine.low %v6985_v48, %v6989_v47  ;;  %v7006_v11 = vld [vmem:[#allocation8 + $0x6b8] sm:$0xff] }
 0x8be   :  { %9123 = vmatpush1.bf16.msra.mxu1 %v11629_v9  ;;  %8898 = vmatprep.subr.bf16.mxu0 %v11636_v22  ;;  %v6990_v9 = vld [vmem:[#allocation8 + $0x638] sm:$0xff]  ;;  %v11676_v22 = vcombine.high %v6985_v48, %v6989_v47 }
 0x8bf   :  { %9124 = vmatprep.subr.bf16.mxu1 %v11638_v3  ;;  %v11678_v29 = vcombine.high %v6986_v32, %v6990_v9  ;;  %v6993_v3 = vld [vmem:[#allocation8 + $0x650] sm:$0xff]  ;;  %v7026_v47 = vld [vmem:[#allocation8 + $0x758] sm:$0xff] }
 0x8c0   :  { %8899 = vmatpush1.bf16.msra.mxu0 %v11635_v0  ;;  %v6997_v0 = vld [vmem:[#allocation8 + $0x670] sm:$0xff] }
 0x8c1   :  { %8900 = vmatprep.subr.bf16.mxu0 %v11644_v60  ;;  %v6998_v60 = vld [vmem:[#allocation8 + $0x678] sm:$0xff]  ;;  %v11683_v45 = vcombine.low %v6993_v3, %v6997_v0 }
 0x8c2   :  { %9125 = vmatpush1.bf16.msra.mxu1 %v11637_v38  ;;  %v11684_v38 = vcombine.high %v6993_v3, %v6997_v0 }
 0x8c3   :  { %8832 = vmatmul.mubr.bf16.gmra.mrb[200].mxu0 %v17468_v55  ;;  %9126 = vmatprep.subr.bf16.mxu1 %v11646_v28  ;;  %v7001_v28 = vld [vmem:[#allocation8 + $0x690] sm:$0xff] }
 0x8c4   :  { %8901 = vmatpush1.bf16.msra.mxu0 %v11643_v5  ;;  %9058 = vmatmul.mubr.bf16.gmra.mrb[200].mxu1 %v17468_v55  ;;  %v11661_v55 = vcombine.low %v6970_v35, %v6974_v61  ;;  %v7002_v5 = vld [vmem:[#allocation8 + $0x698] sm:$0xff]  ;;  %v11692_v56 = vcombine.high %v7001_v28, %v7005_v21  ;;  %v11700_v61 = vcombine.high %v7009_v44, %v7013_v10 }
 0x8c5   :  { %8841 = vmatprep.mubr.bf16.mxu0 %v17547_v31  ;;  %9067 = vmatprep.mubr.bf16.mxu1 %v17547_v31  ;;  %v11670_v31 = vcombine.high %v6978_v57, %v6982_v49  ;;  %v7014_v35 = vld [vmem:[#allocation8 + $0x6f8] sm:$0xff]  ;;  %v11710_v49 = vcombine.high %v7018_v59, %v7022_v13 }
 0x8c6   :  { %9127 = vmatpush1.bf16.msra.mxu1 %v11645_v24  ;;  %8902 = vmatprep.subr.bf16.mxu0 %v11652_v26  ;;  %v11685_v24 = vcombine.low %v6994_v17, %v6998_v60  ;;  %v11694_v26 = vcombine.high %v7002_v5, %v7006_v11 }
 0x8c7   :  { %9128 = vmatprep.subr.bf16.mxu1 %v11654_v12  ;;  %v11691_v12 = vcombine.low %v7001_v28, %v7005_v21  ;;  %v7046_v28 = vld [vmem:[#allocation8 + $0x7f8] sm:$0xff] }
 0x8c8   :  { %8903 = vmatpush1.bf16.msra.mxu0 %v11651_v23  ;;  %v7010_v23 = vld [vmem:[#allocation8 + $0x6d8] sm:$0xff] }
 0x8c9   :  { %8904 = vmatprep.subr.bf16.mxu0 %v11660_v51  ;;  %v7017_v51 = vld [vmem:[#allocation8 + $0x710] sm:$0xff]  ;;  %v11701_v57 = vcombine.low %v7010_v23, %v7014_v35 }
 0x8ca   :  { %9129 = vmatpush1.bf16.msra.mxu1 %v11653_v16  ;;  %v7021_v16 = vld [vmem:[#allocation8 + $0x730] sm:$0xff] }
 0x8cb   :  { %8842 = vmatmul.mubr.bf16.gmra.mrb[204].mxu0 %v17549_v50  ;;  %9130 = vmatprep.subr.bf16.mxu1 %v11662_v46  ;;  %v11699_v46 = vcombine.low %v7009_v44, %v7013_v10  ;;  %v11707_v48 = vcombine.low %v7017_v51, %v7021_v16 }
 0x8cc   :  { %8905 = vmatpush1.bf16.msra.mxu0 %v11659_v41  ;;  %9068 = vmatmul.mubr.bf16.gmra.mrb[204].mxu1 %v17549_v50  ;;  %v11677_v50 = vcombine.low %v6986_v32, %v6990_v9  ;;  %v11708_v41 = vcombine.high %v7017_v51, %v7021_v16  ;;  %v7033_v32 = vld [vmem:[#allocation8 + $0x790] sm:$0xff]  ;;  %v12888_v16 = vld [vmem:[#allocation9 + $0x68] ss:$16 sps:$4 sm:$0xff]  }
 0x8cd   :  { %8851 = vmatprep.mubr.bf16.mxu0 %v17606_v1  ;;  %9077 = vmatprep.mubr.bf16.mxu1 %v17606_v1  ;;  %v11686_v1 = vcombine.high %v6994_v17, %v6998_v60  ;;  %v7037_v9 = vld [vmem:[#allocation8 + $0x7b0] sm:$0xff] }
 0x8ce   :  { %9131 = vmatpush1.bf16.msra.mxu1 %v11661_v55  ;;  %8906 = vmatprep.subr.bf16.mxu0 %v11668_v34  ;;  %v7025_v55 = vld [vmem:[#allocation8 + $0x750] sm:$0xff]  ;;  %v11724_v3 = vcombine.high %v7033_v32, %v7037_v9 }
 0x8cf   :  { %9132 = vmatprep.subr.bf16.mxu1 %v11670_v31  ;;  %v7029_v34 = vld [vmem:[#allocation8 + $0x770] sm:$0xff]  ;;  %v7030_v31 = vld [vmem:[#allocation8 + $0x778] sm:$0xff] }
 0x8d0   :  { %8907 = vmatpush1.bf16.msra.mxu0 %v11667_v63  ;;  %v11716_v63 = vcombine.high %v7025_v55, %v7029_v34  ;;  %v11717_v0 = vcombine.low %v7026_v47, %v7030_v31  ;;  %v7041_v17 = vld [vmem:[#allocation8 + $0x7d0] sm:$0xff] }
 0x8d1   :  { %8908 = vmatprep.subr.bf16.mxu0 %v11676_v22  ;;  %v11715_v22 = vcombine.low %v7025_v55, %v7029_v34  ;;  %v7045_v60 = vld [vmem:[#allocation8 + $0x7f0] sm:$0xff] }
 0x8d2   :  { %9133 = vmatpush1.bf16.msra.mxu1 %v11669_v25  ;;  %v7034_v25 = vld [vmem:[#allocation8 + $0x798] sm:$0xff]  ;;  %v11732_v21 = vcombine.high %v7041_v17, %v7045_v60  ;;  %v12887_v51 = vld [vmem:[#allocation9 + $0x64] ss:$16 sps:$4 sm:$0xff]  }
 0x8d3   :  { %8852 = vmatmul.mubr.bf16.gmra.mrb[208].mxu0 %v17608_v33  ;;  %9134 = vmatprep.subr.bf16.mxu1 %v11678_v29  ;;  %v7038_v29 = vld [vmem:[#allocation8 + $0x7b8] sm:$0xff] }
 0x8d4   :  { %8909 = vmatpush1.bf16.msra.mxu0 %v11675_v43  ;;  %9078 = vmatmul.mubr.bf16.gmra.mrb[208].mxu1 %v17608_v33  ;;  %v11693_v33 = vcombine.low %v7002_v5, %v7006_v11  ;;  %v11726_v43 = vcombine.high %v7034_v25, %v7038_v29  ;;  %v12884_v5 = vld [vmem:[#allocation9 + $0x4c] ss:$16 sps:$4 sm:$0xff]  }
 0x8d5   :  { %8861 = vmatprep.mubr.bf16.mxu0 %v17637_v27  ;;  %9087 = vmatprep.mubr.bf16.mxu1 %v17637_v27  ;;  %v11702_v27 = vcombine.high %v7010_v23, %v7014_v35 }
 0x8d6   :  { %9135 = vmatpush1.bf16.msra.mxu1 %v11677_v50  ;;  %8910 = vmatprep.subr.bf16.mxu0 %v11684_v38  ;;  %v11723_v50 = vcombine.low %v7033_v32, %v7037_v9  ;;  %v7042_v38 = vld [vmem:[#allocation8 + $0x7d8] sm:$0xff]  ;;  %v12899_v32 = vld [vmem:[#allocation9 + $0xa4] ss:$16 sps:$4 sm:$0xff]  }
 0x8d7   :  { %9136 = vmatprep.subr.bf16.mxu1 %v11686_v1  ;;  %v11731_v1 = vcombine.low %v7041_v17, %v7045_v60  ;;  %v12900_v9 = vld [vmem:[#allocation9 + $0xa8] ss:$16 sps:$4 sm:$0xff]  }
 0x8d8   :  { %8911 = vmatpush1.bf16.msra.mxu0 %v11683_v45  ;;  %v11733_v45 = vcombine.low %v7042_v38, %v7046_v28 }
 0x8d9   :  { %8912 = vmatprep.subr.bf16.mxu0 %v11692_v56 }
 0x8da   :  { %9137 = vmatpush1.bf16.msra.mxu1 %v11685_v24  ;;  %v12879_v24 = vld [vmem:[#allocation9 + $0x40] ss:$16 sps:$4 sm:$0xff]  }
 0x8db   :  { %8862 = vmatmul.mubr.bf16.gmra.mrb[212].mxu0 %v17639_v4  ;;  %9138 = vmatprep.subr.bf16.mxu1 %v11694_v26  ;;  %v12882_v26 = vld [vmem:[#allocation9 + $0x48] ss:$16 sps:$4 sm:$0xff]  }
 0x8dc   :  { %8913 = vmatpush1.bf16.msra.mxu0 %v11691_v12  ;;  %9088 = vmatmul.mubr.bf16.gmra.mrb[212].mxu1 %v17639_v4  ;;  %v11709_v4 = vcombine.low %v7018_v59, %v7022_v13  ;;  %v12896_v59 = vld [vmem:[#allocation9 + $0x8c] ss:$16 sps:$4 sm:$0xff]  }
 0x8dd   :  { %8871 = vmatprep.mubr.bf16.mxu0 %v17681_v7  ;;  %9097 = vmatprep.mubr.bf16.mxu1 %v17681_v7  ;;  %v11718_v7 = vcombine.high %v7026_v47, %v7030_v31 }
 0x8de   :  { %9139 = vmatpush1.bf16.msra.mxu1 %v11693_v33  ;;  %8914 = vmatprep.subr.bf16.mxu0 %v11700_v61  ;;  %v12885_v61 = vld [vmem:[#allocation9 + $0x60] ss:$16 sps:$4 sm:$0xff]  }
 0x8df   :  { %9140 = vmatprep.subr.bf16.mxu1 %v11702_v27  ;;  %v12890_v27 = vld [vmem:[#allocation9 + $0x6c] ss:$16 sps:$4 sm:$0xff]  }
 0x8e0   :  { %8915 = vmatpush1.bf16.msra.mxu0 %v11699_v46  ;;  %v12893_v46 = vld [vmem:[#allocation9 + $0x84] ss:$16 sps:$4 sm:$0xff]  }
 0x8e1   :  { %8916 = vmatprep.subr.bf16.mxu0 %v11708_v41 }
 0x8e2   :  { %9141 = vmatpush1.bf16.msra.mxu1 %v11701_v57  ;;  %v12891_v57 = vld [vmem:[#allocation9 + $0x80] ss:$16 sps:$4 sm:$0xff]  }
 0x8e3   :  { %8872 = vmatmul.mubr.bf16.gmra.mrb[216].mxu0 %v17683_v40  ;;  %9142 = vmatprep.subr.bf16.mxu1 %v11710_v49  ;;  %v12894_v49 = vld [vmem:[#allocation9 + $0x88] ss:$16 sps:$4 sm:$0xff]  }
 0x8e4   :  { %8917 = vmatpush1.bf16.msra.mxu0 %v11707_v48  ;;  %9098 = vmatmul.mubr.bf16.gmra.mrb[216].mxu1 %v17683_v40  ;;  %v11725_v40 = vcombine.low %v7034_v25, %v7038_v29  ;;  %v12905_v29 = vld [vmem:[#allocation9 + $0xc4] ss:$16 sps:$4 sm:$0xff]  }
 0x8e5   :  { %8881 = vmatprep.mubr.bf16.mxu0 %v17709_v2  ;;  %9107 = vmatprep.mubr.bf16.mxu1 %v17709_v2  ;;  %v11734_v2 = vcombine.high %v7042_v38, %v7046_v28  ;;  %v12906_v28 = vld [vmem:[#allocation9 + $0xc8] ss:$16 sps:$4 sm:$0xff]  }
 0x8e6   :  { %9143 = vmatpush1.bf16.msra.mxu1 %v11709_v4  ;;  %8918 = vmatprep.subr.bf16.mxu0 %v11716_v63  ;;  %v12897_v63 = vld [vmem:[#allocation9 + $0xa0] ss:$16 sps:$4 sm:$0xff]  }
 0x8e7   :  { %9144 = vmatprep.subr.bf16.mxu1 %v11718_v7  ;;  %v12902_v7 = vld [vmem:[#allocation9 + $0xac] ss:$16 sps:$4 sm:$0xff]  }
 0x8e8   :  { %8919 = vmatpush1.bf16.msra.mxu0 %v11715_v22 }
 0x8e9   :  { %8920 = vmatprep.subr.bf16.mxu0 %v11724_v3 }
 0x8ea   :  { %9145 = vmatpush1.bf16.msra.mxu1 %v11717_v0  ;;  %v12903_v0 = vld [vmem:[#allocation9 + $0xc0] ss:$16 sps:$4 sm:$0xff]  }
 0x8eb   :  { %8882 = vmatmul.mubr.bf16.gmra.mrb[220].mxu0 %v17711_v52  ;;  %9146 = vmatprep.subr.bf16.mxu1 %v11726_v43 }
 0x8ec   :  { %8921 = vmatpush1.bf16.msra.mxu0 %v11723_v50  ;;  %9108 = vmatmul.mubr.bf16.gmra.mrb[220].mxu1 %v17711_v52  ;;  %v12876_v52 = vld [vmem:[#allocation9 + $0x28] ss:$16 sps:$4 sm:$0xff]  }
 0x8ed   :  { %8924 = vmatprep.mubr.bf16.mxu0 %v17348_v62  ;;  %9150 = vmatprep.mubr.bf16.mxu1 %v17348_v62  ;;  %v12872_v62 = vld [vmem:[#allocation9 + $0xc] ss:$16 sps:$4 sm:$0xff]  }
 0x8ee   :  { %9147 = vmatpush1.bf16.msra.mxu1 %v11725_v40  ;;  %8922 = vmatprep.subr.bf16.mxu0 %v11732_v21  ;;  %v12908_v40 = vld [vmem:[#allocation9 + $0xcc] ss:$16 sps:$4 sm:$0xff]   ;;  %v12909_v21 = vld [vmem:[#allocation9 + $0xe0] ss:$16 sps:$4 sm:$0xff]  }
 0x8ef   :  { %9148 = vmatprep.subr.bf16.mxu1 %v11734_v2  ;;  %v12911_v2 = vld [vmem:[#allocation9 + $0xe4] ss:$16 sps:$4 sm:$0xff]  }
 0x8f0   :  { %8923 = vmatpush1.bf16.msra.mxu0 %v11731_v1  ;;  %v12914_v1 = vld [vmem:[#allocation9 + $0xec] ss:$16 sps:$4 sm:$0xff]  }
 0x8f2   :  { %9149 = vmatpush1.bf16.msra.mxu1 %v11733_v45  ;;  %v12917_v45 = vld [vmem:[#allocation9 + $0x104] ss:$16 sps:$4 sm:$0xff]  }
 0x8f3   :  { %8925 = vmatmul.mubr.bf16.vlgmr.msra.gmra.mrb[192].mxu0 %v17352_v36  ;;  %10769 = vmatprep.subr.bf16.mxu1 %v12872_v62 }
 0x8f4   :  { %8934 = vmatprep.mubr.bf16.mxu0 %v17420_v8 }
 0x8f5   :  { %9151 = vmatmul.mubr.bf16.vlgmr.msra.gmra.mrb[192].mxu1 %v17352_v36  ;;  %v12869_v36 = vld [vmem:[#allocation9 + $0x4] ss:$16 sps:$4 sm:$0xff]  }
 0x8f6   :  { %9160 = vmatprep.mubr.bf16.mxu1 %v17420_v8  ;;  %10543 = vmatprep.subr.bf16.mxu0 %v12869_v36 }
 0x8fb   :  { %8935 = vmatmul.mubr.bf16.gmra.mrb[196].mxu0 %v17426_v19 }
 0x8fc   :  { %8944 = vmatprep.mubr.bf16.mxu0 %v17482_v18 }
 0x8fd   :  { %9161 = vmatmul.mubr.bf16.gmra.mrb[196].mxu1 %v17426_v19 }
 0x8fe   :  { %9170 = vmatprep.mubr.bf16.mxu1 %v17482_v18  ;;  %v12867_v18 = vld [vmem:[#allocation9] ss:$16 sps:$4 sm:$0xff]  }
 0x8ff   :  { %10544 = vmatpush1.bf16.msra.mxu0 %v12867_v18  ;;  %v12912_v18 = vld [vmem:[#allocation9 + $0xe8] ss:$16 sps:$4 sm:$0xff]  }
 0x903   :  { %8945 = vmatmul.mubr.bf16.gmra.mrb[200].mxu0 %v17493_v54 }
 0x904   :  { %8954 = vmatprep.mubr.bf16.mxu0 %v17559_v37 }
 0x905   :  { %9171 = vmatmul.mubr.bf16.gmra.mrb[200].mxu1 %v17493_v54  ;;  %v12870_v54 = vld [vmem:[#allocation9 + $0x8] ss:$16 sps:$4 sm:$0xff]  }
 0x906   :  { %9180 = vmatprep.mubr.bf16.mxu1 %v17559_v37  ;;  %10770 = vmatpush1.bf16.msra.mxu1 %v12870_v54 }
 0x90b   :  { %8955 = vmatmul.mubr.bf16.gmra.mrb[204].mxu0 %v17561_v20 }
 0x90c   :  { %8964 = vmatprep.mubr.bf16.mxu0 %v17613_v14 }
 0x90d   :  { %9181 = vmatmul.mubr.bf16.gmra.mrb[204].mxu1 %v17561_v20 }
 0x90e   :  { %9190 = vmatprep.mubr.bf16.mxu1 %v17613_v14 }
 0x913   :  { %8965 = vmatmul.mubr.bf16.gmra.mrb[208].mxu0 %v17629_v53 }
 0x914   :  { %8974 = vmatprep.mubr.bf16.mxu0 %v17643_v15 }
 0x915   :  { %9191 = vmatmul.mubr.bf16.gmra.mrb[208].mxu1 %v17629_v53 }
 0x916   :  { %9200 = vmatprep.mubr.bf16.mxu1 %v17643_v15 }
 0x91b   :  { %8975 = vmatmul.mubr.bf16.gmra.mrb[212].mxu0 %v17651_v39 }
 0x91c   :  { %8984 = vmatprep.mubr.bf16.mxu0 %v17685_v30 }
 0x91d   :  { %9201 = vmatmul.mubr.bf16.gmra.mrb[212].mxu1 %v17651_v39 }
 0x91e   :  { %9210 = vmatprep.mubr.bf16.mxu1 %v17685_v30  ;;  %v12873_v30 = vld [vmem:[#allocation9 + $0x20] ss:$16 sps:$4 sm:$0xff]  }
 0x923   :  { %8985 = vmatmul.mubr.bf16.gmra.mrb[216].mxu0 %v17687_v58 }
 0x924   :  { %8994 = vmatprep.mubr.bf16.mxu0 %v17713_v6 }
 0x925   :  { %9211 = vmatmul.mubr.bf16.gmra.mrb[216].mxu1 %v17687_v58  ;;  %v12875_v58 = vld [vmem:[#allocation9 + $0x24] ss:$16 sps:$4 sm:$0xff]  }
 0x926   :  { %9220 = vmatprep.mubr.bf16.mxu1 %v17713_v6  ;;  %v12878_v6 = vld [vmem:[#allocation9 + $0x2c] ss:$16 sps:$4 sm:$0xff]   ;;  %10545 = vmatprep.subr.bf16.mxu0 %v12875_v58  ;;  %v12915_v58 = vld [vmem:[#allocation9 + $0x100] ss:$16 sps:$4 sm:$0xff]  }
 0x927   :  { %10771 = vmatprep.subr.bf16.mxu1 %v12878_v6  ;;  %10546 = vmatpush1.bf16.msra.mxu0 %v12873_v30 }
 0x928   :  { %10772 = vmatpush1.bf16.msra.mxu1 %v12876_v52  ;;  %v12920_v52 = vld [vmem:[#allocation9 + $0x10c] ss:$16 sps:$4 sm:$0xff]  }
 0x929   :  { %10773 = vmatprep.subr.bf16.mxu1 %v12884_v5 }
 0x92b   :  { %8995 = vmatmul.mubr.bf16.gmra.mrb[220].mxu0 %v17715_v42 }
 0x92c   :  { %10774 = vmatpush1.bf16.msra.mxu1 %v12882_v26  ;;  %v12918_v26 = vld [vmem:[#allocation9 + $0x108] ss:$16 sps:$4 sm:$0xff]  }
 0x92d   :  { %9221 = vmatmul.mubr.bf16.gmra.mrb[220].mxu1 %v17715_v42  ;;  %v12881_v42 = vld [vmem:[#allocation9 + $0x44] ss:$16 sps:$4 sm:$0xff]   ;;  %10775 = vmatprep.subr.bf16.mxu1 %v12890_v27 }
 0x92e   :  { %10547 = vmatprep.subr.bf16.mxu0 %v12881_v42 }
 0x92f   :  { %10548 = vmatpush1.bf16.msra.mxu0 %v12879_v24 }
 0x930   :  { %10549 = vmatprep.subr.bf16.mxu0 %v12887_v51  ;;  %10776 = vmatpush1.bf16.msra.mxu1 %v12888_v16  ;;  %v12923_v51 = vld [vmem:[#allocation9 + $0x124] ss:$16 sps:$4 sm:$0xff]   ;;  %v12926_v16 = vld [vmem:[#allocation9 + $0x12c] ss:$16 sps:$4 sm:$0xff]  }
 0x931   :  { %10777 = vmatprep.subr.bf16.mxu1 %v12896_v59 }
 0x933   :  { %10550 = vmatpush1.bf16.msra.mxu0 %v12885_v61  ;;  %v12921_v61 = vld [vmem:[#allocation9 + $0x120] ss:$16 sps:$4 sm:$0xff]  }
 0x934   :  { %10551 = vmatprep.subr.bf16.mxu0 %v12893_v46  ;;  %10778 = vmatpush1.bf16.msra.mxu1 %v12894_v49  ;;  %v12929_v46 = vld [vmem:[#allocation9 + $0x144] ss:$16 sps:$4 sm:$0xff]  }
 0x935   :  { %10779 = vmatprep.subr.bf16.mxu1 %v12902_v7  ;;  %v12927_v7 = vld [vmem:[#allocation9 + $0x140] ss:$16 sps:$4 sm:$0xff]  }
 0x937   :  { %10552 = vmatpush1.bf16.msra.mxu0 %v12891_v57 }
 0x938   :  { %10553 = vmatprep.subr.bf16.mxu0 %v12899_v32  ;;  %10780 = vmatpush1.bf16.msra.mxu1 %v12900_v9  ;;  %v12924_v32 = vld [vmem:[#allocation9 + $0x128] ss:$16 sps:$4 sm:$0xff]  }
 0x939   :  { %10781 = vmatprep.subr.bf16.mxu1 %v12908_v40 }
 0x93b   :  { %10554 = vmatpush1.bf16.msra.mxu0 %v12897_v63 }
 0x93c   :  { %10555 = vmatprep.subr.bf16.mxu0 %v12905_v29  ;;  %10782 = vmatpush1.bf16.msra.mxu1 %v12906_v28  ;;  %v12932_v29 = vld [vmem:[#allocation9 + $0x14c] ss:$16 sps:$4 sm:$0xff]  }
 0x93d   :  { %10783 = vmatprep.subr.bf16.mxu1 %v12914_v1 }
 0x93f   :  { %10556 = vmatpush1.bf16.msra.mxu0 %v12903_v0 }
 0x940   :  { %10557 = vmatprep.subr.bf16.mxu0 %v12911_v2  ;;  %10784 = vmatpush1.bf16.msra.mxu1 %v12912_v18 }
 0x941   :  { %10785 = vmatprep.subr.bf16.mxu1 %v12920_v52  ;;  %v12930_v52 = vld [vmem:[#allocation9 + $0x148] ss:$16 sps:$4 sm:$0xff]  }
 0x943   :  { %10558 = vmatpush1.bf16.msra.mxu0 %v12909_v21  ;;  %v12935_v21 = vld [vmem:[#allocation9 + $0x164] ss:$16 sps:$4 sm:$0xff]  }
 0x944   :  { %10559 = vmatprep.subr.bf16.mxu0 %v12917_v45  ;;  %10786 = vmatpush1.bf16.msra.mxu1 %v12918_v26 }
 0x945   :  { %10787 = vmatprep.subr.bf16.mxu1 %v12926_v16  ;;  %v12938_v16 = vld [vmem:[#allocation9 + $0x16c] ss:$16 sps:$4 sm:$0xff]  }
 0x946   :  { %v17821_v8 = vpop.f32.mrb[160].mxu0  ;;  %v17823_v19 = vpop.f32.mrb[160].mxu1 }
 0x947   :  { %v17825_v37 = vpop.f32.mrb[161].mxu0  ;;  %v17827_v20 = vpop.f32.mrb[161].mxu1  ;;  %10560 = vmatpush1.bf16.msra.mxu0 %v12915_v58  ;;  %v11735_v27 = vmul.f32 -1.442695, %v17821_v8  ;;  %v11737_v59 = vmul.f32 -1.442695, %v17823_v19 }
 0x948   :  { %v17829_v14 = vpop.f32.mrb[162].mxu0  ;;  %v17831_v53 = vpop.f32.mrb[162].mxu1  ;;  %10561 = vmatprep.subr.bf16.mxu0 %v12923_v51  ;;  %v11736_v57 = vmul.f32 -1.442695, %v17825_v37  ;;  %v11738_v0 = vmul.f32 -1.442695, %v17827_v20  ;;  %10788 = vmatpush1.bf16.msra.mxu1 %v12924_v32 }
 0x949   :  { %v17833_v15 = vpop.f32.mrb[163].mxu0  ;;  %v17835_v39 = vpop.f32.mrb[163].mxu1  ;;  %13379 = vpow2.f32 %v11735_v27  ;;  %v11739_v2 = vmul.f32 -1.442695, %v17829_v14  ;;  %v11741_v45 = vmul.f32 -1.442695, %v17831_v53  ;;  %10789 = vmatprep.subr.bf16.mxu1 %v12932_v29 }
 0x94a   :  { %13381 = vpow2.f32 %v11737_v59  ;;  %v11740_v26 = vmul.f32 -1.442695, %v17833_v15  ;;  %v11742_v51 = vmul.f32 -1.442695, %v17835_v39 }
 0x94b   :  { %10562 = vmatpush1.bf16.msra.mxu0 %v12921_v61  ;;  %13383 = vpow2.f32 %v11736_v57  ;;  %v12933_v61 = vld [vmem:[#allocation9 + $0x160] ss:$16 sps:$4 sm:$0xff]   ;;  %v12936_v57 = vld [vmem:[#allocation9 + $0x168] ss:$16 sps:$4 sm:$0xff]  }
 0x94c   :  { %10563 = vmatprep.subr.bf16.mxu0 %v12929_v46  ;;  %13385 = vpow2.f32 %v11738_v0  ;;  %v12941_v46 = vld [vmem:[#allocation9 + $0x184] ss:$16 sps:$4 sm:$0xff]   ;;  %10790 = vmatpush1.bf16.msra.mxu1 %v12930_v52  ;;  %v12944_v0 = vld [vmem:[#allocation9 + $0x18c] ss:$16 sps:$4 sm:$0xff]  }
 0x94d   :  { %13387 = vpow2.f32 %v11739_v2  ;;  %10791 = vmatprep.subr.bf16.mxu1 %v12938_v16 }
 0x94e   :  { %v17837_v11 = vpop.f32.mrb[164].mxu0  ;;  %v17839_v56 = vpop.f32.mrb[164].mxu1  ;;  %13389 = vpow2.f32 %v11741_v45 }
 0x94f   :  { %v17841_v44 = vpop.f32.mrb[165].mxu0  ;;  %v17843_v10 = vpop.f32.mrb[165].mxu1  ;;  %10564 = vmatpush1.bf16.msra.mxu0 %v12927_v7  ;;  %v11743_v27 = vmul.f32 -1.442695, %v17837_v11  ;;  %13391 = vpow2.f32 %v11740_v26  ;;  %v12939_v7 = vld [vmem:[#allocation9 + $0x180] ss:$16 sps:$4 sm:$0xff]  }
 0x950   :  { %19153 = vst [vmem:[#allocation91_spill] sm:$0xff] %v17841_v44  ;;  %19154 = vst [vmem:[#allocation95_spill] sm:$0xff] %v17843_v10  ;;  %v17845_v12 = vpop.f32.mrb[166].mxu0  ;;  %v17847_v23 = vpop.f32.mrb[166].mxu1  ;;  %10565 = vmatprep.subr.bf16.mxu0 %v12935_v21  ;;  %13393 = vpow2.f32 %v11742_v51  ;;  %v11745_v52 = vmul.f32 -1.442695, %v17839_v56  ;;  %10792 = vmatpush1.bf16.msra.mxu1 %v12936_v57 }
 0x951   :  { %19155 = vst [vmem:[#allocation98_spill] sm:$0xff] %v17845_v12  ;;  %v17849_v35 = vpop.f32.mrb[167].mxu0  ;;  %v17851_v33 = vpop.f32.mrb[167].mxu1  ;;  %13395 = vpow2.f32 %v11743_v27  ;;  %v11744_v51 = vmul.f32 -1.442695, %v17841_v44  ;;  %10793 = vmatprep.subr.bf16.mxu1 %v12944_v0 }
 0x952   :  { %v12947_v27 = vld [vmem:[#allocation9 + $0x1a4] ss:$16 sps:$4 sm:$0xff]   ;;  %13397 = vpow2.f32 %v11745_v52  ;;  %v12956_v44 = vld [vmem:[#allocation9 + $0x1cc] ss:$16 sps:$4 sm:$0xff]  }
 0x953   :  { %10566 = vmatpush1.bf16.msra.mxu0 %v12933_v61  ;;  %v12942_v61 = vld [vmem:[#allocation9 + $0x188] ss:$16 sps:$4 sm:$0xff]   ;;  %13399 = vpow2.f32 %v11744_v51 }
 0x954   :  { %10567 = vmatprep.subr.bf16.mxu0 %v12941_v46  ;;  %v11746_v46 = vmul.f32 -1.442695, %v17843_v10  ;;  %10794 = vmatpush1.bf16.msra.mxu1 %v12942_v61 }
 0x956   :  { %v17853_v13 = vpop.f32.mrb[168].mxu0  ;;  %v17855_v41 = vpop.f32.mrb[168].mxu1  ;;  %13401 = vpow2.f32 %v11746_v46 }
 0x957   :  { %v17857_v55 = vpop.f32.mrb[169].mxu0  ;;  %v17859_v34 = vpop.f32.mrb[169].mxu1  ;;  %10568 = vmatpush1.bf16.msra.mxu0 %v12939_v7  ;;  %v12948_v7 = vld [vmem:[#allocation9 + $0x1a8] ss:$16 sps:$4 sm:$0xff]  }
 0x958   :  { %19156 = vst [vmem:[#allocation102_spill] sm:$0xff] %v17857_v55  ;;  %19157 = vst [vmem:[#allocation33_spill] sm:$0xff] %v17859_v34  ;;  %v17861_v48 = vpop.f32.mrb[170].mxu0  ;;  %v17863_v47 = vpop.f32.mrb[170].mxu1  ;;  %10569 = vmatprep.subr.bf16.mxu0 %v12947_v27 }
 0x959   :  { %19158 = vst [vmem:[#allocation38_spill] sm:$0xff] %v17861_v48  ;;  %19159 = vst [vmem:[#allocation37_spill] sm:$0xff] %v17863_v47  ;;  %v17865_v31 = vpop.f32.mrb[171].mxu0  ;;  %v17867_v4 = vpop.f32.mrb[171].mxu1 }
 0x95a   :  { %19160 = vst [vmem:[#allocation43_spill] sm:$0xff] %v17865_v31  ;;  %19161 = vst [vmem:[#allocation41_spill] sm:$0xff] %v17867_v4 }
 0x95e   :  { %v17869_v22 = vpop.f32.mrb[172].mxu0  ;;  %v17871_v25 = vpop.f32.mrb[172].mxu1 }
 0x95f   :  { %19162 = vst [vmem:[#allocation36_spill] sm:$0xff] %v17869_v22  ;;  %19163 = vst [vmem:[#allocation20_spill] sm:$0xff] %v17871_v25  ;;  %v17873_v3 = vpop.f32.mrb[173].mxu0  ;;  %v17875_v43 = vpop.f32.mrb[173].mxu1 }
 0x960   :  { %19164 = vst [vmem:[#allocation21_spill] sm:$0xff] %v17873_v3  ;;  %19165 = vst [vmem:[#allocation40_spill] sm:$0xff] %v17875_v43  ;;  %v17877_v17 = vpop.f32.mrb[174].mxu0  ;;  %v17879_v60 = vpop.f32.mrb[174].mxu1 }
 0x961   :  { %19166 = vst [vmem:[#allocation42_spill] sm:$0xff] %v17877_v17  ;;  %19167 = vst [vmem:[#allocation44_spill] sm:$0xff] %v17879_v60  ;;  %v17881_v50 = vpop.f32.mrb[175].mxu0  ;;  %v17883_v38 = vpop.f32.mrb[175].mxu1 }
 0x962   :  { %19168 = vst [vmem:[#allocation50_spill] sm:$0xff] %v17881_v50  ;;  %19169 = vst [vmem:[#allocation47_spill] sm:$0xff] %v17883_v38 }
 0x966   :  { %v17885_v36 = vpop.f32.mrb[176].mxu0  ;;  %v17887_v62 = vpop.f32.mrb[176].mxu1 }
 0x967   :  { %19170 = vst [vmem:[#allocation48_spill] sm:$0xff] %v17885_v36  ;;  %19171 = vst [vmem:[#allocation22_spill] sm:$0xff] %v17887_v62  ;;  %v17889_v54 = vpop.f32.mrb[177].mxu0  ;;  %v17891_v30 = vpop.f32.mrb[177].mxu1 }
 0x968   :  { %19172 = vst [vmem:[#allocation23_spill] sm:$0xff] %v17889_v54  ;;  %19173 = vst [vmem:[#allocation51_spill] sm:$0xff] %v17891_v30  ;;  %v17893_v6 = vpop.f32.mrb[178].mxu0  ;;  %v17895_v42 = vpop.f32.mrb[178].mxu1 }
 0x969   :  { %19174 = vst [vmem:[#allocation56_spill] sm:$0xff] %v17893_v6  ;;  %19175 = vst [vmem:[#allocation53_spill] sm:$0xff] %v17895_v42  ;;  %v17897_v5 = vpop.f32.mrb[179].mxu0  ;;  %v17899_v24 = vpop.f32.mrb[179].mxu1 }
 0x96a   :  { %19176 = vst [vmem:[#allocation52_spill] sm:$0xff] %v17897_v5  ;;  %19177 = vst [vmem:[#allocation45_spill] sm:$0xff] %v17899_v24 }
 0x96e   :  { %v17904_v49 = vpop.f32.mrb[180].mxu0  ;;  %v17906_v63 = vpop.f32.mrb[180].mxu1 }
 0x96f   :  { %19178 = vst [vmem:[#allocation54_spill] sm:$0xff] %v17904_v49  ;;  %19179 = vst [vmem:[#allocation63_spill] sm:$0xff] %v17906_v63  ;;  %v17908_v9 = vpop.f32.mrb[181].mxu0  ;;  %v17911_v28 = vpop.f32.mrb[181].mxu1 }
 0x970   :  { %19180 = vst [vmem:[#allocation72_spill] sm:$0xff] %v17908_v9  ;;  %19181 = vst [vmem:[#allocation59_spill] sm:$0xff] %v17911_v28  ;;  %v17913_v40 = vpop.f32.mrb[182].mxu0  ;;  %v17916_v1 = vpop.f32.mrb[182].mxu1 }
 0x971   :  { %19182 = vst [vmem:[#allocation81_spill] sm:$0xff] %v17913_v40  ;;  %19183 = vst [vmem:[#allocation90_spill] sm:$0xff] %v17916_v1  ;;  %v17919_v18 = vpop.f32.mrb[183].mxu0  ;;  %v17921_v58 = vpop.f32.mrb[183].mxu1 }
 0x972   :  { %19184 = vst [vmem:[#allocation99_spill] sm:$0xff] %v17919_v18  ;;  %19185 = vst [vmem:[#allocation103_spill] sm:$0xff] %v17921_v58  ;;  %v12953_v58 = vld [vmem:[#allocation9 + $0x1c4] ss:$16 sps:$4 sm:$0xff]  }
 0x976   :  { %v17926_v59 = vpop.f32.mrb[184].mxu0  ;;  %v17928_v32 = vpop.f32.mrb[184].mxu1 }
 0x977   :  { %19186 = vst [vmem:[#allocation57_spill] sm:$0xff] %v17926_v59  ;;  %19187 = vst [vmem:[#allocation24_spill] sm:$0xff] %v17928_v32  ;;  %v17930_v29 = vpop.f32.mrb[185].mxu0  ;;  %v17932_v21 = vpop.f32.mrb[185].mxu1 }
 0x978   :  { %19188 = vst [vmem:[#allocation60_spill] sm:$0xff] %v17930_v29  ;;  %19189 = vst [vmem:[#allocation25_spill] sm:$0xff] %v17932_v21  ;;  %v17934_v2 = vpop.f32.mrb[186].mxu0  ;;  %v17936_v45 = vpop.f32.mrb[186].mxu1  ;;  %v12945_v21 = vld [vmem:[#allocation9 + $0x1a0] ss:$16 sps:$4 sm:$0xff]  }
 0x979   :  { %19190 = vst [vmem:[#allocation61_spill] sm:$0xff] %v17934_v2  ;;  %19191 = vst [vmem:[#allocation62_spill] sm:$0xff] %v17936_v45  ;;  %v13380_v59 = vpop.eup %13379  ;;  %v17939_v32 = vpop.f32.mrb[187].mxu0  ;;  %v12950_v2 = vld [vmem:[#allocation9 + $0x1ac] ss:$16 sps:$4 sm:$0xff]   ;;  %10570 = vmatpush1.bf16.msra.mxu0 %v12945_v21 }
 0x97a   :  { %19192 = vst [vmem:[#allocation65_spill] sm:$0xff] %v17939_v32  ;;  %v17941_v26 = vpop.f32.mrb[187].mxu1  ;;  %v13382_v16 = vpop.eup %13381  ;;  %v11747_v29 = vmul.f32 -1.442695, %v17845_v12  ;;  %v9423_v32 = vadd.f32 1.0, %v13380_v59  ;;  %10795 = vmatprep.subr.bf16.mxu1 %v12950_v2  ;;  %10571 = vmatprep.subr.bf16.mxu0 %v12953_v58 }
 0x97b   :  { %19193 = vst [vmem:[#allocation68_spill] sm:$0xff] %v17941_v26  ;;  %v13384_v45 = vpop.eup %13383  ;;  %v9425_v1 = vadd.f32 1.0, %v13382_v16  ;;  %v12951_v12 = vld [vmem:[#allocation9 + $0x1c0] ss:$16 sps:$4 sm:$0xff]   ;;  %10796 = vmatpush1.bf16.msra.mxu1 %v12948_v7  ;;  %v12954_v2 = vld [vmem:[#allocation9 + $0x1c8] ss:$16 sps:$4 sm:$0xff]  }
 0x97c   :  { %v13386_v18 = vpop.eup %13385  ;;  %v9424_v16 = vadd.f32 1.0, %v13384_v45  ;;  %13403 = vpow2.f32 %v11747_v29  ;;  %10797 = vmatprep.subr.bf16.mxu1 %v12956_v44  ;;  %v12962_v58 = vld [vmem:[#allocation9 + $0x1ec] ss:$16 sps:$4 sm:$0xff]   ;;  %v12965_v29 = vld [vmem:[#allocation9 + $0x204] ss:$16 sps:$4 sm:$0xff]  }
 0x97d   :  { %v13388_v0 = vpop.eup %13387  ;;  %v9426_v27 = vadd.f32 1.0, %v13386_v18  ;;  %13405 = vrcp.f32 %v9423_v32  ;;  %10572 = vmatpush1.bf16.msra.mxu0 %v12951_v12  ;;  %v12960_v32 = vld [vmem:[#allocation9 + $0x1e8] ss:$16 sps:$4 sm:$0xff]   ;;  %v11749_v7 = vmul.f32 -1.442695, %v17847_v23 }
 0x97e   :  { %v17946_v57 = vpop.f32.mrb[188].mxu0  ;;  %v17948_v26 = vpop.f32.mrb[188].mxu1  ;;  %v9427_v21 = vadd.f32 1.0, %v13388_v0  ;;  %13407 = vrcp.f32 %v9425_v1  ;;  %v12968_v1 = vld [vmem:[#allocation9 + $0x20c] ss:$16 sps:$4 sm:$0xff]  }
 0x97f   :  { %19194 = vst [vmem:[#allocation66_spill] sm:$0xff] %v17946_v57  ;;  %19195 = vst [vmem:[#allocation26_spill] sm:$0xff] %v17948_v26  ;;  %v17950_v10 = vpop.f32.mrb[189].mxu0  ;;  %v17952_v40 = vpop.f32.mrb[189].mxu1  ;;  %v12959_v26 = vld [vmem:[#allocation9 + $0x1e4] ss:$16 sps:$4 sm:$0xff]   ;;  %13409 = vrcp.f32 %v9424_v16  ;;  %10798 = vmatpush1.bf16.msra.mxu1 %v12954_v2 }
 0x980   :  { %19196 = vst [vmem:[#allocation69_spill] sm:$0xff] %v17950_v10  ;;  %19197 = vst [vmem:[#allocation27_spill] sm:$0xff] %v17952_v40  ;;  %v13390_v59 = vpop.eup %13389  ;;  %v17954_v52 = vpop.f32.mrb[190].mxu0  ;;  %10573 = vmatprep.subr.bf16.mxu0 %v12959_v26  ;;  %13411 = vrcp.f32 %v9426_v27  ;;  %10799 = vmatprep.subr.bf16.mxu1 %v12962_v58  ;;  %v11748_v12 = vmul.f32 -1.442695, %v17849_v35 }
 0x981   :  { %v17956_v57 = vpop.f32.mrb[190].mxu1  ;;  %v13392_v61 = vpop.eup %13391  ;;  %v9429_v46 = vadd.f32 1.0, %v13390_v59  ;;  %13413 = vrcp.f32 %v9427_v21  ;;  %v11750_v26 = vmul.f32 -1.442695, %v17851_v33  ;;  %v11751_v59 = vmul.f32 -1.442695, %v17853_v13 }
 0x982   :  { %19198 = vst [vmem:[#allocation70_spill] sm:$0xff] %v17956_v57  ;;  %v17958_v51 = vpop.f32.mrb[191].mxu0  ;;  %v17960_v10 = vpop.f32.mrb[191].mxu1  ;;  %v12957_v57 = vld [vmem:[#allocation9 + $0x1e0] ss:$16 sps:$4 sm:$0xff]   ;;  %v9428_v18 = vadd.f32 1.0, %v13392_v61 }
 0x983   :  { %19199 = vst [vmem:[#allocation71_spill] sm:$0xff] %v17958_v51  ;;  %19200 = vst [vmem:[#allocation74_spill] sm:$0xff] %v17960_v10  ;;  %v13394_v40 = vpop.eup %13393  ;;  %13415 = vrcp.f32 %v9429_v46  ;;  %10574 = vmatpush1.bf16.msra.mxu0 %v12957_v57  ;;  %10800 = vmatpush1.bf16.msra.mxu1 %v12960_v32  ;;  %v11753_v61 = vmul.f32 -1.442695, %v17855_v41  ;;  %v11752_v27 = vmul.f32 -1.442695, %v17857_v55 }
 0x984   :  { %v13396_v45 = vpop.eup %13395  ;;  %v9430_v51 = vadd.f32 1.0, %v13394_v40  ;;  %13417 = vrcp.f32 %v9428_v18  ;;  %10656 = vmatprep.subr.bf16.mxu0 %v12965_v29  ;;  %10882 = vmatprep.subr.bf16.mxu1 %v12968_v1  ;;  %v11757_v46 = vmul.f32 -1.442695, %v17863_v47 }
 0x985   :  { %v9431_v10 = vadd.f32 1.0, %v13396_v45  ;;  %v13398_v44 = vpop.eup %13397 }
 0x986   :  { %v13400_v0 = vpop.eup %13399  ;;  %13419 = vrcp.f32 %v9430_v51  ;;  %v11754_v51 = vmul.f32 -1.442695, %v17859_v34  ;;  %v9433_v18 = vadd.f32 1.0, %v13398_v44  ;;  %v11758_v44 = vmul.f32 -1.442695, %v17867_v4 }
 0x987   :  { %v13402_v40 = vpop.eup %13401  ;;  %13421 = vrcp.f32 %v9431_v10  ;;  %v11755_v10 = vmul.f32 -1.442695, %v17861_v48  ;;  %v9432_v32 = vadd.f32 1.0, %v13400_v0  ;;  %v11759_v0 = vmul.f32 -1.442695, %v17869_v22 }
 0x988   :  { %v13404_v16 = vpop.eup %13403  ;;  %13423 = vpow2.f32 %v11749_v7  ;;  %v9434_v1 = vadd.f32 1.0, %v13402_v40  ;;  %v11761_v40 = vmul.f32 -1.442695, %v17871_v25 }
 0x989   :  { %v17967_v57 = vpop.eup %13405  ;;  %13425 = vpow2.f32 %v11748_v12 }
 0x98a   :  { %v17970_v21 = vpop.eup %13407  ;;  %13427 = vpow2.f32 %v11750_v26  ;;  %v9435_v26 = vadd.f32 1.0, %v13404_v16 }
 0x98b   :  { %v17973_v2 = vpop.eup %13409  ;;  %13429 = vpow2.f32 %v11751_v59 }
 0x98c   :  { %v17976_v45 = vpop.eup %13411  ;;  %13431 = vpow2.f32 %v11753_v61  ;;  %v11756_v61 = vmul.f32 -1.442695, %v17865_v31 }
 0x98d   :  { %v17979_v58 = vpop.eup %13413  ;;  %13433 = vpow2.f32 %v11752_v27 }
 0x98e   :  { %v17981_v29 = vpop.eup %13415  ;;  %13435 = vpow2.f32 %v11754_v51 }
 0x98f   :  { %v17983_v7 = vpop.eup %13417  ;;  %13437 = vpow2.f32 %v11755_v10 }
 0x990   :  { %v17985_v12 = vpop.eup %13419  ;;  %13439 = vpow2.f32 %v11757_v46 }
 0x991   :  { %v17987_v59 = vpop.eup %13421  ;;  %13441 = vrcp.f32 %v9433_v18 }
 0x992   :  { %v13424_v47 = vpop.eup %13423  ;;  %13443 = vrcp.f32 %v9432_v32 }
 0x993   :  { %v13426_v27 = vpop.eup %13425  ;;  %13445 = vrcp.f32 %v9434_v1  ;;  %v9437_v16 = vadd.f32 1.0, %v13424_v47 }
 0x994   :  { %v13428_v51 = vpop.eup %13427  ;;  %13447 = vrcp.f32 %v9435_v26  ;;  %v9436_v48 = vadd.f32 1.0, %v13426_v27 }
 0x995   :  { %v13430_v10 = vpop.eup %13429  ;;  %13449 = vpow2.f32 %v11756_v61  ;;  %v9438_v31 = vadd.f32 1.0, %v13428_v51 }
 0x996   :  { %v13432_v46 = vpop.eup %13431  ;;  %13451 = vpow2.f32 %v11758_v44  ;;  %v9439_v34 = vadd.f32 1.0, %v13430_v10 }
 0x997   :  { %v13434_v18 = vpop.eup %13433  ;;  %13453 = vpow2.f32 %v11759_v0  ;;  %v9441_v1 = vadd.f32 1.0, %v13432_v46 }
 0x998   :  { %v13436_v32 = vpop.eup %13435  ;;  %13455 = vpow2.f32 %v11761_v40  ;;  %v9440_v26 = vadd.f32 1.0, %v13434_v18  ;;  %v11760_v40 = vmul.f32 -1.442695, %v17873_v3 }
 0x999   :  { %v13438_v4 = vpop.eup %13437  ;;  %13457 = vrcp.f32 %v9437_v16  ;;  %v9442_v47 = vadd.f32 1.0, %v13436_v32  ;;  %v11766_v32 = vmul.f32 -1.442695, %v17883_v38 }
 0x99a   :  { %v13440_v22 = vpop.eup %13439  ;;  %13459 = vrcp.f32 %v9436_v48  ;;  %v9443_v44 = vadd.f32 1.0, %v13438_v4  ;;  %v11762_v48 = vmul.f32 -1.442695, %v17875_v43 }
 0x99b   :  { %v17993_v55 = vpop.eup %13441  ;;  %13461 = vrcp.f32 %v9438_v31  ;;  %v9445_v0 = vadd.f32 1.0, %v13440_v22  ;;  %v11763_v31 = vmul.f32 -1.442695, %v17877_v17  ;;  %v11764_v22 = vmul.f32 -1.442695, %v17881_v50 }
 0x99c   :  { %v17995_v61 = vpop.eup %13443  ;;  %13463 = vrcp.f32 %v9439_v34  ;;  %v11765_v34 = vmul.f32 -1.442695, %v17879_v60 }
 0x99d   :  { %v17997_v27 = vpop.eup %13445  ;;  %13465 = vrcp.f32 %v9441_v1 }
 0x99e   :  { %v17999_v51 = vpop.eup %13447  ;;  %13467 = vrcp.f32 %v9440_v26  ;;  %v11767_v26 = vmul.f32 -1.442695, %v17885_v36 }
 0x99f   :  { %v13450_v10 = vpop.eup %13449  ;;  %13469 = vrcp.f32 %v9442_v47 }
 0x9a0   :  { %v13452_v16 = vpop.eup %13451  ;;  %13471 = vrcp.f32 %v9443_v44  ;;  %v11769_v44 = vmul.f32 -1.442695, %v17887_v62 }
 0x9a1   :  { %v13454_v46 = vpop.eup %13453  ;;  %13473 = vrcp.f32 %v9445_v0  ;;  %v9446_v60 = vadd.f32 1.0, %v13452_v16  ;;  %v11773_v16 = vmul.f32 -1.442695, %v17895_v42 }
 0x9a2   :  { %v13456_v4 = vpop.eup %13455  ;;  %13475 = vpow2.f32 %v11760_v40  ;;  %v11768_v40 = vmul.f32 -1.442695, %v17889_v54  ;;  %v9447_v36 = vadd.f32 1.0, %v13454_v46  ;;  %v11772_v46 = vmul.f32 -1.442695, %v17897_v5 }
 0x9a3   :  { %v18006_v18 = vpop.eup %13457  ;;  %13477 = vpow2.f32 %v11762_v48  ;;  %v9444_v48 = vadd.f32 1.0, %v13450_v10  ;;  %v9449_v62 = vadd.f32 1.0, %v13456_v4  ;;  %v11771_v10 = vmul.f32 -1.442695, %v17893_v6 }
 0x9a4   :  { %v18009_v1 = vpop.eup %13459  ;;  %13479 = vpow2.f32 %v11763_v31 }
 0x9a5   :  { %v18012_v47 = vpop.eup %13461  ;;  %13481 = vpow2.f32 %v11765_v34 }
 0x9a6   :  { %v18015_v0 = vpop.eup %13463  ;;  %13483 = vpow2.f32 %v11764_v22  ;;  %v11770_v22 = vmul.f32 -1.442695, %v17891_v30 }
 0x9a7   :  { %v18018_v50 = vpop.eup %13465  ;;  %13485 = vpow2.f32 %v11766_v32 }
 0x9a8   :  { %v18020_v38 = vpop.eup %13467  ;;  %13487 = vpow2.f32 %v11767_v26 }
 0x9a9   :  { %v18022_v31 = vpop.eup %13469  ;;  %13489 = vpow2.f32 %v11769_v44 }
 0x9aa   :  { %v18024_v34 = vpop.eup %13471  ;;  %13491 = vpow2.f32 %v11768_v40 }
 0x9ab   :  { %v18026_v17 = vpop.eup %13473  ;;  %13493 = vrcp.f32 %v9444_v48 }
 0x9ac   :  { %v13476_v54 = vpop.eup %13475  ;;  %13495 = vrcp.f32 %v9446_v60 }
 0x9ad   :  { %v13478_v32 = vpop.eup %13477  ;;  %13497 = vrcp.f32 %v9447_v36  ;;  %v9448_v4 = vadd.f32 1.0, %v13476_v54 }
 0x9ae   :  { %v13480_v26 = vpop.eup %13479  ;;  %13499 = vrcp.f32 %v9449_v62  ;;  %v9450_v43 = vadd.f32 1.0, %v13478_v32 }
 0x9af   :  { %v13482_v44 = vpop.eup %13481  ;;  %13501 = vpow2.f32 %v11770_v22  ;;  %v9451_v30 = vadd.f32 1.0, %v13480_v26 }
 0x9b0   :  { %v13484_v40 = vpop.eup %13483  ;;  %13503 = vpow2.f32 %v11771_v10  ;;  %v9453_v3 = vadd.f32 1.0, %v13482_v44 }
 0x9b1   :  { %v13486_v48 = vpop.eup %13485  ;;  %13505 = vpow2.f32 %v11773_v16  ;;  %v9452_v36 = vadd.f32 1.0, %v13484_v40 }
 0x9b2   :  { %v13488_v60 = vpop.eup %13487  ;;  %13507 = vpow2.f32 %v11772_v46  ;;  %v9454_v62 = vadd.f32 1.0, %v13486_v48  ;;  %v18042_v46 = vmul.f32 %v17967_v57, %v17821_v8  ;;  %v18056_v8 = vmul.f32 %v17976_v45, %v17827_v20  ;;  %v19204_v48 = vld [vmem:[#allocation98_spill] sm:$0xff] }
 0x9b3   :  { %v13490_v6 = vpop.eup %13489  ;;  %13509 = vrcp.f32 %v9448_v4  ;;  %v9455_v54 = vadd.f32 1.0, %v13488_v60  ;;  %v18060_v57 = vmul.f32 %v17979_v58, %v17829_v14  ;;  %v11776_v20 = vmul.f32 -1.442695, %v17908_v9 }
 0x9b4   :  { %v13492_v42 = vpop.eup %13491  ;;  %13511 = vrcp.f32 %v9450_v43  ;;  %v9457_v10 = vadd.f32 1.0, %v13490_v6  ;;  %v11774_v43 = vmul.f32 -1.442695, %v17899_v24  ;;  %v11775_v6 = vmul.f32 -1.442695, %v17904_v49 }
 0x9b5   :  { %v18032_v25 = vpop.eup %13493  ;;  %13513 = vrcp.f32 %v9451_v30  ;;  %v9456_v16 = vadd.f32 1.0, %v13492_v42  ;;  %v18047_v30 = vmul.f32 %v17970_v21, %v17823_v19  ;;  %v11777_v19 = vmul.f32 -1.442695, %v17906_v63 }
 0x9b6   :  { %v18034_v22 = vpop.eup %13495  ;;  %13515 = vrcp.f32 %v9453_v3  ;;  %v18051_v3 = vmul.f32 %v17973_v2, %v17825_v37  ;;  %v18065_v37 = vmul.f32 %v17981_v29, %v17831_v53  ;;  %v18069_v2 = vmul.f32 %v17983_v7, %v17833_v15  ;;  %v19201_v7 = vld [vmem:[#allocation91_spill] sm:$0xff] }
 0x9b7   :  { %v18036_v32 = vpop.eup %13497  ;;  %13517 = vrcp.f32 %v9452_v36  ;;  %v18074_v14 = vmul.f32 %v17985_v12, %v17835_v39  ;;  %v18078_v58 = vmul.f32 %v17987_v59, %v17837_v11  ;;  %v11778_v53 = vmul.f32 -1.442695, %v17911_v28  ;;  %v19202_v39 = vld [vmem:[#allocation81_spill] sm:$0xff]  ;;  %v19203_v11 = vld [vmem:[#allocation95_spill] sm:$0xff] }
 0x9b8   :  { %v18038_v26 = vpop.eup %13499  ;;  %13519 = vrcp.f32 %v9454_v62  ;;  %v18085_v15 = vmul.f32 %v17993_v55, %v17839_v56  ;;  %v18089_v4 = vmul.f32 %v17995_v61, %v19201_v7  ;;  %v11779_v12 = vmul.f32 -1.442695, %v19202_v39  ;;  %v19205_v56 = vld [vmem:[#allocation90_spill] sm:$0xff]  ;;  %v19206_v61 = vld [vmem:[#allocation99_spill] sm:$0xff] }
 0x9b9   :  { %v13502_v44 = vpop.eup %13501  ;;  %13521 = vrcp.f32 %v9455_v54  ;;  %v18096_v59 = vmul.f32 %v17997_v27, %v19203_v11  ;;  %v18100_v60 = vmul.f32 %v17999_v51, %v19204_v48  ;;  %v11781_v55 = vmul.f32 -1.442695, %v19205_v56  ;;  %v19207_v54 = vld [vmem:[#allocation103_spill] sm:$0xff]  ;;  %v19209_v27 = vld [vmem:[#allocation24_spill] sm:$0xff] }
 0x9ba   :  { %v13504_v42 = vpop.eup %13503  ;;  %13523 = vrcp.f32 %v9457_v10  ;;  %v11780_v62 = vmul.f32 -1.442695, %v19206_v61  ;;  %v11782_v10 = vmul.f32 -1.442695, %v19207_v54  ;;  %v11785_v7 = vmul.f32 -1.442695, %v19209_v27 }
 0x9bb   :  { %v13506_v21 = vpop.eup %13505  ;;  %13525 = vrcp.f32 %v9456_v16  ;;  %v19208_v16 = vld [vmem:[#allocation57_spill] sm:$0xff]  ;;  %v19210_v11 = vld [vmem:[#allocation60_spill] sm:$0xff]  ;;  %v19213_v54 = vld [vmem:[#allocation62_spill] sm:$0xff]  ;;  %v9459_v27 = vadd.f32 1.0, %v13504_v42 }
 0x9bc   :  { %v13508_v45 = vpop.eup %13507  ;;  %13527 = vpow2.f32 %v11774_v43  ;;  %v11783_v43 = vmul.f32 -1.442695, %v19208_v16  ;;  %v18112_v51 = vmul.f32 -1.442695, %v19210_v11  ;;  %v19212_v61 = vld [vmem:[#allocation61_spill] sm:$0xff] }
 0x9bd   :  { %v18081_v29 = vpop.eup %13509  ;;  %13529 = vpow2.f32 %v11775_v6  ;;  %v18120_v39 = vmul.f32 -1.442695, %v19212_v61  ;;  %v18123_v16 = vmul.f32 -1.442695, %v19213_v54  ;;  %v19215_v54 = vld [vmem:[#allocation68_spill] sm:$0xff] }
 0x9be   :  { %v18092_v40 = vpop.eup %13511  ;;  %13531 = vpow2.f32 %v11777_v19  ;;  %v19211_v19 = vld [vmem:[#allocation25_spill] sm:$0xff]  ;;  %v18141_v61 = vmul.f32 -1.442695, %v19215_v54 }
 0x9bf   :  { %v18103_v36 = vpop.eup %13513  ;;  %13533 = vpow2.f32 %v11776_v20  ;;  %v18115_v48 = vmul.f32 -1.442695, %v19211_v19  ;;  %v9458_v20 = vadd.f32 1.0, %v13502_v44  ;;  %v19214_v19 = vld [vmem:[#allocation65_spill] sm:$0xff]  ;;  %v18138_v44 = vmul.f32 %v18009_v1, %v17849_v35  ;;  %v19218_v1 = vld [vmem:[#allocation66_spill] sm:$0xff] }
 0x9c0   :  { %v18108_v6 = vpop.eup %13515  ;;  %13535 = vpow2.f32 %v11778_v53  ;;  %v18129_v53 = vmul.f32 %v18006_v18, %v17847_v23  ;;  %v18132_v11 = vmul.f32 -1.442695, %v19214_v19  ;;  %v18147_v23 = vmul.f32 %v18012_v47, %v17851_v33 }
 0x9c1   :  { %v18117_v56 = vpop.eup %13517  ;;  %13537 = vpow2.f32 %v11779_v12  ;;  %v9461_v12 = vadd.f32 1.0, %v13506_v21  ;;  %v9460_v18 = vadd.f32 1.0, %v13508_v45  ;;  %v18154_v35 = vmul.f32 %v18015_v0, %v17853_v13  ;;  %v19219_v45 = vld [vmem:[#allocation26_spill] sm:$0xff] }
 0x9c2   :  { %v18125_v28 = vpop.eup %13519  ;;  %13539 = vpow2.f32 %v11781_v55  ;;  %v18157_v21 = vmul.f32 -1.442695, %v19218_v1 }
 0x9c3   :  { %v18134_v9 = vpop.eup %13521  ;;  %13541 = vpow2.f32 %v11780_v62 }
 0x9c4   :  { %v18143_v49 = vpop.eup %13523  ;;  %13543 = vpow2.f32 %v11782_v10  ;;  %v18161_v10 = vmul.f32 -1.442695, %v19219_v45  ;;  %v19222_v45 = vld [vmem:[#allocation27_spill] sm:$0xff] }
 0x9c5   :  { %19216 = vst [vmem:[#allocation19_spill] sm:$0xff] %v18143_v49  ;;  %v18150_v19 = vpop.eup %13525  ;;  %13545 = vrcp.f32 %v9458_v20  ;;  %v19220_v20 = vld [vmem:[#allocation69_spill] sm:$0xff] }
 0x9c6   :  { %v8926_v63 = vpop.f32.mrb[192].mxu0  ;;  %19217 = vst [vmem:[#allocation28_spill] sm:$0xff] %v18150_v19  ;;  %v13528_v47 = vpop.eup %13527  ;;  %13547 = vrcp.f32 %v9459_v27  ;;  %v18166_v1 = vmul.f32 -1.442695, %v19220_v20  ;;  %v18171_v19 = vmul.f32 -1.442695, %v19222_v45 }
 0x9c7   :  { %v9679_v42 = vmul.f32 %v18042_v46, %v8926_v63  ;;  %v8928_v55 = vpop.f32.mrb[193].mxu0  ;;  %v13530_v0 = vpop.eup %13529  ;;  %13549 = vrcp.f32 %v9461_v12  ;;  %v9462_v49 = vadd.f32 1.0, %v13528_v47 }
 0x9c8   :  { %v9152_v62 = vpop.f32.mrb[192].mxu1  ;;  %v9680_v54 = vmul.f32 %v18051_v3, %v8928_v55  ;;  %v8930_v33 = vpop.f32.mrb[194].mxu0  ;;  %19221 = vst [vmem:[#allocation77_spill] sm:$0xff] %v18166_v1  ;;  %13551 = vrcp.f32 %v9460_v18  ;;  %v12963_v1 = vld [vmem:[#allocation9 + $0x200] ss:$16 sps:$4 sm:$0xff]   ;;  %v9463_v18 = vadd.f32 1.0, %v13530_v0 }
 0x9c9   :  { %v9681_v63 = vmul.f32 %v18047_v30, %v9152_v62  ;;  %v9154_v46 = vpop.f32.mrb[193].mxu1  ;;  %v9683_v24 = vmul.f32 %v18060_v57, %v8930_v33  ;;  %v8932_v13 = vpop.f32.mrb[195].mxu0  ;;  %13553 = vpow2.f32 %v11783_v43 }
 0x9ca   :  { %v9682_v5 = vmul.f32 %v18056_v8, %v9154_v46  ;;  %v9156_v3 = vpop.f32.mrb[194].mxu1  ;;  %v9684_v55 = vmul.f32 %v18069_v2, %v8932_v13  ;;  %v13532_v27 = vpop.eup %13531  ;;  %v12966_v8 = vld [vmem:[#allocation9 + $0x208] ss:$16 sps:$4 sm:$0xff]   ;;  %v18177_v2 = vmul.f32 %v18018_v50, %v17855_v41  ;;  %13555 = vpow2.f32 %v11785_v7 }
 0x9cb   :  { %v9743_v30 = vpack.c.bf16 %v9683_v24, %v9679_v42  ;;  %v9685_v62 = vmul.f32 %v18065_v37, %v9156_v3  ;;  %v9158_v57 = vpop.f32.mrb[195].mxu1  ;;  %v13534_v33 = vpop.eup %13533  ;;  %v12971_v24 = vld [vmem:[#allocation9 + $0x224] ss:$16 sps:$4 sm:$0xff]   ;;  %v12974_v37 = vld [vmem:[#allocation9 + $0x22c] ss:$16 sps:$4 sm:$0xff]   ;;  %v9465_v3 = vadd.f32 1.0, %v13532_v27  ;;  %13557 = vpow2.f32 %v18112_v51 }
 0x9cc   :  { %v9744_v12 = vpack.c.bf16 %v9684_v55, %v9680_v54  ;;  %v9686_v20 = vmul.f32 %v18074_v14, %v9158_v57  ;;  %v13536_v46 = vpop.eup %13535  ;;  %v18183_v54 = vmul.f32 -1.442695, %v17954_v52  ;;  %v19224_v50 = vld [vmem:[#allocation102_spill] sm:$0xff]  ;;  %v9464_v47 = vadd.f32 1.0, %v13534_v33  ;;  %v12969_v51 = vld [vmem:[#allocation9 + $0x220] ss:$16 sps:$4 sm:$0xff]  }
 0x9cd   :  { %v18179_v13 = vpack.c.bf16 %v9685_v62, %v9681_v63  ;;  %v13538_v42 = vpop.eup %13537  ;;  %v18189_v7 = vmul.f32 %v18020_v38, %v19224_v50  ;;  %13559 = vpow2.f32 %v18115_v48  ;;  %v12972_v55 = vld [vmem:[#allocation9 + $0x228] ss:$16 sps:$4 sm:$0xff]   ;;  %v9466_v62 = vadd.f32 1.0, %v13536_v46  ;;  %v12977_v33 = vld [vmem:[#allocation9 + $0x244] ss:$16 sps:$4 sm:$0xff]  }
 0x9ce   :  { %v18185_v14 = vpack.c.bf16 %v9686_v20, %v9682_v5  ;;  %v8936_v43 = vpop.f32.mrb[196].mxu0  ;;  %10575 = vmatprep.mubr.bf16.mxu0 %v9744_v12  ;;  %10801 = vmatprep.mubr.bf16.mxu1 %v9744_v12  ;;  %v13540_v41 = vpop.eup %13539  ;;  %v19225_v20 = vld [vmem:[#allocation33_spill] sm:$0xff]  ;;  %13561 = vrcp.f32 %v9462_v49  ;;  %v9467_v12 = vadd.f32 1.0, %v13538_v42  ;;  %v12980_v49 = vld [vmem:[#allocation9 + $0x24c] ss:$16 sps:$4 sm:$0xff]  }
 0x9cf   :  { %19223 = vst [vmem:[#allocation78_spill] sm:$0xff] %v18179_v13  ;;  %v9687_v63 = vmul.f32 %v18078_v58, %v8936_v43  ;;  %v8938_v0 = vpop.f32.mrb[197].mxu0  ;;  %10576 = vmatmul.mubr.bf16.vlgmr.msra.gmra.mrb[224].mxu0 %v9743_v30  ;;  %10802 = vmatmul.mubr.bf16.vlgmr.msra.gmra.mrb[224].mxu1 %v9743_v30  ;;  %v13542_v5 = vpop.eup %13541  ;;  %v18195_v27 = vmul.f32 %v18022_v31, %v19225_v20  ;;  %13563 = vrcp.f32 %v9463_v18 }
 0x9d0   :  { %v9162_v57 = vpop.f32.mrb[196].mxu1  ;;  %v9688_v38 = vmul.f32 %v18089_v4, %v8938_v0  ;;  %10657 = vmatpush1.bf16.msra.mxu0 %v12963_v1  ;;  %10883 = vmatpush1.bf16.msra.mxu1 %v12966_v8  ;;  %v8940_v48 = vpop.f32.mrb[198].mxu0  ;;  %13565 = vrcp.f32 %v9465_v3  ;;  %v9469_v4 = vadd.f32 1.0, %v13540_v41  ;;  %v12978_v41 = vld [vmem:[#allocation9 + $0x248] ss:$16 sps:$4 sm:$0xff]  }
 0x9d1   :  { %v13544_v58 = vpop.eup %13543  ;;  %v9689_v30 = vmul.f32 %v18085_v15, %v9162_v57  ;;  %v9164_v43 = vpop.f32.mrb[197].mxu1  ;;  %v9691_v50 = vmul.f32 %v18100_v60, %v8940_v48  ;;  %10658 = vmatprep.subr.bf16.mxu0 %v12971_v24  ;;  %10884 = vmatprep.subr.bf16.mxu1 %v12974_v37  ;;  %13567 = vrcp.f32 %v9464_v47  ;;  %v9468_v15 = vadd.f32 1.0, %v13542_v5  ;;  %v12986_v57 = vld [vmem:[#allocation9 + $0x26c] ss:$16 sps:$4 sm:$0xff]  }
 0x9d2   :  { %v8942_v13 = vpop.f32.mrb[199].mxu0  ;;  %v18200_v31 = vpop.eup %13545  ;;  %v9690_v1 = vmul.f32 %v18096_v59, %v9164_v43  ;;  %13569 = vrcp.f32 %v9466_v62  ;;  %v9470_v37 = vadd.f32 1.0, %v13544_v58  ;;  %v12975_v59 = vld [vmem:[#allocation9 + $0x240] ss:$16 sps:$4 sm:$0xff]   ;;  %v12983_v62 = vld [vmem:[#allocation9 + $0x264] ss:$16 sps:$4 sm:$0xff]  }
 0x9d3   :  { %v9166_v8 = vpop.f32.mrb[198].mxu1  ;;  %v9692_v46 = vmul.f32 %v18138_v44, %v8942_v13  ;;  %v18204_v18 = vpop.eup %13547  ;;  %v9747_v42 = vpack.c.bf16 %v9691_v50, %v9687_v63  ;;  %v19226_v13 = vld [vmem:[#allocation38_spill] sm:$0xff]  ;;  %13571 = vrcp.f32 %v9467_v12  ;;  %v19231_v43 = vld [vmem:[#allocation43_spill] sm:$0xff] }
 0x9d4   :  { %v9693_v60 = vmul.f32 %v18129_v53, %v9166_v8  ;;  %v9168_v0 = vpop.f32.mrb[199].mxu1  ;;  %v18207_v24 = vpop.eup %13549  ;;  %10659 = vmatpush1.bf16.msra.mxu0 %v12969_v51  ;;  %10885 = vmatpush1.bf16.msra.mxu1 %v12972_v55  ;;  %v9635_v47 = vmul.f32 %v18024_v34, %v19226_v13  ;;  %v19227_v63 = vld [vmem:[#allocation70_spill] sm:$0xff]  ;;  %13573 = vrcp.f32 %v9469_v4  ;;  %v19228_v51 = vld [vmem:[#allocation71_spill] sm:$0xff]  ;;  %v9636_v50 = vmul.f32 %v18032_v25, %v19231_v43 }
 0x9d5   :  { %v9748_v20 = vpack.c.bf16 %v9692_v46, %v9688_v38  ;;  %v9694_v3 = vmul.f32 %v18147_v23, %v9168_v0  ;;  %v18210_v44 = vpop.eup %13551  ;;  %v18215_v53 = vmul.f32 -1.442695, %v19227_v63  ;;  %10660 = vmatprep.subr.bf16.mxu0 %v12977_v33  ;;  %10886 = vmatprep.subr.bf16.mxu1 %v12980_v49  ;;  %v18222_v55 = vmul.f32 -1.442695, %v19228_v51  ;;  %v19229_v38 = vld [vmem:[#allocation74_spill] sm:$0xff]  ;;  %v19230_v33 = vld [vmem:[#allocation37_spill] sm:$0xff] }
 0x9d6   :  { %v18217_v5 = vpack.c.bf16 %v9693_v60, %v9689_v30  ;;  %v18219_v23 = vpop.eup %13553  ;;  %v18225_v48 = vmul.f32 -1.442695, %v19229_v38  ;;  %v8946_v58 = vpop.f32.mrb[200].mxu0  ;;  %v9637_v30 = vmul.f32 %v18026_v17, %v19230_v33  ;;  %13575 = vrcp.f32 %v9468_v15  ;;  %v19233_v60 = vld [vmem:[#allocation36_spill] sm:$0xff]  ;;  %v12981_v15 = vld [vmem:[#allocation9 + $0x260] ss:$16 sps:$4 sm:$0xff]  }
 0x9d7   :  { %v18227_v34 = vpack.c.bf16 %v9694_v3, %v9690_v1  ;;  %10585 = vmatprep.mubr.bf16.mxu0 %v9748_v20  ;;  %10811 = vmatprep.mubr.bf16.mxu1 %v9748_v20  ;;  %v18229_v12 = vpop.eup %13555  ;;  %v9695_v49 = vmul.f32 %v18154_v35, %v8946_v58  ;;  %v8948_v4 = vpop.f32.mrb[201].mxu0  ;;  %v19232_v1 = vld [vmem:[#allocation41_spill] sm:$0xff]  ;;  %v9639_v0 = vmul.f32 %v18036_v32, %v19233_v60  ;;  %13577 = vrcp.f32 %v9470_v37  ;;  %v12984_v35 = vld [vmem:[#allocation9 + $0x268] ss:$16 sps:$4 sm:$0xff]  }
 0x9d8   :  { %10586 = vmatmul.mubr.bf16.gmra.mrb[228].mxu0 %v9747_v42  ;;  %10812 = vmatmul.mubr.bf16.gmra.mrb[228].mxu1 %v9747_v42  ;;  %v18236_v8 = vpop.eup %13557  ;;  %v9638_v46 = vmul.f32 %v18034_v22, %v19232_v1  ;;  %v9172_v20 = vpop.f32.mrb[200].mxu1  ;;  %v9696_v17 = vmul.f32 %v18189_v7, %v8948_v4  ;;  %v19234_v42 = vld [vmem:[#allocation20_spill] sm:$0xff]  ;;  %13579 = vpow2.f32 %v18120_v39  ;;  %v12989_v7 = vld [vmem:[#allocation9 + $0x284] ss:$16 sps:$4 sm:$0xff]  }
 0x9d9   :  { %10661 = vmatpush1.bf16.msra.mxu0 %v12975_v59  ;;  %10887 = vmatpush1.bf16.msra.mxu1 %v12978_v41  ;;  %v8950_v25 = vpop.f32.mrb[202].mxu0  ;;  %v18243_v3 = vpop.eup %13559  ;;  %v18247_v13 = vmul.f32 %v18038_v26, %v19234_v42  ;;  %v9697_v22 = vmul.f32 %v18177_v2, %v9172_v20  ;;  %v12992_v59 = vld [vmem:[#allocation9 + $0x28c] ss:$16 sps:$4 sm:$0xff]   ;;  %v19235_v33 = vld [vmem:[#allocation21_spill] sm:$0xff]  ;;  %13581 = vpow2.f32 %v18132_v11  ;;  %v12990_v42 = vld [vmem:[#allocation9 + $0x288] ss:$16 sps:$4 sm:$0xff]  }
 0x9da   :  { %v9174_v32 = vpop.f32.mrb[201].mxu1  ;;  %v9699_v37 = vmul.f32 %v9635_v47, %v8950_v25  ;;  %v8952_v58 = vpop.f32.mrb[203].mxu0  ;;  %10662 = vmatprep.subr.bf16.mxu0 %v12983_v62  ;;  %10888 = vmatprep.subr.bf16.mxu1 %v12986_v57  ;;  %v9640_v43 = vmul.f32 %v18081_v29, %v19235_v33  ;;  %v19236_v2 = vld [vmem:[#allocation40_spill] sm:$0xff]  ;;  %13583 = vpow2.f32 %v18123_v16  ;;  %v19237_v29 = vld [vmem:[#allocation42_spill] sm:$0xff]  ;;  %v12987_v25 = vld [vmem:[#allocation9 + $0x280] ss:$16 sps:$4 sm:$0xff]  }
 0x9db   :  { %v18251_v41 = vpop.eup %13561  ;;  %v9698_v26 = vmul.f32 %v18195_v27, %v9174_v32  ;;  %v9176_v4 = vpop.f32.mrb[202].mxu1  ;;  %v9700_v39 = vmul.f32 %v9636_v50, %v8952_v58  ;;  %v18261_v47 = vmul.f32 %v18092_v40, %v19236_v2  ;;  %v9643_v11 = vmul.f32 %v18103_v36, %v19237_v29  ;;  %v19238_v32 = vld [vmem:[#allocation44_spill] sm:$0xff]  ;;  %v12995_v36 = vld [vmem:[#allocation9 + $0x2a4] ss:$16 sps:$4 sm:$0xff]  }
 0x9dc   :  { %v18257_v1 = vpop.eup %13563  ;;  %v9751_v62 = vpack.c.bf16 %v9699_v37, %v9695_v49  ;;  %v9701_v57 = vmul.f32 %v9637_v30, %v9176_v4  ;;  %v9178_v60 = vpop.f32.mrb[203].mxu1  ;;  %13585 = vpow2.f32 %v18141_v61  ;;  %v9645_v16 = vmul.f32 %v18108_v6, %v19238_v32  ;;  %v19239_v30 = vld [vmem:[#allocation50_spill] sm:$0xff]  ;;  %v19244_v33 = vld [vmem:[#allocation23_spill] sm:$0xff]  ;;  %v19245_v4 = vld [vmem:[#allocation28_spill] sm:$0xff] }
 0x9dd   :  { %v18264_v20 = vpop.eup %13565  ;;  %v9752_v27 = vpack.c.bf16 %v9700_v39, %v9696_v17  ;;  %v9702_v50 = vmul.f32 %v9638_v46, %v9178_v60  ;;  %10663 = vmatpush1.bf16.msra.mxu0 %v12981_v15  ;;  %10889 = vmatpush1.bf16.msra.mxu1 %v12984_v35  ;;  %v9644_v49 = vmul.f32 %v18117_v56, %v19239_v30  ;;  %13587 = vpow2.f32 %v18157_v21  ;;  %v12998_v61 = vld [vmem:[#allocation9 + $0x2ac] ss:$16 sps:$4 sm:$0xff]   ;;  %v19240_v17 = vld [vmem:[#allocation47_spill] sm:$0xff]  ;;  %v19246_v39 = vld [vmem:[#allocation77_spill] sm:$0xff] }
 0x9de   :  { %v18269_v40 = vpop.eup %13567  ;;  %v18276_v37 = vpack.c.bf16 %v9701_v57, %v9697_v22  ;;  %10664 = vmatprep.subr.bf16.mxu0 %v12989_v7  ;;  %10890 = vmatprep.subr.bf16.mxu1 %v12992_v59  ;;  %v9646_v15 = vmul.f32 %v18125_v28, %v19240_v17  ;;  %v19241_v35 = vld [vmem:[#allocation48_spill] sm:$0xff]  ;;  %13589 = vpow2.f32 %v18161_v10  ;;  %v8956_v6 = vpop.f32.mrb[204].mxu0  ;;  %v19242_v22 = vld [vmem:[#allocation22_spill] sm:$0xff]  ;;  %v19243_v7 = vld [vmem:[#allocation19_spill] sm:$0xff]  ;;  %v18297_v28 = vmul.f32 %v19245_v4, %v19244_v33 }
 0x9df   :  { %v18278_v46 = vpop.eup %13569  ;;  %v18284_v58 = vmul.f32 %v18134_v9, %v19241_v35  ;;  %v18287_v56 = vpack.c.bf16 %v9702_v50, %v9698_v26  ;;  %10595 = vmatprep.mubr.bf16.mxu0 %v9752_v27  ;;  %10821 = vmatprep.mubr.bf16.mxu1 %v9752_v27  ;;  %v18293_v59 = vmul.f32 %v19243_v7, %v19242_v22  ;;  %13591 = vpow2.f32 %v19246_v39  ;;  %v8958_v2 = vpop.f32.mrb[205].mxu0  ;;  %v12993_v10 = vld [vmem:[#allocation9 + $0x2a0] ss:$16 sps:$4 sm:$0xff]   ;;  %v19248_v29 = vld [vmem:[#allocation56_spill] sm:$0xff] }
 0x9e0   :  { %v18289_v21 = vpop.eup %13571  ;;  %v9703_v9 = vmul.f32 %v9639_v0, %v8956_v6  ;;  %10596 = vmatmul.mubr.bf16.gmra.mrb[232].mxu0 %v9751_v62  ;;  %10822 = vmatmul.mubr.bf16.gmra.mrb[232].mxu1 %v9751_v62  ;;  %v19247_v57 = vld [vmem:[#allocation51_spill] sm:$0xff]  ;;  %v18308_v27 = vmul.f32 %v18204_v18, %v19248_v29  ;;  %13593 = vpow2.f32 %v18171_v19  ;;  %v9182_v50 = vpop.f32.mrb[204].mxu1  ;;  %v9704_v32 = vmul.f32 %v9640_v43, %v8958_v2  ;;  %v12996_v30 = vld [vmem:[#allocation9 + $0x2a8] ss:$16 sps:$4 sm:$0xff]   ;;  %v13004_v19 = vld [vmem:[#allocation9 + $0x2cc] ss:$16 sps:$4 sm:$0xff]  }
 0x9e1   :  { %v18300_v26 = vpop.eup %13573  ;;  %v18304_v60 = vmul.f32 %v18200_v31, %v19247_v57  ;;  %10665 = vmatpush1.bf16.msra.mxu0 %v12987_v25  ;;  %10891 = vmatpush1.bf16.msra.mxu1 %v12990_v42  ;;  %v8960_v0 = vpop.f32.mrb[206].mxu0  ;;  %v13001_v62 = vld [vmem:[#allocation9 + $0x2c4] ss:$16 sps:$4 sm:$0xff]   ;;  %v9471_v35 = vadd.f32 1.0, %v18219_v23  ;;  %13595 = vpow2.f32 %v18183_v54  ;;  %v9705_v31 = vmul.f32 %v18247_v13, %v9182_v50  ;;  %v19250_v57 = vld [vmem:[#allocation52_spill] sm:$0xff] }
 0x9e2   :  { %v18311_v17 = vpop.eup %13575  ;;  %v9184_v6 = vpop.f32.mrb[205].mxu1  ;;  %v9707_v18 = vmul.f32 %v9643_v11, %v8960_v0  ;;  %10666 = vmatprep.subr.bf16.mxu0 %v12995_v36  ;;  %10892 = vmatprep.subr.bf16.mxu1 %v12998_v61  ;;  %v9473_v25 = vadd.f32 1.0, %v18229_v12  ;;  %13597 = vpow2.f32 %v18222_v55  ;;  %v9472_v54 = vadd.f32 1.0, %v18236_v8  ;;  %v12999_v55 = vld [vmem:[#allocation9 + $0x2c0] ss:$16 sps:$4 sm:$0xff]  }
 0x9e3   :  { %v8962_v22 = vpop.f32.mrb[207].mxu0  ;;  %v18316_v43 = vpop.eup %13577  ;;  %v9706_v42 = vmul.f32 %v18261_v47, %v9184_v6  ;;  %13599 = vpow2.f32 %v18215_v53  ;;  %v9474_v4 = vadd.f32 1.0, %v18243_v3  ;;  %v13002_v47 = vld [vmem:[#allocation9 + $0x2c8] ss:$16 sps:$4 sm:$0xff]   ;;  %v19249_v2 = vld [vmem:[#allocation53_spill] sm:$0xff]  ;;  %v9652_v53 = vmul.f32 %v18210_v44, %v19250_v57 }
 0x9e4   :  { %v9186_v7 = vpop.f32.mrb[206].mxu1  ;;  %v9708_v23 = vmul.f32 %v9644_v49, %v8962_v22  ;;  %v13580_v33 = vpop.eup %13579  ;;  %v9755_v13 = vpack.c.bf16 %v9707_v18, %v9703_v9  ;;  %13601 = vpow2.f32 %v18225_v48  ;;  %v9653_v8 = vmul.f32 %v18207_v24, %v19249_v2  ;;  %v13007_v3 = vld [vmem:[#allocation9 + $0x2e4] ss:$16 sps:$4 sm:$0xff]   ;;  %v13010_v48 = vld [vmem:[#allocation9 + $0x2ec] ss:$16 sps:$4 sm:$0xff]  }
 0x9e5   :  { %v9709_v11 = vmul.f32 %v9645_v16, %v9186_v7  ;;  %v9188_v36 = vpop.f32.mrb[207].mxu1  ;;  %v13582_v61 = vpop.eup %13581  ;;  %10667 = vmatpush1.bf16.msra.mxu0 %v12993_v10  ;;  %10893 = vmatpush1.bf16.msra.mxu1 %v12996_v30  ;;  %13603 = vrcp.f32 %v9471_v35  ;;  %v9475_v29 = vadd.f32 1.0, %v13580_v33  ;;  %v19252_v44 = vld [vmem:[#allocation54_spill] sm:$0xff]  ;;  %v19253_v18 = vld [vmem:[#allocation63_spill] sm:$0xff] }
 0x9e6   :  { %v9756_v12 = vpack.c.bf16 %v9708_v23, %v9704_v32  ;;  %v9710_v39 = vmul.f32 %v9646_v15, %v9188_v36  ;;  %v13584_v49 = vpop.eup %13583  ;;  %10668 = vmatprep.subr.bf16.mxu0 %v13001_v62  ;;  %10894 = vmatprep.subr.bf16.mxu1 %v13004_v19  ;;  %v19251_v15 = vld [vmem:[#allocation45_spill] sm:$0xff]  ;;  %13605 = vrcp.f32 %v9473_v25  ;;  %v8966_v32 = vpop.f32.mrb[208].mxu0  ;;  %v18337_v0 = vmul.f32 %v18257_v1, %v19252_v44  ;;  %v19254_v23 = vld [vmem:[#allocation72_spill] sm:$0xff] }
 0x9e7   :  { %v18329_v16 = vpack.c.bf16 %v9709_v11, %v9705_v31  ;;  %v13586_v9 = vpop.eup %13585  ;;  %v9654_v10 = vmul.f32 %v18251_v41, %v19251_v15  ;;  %13607 = vrcp.f32 %v9472_v54  ;;  %v9476_v30 = vadd.f32 1.0, %v13582_v61  ;;  %v8968_v35 = vpop.f32.mrb[209].mxu0  ;;  %v13005_v41 = vld [vmem:[#allocation9 + $0x2e0] ss:$16 sps:$4 sm:$0xff]   ;;  %v13008_v31 = vld [vmem:[#allocation9 + $0x2e8] ss:$16 sps:$4 sm:$0xff]  }
 0x9e8   :  { %v18333_v50 = vpack.c.bf16 %v9710_v39, %v9706_v42  ;;  %10605 = vmatprep.mubr.bf16.mxu0 %v9756_v12  ;;  %10831 = vmatprep.mubr.bf16.mxu1 %v9756_v12  ;;  %v13588_v24 = vpop.eup %13587  ;;  %v9711_v62 = vmul.f32 %v18284_v58, %v8966_v32  ;;  %v18342_v22 = vmul.f32 %v18264_v20, %v19253_v18  ;;  %13609 = vrcp.f32 %v9474_v4  ;;  %v9192_v25 = vpop.f32.mrb[208].mxu1  ;;  %v13013_v7 = vld [vmem:[#allocation9 + $0x304] ss:$16 sps:$4 sm:$0xff]   ;;  %v13016_v61 = vld [vmem:[#allocation9 + $0x30c] ss:$16 sps:$4 sm:$0xff]  }
 0x9e9   :  { %10606 = vmatmul.mubr.bf16.gmra.mrb[236].mxu0 %v9755_v13  ;;  %10832 = vmatmul.mubr.bf16.gmra.mrb[236].mxu1 %v9755_v13  ;;  %v13590_v6 = vpop.eup %13589  ;;  %v9477_v19 = vadd.f32 1.0, %v13584_v49  ;;  %v9712_v1 = vmul.f32 %v18297_v28, %v8968_v35  ;;  %v8970_v42 = vpop.f32.mrb[210].mxu0  ;;  %v9656_v33 = vmul.f32 %v18269_v40, %v19254_v23  ;;  %v9478_v54 = vadd.f32 1.0, %v13586_v9  ;;  %v13014_v15 = vld [vmem:[#allocation9 + $0x308] ss:$16 sps:$4 sm:$0xff]   ;;  %v19255_v32 = vld [vmem:[#allocation59_spill] sm:$0xff] }
 0x9ea   :  { %10669 = vmatpush1.bf16.msra.mxu0 %v12999_v55  ;;  %10895 = vmatpush1.bf16.msra.mxu1 %v13002_v47  ;;  %v13592_v58 = vpop.eup %13591  ;;  %v9713_v13 = vmul.f32 %v18293_v59, %v9192_v25  ;;  %v9194_v11 = vpop.f32.mrb[209].mxu1  ;;  %v9715_v20 = vmul.f32 %v18308_v27, %v8970_v42  ;;  %13611 = vrcp.f32 %v9475_v29  ;;  %v9479_v28 = vadd.f32 1.0, %v13588_v24  ;;  %v13022_v44 = vld [vmem:[#allocation9 + $0x32c] ss:$16 sps:$4 sm:$0xff]   ;;  %v13017_v42 = vld [vmem:[#allocation9 + $0x320] ss:$16 sps:$4 sm:$0xff]  }
 0x9eb   :  { %v8972_v36 = vpop.f32.mrb[211].mxu0  ;;  %10670 = vmatprep.subr.bf16.mxu0 %v13007_v3  ;;  %10896 = vmatprep.subr.bf16.mxu1 %v13010_v48  ;;  %v13594_v4 = vpop.eup %13593  ;;  %v9714_v12 = vmul.f32 %v18304_v60, %v9194_v11  ;;  %13613 = vrcp.f32 %v9476_v30  ;;  %v9481_v40 = vadd.f32 1.0, %v13590_v6  ;;  %v9480_v27 = vadd.f32 1.0, %v13592_v58  ;;  %v13011_v48 = vld [vmem:[#allocation9 + $0x300] ss:$16 sps:$4 sm:$0xff]   ;;  %v19257_v6 = vld [vmem:[#allocation90_spill] sm:$0xff] }
 0x9ec   :  { %v9196_v39 = vpop.f32.mrb[210].mxu1  ;;  %v9716_v55 = vmul.f32 %v9652_v53, %v8972_v36  ;;  %v13596_v47 = vpop.eup %13595  ;;  %v9759_v49 = vpack.c.bf16 %v9715_v20, %v9711_v62  ;;  %13615 = vrcp.f32 %v9477_v19  ;;  %v9658_v60 = vmul.f32 %v18278_v46, %v19255_v32  ;;  %v19256_v62 = vld [vmem:[#allocation81_spill] sm:$0xff]  ;;  %v19258_v58 = vld [vmem:[#allocation99_spill] sm:$0xff] }
 0x9ed   :  { %v9717_v2 = vmul.f32 %v9653_v8, %v9196_v39  ;;  %v9198_v59 = vpop.f32.mrb[211].mxu1  ;;  %v13598_v57 = vpop.eup %13597  ;;  %13617 = vrcp.f32 %v9478_v54  ;;  %v9482_v53 = vadd.f32 1.0, %v13594_v4  ;;  %v13019_v8 = vld [vmem:[#allocation9 + $0x324] ss:$16 sps:$4 sm:$0xff]   ;;  %v9483_v35 = vadd.f32 1.0, %v13596_v47 }
 0x9ee   :  { %v9760_v9 = vpack.c.bf16 %v9716_v55, %v9712_v1  ;;  %v9718_v3 = vmul.f32 %v9654_v10, %v9198_v59  ;;  %10671 = vmatpush1.bf16.msra.mxu0 %v13005_v41  ;;  %10897 = vmatpush1.bf16.msra.mxu1 %v13008_v31  ;;  %v13600_v29 = vpop.eup %13599  ;;  %v9659_v10 = vmul.f32 %v18289_v21, %v19256_v62  ;;  %13619 = vrcp.f32 %v9479_v28  ;;  %v8976_v31 = vpop.f32.mrb[212].mxu0  ;;  %v13020_v21 = vld [vmem:[#allocation9 + $0x328] ss:$16 sps:$4 sm:$0xff]   ;;  %v13025_v20 = vld [vmem:[#allocation9 + $0x344] ss:$16 sps:$4 sm:$0xff]  }
 0x9ef   :  { %v18352_v24 = vpack.c.bf16 %v9717_v2, %v9713_v13  ;;  %10672 = vmatprep.subr.bf16.mxu0 %v13013_v7  ;;  %10898 = vmatprep.subr.bf16.mxu1 %v13016_v61  ;;  %v13602_v30 = vpop.eup %13601  ;;  %v9661_v18 = vmul.f32 %v18300_v26, %v19257_v6  ;;  %13621 = vrcp.f32 %v9481_v40  ;;  %v9484_v19 = vadd.f32 1.0, %v13598_v57  ;;  %v8978_v1 = vpop.f32.mrb[213].mxu0  ;;  %v13028_v39 = vld [vmem:[#allocation9 + $0x34c] ss:$16 sps:$4 sm:$0xff]   ;;  %v19259_v55 = vld [vmem:[#allocation103_spill] sm:$0xff] }
 0x9f0   :  { %v18356_v41 = vpack.c.bf16 %v9718_v3, %v9714_v12  ;;  %10615 = vmatprep.mubr.bf16.mxu0 %v9760_v9  ;;  %10841 = vmatprep.mubr.bf16.mxu1 %v9760_v9  ;;  %v13604_v46 = vpop.eup %13603  ;;  %v9719_v25 = vmul.f32 %v18337_v0, %v8976_v31  ;;  %v9660_v23 = vmul.f32 %v18311_v17, %v19258_v58  ;;  %13623 = vrcp.f32 %v9480_v27  ;;  %v9202_v13 = vpop.f32.mrb[212].mxu1  ;;  %v13023_v3 = vld [vmem:[#allocation9 + $0x340] ss:$16 sps:$4 sm:$0xff]   ;;  %v19262_v31 = vld [vmem:[#allocation24_spill] sm:$0xff] }
 0x9f1   :  { %10616 = vmatmul.mubr.bf16.gmra.mrb[240].mxu0 %v9759_v49  ;;  %10842 = vmatmul.mubr.bf16.gmra.mrb[240].mxu1 %v9759_v49  ;;  %v13606_v7 = vpop.eup %13605  ;;  %v9485_v54 = vadd.f32 1.0, %v13600_v29  ;;  %v9720_v11 = vmul.f32 %v9656_v33, %v8978_v1  ;;  %v8980_v26 = vpop.f32.mrb[214].mxu0  ;;  %13625 = vrcp.f32 %v9482_v53  ;;  %v9486_v0 = vadd.f32 1.0, %v13602_v30  ;;  %v19260_v29 = vld [vmem:[#allocation57_spill] sm:$0xff]  ;;  %v13034_v53 = vld [vmem:[#allocation9 + $0x36c] ss:$16 sps:$4 sm:$0xff]  }
 0x9f2   :  { %10673 = vmatpush1.bf16.msra.mxu0 %v13011_v48  ;;  %10899 = vmatpush1.bf16.msra.mxu1 %v13014_v15  ;;  %v13608_v36 = vpop.eup %13607  ;;  %v9721_v61 = vmul.f32 %v18342_v22, %v9202_v13  ;;  %v9204_v4 = vpop.f32.mrb[213].mxu1  ;;  %v9723_v28 = vmul.f32 %v9659_v10, %v8980_v26  ;;  %v9662_v47 = vmul.f32 %v18316_v43, %v19259_v55  ;;  %13627 = vrcp.f32 %v9483_v35  ;;  %v13026_v48 = vld [vmem:[#allocation9 + $0x348] ss:$16 sps:$4 sm:$0xff]   ;;  %v19265_v58 = vld [vmem:[#allocation65_spill] sm:$0xff] }
 0x9f3   :  { %v8982_v12 = vpop.f32.mrb[215].mxu0  ;;  %10674 = vmatprep.subr.bf16.mxu0 %v13019_v8  ;;  %10900 = vmatprep.subr.bf16.mxu1 %v13022_v44  ;;  %v13610_v17 = vpop.eup %13609  ;;  %v9722_v33 = vmul.f32 %v9658_v60, %v9204_v4  ;;  %13629 = vrcp.f32 %v9484_v19  ;;  %v9663_v32 = vmul.f32 %v13604_v46, %v19260_v29  ;;  %v13031_v60 = vld [vmem:[#allocation9 + $0x364] ss:$16 sps:$4 sm:$0xff]   ;;  %v19261_v44 = vld [vmem:[#allocation60_spill] sm:$0xff]  ;;  %v9665_v6 = vmul.f32 %v13606_v7, %v19262_v31  ;;  %v13029_v26 = vld [vmem:[#allocation9 + $0x360] ss:$16 sps:$4 sm:$0xff]  }
 0x9f4   :  { %v9206_v40 = vpop.f32.mrb[214].mxu1  ;;  %v9724_v49 = vmul.f32 %v9660_v23, %v8982_v12  ;;  %v9763_v2 = vpack.c.bf16 %v9723_v28, %v9719_v25  ;;  %v13612_v27 = vpop.eup %13611  ;;  %13631 = vrcp.f32 %v9485_v54  ;;  %v9664_v30 = vmul.f32 %v13608_v36, %v19261_v44  ;;  %v19266_v7 = vld [vmem:[#allocation62_spill] sm:$0xff]  ;;  %v13043_v44 = vld [vmem:[#allocation9 + $0x3a4] ss:$16 sps:$4 sm:$0xff]  }
 0x9f5   :  { %v9725_v59 = vmul.f32 %v9661_v18, %v9206_v40  ;;  %v9208_v57 = vpop.f32.mrb[215].mxu1  ;;  %v13614_v15 = vpop.eup %13613  ;;  %13633 = vrcp.f32 %v9486_v0  ;;  %v19263_v18 = vld [vmem:[#allocation61_spill] sm:$0xff]  ;;  %v13038_v29 = vld [vmem:[#allocation9 + $0x388] ss:$16 sps:$4 sm:$0xff]  }
 0x9f6   :  { %v9764_v22 = vpack.c.bf16 %v9724_v49, %v9720_v11  ;;  %v9726_v9 = vmul.f32 %v9662_v47, %v9208_v57  ;;  %10675 = vmatpush1.bf16.msra.mxu0 %v13017_v42  ;;  %10901 = vmatpush1.bf16.msra.mxu1 %v13020_v21  ;;  %v13616_v8 = vpop.eup %13615  ;;  %v8986_v10 = vpop.f32.mrb[216].mxu0  ;;  %v9667_v46 = vmul.f32 %v13612_v27, %v19263_v18  ;;  %v19264_v42 = vld [vmem:[#allocation25_spill] sm:$0xff]  ;;  %v19267_v47 = vld [vmem:[#allocation68_spill] sm:$0xff] }
 0x9f7   :  { %v18367_v43 = vpack.c.bf16 %v9725_v59, %v9721_v61  ;;  %10676 = vmatprep.subr.bf16.mxu0 %v13025_v20  ;;  %10902 = vmatprep.subr.bf16.mxu1 %v13028_v39  ;;  %v13618_v35 = vpop.eup %13617  ;;  %v9727_v19 = vmul.f32 %v9663_v32, %v8986_v10  ;;  %v8988_v25 = vpop.f32.mrb[217].mxu0  ;;  %v9666_v21 = vmul.f32 %v13610_v17, %v19264_v42  ;;  %v13032_v20 = vld [vmem:[#allocation9 + $0x368] ss:$16 sps:$4 sm:$0xff]   ;;  %v13037_v39 = vld [vmem:[#allocation9 + $0x384] ss:$16 sps:$4 sm:$0xff]  }
 0x9f8   :  { %v18370_v62 = vpack.c.bf16 %v9726_v9, %v9722_v33  ;;  %10625 = vmatprep.mubr.bf16.mxu0 %v9764_v22  ;;  %10851 = vmatprep.mubr.bf16.mxu1 %v9764_v22  ;;  %v13620_v1 = vpop.eup %13619  ;;  %v9668_v23 = vmul.f32 %v13614_v15, %v19265_v58  ;;  %v9212_v54 = vpop.f32.mrb[216].mxu1  ;;  %v9728_v13 = vmul.f32 %v9664_v30, %v8988_v25  ;;  %v13040_v17 = vld [vmem:[#allocation9 + $0x38c] ss:$16 sps:$4 sm:$0xff]   ;;  %v13035_v15 = vld [vmem:[#allocation9 + $0x380] ss:$16 sps:$4 sm:$0xff]  }
 0x9f9   :  { %10626 = vmatmul.mubr.bf16.gmra.mrb[244].mxu0 %v9763_v2  ;;  %10852 = vmatmul.mubr.bf16.gmra.mrb[244].mxu1 %v9763_v2  ;;  %v8990_v11 = vpop.f32.mrb[218].mxu0  ;;  %v13622_v36 = vpop.eup %13621  ;;  %v9669_v0 = vmul.f32 %v13616_v8, %v19266_v7  ;;  %v9729_v61 = vmul.f32 %v9665_v6, %v9212_v54  ;;  %v9670_v33 = vmul.f32 %v13618_v35, %v19267_v47  ;;  %v13046_v30 = vld [vmem:[#allocation9 + $0x3ac] ss:$16 sps:$4 sm:$0xff]   ;;  %v19269_v35 = vld [vmem:[#allocation69_spill] sm:$0xff] }
 0x9fa   :  { %10677 = vmatpush1.bf16.msra.mxu0 %v13023_v3  ;;  %10903 = vmatpush1.bf16.msra.mxu1 %v13026_v48  ;;  %v9214_v4 = vpop.f32.mrb[217].mxu1  ;;  %v9731_v28 = vmul.f32 %v9667_v46, %v8990_v11  ;;  %v8992_v12 = vpop.f32.mrb[219].mxu0 }
 0x9fb   :  { %10678 = vmatprep.subr.bf16.mxu0 %v13031_v60  ;;  %10904 = vmatprep.subr.bf16.mxu1 %v13034_v53  ;;  %v13624_v55 = vpop.eup %13623  ;;  %v9730_v40 = vmul.f32 %v9666_v21, %v9214_v4  ;;  %v9216_v49 = vpop.f32.mrb[218].mxu1  ;;  %v9732_v2 = vmul.f32 %v9668_v23, %v8992_v12  ;;  %v19268_v60 = vld [vmem:[#allocation66_spill] sm:$0xff]  ;;  %v13049_v4 = vld [vmem:[#allocation9 + $0x3c4] ss:$16 sps:$4 sm:$0xff]  }
 0x9fc   :  { %v13626_v59 = vpop.eup %13625  ;;  %v9767_v57 = vpack.c.bf16 %v9731_v28, %v9727_v19  ;;  %v9733_v27 = vmul.f32 %v9669_v0, %v9216_v49  ;;  %v9218_v22 = vpop.f32.mrb[219].mxu1  ;;  %v9671_v53 = vmul.f32 %v13620_v1, %v19268_v60  ;;  %v9672_v31 = vmul.f32 %v13624_v55, %v19269_v35  ;;  %v19270_v19 = vld [vmem:[#allocation26_spill] sm:$0xff] }
 0x9fd   :  { %v13628_v9 = vpop.eup %13627  ;;  %v9768_v3 = vpack.c.bf16 %v9732_v2, %v9728_v13  ;;  %v9734_v48 = vmul.f32 %v9670_v33, %v9218_v22  ;;  %v9673_v25 = vmul.f32 %v13622_v36, %v19270_v19  ;;  %v9674_v58 = vmul.f32 %v13626_v59, %v19222_v45  ;;  %v13052_v28 = vld [vmem:[#allocation9 + $0x3cc] ss:$16 sps:$4 sm:$0xff]   ;;  %v13050_v49 = vld [vmem:[#allocation9 + $0x3c8] ss:$16 sps:$4 sm:$0xff]  }
 0x9fe   :  { %10679 = vmatpush1.bf16.msra.mxu0 %v13029_v26  ;;  %10905 = vmatpush1.bf16.msra.mxu1 %v13032_v20  ;;  %v13630_v32 = vpop.eup %13629  ;;  %v18379_v8 = vpack.c.bf16 %v9733_v27, %v9729_v61  ;;  %v8996_v18 = vpop.f32.mrb[220].mxu0  ;;  %v9675_v42 = vmul.f32 %v13628_v9, %v17954_v52  ;;  %v13041_v26 = vld [vmem:[#allocation9 + $0x3a0] ss:$16 sps:$4 sm:$0xff]   ;;  %v13044_v20 = vld [vmem:[#allocation9 + $0x3a8] ss:$16 sps:$4 sm:$0xff]  }
 0x9ff   :  { %10680 = vmatprep.subr.bf16.mxu0 %v13037_v39  ;;  %10906 = vmatprep.subr.bf16.mxu1 %v13040_v17  ;;  %v13632_v10 = vpop.eup %13631  ;;  %v18382_v6 = vpack.c.bf16 %v9734_v48, %v9730_v40  ;;  %v9735_v1 = vmul.f32 %v9671_v53, %v8996_v18  ;;  %v8998_v21 = vpop.f32.mrb[221].mxu0  ;;  %v9676_v23 = vmul.f32 %v13630_v32, %v19228_v51  ;;  %v13053_v27 = vld [vmem:[#allocation9 + $0x3e0] ss:$16 sps:$4 sm:$0xff]   ;;  %v13056_v22 = vld [vmem:[#allocation9 + $0x3e8] ss:$16 sps:$4 sm:$0xff]  }
 0xa00   :  { %10635 = vmatprep.mubr.bf16.mxu0 %v9768_v3  ;;  %10861 = vmatprep.mubr.bf16.mxu1 %v9768_v3  ;;  %v13634_v46 = vpop.eup %13633  ;;  %v9222_v54 = vpop.f32.mrb[220].mxu1  ;;  %v9736_v13 = vmul.f32 %v9672_v31, %v8998_v21  ;;  %v9677_v7 = vmul.f32 %v13632_v10, %v19227_v63  ;;  %v13047_v63 = vld [vmem:[#allocation9 + $0x3c0] ss:$16 sps:$4 sm:$0xff]   ;;  %v19271_v9 = vld [vmem:[#allocation78_spill] sm:$0xff] }
 0xa01   :  { %10636 = vmatmul.mubr.bf16.gmra.mrb[248].mxu0 %v9767_v57  ;;  %10862 = vmatmul.mubr.bf16.gmra.mrb[248].mxu1 %v9767_v57  ;;  %v9000_v11 = vpop.f32.mrb[222].mxu0  ;;  %v9737_v36 = vmul.f32 %v9673_v25, %v9222_v54  ;;  %v9224_v0 = vpop.f32.mrb[221].mxu1  ;;  %v9678_v45 = vmul.f32 %v13634_v46, %v19229_v38  ;;  %v13055_v57 = vld [vmem:[#allocation9 + $0x3e4] ss:$16 sps:$4 sm:$0xff]   ;;  %v13058_v38 = vld [vmem:[#allocation9 + $0x3ec] ss:$16 sps:$4 sm:$0xff]  }
 0xa02   :  { %10681 = vmatpush1.bf16.msra.mxu0 %v13035_v15  ;;  %10907 = vmatpush1.bf16.msra.mxu1 %v13038_v29  ;;  %v9739_v52 = vmul.f32 %v9675_v42, %v9000_v11  ;;  %v9002_v61 = vpop.f32.mrb[223].mxu0  ;;  %v9738_v51 = vmul.f32 %v9674_v58, %v9224_v0  ;;  %v9226_v12 = vpop.f32.mrb[222].mxu1 }
 0xa03   :  { %10682 = vmatprep.subr.bf16.mxu0 %v13043_v44  ;;  %10908 = vmatprep.subr.bf16.mxu1 %v13046_v30  ;;  %v9740_v39 = vmul.f32 %v9676_v23, %v9002_v61  ;;  %v9741_v55 = vmul.f32 %v9677_v7, %v9226_v12  ;;  %v9228_v47 = vpop.f32.mrb[223].mxu1 }
 0xa04   :  { %v9771_v17 = vpack.c.bf16 %v9739_v52, %v9735_v1  ;;  %v9742_v40 = vmul.f32 %v9678_v45, %v9228_v47 }
 0xa05   :  { %v9772_v33 = vpack.c.bf16 %v9740_v39, %v9736_v13  ;;  %v9773_v2 = vpack.c.bf16 %v9741_v55, %v9737_v36 }
 0xa06   :  { %10683 = vmatpush1.bf16.msra.mxu0 %v13041_v26  ;;  %10909 = vmatpush1.bf16.msra.mxu1 %v13044_v20  ;;  %v9774_v59 = vpack.c.bf16 %v9742_v40, %v9738_v51 }
 0xa07   :  { %10684 = vmatprep.subr.bf16.mxu0 %v13049_v4  ;;  %10910 = vmatprep.subr.bf16.mxu1 %v13052_v28 }
 0xa08   :  { %10645 = vmatprep.mubr.bf16.mxu0 %v9772_v33  ;;  %10871 = vmatprep.mubr.bf16.mxu1 %v9772_v33 }
 0xa09   :  { %10646 = vmatmul.mubr.bf16.gmra.mrb[252].mxu0 %v9771_v17  ;;  %10872 = vmatmul.mubr.bf16.gmra.mrb[252].mxu1 %v9771_v17 }
 0xa0a   :  { %10685 = vmatpush1.bf16.msra.mxu0 %v13047_v63  ;;  %10911 = vmatpush1.bf16.msra.mxu1 %v13050_v49 }
 0xa0b   :  { %10688 = vmatprep.mubr.bf16.mxu0 %v18185_v14  ;;  %10914 = vmatprep.mubr.bf16.mxu1 %v18185_v14 }
 0xa0c   :  { %10686 = vmatprep.subr.bf16.mxu0 %v13055_v57  ;;  %10912 = vmatprep.subr.bf16.mxu1 %v13058_v38 }
 0xa0e   :  { %10687 = vmatpush1.bf16.msra.mxu0 %v13053_v27  ;;  %10913 = vmatpush1.bf16.msra.mxu1 %v13056_v22 }
 0xa11   :  { %10689 = vmatmul.mubr.bf16.vlgmr.msra.gmra.mrb[224].mxu0 %v19271_v9  ;;  %10915 = vmatmul.mubr.bf16.vlgmr.msra.gmra.mrb[224].mxu1 %v19271_v9 }
 0xa12   :  { %10698 = vmatprep.mubr.bf16.mxu0 %v18227_v34  ;;  %10924 = vmatprep.mubr.bf16.mxu1 %v18227_v34 }
 0xa19   :  { %10699 = vmatmul.mubr.bf16.gmra.mrb[228].mxu0 %v18217_v5  ;;  %10925 = vmatmul.mubr.bf16.gmra.mrb[228].mxu1 %v18217_v5 }
 0xa1a   :  { %10708 = vmatprep.mubr.bf16.mxu0 %v18287_v56  ;;  %10934 = vmatprep.mubr.bf16.mxu1 %v18287_v56 }
 0xa21   :  { %10709 = vmatmul.mubr.bf16.gmra.mrb[232].mxu0 %v18276_v37  ;;  %10935 = vmatmul.mubr.bf16.gmra.mrb[232].mxu1 %v18276_v37 }
 0xa22   :  { %10718 = vmatprep.mubr.bf16.mxu0 %v18333_v50  ;;  %10944 = vmatprep.mubr.bf16.mxu1 %v18333_v50 }
 0xa29   :  { %10719 = vmatmul.mubr.bf16.gmra.mrb[236].mxu0 %v18329_v16  ;;  %10945 = vmatmul.mubr.bf16.gmra.mrb[236].mxu1 %v18329_v16 }
 0xa2a   :  { %10728 = vmatprep.mubr.bf16.mxu0 %v18356_v41  ;;  %10954 = vmatprep.mubr.bf16.mxu1 %v18356_v41 }
 0xa31   :  { %10729 = vmatmul.mubr.bf16.gmra.mrb[240].mxu0 %v18352_v24  ;;  %10955 = vmatmul.mubr.bf16.gmra.mrb[240].mxu1 %v18352_v24 }
 0xa32   :  { %10738 = vmatprep.mubr.bf16.mxu0 %v18370_v62  ;;  %10964 = vmatprep.mubr.bf16.mxu1 %v18370_v62 }
 0xa39   :  { %10739 = vmatmul.mubr.bf16.gmra.mrb[244].mxu0 %v18367_v43  ;;  %10965 = vmatmul.mubr.bf16.gmra.mrb[244].mxu1 %v18367_v43 }
 0xa3a   :  { %10748 = vmatprep.mubr.bf16.mxu0 %v18382_v6  ;;  %10974 = vmatprep.mubr.bf16.mxu1 %v18382_v6 }
 0xa41   :  { %10749 = vmatmul.mubr.bf16.gmra.mrb[248].mxu0 %v18379_v8  ;;  %10975 = vmatmul.mubr.bf16.gmra.mrb[248].mxu1 %v18379_v8 }
 0xa42   :  { %10758 = vmatprep.mubr.bf16.mxu0 %v9774_v59  ;;  %10984 = vmatprep.mubr.bf16.mxu1 %v9774_v59 }
 0xa49   :  { %10759 = vmatmul.mubr.bf16.gmra.mrb[252].mxu0 %v9773_v2  ;;  %10985 = vmatmul.mubr.bf16.gmra.mrb[252].mxu1 %v9773_v2 }
 0xa4a   :  { %13874 = shalt.err (!%p13871_p8)
}
 0xa4b   :  { %s13875_s20 = scalar_lea.hbm %s18456_s8, 8192 }
 0xa4c   :  { %p13876_p9 = scmp.ne.s32.totalorder %s18456_s8, %s13875_s20  ;;  %p13879_p10 = scmp.lt.u32.totalorder %s13875_s20, %s18456_s8 }
 0xa4e   :  { %p13881_p11 = pnand %p13879_p10, %p13876_p9 }
 0xa50   :  { %13884 = shalt.err (!%p13881_p11)
}
 0xa51   :  { %11082 = dma.vmem_to_hbm [thread:$0]  %s11077_s14, 8192, %s18456_s8, [#allocation13], %s13919_s17, %s13919_s17, %s13920_s18  }
 0xa52   :  { %s13928_s8 = smov [#allocation11]  }
 0xa53   :  { %s11064_s25 = sshll.u32 %s13928_s8, 4  ;;  %s11065_s25 = int_to_ptr.vmem [resolvable:$true] %s11064_s25 }
 0xa54   :  { %s13885_s26 = scalar_lea.vmem %s11065_s25, 8192  ;;  %p13890_p13 = scmp.lt.s32.totalorder %s11065_s25, %s11065_s25 }
 0xa55   :  { %p13886_p12 = scmp.ne.s32.totalorder %s11065_s25, %s13885_s26  ;;  %p13891_p0 = scmp.lt.s32.totalorder %s13885_s26, %s13885_s26 }
 0xa57   :  { %p13892_p1 = por %p13891_p0, %p13890_p13 }
 0xa59   :  { %p13893_p2 = pnand %p13892_p1, %p13886_p12 }
 0xae4   :  { %v10690_v14 = vpop.f32.mrb[224].mxu0  ;;  %v10916_v5 = vpop.f32.mrb[224].mxu1 }
 0xae5   :  { %10995 = vst [vmem:[#allocation11] sm:$0xff] %v10690_v14  ;;  %10997 = vst [vmem:[#allocation11 + $0x10] sm:$0xff] %v10916_v5  ;;  %v10692_v34 = vpop.f32.mrb[225].mxu0  ;;  %v10918_v37 = vpop.f32.mrb[225].mxu1 }
 0xae6   :  { %10996 = vst [vmem:[#allocation11 + $0x8] sm:$0xff] %v10692_v34  ;;  %10998 = vst [vmem:[#allocation11 + $0x18] sm:$0xff] %v10918_v37  ;;  %v10694_v56 = vpop.f32.mrb[226].mxu0  ;;  %v10920_v16 = vpop.f32.mrb[226].mxu1 }
 0xae7   :  { %10999 = vst [vmem:[#allocation11 + $0x20] sm:$0xff] %v10694_v56  ;;  %11001 = vst [vmem:[#allocation11 + $0x30] sm:$0xff] %v10920_v16  ;;  %v10696_v50 = vpop.f32.mrb[227].mxu0  ;;  %v10922_v24 = vpop.f32.mrb[227].mxu1 }
 0xae8   :  { %11000 = vst [vmem:[#allocation11 + $0x28] sm:$0xff] %v10696_v50  ;;  %11002 = vst [vmem:[#allocation11 + $0x38] sm:$0xff] %v10922_v24 }
 0xaec   :  { %v10700_v41 = vpop.f32.mrb[228].mxu0  ;;  %v10926_v43 = vpop.f32.mrb[228].mxu1 }
 0xaed   :  { %11003 = vst [vmem:[#allocation11 + $0x40] sm:$0xff] %v10700_v41  ;;  %11005 = vst [vmem:[#allocation11 + $0x50] sm:$0xff] %v10926_v43  ;;  %v10702_v62 = vpop.f32.mrb[229].mxu0  ;;  %v10928_v3 = vpop.f32.mrb[229].mxu1 }
 0xaee   :  { %11004 = vst [vmem:[#allocation11 + $0x48] sm:$0xff] %v10702_v62  ;;  %11006 = vst [vmem:[#allocation11 + $0x58] sm:$0xff] %v10928_v3  ;;  %v10704_v48 = vpop.f32.mrb[230].mxu0  ;;  %v10930_v15 = vpop.f32.mrb[230].mxu1 }
 0xaef   :  { %11007 = vst [vmem:[#allocation11 + $0x60] sm:$0xff] %v10704_v48  ;;  %11009 = vst [vmem:[#allocation11 + $0x70] sm:$0xff] %v10930_v15  ;;  %v10706_v29 = vpop.f32.mrb[231].mxu0  ;;  %v10932_v32 = vpop.f32.mrb[231].mxu1 }
 0xaf0   :  { %11008 = vst [vmem:[#allocation11 + $0x68] sm:$0xff] %v10706_v29  ;;  %11010 = vst [vmem:[#allocation11 + $0x78] sm:$0xff] %v10932_v32 }
 0xaf4   :  { %v10710_v60 = vpop.f32.mrb[232].mxu0  ;;  %v10936_v53 = vpop.f32.mrb[232].mxu1 }
 0xaf5   :  { %11011 = vst [vmem:[#allocation11 + $0x80] sm:$0xff] %v10710_v60  ;;  %11013 = vst [vmem:[#allocation11 + $0x90] sm:$0xff] %v10936_v53  ;;  %v10712_v8 = vpop.f32.mrb[233].mxu0  ;;  %v10938_v44 = vpop.f32.mrb[233].mxu1 }
 0xaf6   :  { %11012 = vst [vmem:[#allocation11 + $0x88] sm:$0xff] %v10712_v8  ;;  %11014 = vst [vmem:[#allocation11 + $0x98] sm:$0xff] %v10938_v44  ;;  %v10714_v30 = vpop.f32.mrb[234].mxu0  ;;  %v10940_v10 = vpop.f32.mrb[234].mxu1 }
 0xaf7   :  { %11015 = vst [vmem:[#allocation11 + $0xa0] sm:$0xff] %v10714_v30  ;;  %11017 = vst [vmem:[#allocation11 + $0xb0] sm:$0xff] %v10940_v10  ;;  %v10716_v35 = vpop.f32.mrb[235].mxu0  ;;  %v10942_v31 = vpop.f32.mrb[235].mxu1 }
 0xaf8   :  { %11016 = vst [vmem:[#allocation11 + $0xa8] sm:$0xff] %v10716_v35  ;;  %11018 = vst [vmem:[#allocation11 + $0xb8] sm:$0xff] %v10942_v31 }
 0xafc   :  { %v10720_v6 = vpop.f32.mrb[236].mxu0  ;;  %v10946_v18 = vpop.f32.mrb[236].mxu1 }
 0xafd   :  { %11019 = vst [vmem:[#allocation11 + $0xc0] sm:$0xff] %v10720_v6  ;;  %11021 = vst [vmem:[#allocation11 + $0xd0] sm:$0xff] %v10946_v18  ;;  %v10722_v46 = vpop.f32.mrb[237].mxu0  ;;  %v10948_v19 = vpop.f32.mrb[237].mxu1 }
 0xafe   :  { %11020 = vst [vmem:[#allocation11 + $0xc8] sm:$0xff] %v10722_v46  ;;  %11022 = vst [vmem:[#allocation11 + $0xd8] sm:$0xff] %v10948_v19  ;;  %v10724_v25 = vpop.f32.mrb[238].mxu0  ;;  %v10950_v42 = vpop.f32.mrb[238].mxu1 }
 0xaff   :  { %11023 = vst [vmem:[#allocation11 + $0xe0] sm:$0xff] %v10724_v25  ;;  %11025 = vst [vmem:[#allocation11 + $0xf0] sm:$0xff] %v10950_v42  ;;  %v10726_v1 = vpop.f32.mrb[239].mxu0  ;;  %v10952_v21 = vpop.f32.mrb[239].mxu1 }
 0xb00   :  { %11024 = vst [vmem:[#allocation11 + $0xe8] sm:$0xff] %v10726_v1  ;;  %11026 = vst [vmem:[#allocation11 + $0xf8] sm:$0xff] %v10952_v21 }
 0xb04   :  { %v10730_v58 = vpop.f32.mrb[240].mxu0  ;;  %v10956_v23 = vpop.f32.mrb[240].mxu1 }
 0xb05   :  { %11027 = vst [vmem:[#allocation11 + $0x100] sm:$0xff] %v10730_v58  ;;  %11029 = vst [vmem:[#allocation11 + $0x110] sm:$0xff] %v10956_v23  ;;  %v10732_v54 = vpop.f32.mrb[241].mxu0  ;;  %v10958_v13 = vpop.f32.mrb[241].mxu1 }
 0xb06   :  { %11028 = vst [vmem:[#allocation11 + $0x108] sm:$0xff] %v10732_v54  ;;  %11030 = vst [vmem:[#allocation11 + $0x118] sm:$0xff] %v10958_v13  ;;  %v10734_v11 = vpop.f32.mrb[242].mxu0  ;;  %v10960_v26 = vpop.f32.mrb[242].mxu1 }
 0xb07   :  { %11031 = vst [vmem:[#allocation11 + $0x120] sm:$0xff] %v10734_v11  ;;  %11033 = vst [vmem:[#allocation11 + $0x130] sm:$0xff] %v10960_v26  ;;  %v10736_v20 = vpop.f32.mrb[243].mxu0  ;;  %v10962_v7 = vpop.f32.mrb[243].mxu1 }
 0xb08   :  { %11032 = vst [vmem:[#allocation11 + $0x128] sm:$0xff] %v10736_v20  ;;  %11034 = vst [vmem:[#allocation11 + $0x138] sm:$0xff] %v10962_v7 }
 0xb0c   :  { %v10740_v36 = vpop.f32.mrb[244].mxu0  ;;  %v10966_v0 = vpop.f32.mrb[244].mxu1 }
 0xb0d   :  { %11035 = vst [vmem:[#allocation11 + $0x140] sm:$0xff] %v10740_v36  ;;  %11037 = vst [vmem:[#allocation11 + $0x150] sm:$0xff] %v10966_v0  ;;  %v10742_v52 = vpop.f32.mrb[245].mxu0  ;;  %v10968_v61 = vpop.f32.mrb[245].mxu1 }
 0xb0e   :  { %11036 = vst [vmem:[#allocation11 + $0x148] sm:$0xff] %v10742_v52  ;;  %11038 = vst [vmem:[#allocation11 + $0x158] sm:$0xff] %v10968_v61  ;;  %v10744_v4 = vpop.f32.mrb[246].mxu0  ;;  %v10970_v28 = vpop.f32.mrb[246].mxu1 }
 0xb0f   :  { %11039 = vst [vmem:[#allocation11 + $0x160] sm:$0xff] %v10744_v4  ;;  %11041 = vst [vmem:[#allocation11 + $0x170] sm:$0xff] %v10970_v28  ;;  %v10746_v45 = vpop.f32.mrb[247].mxu0  ;;  %v10972_v51 = vpop.f32.mrb[247].mxu1 }
 0xb10   :  { %11040 = vst [vmem:[#allocation11 + $0x168] sm:$0xff] %v10746_v45  ;;  %11042 = vst [vmem:[#allocation11 + $0x178] sm:$0xff] %v10972_v51 }
 0xb14   :  { %v10750_v12 = vpop.f32.mrb[248].mxu0  ;;  %v10976_v39 = vpop.f32.mrb[248].mxu1 }
 0xb15   :  { %11043 = vst [vmem:[#allocation11 + $0x180] sm:$0xff] %v10750_v12  ;;  %11045 = vst [vmem:[#allocation11 + $0x190] sm:$0xff] %v10976_v39  ;;  %v10752_v17 = vpop.f32.mrb[249].mxu0  ;;  %v10978_v55 = vpop.f32.mrb[249].mxu1 }
 0xb16   :  { %11044 = vst [vmem:[#allocation11 + $0x188] sm:$0xff] %v10752_v17  ;;  %11046 = vst [vmem:[#allocation11 + $0x198] sm:$0xff] %v10978_v55  ;;  %v10754_v47 = vpop.f32.mrb[250].mxu0  ;;  %v10980_v33 = vpop.f32.mrb[250].mxu1 }
 0xb17   :  { %11047 = vst [vmem:[#allocation11 + $0x1a0] sm:$0xff] %v10754_v47  ;;  %11049 = vst [vmem:[#allocation11 + $0x1b0] sm:$0xff] %v10980_v33  ;;  %v10756_v40 = vpop.f32.mrb[251].mxu0  ;;  %v10982_v63 = vpop.f32.mrb[251].mxu1 }
 0xb18   :  { %11048 = vst [vmem:[#allocation11 + $0x1a8] sm:$0xff] %v10756_v40  ;;  %11050 = vst [vmem:[#allocation11 + $0x1b8] sm:$0xff] %v10982_v63 }
 0xb1c   :  { %v10760_v49 = vpop.f32.mrb[252].mxu0  ;;  %v10986_v2 = vpop.f32.mrb[252].mxu1 }
 0xb1d   :  { %11051 = vst [vmem:[#allocation11 + $0x1c0] sm:$0xff] %v10760_v49  ;;  %11053 = vst [vmem:[#allocation11 + $0x1d0] sm:$0xff] %v10986_v2  ;;  %v10762_v59 = vpop.f32.mrb[253].mxu0  ;;  %v10988_v57 = vpop.f32.mrb[253].mxu1 }
 0xb1e   :  { %11052 = vst [vmem:[#allocation11 + $0x1c8] sm:$0xff] %v10762_v59  ;;  %11054 = vst [vmem:[#allocation11 + $0x1d8] sm:$0xff] %v10988_v57  ;;  %v10764_v38 = vpop.f32.mrb[254].mxu0  ;;  %v10990_v27 = vpop.f32.mrb[254].mxu1 }
 0xb1f   :  { %11055 = vst [vmem:[#allocation11 + $0x1e0] sm:$0xff] %v10764_v38  ;;  %11057 = vst [vmem:[#allocation11 + $0x1f0] sm:$0xff] %v10990_v27  ;;  %v10766_v22 = vpop.f32.mrb[255].mxu0  ;;  %v10992_v9 = vpop.f32.mrb[255].mxu1 }
 0xb20   :  { %11056 = vst [vmem:[#allocation11 + $0x1e8] sm:$0xff] %v10766_v22  ;;  %11058 = vst [vmem:[#allocation11 + $0x1f8] sm:$0xff] %v10992_v9 }
 0xb21   :  { %13896 = shalt.err (!%p13893_p2)
}
 0xb22   :  { %s13897_s3 = scalar_lea.hbm %s18455_s7, 8192 }
 0xb23   :  { %p13898_p3 = scmp.ne.s32.totalorder %s18455_s7, %s13897_s3  ;;  %p13901_p4 = scmp.lt.u32.totalorder %s13897_s3, %s18455_s7 }
 0xb25   :  { %p13903_p5 = pnand %p13901_p4, %p13898_p3 }
 0xb27   :  { %13906 = shalt.err (!%p13903_p5)
}
 0xb28   :  { %11070 = dma.vmem_to_hbm [thread:$0]  %s11065_s25, 8192, %s18455_s7, [#allocation5], %s13919_s17, %s13919_s17, %s13920_s18  }
 0xb29   :  { %13913 = dma.done.wait [#allocation5], 8192  }
 0xb2a   :  { %13914 = vsyncadd [#allocation5], 4294959104 }
 0xb2b   :  { %13915 = dma.done.wait [#allocation13], 8192  }
 0xb2c   :  { %13916 = vsyncadd [#allocation13], 4294959104 }
 0xb2d   :  { %11089 = vsyncpa [#allocation4], 1 }
 0xb2e   :  { %11090 = vsyncpa [#allocation7], 1 }
 0xb2f   :  { %11091 = vsyncpa [#allocation10], 1 }
 0xb30   :  { %11092 = vsyncpa [#allocation5], 1 }
 0xb31   :  { %11093 = vsyncpa [#allocation13], 1 }

</bundles_post_ra>
